<compile_context>
chip_gen: v7x
topology: tpu7x:2x2x1
jax: 0.10.0
libtpu: 0.0.40
codegen_flags: <defaults>
</compile_context>

<pallas_src>
import functools

import jax
import jax.numpy as jnp
from jax import lax
from jax.experimental import pallas as pl
from jax.experimental.pallas import tpu as pltpu


def _round_up(x, m):
    return (x + m - 1) // m * m


# --------------------------------------------------------------------------
# Pallas tiled matmul kernels (hot path for every conv)
# --------------------------------------------------------------------------
def _gemm_epilogue(acc, bias, res, relu, res_after_relu):
    """acc (f32) + bias, optional residual add (before or after ReLU)."""
    r = acc + bias
    if res is not None and not res_after_relu:
        r = r + res.astype(jnp.float32)
    if relu:
        r = jnp.maximum(r, 0.0)
    if res is not None and res_after_relu:
        r = r + res.astype(jnp.float32)
    return r


def _make_matmul_kernel(multi_k, has_res, relu, res_after_relu):
    if multi_k:
        def kernel(a_ref, b_ref, bias_ref, *rest):
            if has_res:
                res_ref, o_ref, acc_ref = rest
            else:
                o_ref, acc_ref = rest
                res_ref = None

            @pl.when(pl.program_id(2) == 0)
            def _init():
                acc_ref[...] = jnp.zeros_like(acc_ref)

            acc_ref[...] += jnp.dot(a_ref[...], b_ref[...],
                                    preferred_element_type=jnp.float32)

            @pl.when(pl.program_id(2) == pl.num_programs(2) - 1)
            def _fin():
                res = None if res_ref is None else res_ref[...]
                r = _gemm_epilogue(acc_ref[...], bias_ref[...], res,
                                   relu, res_after_relu)
                o_ref[...] = r.astype(o_ref.dtype)
        return kernel
    else:
        def kernel(a_ref, b_ref, bias_ref, *rest):
            if has_res:
                res_ref, o_ref = rest
            else:
                (o_ref,) = rest
                res_ref = None
            acc = jnp.dot(a_ref[...], b_ref[...],
                          preferred_element_type=jnp.float32)
            res = None if res_ref is None else res_ref[...]
            r = _gemm_epilogue(acc, bias_ref[...], res, relu, res_after_relu)
            o_ref[...] = r.astype(o_ref.dtype)
        return kernel


def pallas_matmul(a, b, bias=None, relu=False, residual=None,
                  residual_after_relu=False, out_dtype=jnp.bfloat16):
    """(M,K) @ (K,N) + bias [+ residual] with fused ReLU on the MXU.

    Operands are bf16 (no-op cast if they already are), accumulation and the
    epilogue are f32, output dtype is configurable (bf16 default so the next
    conv reads half the bytes).  N / K use full-extent blocks when small (no
    padding at the toy channel widths), M is rounded to the bf16 sublane
    multiple (16) only.
    """
    M, K = a.shape
    K2, N = b.shape
    assert K == K2
    if a.dtype != jnp.bfloat16:
        a = a.astype(jnp.bfloat16)
    if b.dtype != jnp.bfloat16:
        b = b.astype(jnp.bfloat16)
    if bias is None:
        bias = jnp.zeros((N,), jnp.float32)
    bias = bias.astype(jnp.float32).reshape(1, N)

    # N tiling: 256-wide tiles when aligned (fills v6e/v7x MXU; v5e handles it
    # as 2 native 128 columns), else 128, else a single full-extent block.
    if N % 256 == 0:
        tn = 256
    elif N % 128 == 0:
        tn = 128
    else:
        tn = N

    # K tiling: a single full-K block unless K is very large.
    if K <= 2048:
        tk, Kp = K, K
    else:
        tk = 512
        Kp = _round_up(K, tk)
        a = jnp.pad(a, ((0, 0), (0, Kp - K)))
        b = jnp.pad(b, ((0, Kp - K), (0, 0)))

    # M tiling: bf16 packs 16 sublanes per vreg -> round to 16, cap at 512
    # (conservative for all of v5e/v6e/v7x scoped-VMEM budgets).
    tm = min(512, _round_up(M, 16))
    Mp = _round_up(M, tm)
    if Mp != M:
        a = jnp.pad(a, ((0, Mp - M), (0, 0)))

    has_res = residual is not None
    if has_res:
        if residual.dtype != jnp.bfloat16:
            residual = residual.astype(jnp.bfloat16)
        if Mp != M:
            residual = jnp.pad(residual, ((0, Mp - M), (0, 0)))

    grid_m, grid_n, grid_k = Mp // tm, N // tn, Kp // tk

    # Explicit VMEM budget (double-buffered tiles + accumulator), with
    # headroom but capped below v7x's 64 MiB physical VMEM.
    out_bytes = jnp.dtype(out_dtype).itemsize
    est = (2 * (tm * tk * 2 + tk * tn * 2 + tn * 4)
           + 2 * tm * tn * out_bytes
           + (tm * tn * 4 if grid_k > 1 else 0)
           + (2 * tm * tn * 2 if has_res else 0))
    vmem_limit = int(min(max(2 * est, 32 * 1024 * 1024), 56 * 1024 * 1024))

    kernel = _make_matmul_kernel(grid_k > 1, has_res, relu, residual_after_relu)
    operands = [a, b, bias] + ([residual] if has_res else [])

    if grid_k == 1:
        in_specs = [pl.BlockSpec((tm, tk), lambda i, j: (i, 0)),
                    pl.BlockSpec((tk, tn), lambda i, j: (0, j)),
                    pl.BlockSpec((1, tn), lambda i, j: (0, j))]
        if has_res:
            in_specs.append(pl.BlockSpec((tm, tn), lambda i, j: (i, j)))
        out = pl.pallas_call(
            kernel,
            out_shape=jax.ShapeDtypeStruct((Mp, N), out_dtype),
            grid_spec=pltpu.PrefetchScalarGridSpec(
                num_scalar_prefetch=0,
                grid=(grid_m, grid_n),
                in_specs=in_specs,
                out_specs=pl.BlockSpec((tm, tn), lambda i, j: (i, j)),
            ),
            compiler_params=pltpu.CompilerParams(
                dimension_semantics=("parallel", "parallel"),
                vmem_limit_bytes=vmem_limit),
        )(*operands)
    else:
        in_specs = [pl.BlockSpec((tm, tk), lambda i, j, k: (i, k)),
                    pl.BlockSpec((tk, tn), lambda i, j, k: (k, j)),
                    pl.BlockSpec((1, tn), lambda i, j, k: (0, j))]
        if has_res:
            in_specs.append(pl.BlockSpec((tm, tn), lambda i, j, k: (i, j)))
        out = pl.pallas_call(
            kernel,
            out_shape=jax.ShapeDtypeStruct((Mp, N), out_dtype),
            grid_spec=pltpu.PrefetchScalarGridSpec(
                num_scalar_prefetch=0,
                grid=(grid_m, grid_n, grid_k),
                in_specs=in_specs,
                out_specs=pl.BlockSpec((tm, tn), lambda i, j, k: (i, j)),
                scratch_shapes=[pltpu.VMEM((tm, tn), jnp.float32)],
            ),
            compiler_params=pltpu.CompilerParams(
                dimension_semantics=("parallel", "parallel", "arbitrary"),
                vmem_limit_bytes=vmem_limit),
        )(*operands)

    if Mp != M:
        out = out[:M]
    return out


# --------------------------------------------------------------------------
# Conv (GEMM), pooling, bilinear resize (glue)
# --------------------------------------------------------------------------
def conv(x, p, stride=1, padding=0, dilation=1, relu=False,
         residual=None, residual_after_relu=False, out_dtype=jnp.bfloat16):
    """x: (N,H,W,Cin) NHWC bf16.  p['w']: (KH,KW,Cin,Cout) bf16 (BN folded),
    p['b']: (Cout,) f32.  Optional residual (N,OH,OW,Cout) fused in epilogue."""
    w, bias = p['w'], p['b']
    KH, KW, Cin, Cout = w.shape
    N, H, W, C = x.shape
    assert C == Cin
    OH = (H + 2 * padding - dilation * (KH - 1) - 1) // stride + 1
    OW = (W + 2 * padding - dilation * (KW - 1) - 1) // stride + 1

    if x.dtype != jnp.bfloat16:
        x = x.astype(jnp.bfloat16)

    if KH == 1 and KW == 1 and padding == 0:
        xs = x if stride == 1 else x[:, ::stride, ::stride, :]
        col = xs.reshape(N * OH * OW, Cin)
    else:
        xp = jnp.pad(x, ((0, 0), (padding, padding), (padding, padding), (0, 0))) \
            if padding > 0 else x
        # TODO(synk): fuse the KH*KW taps into the GEMM reduction grid axis
        # (pl.Element-offset LHS blocks) instead of materializing im2col; at
        # toy channel widths the bf16 im2col buffer is tiny so it stays here.
        cols = []
        for i in range(KH):
            for j in range(KW):
                sl = xp[:, i * dilation:i * dilation + (OH - 1) * stride + 1:stride,
                           j * dilation:j * dilation + (OW - 1) * stride + 1:stride, :]
                cols.append(sl)
        col = jnp.concatenate(cols, axis=-1).reshape(N * OH * OW, KH * KW * Cin)

    res2d = None
    if residual is not None:
        res2d = residual.reshape(N * OH * OW, Cout)

    out = pallas_matmul(col, w.reshape(KH * KW * Cin, Cout), bias=bias,
                        relu=relu, residual=res2d,
                        residual_after_relu=residual_after_relu,
                        out_dtype=out_dtype)
    return out.reshape(N, OH, OW, Cout)


def maxpool_3x3_s2(x):
    return jax.lax.reduce_window(
        x, jnp.array(-jnp.inf, x.dtype), jax.lax.max,
        window_dimensions=(1, 3, 3, 1),
        window_strides=(1, 2, 2, 1),
        padding=((0, 0), (1, 1), (1, 1), (0, 0)))


def _bilinear_weights(out_n, in_n):
    if out_n == 1 or in_n == 1:
        idx = jnp.zeros((out_n,), jnp.float32)
    else:
        idx = jnp.arange(out_n, dtype=jnp.float32) * ((in_n - 1) / (out_n - 1))
    lo = jnp.floor(idx).astype(jnp.int32)
    hi = jnp.minimum(lo + 1, in_n - 1)
    frac = idx - lo.astype(jnp.float32)
    rows = jnp.arange(out_n)
    R = jnp.zeros((out_n, in_n), jnp.float32)
    R = R.at[rows, lo].add(1.0 - frac)
    R = R.at[rows, hi].add(frac)
    return R


def bilinear_resize_ac(x, out_h, out_w):
    """F.interpolate(mode='bilinear', align_corners=True) on NHWC (glue)."""
    _, H, W, _ = x.shape
    Rh = _bilinear_weights(out_h, H)
    Rw = _bilinear_weights(out_w, W)
    y = jnp.einsum('oh,nhwc->nowc', Rh, x.astype(jnp.float32))
    y = jnp.einsum('pw,nowc->nopc', Rw, y)
    return y.astype(x.dtype)


# --------------------------------------------------------------------------
# Parameter initialization (deterministic He-style; BN folded + bf16 at init)
# --------------------------------------------------------------------------
class KeyGen:
    def __init__(self, key):
        self.key = key

    def __call__(self):
        self.key, k = jax.random.split(self.key)
        return k


def _he(key, kh, kw, cin, cout):
    return jax.random.normal(key, (kh, kw, cin, cout), jnp.float32) * \
        jnp.sqrt(2.0 / (kh * kw * cin))


def init_conv_bn(key, kh, kw, cin, cout):
    """Conv(bias=False) + eval-mode BN, folded once into GEMM-ready weights."""
    w = _he(key, kh, kw, cin, cout)
    gamma = jnp.ones((cout,), jnp.float32)
    beta = jnp.zeros((cout,), jnp.float32)
    mean = jnp.zeros((cout,), jnp.float32)
    var = jnp.ones((cout,), jnp.float32)
    scale = gamma / jnp.sqrt(var + 1e-5)
    w_f = (w * scale[None, None, None, :]).astype(jnp.bfloat16)
    b_f = (beta - mean * scale).astype(jnp.float32)
    return dict(w=w_f, b=b_f)


def init_conv(key, kh, kw, cin, cout):
    w = _he(key, kh, kw, cin, cout).astype(jnp.bfloat16)
    return dict(w=w, b=jnp.zeros((cout,), jnp.float32))


def make_bottleneck(kg, cin, mid, cout, has_down):
    p = dict(conv1=init_conv_bn(kg(), 1, 1, cin, mid),
             conv2=init_conv_bn(kg(), 3, 3, mid, mid),
             conv3=init_conv_bn(kg(), 1, 1, mid, cout))
    if has_down:
        p['down'] = init_conv_bn(kg(), 1, 1, cin, cout)
    return p


def make_layer(kg, cin, mid, cout, blocks):
    layer = [make_bottleneck(kg, cin, mid, cout, True)]
    for _ in range(blocks - 1):
        layer.append(make_bottleneck(kg, cout, mid, cout, False))
    return layer


def init_mutualnet(kg, dim, nclusters):
    s = jnp.sqrt(2.0 / dim)

    def dd(key):   # (dim, dim) bf16, MXU-ready
        return (jax.random.normal(key, (dim, dim), jnp.float32) /
                jnp.sqrt(float(dim))).astype(jnp.bfloat16)

    return dict(
        e_proj_w=(jax.random.normal(kg(), (dim, nclusters), jnp.float32) * s
                  ).astype(jnp.bfloat16),
        e_proj_b=jnp.zeros((1, nclusters), jnp.float32),
        r_proj_w=(jax.random.normal(kg(), (dim, nclusters), jnp.float32) * s
                  ).astype(jnp.bfloat16),
        r_proj_b=jnp.zeros((1, nclusters), jnp.float32),
        e_gcn_w=dd(kg()),
        r_gcn_w=dd(kg()),
        wq=dd(kg()),
        wk=dd(kg()),
        e_reproj=init_conv_bn(kg(), 1, 1, dim, dim),
        r_reproj=init_conv_bn(kg(), 1, 1, dim, dim),
        e_pred=init_conv(kg(), 1, 1, dim, 1),
        r_pred=init_conv(kg(), 1, 1, dim, 1),
    )


def init_params(key, stage=1):
    # ResNet-50 structure (3,4,6,3 bottlenecks, PSPNet deep stem), channel
    # widths divided by 16 to keep the toy run small.  dim = 512/16 = 32.
    kg = KeyGen(key)
    WD = 16
    c64, c128 = 64 // WD, 128 // WD
    c256, c512, c1024, c2048 = 256 // WD, 512 // WD, 1024 // WD, 2048 // WD
    dim = 512 // WD
    nclusters = 8   # scaled from 32
    params = dict(
        stem=dict(conv1=init_conv_bn(kg(), 3, 3, 3, c64),
                  conv2=init_conv_bn(kg(), 3, 3, c64, c64),
                  conv3=init_conv_bn(kg(), 3, 3, c64, c128)),
        layer1=make_layer(kg, c128, c64, c256, 3),
        layer2=make_layer(kg, c256, c128, c512, 4),
        layer3=make_layer(kg, c512, c256, c1024, 6),
        layer4=make_layer(kg, c1024, c512, c2048, 3),
        region_conv=init_conv_bn(kg(), 3, 3, c2048, dim),   # pred[0:4]
        edge_cat=dict(conv1=init_conv_bn(kg(), 3, 3, c256, c128),
                      conv2=init_conv_bn(kg(), 3, 3, c512, c128),
                      conv3=init_conv_bn(kg(), 3, 3, c1024, c128),
                      conv4=init_conv_bn(kg(), 3, 3, c2048, c128),
                      conv5=init_conv_bn(kg(), 3, 3, 4 * c128, dim)),
        mutualnets=[init_mutualnet(kg, dim, nclusters) for _ in range(stage)],
    )
    return params


# --------------------------------------------------------------------------
# Fused mutual-graph-learning head (one Pallas kernel, grid over batch)
# --------------------------------------------------------------------------
def _mm(a, b):
    return jnp.dot(a, b, preferred_element_type=jnp.float32)


def _mm_tA(a, b):   # a.T @ b
    return lax.dot_general(a, b, (((0,), (0,)), ((), ())),
                           preferred_element_type=jnp.float32)


def _mm_tB(a, b):   # a @ b.T
    return lax.dot_general(a, b, (((1,), (1,)), ((), ())),
                           preferred_element_type=jnp.float32)


def _graph_head_kernel(xe_ref, xr_ref, epw_ref, epb_ref, rpw_ref, rpb_ref,
                       egw_ref, rgw_ref, wq_ref, wk_ref, eo_ref, ro_ref):
    xe = xe_ref[0]                      # (HW, D) bf16
    xr = xr_ref[0]                      # (HW, D) bf16
    D = xe.shape[-1]
    att_scale = 1.0 / (float(D) ** 0.5)

    def softmax_last(s):                # f32 in / f32 out, EUP reciprocal
        s = s - jnp.max(s, axis=-1, keepdims=True)
        e = jnp.exp(s)
        return e * pl.reciprocal(jnp.sum(e, axis=-1, keepdims=True), approx=True)

    def project(x, w_ref, b_ref):
        assign = softmax_last(_mm(x, w_ref[...]) + b_ref[...])        # (HW,K) f32
        inv = pl.reciprocal(jnp.sum(assign, axis=0, keepdims=True) + 1e-6,
                            approx=True)
        a_n = (assign * inv).astype(jnp.bfloat16)
        nodes = _mm_tA(a_n, x)                                        # (K,D) f32
        return nodes, assign

    def gcn(n, w_ref):
        nb = n.astype(jnp.bfloat16)
        adj = softmax_last(_mm_tB(nb, nb))                            # (K,K) f32
        m = _mm(_mm(adj.astype(jnp.bfloat16), nb).astype(jnp.bfloat16),
                w_ref[...])
        return jnp.maximum(m + n, 0.0)

    def cross(qn, kn):
        qb = qn.astype(jnp.bfloat16)
        kb = kn.astype(jnp.bfloat16)
        q = _mm(qb, wq_ref[...])
        k = _mm(kb, wk_ref[...])
        att = softmax_last(_mm_tB(q.astype(jnp.bfloat16),
                                  k.astype(jnp.bfloat16)) * att_scale)
        return qn + _mm(att.astype(jnp.bfloat16), kb)

    e_nodes, e_assign = project(xe, epw_ref, epb_ref)
    r_nodes, r_assign = project(xr, rpw_ref, rpb_ref)
    e_nodes = gcn(e_nodes, egw_ref)
    r_nodes = gcn(r_nodes, rgw_ref)
    e2 = cross(e_nodes, r_nodes)        # edge attends to region graph
    r2 = cross(r_nodes, e_nodes)        # region attends to edge graph
    eo_ref[0] = _mm(e_assign.astype(jnp.bfloat16),
                    e2.astype(jnp.bfloat16)).astype(eo_ref.dtype)
    ro_ref[0] = _mm(r_assign.astype(jnp.bfloat16),
                    r2.astype(jnp.bfloat16)).astype(ro_ref.dtype)


def graph_head(p, coee_x, cod_x):
    B, H, W, D = cod_x.shape
    HW = H * W
    K = p['e_proj_w'].shape[1]
    xe = coee_x.reshape(B, HW, D).astype(jnp.bfloat16)
    xr = cod_x.reshape(B, HW, D).astype(jnp.bfloat16)

    spec_x = pl.BlockSpec((1, HW, D), lambda b: (b, 0, 0))
    spec_pw = pl.BlockSpec((D, K), lambda b: (0, 0))
    spec_pb = pl.BlockSpec((1, K), lambda b: (0, 0))
    spec_dd = pl.BlockSpec((D, D), lambda b: (0, 0))

    # TODO(synk): at production sizes (HW ~ 3600, D = 512) tile HW with an
    # inner grid axis and keep (K,D) node accumulators in scratch so the
    # working set fits v7x's 64 MiB VMEM; at toy sizes whole-image blocks fit.
    blk = HW * D * 2
    est = 2 * 2 * blk * 2 + 2 * 2 * blk + 4 * D * D * 2 + 2 * (D * K * 2 + K * 4)
    vmem_limit = int(min(max(4 * est, 32 * 1024 * 1024), 56 * 1024 * 1024))

    e_out, r_out = pl.pallas_call(
        _graph_head_kernel,
        out_shape=(jax.ShapeDtypeStruct((B, HW, D), jnp.bfloat16),
                   jax.ShapeDtypeStruct((B, HW, D), jnp.bfloat16)),
        grid_spec=pltpu.PrefetchScalarGridSpec(
            num_scalar_prefetch=0,
            grid=(B,),
            in_specs=[spec_x, spec_x, spec_pw, spec_pb, spec_pw, spec_pb,
                      spec_dd, spec_dd, spec_dd, spec_dd],
            out_specs=(spec_x, spec_x),
        ),
        compiler_params=pltpu.CompilerParams(
            dimension_semantics=("parallel",),
            vmem_limit_bytes=vmem_limit),
    )(xe, xr, p['e_proj_w'], p['e_proj_b'], p['r_proj_w'], p['r_proj_b'],
      p['e_gcn_w'], p['r_gcn_w'], p['wq'], p['wk'])
    return e_out.reshape(B, H, W, D), r_out.reshape(B, H, W, D)


# --------------------------------------------------------------------------
# Forward pieces
# --------------------------------------------------------------------------
def bottleneck_fwd(x, p, stride=1, dilation=1):
    out = conv(x, p['conv1'], relu=True)
    out = conv(out, p['conv2'], stride=stride, padding=dilation,
               dilation=dilation, relu=True)
    if 'down' in p:
        identity = conv(x, p['down'], stride=stride, relu=False)
    else:
        identity = x
    # relu(conv3(out) + identity), residual fused into the GEMM epilogue.
    return conv(out, p['conv3'], relu=True,
                residual=identity, residual_after_relu=False)


def layer_fwd(x, layer, stride=1, dilation=1):
    x = bottleneck_fwd(x, layer[0], stride=stride, dilation=dilation)
    for p in layer[1:]:
        x = bottleneck_fwd(x, p, stride=1, dilation=dilation)
    return x


def concatnet_fwd(p, x1, x2, x3, x4, size):
    h, w = size
    y1 = bilinear_resize_ac(conv(x1, p['conv1'], padding=1, relu=True), h, w)
    y2 = bilinear_resize_ac(conv(x2, p['conv2'], padding=1, relu=True), h, w)
    y3 = bilinear_resize_ac(conv(x3, p['conv3'], padding=1, relu=True), h, w)
    y4 = bilinear_resize_ac(conv(x4, p['conv4'], padding=1, relu=True), h, w)
    y = jnp.concatenate([y1, y2, y3, y4], axis=-1)
    return conv(y, p['conv5'], padding=1, relu=True)


def mutualnet_fwd(p, coee_x, cod_x):
    # Graph projection + GCN + mutual cross-graph interaction + reprojection,
    # fused into a single batched Pallas kernel.
    n_coee_raw, n_cod_raw = graph_head(p, coee_x, cod_x)
    # new_coee_x = coee_x + relu(bn(conv(n_coee_raw)))  (residual post-ReLU,
    # fused into the reproj GEMM epilogue -> no caller-side add kernel).
    new_coee_x = conv(n_coee_raw, p['e_reproj'], relu=True,
                      residual=coee_x, residual_after_relu=True)
    new_cod_x = conv(n_cod_raw, p['r_reproj'], relu=True,
                     residual=cod_x, residual_after_relu=True)
    coee = conv(new_coee_x, p['e_pred'], out_dtype=jnp.float32)
    cod = conv(new_cod_x, p['r_pred'], out_dtype=jnp.float32)
    return new_coee_x, coee, new_cod_x, cod


def mglnet_forward(params, x_nchw, zoom_factor=8):
    x = jnp.transpose(x_nchw, (0, 2, 3, 1)).astype(jnp.bfloat16)  # NCHW->NHWC
    N, H, W, _ = x.shape
    assert H % 8 == 0 and W % 8 == 0
    h = H // 8 * zoom_factor
    w = W // 8 * zoom_factor

    # layer0 (deep stem) -------------------------------------------------
    s = params['stem']
    x0 = conv(x, s['conv1'], stride=2, padding=1, relu=True)
    x0 = conv(x0, s['conv2'], stride=1, padding=1, relu=True)
    x0 = conv(x0, s['conv3'], stride=1, padding=1, relu=True)
    x0 = maxpool_3x3_s2(x0)
    # layers 1-4 (layer3/4 dilated, stride forced to 1) -------------------
    x1 = layer_fwd(x0, params['layer1'], stride=1, dilation=1)
    x2 = layer_fwd(x1, params['layer2'], stride=2, dilation=1)
    x3 = layer_fwd(x2, params['layer3'], stride=1, dilation=2)
    x4 = layer_fwd(x3, params['layer4'], stride=1, dilation=4)

    # region head (pred[0:4], Dropout2d is identity in eval) --------------
    cod_x = conv(x4, params['region_conv'], padding=1, relu=True)
    # edge head -----------------------------------------------------------
    coee_x = concatnet_fwd(params['edge_cat'], x1, x2, x3, x4,
                           (cod_x.shape[1], cod_x.shape[2]))

    coee = cod = None
    for mp in params['mutualnets']:
        coee_x, coee, cod_x, cod = mutualnet_fwd(mp, coee_x, cod_x)
        if zoom_factor != 1:
            coee = bilinear_resize_ac(coee, h, w)
            cod = bilinear_resize_ac(cod, h, w)

    out = jnp.concatenate([cod, coee], axis=-1)       # channel concat (NHWC)
    return jnp.transpose(out, (0, 3, 1, 2))           # back to NCHW (B,2,h,w)


# --------------------------------------------------------------------------
if __name__ == "__main__":
    key = jax.random.PRNGKey(0)
    pkey, xkey = jax.random.split(key)
    params = init_params(pkey, stage=1)
    x = jax.random.normal(xkey, (2, 3, 32, 32), jnp.float32)   # NCHW like torch

    fwd = jax.jit(mglnet_forward)
    out = fwd(params, x)
    out = jax.block_until_ready(out)

    assert out.shape == (2, 2, 32, 32), out.shape
    assert out.dtype == jnp.float32
    assert bool(jnp.all(jnp.isfinite(out)))
    print("KERNEL_OK")
</pallas_src>

<mosaic_0001>
module attributes {stable_mosaic.version = 11 : i64} {
  func.func private @main(%arg0: i32) attributes {dimension_semantics = [#tpu.dimension_semantics<core_parallel>], iteration_bounds = array<i64: 2>, tpu.core_type = #tpu.core_type<sc_scalar_subcore>, window_params = []} {
    return
  }
}

module attributes {stable_mosaic.version = 11 : i64} {
  func.func private @main(%arg0: i32) attributes {dimension_semantics = [#tpu.dimension_semantics<core_parallel>], iteration_bounds = array<i64: 2>, tpu.core_type = #tpu.core_type<sc_scalar_subcore>, window_params = []} {
    return
  }
}

module attributes {stable_mosaic.version = 11 : i64} {
  func.func @kernel(%arg0: i32, %arg1: i32, %arg2: memref<512x27xbf16, #tpu.memory_space<vmem>>, %arg3: memref<27x4xbf16, #tpu.memory_space<vmem>>, %arg4: memref<1x4xf32, #tpu.memory_space<vmem>>, %arg5: memref<512x4xbf16, #tpu.memory_space<vmem>>) attributes {dimension_semantics = [#tpu.dimension_semantics<parallel>, #tpu.dimension_semantics<parallel>], iteration_bounds = array<i64: 1, 1>, scalar_prefetch = 0 : i64, scratch_operands = 0 : i64, tpu.core_type = #tpu.core_type<tc>, window_params = [{transform_indices = @transform_0, window_bounds = array<i64: 512, 27>}, {transform_indices = @transform_1, window_bounds = array<i64: 27, 4>}, {transform_indices = @transform_2, window_bounds = array<i64: 1, 4>}, {transform_indices = @transform_3, window_bounds = array<i64: 512, 4>}]} {
    %c0 = arith.constant 0 : index
    %c0_0 = arith.constant 0 : index
    %0 = vector.load %arg2[%c0, %c0_0] : memref<512x27xbf16, #tpu.memory_space<vmem>>, vector<512x27xbf16>
    %c0_1 = arith.constant 0 : index
    %c0_2 = arith.constant 0 : index
    %1 = vector.load %arg3[%c0_1, %c0_2] : memref<27x4xbf16, #tpu.memory_space<vmem>>, vector<27x4xbf16>
    %cst = arith.constant dense<0.000000e+00> : vector<512x4xf32>
    %2 = tpu.matmul %0, %1, %cst {dimension_numbers = #tpu.dot_dimension_numbers<[1], [0], [0], [1], [0, 0, 1, 1], [], []>} : vector<512x27xbf16>, vector<27x4xbf16>, vector<512x4xf32> -> vector<512x4xf32>
    %c0_3 = arith.constant 0 : index
    %c0_4 = arith.constant 0 : index
    %3 = vector.load %arg4[%c0_3, %c0_4] : memref<1x4xf32, #tpu.memory_space<vmem>>, vector<1x4xf32>
    %4 = vector.broadcast %3 : vector<1x4xf32> to vector<512x4xf32>
    %5 = arith.addf %2, %4 : vector<512x4xf32>
    %cst_5 = arith.constant 0.000000e+00 : f32
    %6 = vector.broadcast %cst_5 : f32 to vector<512x4xf32>
    %7 = arith.maximumf %5, %6 : vector<512x4xf32>
    %8 = arith.truncf %7 : vector<512x4xf32> to vector<512x4xbf16>
    %c0_6 = arith.constant 0 : index
    %c0_7 = arith.constant 0 : index
    %9 = vector.load %arg5[%c0_6, %c0_7] : memref<512x4xbf16, #tpu.memory_space<vmem>>, vector<512x4xbf16>
    tpu.vector_store %arg5[%c0_6, %c0_7], %8 {strides = array<i32>} : memref<512x4xbf16, #tpu.memory_space<vmem>>, vector<512x4xbf16>,
    return
  }
  func.func @transform_0(%arg0: i32, %arg1: i32) -> (i32, i32) {
    %c0_i32 = arith.constant 0 : i32
    %c0_i32_0 = arith.constant 0 : i32
    return %arg0, %c0_i32 : i32, i32
  }
  func.func @transform_1(%arg0: i32, %arg1: i32) -> (i32, i32) {
    %c0_i32 = arith.constant 0 : i32
    %c0_i32_0 = arith.constant 0 : i32
    return %c0_i32, %arg1 : i32, i32
  }
  func.func @transform_2(%arg0: i32, %arg1: i32) -> (i32, i32) {
    %c0_i32 = arith.constant 0 : i32
    %c0_i32_0 = arith.constant 0 : i32
    return %c0_i32, %arg1 : i32, i32
  }
  func.func @transform_3(%arg0: i32, %arg1: i32) -> (i32, i32) {
    %c0_i32 = arith.constant 0 : i32
    return %arg0, %arg1 : i32, i32
  }
}

module attributes {stable_mosaic.version = 11 : i64} {
  func.func @kernel(%arg0: i32, %arg1: i32, %arg2: memref<512x36xbf16, #tpu.memory_space<vmem>>, %arg3: memref<36x4xbf16, #tpu.memory_space<vmem>>, %arg4: memref<1x4xf32, #tpu.memory_space<vmem>>, %arg5: memref<512x4xbf16, #tpu.memory_space<vmem>>) attributes {dimension_semantics = [#tpu.dimension_semantics<parallel>, #tpu.dimension_semantics<parallel>], iteration_bounds = array<i64: 1, 1>, scalar_prefetch = 0 : i64, scratch_operands = 0 : i64, tpu.core_type = #tpu.core_type<tc>, window_params = [{transform_indices = @transform_0, window_bounds = array<i64: 512, 36>}, {transform_indices = @transform_1, window_bounds = array<i64: 36, 4>}, {transform_indices = @transform_2, window_bounds = array<i64: 1, 4>}, {transform_indices = @transform_3, window_bounds = array<i64: 512, 4>}]} {
    %c0 = arith.constant 0 : index
    %c0_0 = arith.constant 0 : index
    %0 = vector.load %arg2[%c0, %c0_0] : memref<512x36xbf16, #tpu.memory_space<vmem>>, vector<512x36xbf16>
    %c0_1 = arith.constant 0 : index
    %c0_2 = arith.constant 0 : index
    %1 = vector.load %arg3[%c0_1, %c0_2] : memref<36x4xbf16, #tpu.memory_space<vmem>>, vector<36x4xbf16>
    %cst = arith.constant dense<0.000000e+00> : vector<512x4xf32>
    %2 = tpu.matmul %0, %1, %cst {dimension_numbers = #tpu.dot_dimension_numbers<[1], [0], [0], [1], [0, 0, 1, 1], [], []>} : vector<512x36xbf16>, vector<36x4xbf16>, vector<512x4xf32> -> vector<512x4xf32>
    %c0_3 = arith.constant 0 : index
    %c0_4 = arith.constant 0 : index
    %3 = vector.load %arg4[%c0_3, %c0_4] : memref<1x4xf32, #tpu.memory_space<vmem>>, vector<1x4xf32>
    %4 = vector.broadcast %3 : vector<1x4xf32> to vector<512x4xf32>
    %5 = arith.addf %2, %4 : vector<512x4xf32>
    %cst_5 = arith.constant 0.000000e+00 : f32
    %6 = vector.broadcast %cst_5 : f32 to vector<512x4xf32>
    %7 = arith.maximumf %5, %6 : vector<512x4xf32>
    %8 = arith.truncf %7 : vector<512x4xf32> to vector<512x4xbf16>
    %c0_6 = arith.constant 0 : index
    %c0_7 = arith.constant 0 : index
    %9 = vector.load %arg5[%c0_6, %c0_7] : memref<512x4xbf16, #tpu.memory_space<vmem>>, vector<512x4xbf16>
    tpu.vector_store %arg5[%c0_6, %c0_7], %8 {strides = array<i32>} : memref<512x4xbf16, #tpu.memory_space<vmem>>, vector<512x4xbf16>,
    return
  }
  func.func @transform_0(%arg0: i32, %arg1: i32) -> (i32, i32) {
    %c0_i32 = arith.constant 0 : i32
    %c0_i32_0 = arith.constant 0 : i32
    return %arg0, %c0_i32 : i32, i32
  }
  func.func @transform_1(%arg0: i32, %arg1: i32) -> (i32, i32) {
    %c0_i32 = arith.constant 0 : i32
    %c0_i32_0 = arith.constant 0 : i32
    return %c0_i32, %arg1 : i32, i32
  }
  func.func @transform_2(%arg0: i32, %arg1: i32) -> (i32, i32) {
    %c0_i32 = arith.constant 0 : i32
    %c0_i32_0 = arith.constant 0 : i32
    return %c0_i32, %arg1 : i32, i32
  }
  func.func @transform_3(%arg0: i32, %arg1: i32) -> (i32, i32) {
    %c0_i32 = arith.constant 0 : i32
    return %arg0, %arg1 : i32, i32
  }
}

module attributes {stable_mosaic.version = 11 : i64} {
  func.func @kernel(%arg0: i32, %arg1: i32, %arg2: memref<512x36xbf16, #tpu.memory_space<vmem>>, %arg3: memref<36x8xbf16, #tpu.memory_space<vmem>>, %arg4: memref<1x8xf32, #tpu.memory_space<vmem>>, %arg5: memref<512x8xbf16, #tpu.memory_space<vmem>>) attributes {dimension_semantics = [#tpu.dimension_semantics<parallel>, #tpu.dimension_semantics<parallel>], iteration_bounds = array<i64: 1, 1>, scalar_prefetch = 0 : i64, scratch_operands = 0 : i64, tpu.core_type = #tpu.core_type<tc>, window_params = [{transform_indices = @transform_0, window_bounds = array<i64: 512, 36>}, {transform_indices = @transform_1, window_bounds = array<i64: 36, 8>}, {transform_indices = @transform_2, window_bounds = array<i64: 1, 8>}, {transform_indices = @transform_3, window_bounds = array<i64: 512, 8>}]} {
    %c0 = arith.constant 0 : index
    %c0_0 = arith.constant 0 : index
    %0 = vector.load %arg2[%c0, %c0_0] : memref<512x36xbf16, #tpu.memory_space<vmem>>, vector<512x36xbf16>
    %c0_1 = arith.constant 0 : index
    %c0_2 = arith.constant 0 : index
    %1 = vector.load %arg3[%c0_1, %c0_2] : memref<36x8xbf16, #tpu.memory_space<vmem>>, vector<36x8xbf16>
    %cst = arith.constant dense<0.000000e+00> : vector<512x8xf32>
    %2 = tpu.matmul %0, %1, %cst {dimension_numbers = #tpu.dot_dimension_numbers<[1], [0], [0], [1], [0, 0, 1, 1], [], []>} : vector<512x36xbf16>, vector<36x8xbf16>, vector<512x8xf32> -> vector<512x8xf32>
    %c0_3 = arith.constant 0 : index
    %c0_4 = arith.constant 0 : index
    %3 = vector.load %arg4[%c0_3, %c0_4] : memref<1x8xf32, #tpu.memory_space<vmem>>, vector<1x8xf32>
    %4 = vector.broadcast %3 : vector<1x8xf32> to vector<512x8xf32>
    %5 = arith.addf %2, %4 : vector<512x8xf32>
    %cst_5 = arith.constant 0.000000e+00 : f32
    %6 = vector.broadcast %cst_5 : f32 to vector<512x8xf32>
    %7 = arith.maximumf %5, %6 : vector<512x8xf32>
    %8 = arith.truncf %7 : vector<512x8xf32> to vector<512x8xbf16>
    %c0_6 = arith.constant 0 : index
    %c0_7 = arith.constant 0 : index
    %9 = vector.load %arg5[%c0_6, %c0_7] : memref<512x8xbf16, #tpu.memory_space<vmem>>, vector<512x8xbf16>
    tpu.vector_store %arg5[%c0_6, %c0_7], %8 {strides = array<i32>} : memref<512x8xbf16, #tpu.memory_space<vmem>>, vector<512x8xbf16>,
    return
  }
  func.func @transform_0(%arg0: i32, %arg1: i32) -> (i32, i32) {
    %c0_i32 = arith.constant 0 : i32
    %c0_i32_0 = arith.constant 0 : i32
    return %arg0, %c0_i32 : i32, i32
  }
  func.func @transform_1(%arg0: i32, %arg1: i32) -> (i32, i32) {
    %c0_i32 = arith.constant 0 : i32
    %c0_i32_0 = arith.constant 0 : i32
    return %c0_i32, %arg1 : i32, i32
  }
  func.func @transform_2(%arg0: i32, %arg1: i32) -> (i32, i32) {
    %c0_i32 = arith.constant 0 : i32
    %c0_i32_0 = arith.constant 0 : i32
    return %c0_i32, %arg1 : i32, i32
  }
  func.func @transform_3(%arg0: i32, %arg1: i32) -> (i32, i32) {
    %c0_i32 = arith.constant 0 : i32
    return %arg0, %arg1 : i32, i32
  }
}

module attributes {stable_mosaic.version = 11 : i64} {
  func.func @kernel(%arg0: i32, %arg1: i32, %arg2: memref<128x8xbf16, #tpu.memory_space<vmem>>, %arg3: memref<8x4xbf16, #tpu.memory_space<vmem>>, %arg4: memref<1x4xf32, #tpu.memory_space<vmem>>, %arg5: memref<128x4xbf16, #tpu.memory_space<vmem>>) attributes {dimension_semantics = [#tpu.dimension_semantics<parallel>, #tpu.dimension_semantics<parallel>], iteration_bounds = array<i64: 1, 1>, scalar_prefetch = 0 : i64, scratch_operands = 0 : i64, tpu.core_type = #tpu.core_type<tc>, window_params = [{transform_indices = @transform_0, window_bounds = array<i64: 128, 8>}, {transform_indices = @transform_1, window_bounds = array<i64: 8, 4>}, {transform_indices = @transform_2, window_bounds = array<i64: 1, 4>}, {transform_indices = @transform_3, window_bounds = array<i64: 128, 4>}]} {
    %c0 = arith.constant 0 : index
    %c0_0 = arith.constant 0 : index
    %0 = vector.load %arg2[%c0, %c0_0] : memref<128x8xbf16, #tpu.memory_space<vmem>>, vector<128x8xbf16>
    %c0_1 = arith.constant 0 : index
    %c0_2 = arith.constant 0 : index
    %1 = vector.load %arg3[%c0_1, %c0_2] : memref<8x4xbf16, #tpu.memory_space<vmem>>, vector<8x4xbf16>
    %cst = arith.constant dense<0.000000e+00> : vector<128x4xf32>
    %2 = tpu.matmul %0, %1, %cst {dimension_numbers = #tpu.dot_dimension_numbers<[1], [0], [0], [1], [0, 0, 1, 1], [], []>} : vector<128x8xbf16>, vector<8x4xbf16>, vector<128x4xf32> -> vector<128x4xf32>
    %c0_3 = arith.constant 0 : index
    %c0_4 = arith.constant 0 : index
    %3 = vector.load %arg4[%c0_3, %c0_4] : memref<1x4xf32, #tpu.memory_space<vmem>>, vector<1x4xf32>
    %4 = vector.broadcast %3 : vector<1x4xf32> to vector<128x4xf32>
    %5 = arith.addf %2, %4 : vector<128x4xf32>
    %cst_5 = arith.constant 0.000000e+00 : f32
    %6 = vector.broadcast %cst_5 : f32 to vector<128x4xf32>
    %7 = arith.maximumf %5, %6 : vector<128x4xf32>
    %8 = arith.truncf %7 : vector<128x4xf32> to vector<128x4xbf16>
    %c0_6 = arith.constant 0 : index
    %c0_7 = arith.constant 0 : index
    %9 = vector.load %arg5[%c0_6, %c0_7] : memref<128x4xbf16, #tpu.memory_space<vmem>>, vector<128x4xbf16>
    tpu.vector_store %arg5[%c0_6, %c0_7], %8 {strides = array<i32>} : memref<128x4xbf16, #tpu.memory_space<vmem>>, vector<128x4xbf16>,
    return
  }
  func.func @transform_0(%arg0: i32, %arg1: i32) -> (i32, i32) {
    %c0_i32 = arith.constant 0 : i32
    %c0_i32_0 = arith.constant 0 : i32
    return %arg0, %c0_i32 : i32, i32
  }
  func.func @transform_1(%arg0: i32, %arg1: i32) -> (i32, i32) {
    %c0_i32 = arith.constant 0 : i32
    %c0_i32_0 = arith.constant 0 : i32
    return %c0_i32, %arg1 : i32, i32
  }
  func.func @transform_2(%arg0: i32, %arg1: i32) -> (i32, i32) {
    %c0_i32 = arith.constant 0 : i32
    %c0_i32_0 = arith.constant 0 : i32
    return %c0_i32, %arg1 : i32, i32
  }
  func.func @transform_3(%arg0: i32, %arg1: i32) -> (i32, i32) {
    %c0_i32 = arith.constant 0 : i32
    return %arg0, %arg1 : i32, i32
  }
}

module attributes {stable_mosaic.version = 11 : i64} {
  func.func @kernel(%arg0: i32, %arg1: i32, %arg2: memref<128x8xbf16, #tpu.memory_space<vmem>>, %arg3: memref<8x16xbf16, #tpu.memory_space<vmem>>, %arg4: memref<1x16xf32, #tpu.memory_space<vmem>>, %arg5: memref<128x16xbf16, #tpu.memory_space<vmem>>) attributes {dimension_semantics = [#tpu.dimension_semantics<parallel>, #tpu.dimension_semantics<parallel>], iteration_bounds = array<i64: 1, 1>, scalar_prefetch = 0 : i64, scratch_operands = 0 : i64, tpu.core_type = #tpu.core_type<tc>, window_params = [{transform_indices = @transform_0, window_bounds = array<i64: 128, 8>}, {transform_indices = @transform_1, window_bounds = array<i64: 8, 16>}, {transform_indices = @transform_2, window_bounds = array<i64: 1, 16>}, {transform_indices = @transform_3, window_bounds = array<i64: 128, 16>}]} {
    %c0 = arith.constant 0 : index
    %c0_0 = arith.constant 0 : index
    %0 = vector.load %arg2[%c0, %c0_0] : memref<128x8xbf16, #tpu.memory_space<vmem>>, vector<128x8xbf16>
    %c0_1 = arith.constant 0 : index
    %c0_2 = arith.constant 0 : index
    %1 = vector.load %arg3[%c0_1, %c0_2] : memref<8x16xbf16, #tpu.memory_space<vmem>>, vector<8x16xbf16>
    %cst = arith.constant dense<0.000000e+00> : vector<128x16xf32>
    %2 = tpu.matmul %0, %1, %cst {dimension_numbers = #tpu.dot_dimension_numbers<[1], [0], [0], [1], [0, 0, 1, 1], [], []>} : vector<128x8xbf16>, vector<8x16xbf16>, vector<128x16xf32> -> vector<128x16xf32>
    %c0_3 = arith.constant 0 : index
    %c0_4 = arith.constant 0 : index
    %3 = vector.load %arg4[%c0_3, %c0_4] : memref<1x16xf32, #tpu.memory_space<vmem>>, vector<1x16xf32>
    %4 = vector.broadcast %3 : vector<1x16xf32> to vector<128x16xf32>
    %5 = arith.addf %2, %4 : vector<128x16xf32>
    %6 = arith.truncf %5 : vector<128x16xf32> to vector<128x16xbf16>
    %c0_5 = arith.constant 0 : index
    %c0_6 = arith.constant 0 : index
    %7 = vector.load %arg5[%c0_5, %c0_6] : memref<128x16xbf16, #tpu.memory_space<vmem>>, vector<128x16xbf16>
    tpu.vector_store %arg5[%c0_5, %c0_6], %6 {strides = array<i32>} : memref<128x16xbf16, #tpu.memory_space<vmem>>, vector<128x16xbf16>,
    return
  }
  func.func @transform_0(%arg0: i32, %arg1: i32) -> (i32, i32) {
    %c0_i32 = arith.constant 0 : i32
    %c0_i32_0 = arith.constant 0 : i32
    return %arg0, %c0_i32 : i32, i32
  }
  func.func @transform_1(%arg0: i32, %arg1: i32) -> (i32, i32) {
    %c0_i32 = arith.constant 0 : i32
    %c0_i32_0 = arith.constant 0 : i32
    return %c0_i32, %arg1 : i32, i32
  }
  func.func @transform_2(%arg0: i32, %arg1: i32) -> (i32, i32) {
    %c0_i32 = arith.constant 0 : i32
    %c0_i32_0 = arith.constant 0 : i32
    return %c0_i32, %arg1 : i32, i32
  }
  func.func @transform_3(%arg0: i32, %arg1: i32) -> (i32, i32) {
    %c0_i32 = arith.constant 0 : i32
    return %arg0, %arg1 : i32, i32
  }
}

module attributes {stable_mosaic.version = 11 : i64} {
  func.func @kernel(%arg0: i32, %arg1: i32, %arg2: memref<128x4xbf16, #tpu.memory_space<vmem>>, %arg3: memref<4x16xbf16, #tpu.memory_space<vmem>>, %arg4: memref<1x16xf32, #tpu.memory_space<vmem>>, %arg5: memref<128x16xbf16, #tpu.memory_space<vmem>>, %arg6: memref<128x16xbf16, #tpu.memory_space<vmem>>) attributes {dimension_semantics = [#tpu.dimension_semantics<parallel>, #tpu.dimension_semantics<parallel>], iteration_bounds = array<i64: 1, 1>, scalar_prefetch = 0 : i64, scratch_operands = 0 : i64, tpu.core_type = #tpu.core_type<tc>, window_params = [{transform_indices = @transform_0, window_bounds = array<i64: 128, 4>}, {transform_indices = @transform_1, window_bounds = array<i64: 4, 16>}, {transform_indices = @transform_2, window_bounds = array<i64: 1, 16>}, {transform_indices = @transform_3, window_bounds = array<i64: 128, 16>}, {transform_indices = @transform_4, window_bounds = array<i64: 128, 16>}]} {
    %c0 = arith.constant 0 : index
    %c0_0 = arith.constant 0 : index
    %0 = vector.load %arg2[%c0, %c0_0] : memref<128x4xbf16, #tpu.memory_space<vmem>>, vector<128x4xbf16>
    %c0_1 = arith.constant 0 : index
    %c0_2 = arith.constant 0 : index
    %1 = vector.load %arg3[%c0_1, %c0_2] : memref<4x16xbf16, #tpu.memory_space<vmem>>, vector<4x16xbf16>
    %cst = arith.constant dense<0.000000e+00> : vector<128x16xf32>
    %2 = tpu.matmul %0, %1, %cst {dimension_numbers = #tpu.dot_dimension_numbers<[1], [0], [0], [1], [0, 0, 1, 1], [], []>} : vector<128x4xbf16>, vector<4x16xbf16>, vector<128x16xf32> -> vector<128x16xf32>
    %c0_3 = arith.constant 0 : index
    %c0_4 = arith.constant 0 : index
    %3 = vector.load %arg5[%c0_3, %c0_4] : memref<128x16xbf16, #tpu.memory_space<vmem>>, vector<128x16xbf16>
    %c0_5 = arith.constant 0 : index
    %c0_6 = arith.constant 0 : index
    %4 = vector.load %arg4[%c0_5, %c0_6] : memref<1x16xf32, #tpu.memory_space<vmem>>, vector<1x16xf32>
    %5 = vector.broadcast %4 : vector<1x16xf32> to vector<128x16xf32>
    %6 = arith.addf %2, %5 : vector<128x16xf32>
    %7 = arith.extf %3 : vector<128x16xbf16> to vector<128x16xf32>
    %8 = arith.addf %6, %7 : vector<128x16xf32>
    %cst_7 = arith.constant 0.000000e+00 : f32
    %9 = vector.broadcast %cst_7 : f32 to vector<128x16xf32>
    %10 = arith.maximumf %8, %9 : vector<128x16xf32>
    %11 = arith.truncf %10 : vector<128x16xf32> to vector<128x16xbf16>
    %c0_8 = arith.constant 0 : index
    %c0_9 = arith.constant 0 : index
    %12 = vector.load %arg6[%c0_8, %c0_9] : memref<128x16xbf16, #tpu.memory_space<vmem>>, vector<128x16xbf16>
    tpu.vector_store %arg6[%c0_8, %c0_9], %11 {strides = array<i32>} : memref<128x16xbf16, #tpu.memory_space<vmem>>, vector<128x16xbf16>,
    return
  }
  func.func @transform_0(%arg0: i32, %arg1: i32) -> (i32, i32) {
    %c0_i32 = arith.constant 0 : i32
    %c0_i32_0 = arith.constant 0 : i32
    return %arg0, %c0_i32 : i32, i32
  }
  func.func @transform_1(%arg0: i32, %arg1: i32) -> (i32, i32) {
    %c0_i32 = arith.constant 0 : i32
    %c0_i32_0 = arith.constant 0 : i32
    return %c0_i32, %arg1 : i32, i32
  }
  func.func @transform_2(%arg0: i32, %arg1: i32) -> (i32, i32) {
    %c0_i32 = arith.constant 0 : i32
    %c0_i32_0 = arith.constant 0 : i32
    return %c0_i32, %arg1 : i32, i32
  }
  func.func @transform_3(%arg0: i32, %arg1: i32) -> (i32, i32) {
    %c0_i32 = arith.constant 0 : i32
    return %arg0, %arg1 : i32, i32
  }
  func.func @transform_4(%arg0: i32, %arg1: i32) -> (i32, i32) {
    %c0_i32 = arith.constant 0 : i32
    return %arg0, %arg1 : i32, i32
  }
}

module attributes {stable_mosaic.version = 11 : i64} {
  func.func @kernel(%arg0: i32, %arg1: i32, %arg2: memref<128x36xbf16, #tpu.memory_space<vmem>>, %arg3: memref<36x4xbf16, #tpu.memory_space<vmem>>, %arg4: memref<1x4xf32, #tpu.memory_space<vmem>>, %arg5: memref<128x4xbf16, #tpu.memory_space<vmem>>) attributes {dimension_semantics = [#tpu.dimension_semantics<parallel>, #tpu.dimension_semantics<parallel>], iteration_bounds = array<i64: 1, 1>, scalar_prefetch = 0 : i64, scratch_operands = 0 : i64, tpu.core_type = #tpu.core_type<tc>, window_params = [{transform_indices = @transform_0, window_bounds = array<i64: 128, 36>}, {transform_indices = @transform_1, window_bounds = array<i64: 36, 4>}, {transform_indices = @transform_2, window_bounds = array<i64: 1, 4>}, {transform_indices = @transform_3, window_bounds = array<i64: 128, 4>}]} {
    %c0 = arith.constant 0 : index
    %c0_0 = arith.constant 0 : index
    %0 = vector.load %arg2[%c0, %c0_0] : memref<128x36xbf16, #tpu.memory_space<vmem>>, vector<128x36xbf16>
    %c0_1 = arith.constant 0 : index
    %c0_2 = arith.constant 0 : index
    %1 = vector.load %arg3[%c0_1, %c0_2] : memref<36x4xbf16, #tpu.memory_space<vmem>>, vector<36x4xbf16>
    %cst = arith.constant dense<0.000000e+00> : vector<128x4xf32>
    %2 = tpu.matmul %0, %1, %cst {dimension_numbers = #tpu.dot_dimension_numbers<[1], [0], [0], [1], [0, 0, 1, 1], [], []>} : vector<128x36xbf16>, vector<36x4xbf16>, vector<128x4xf32> -> vector<128x4xf32>
    %c0_3 = arith.constant 0 : index
    %c0_4 = arith.constant 0 : index
    %3 = vector.load %arg4[%c0_3, %c0_4] : memref<1x4xf32, #tpu.memory_space<vmem>>, vector<1x4xf32>
    %4 = vector.broadcast %3 : vector<1x4xf32> to vector<128x4xf32>
    %5 = arith.addf %2, %4 : vector<128x4xf32>
    %cst_5 = arith.constant 0.000000e+00 : f32
    %6 = vector.broadcast %cst_5 : f32 to vector<128x4xf32>
    %7 = arith.maximumf %5, %6 : vector<128x4xf32>
    %8 = arith.truncf %7 : vector<128x4xf32> to vector<128x4xbf16>
    %c0_6 = arith.constant 0 : index
    %c0_7 = arith.constant 0 : index
    %9 = vector.load %arg5[%c0_6, %c0_7] : memref<128x4xbf16, #tpu.memory_space<vmem>>, vector<128x4xbf16>
    tpu.vector_store %arg5[%c0_6, %c0_7], %8 {strides = array<i32>} : memref<128x4xbf16, #tpu.memory_space<vmem>>, vector<128x4xbf16>,
    return
  }
  func.func @transform_0(%arg0: i32, %arg1: i32) -> (i32, i32) {
    %c0_i32 = arith.constant 0 : i32
    %c0_i32_0 = arith.constant 0 : i32
    return %arg0, %c0_i32 : i32, i32
  }
  func.func @transform_1(%arg0: i32, %arg1: i32) -> (i32, i32) {
    %c0_i32 = arith.constant 0 : i32
    %c0_i32_0 = arith.constant 0 : i32
    return %c0_i32, %arg1 : i32, i32
  }
  func.func @transform_2(%arg0: i32, %arg1: i32) -> (i32, i32) {
    %c0_i32 = arith.constant 0 : i32
    %c0_i32_0 = arith.constant 0 : i32
    return %c0_i32, %arg1 : i32, i32
  }
  func.func @transform_3(%arg0: i32, %arg1: i32) -> (i32, i32) {
    %c0_i32 = arith.constant 0 : i32
    return %arg0, %arg1 : i32, i32
  }
}

module attributes {stable_mosaic.version = 11 : i64} {
  func.func @kernel(%arg0: i32, %arg1: i32, %arg2: memref<128x16xbf16, #tpu.memory_space<vmem>>, %arg3: memref<16x8xbf16, #tpu.memory_space<vmem>>, %arg4: memref<1x8xf32, #tpu.memory_space<vmem>>, %arg5: memref<128x8xbf16, #tpu.memory_space<vmem>>) attributes {dimension_semantics = [#tpu.dimension_semantics<parallel>, #tpu.dimension_semantics<parallel>], iteration_bounds = array<i64: 1, 1>, scalar_prefetch = 0 : i64, scratch_operands = 0 : i64, tpu.core_type = #tpu.core_type<tc>, window_params = [{transform_indices = @transform_0, window_bounds = array<i64: 128, 16>}, {transform_indices = @transform_1, window_bounds = array<i64: 16, 8>}, {transform_indices = @transform_2, window_bounds = array<i64: 1, 8>}, {transform_indices = @transform_3, window_bounds = array<i64: 128, 8>}]} {
    %c0 = arith.constant 0 : index
    %c0_0 = arith.constant 0 : index
    %0 = vector.load %arg2[%c0, %c0_0] : memref<128x16xbf16, #tpu.memory_space<vmem>>, vector<128x16xbf16>
    %c0_1 = arith.constant 0 : index
    %c0_2 = arith.constant 0 : index
    %1 = vector.load %arg3[%c0_1, %c0_2] : memref<16x8xbf16, #tpu.memory_space<vmem>>, vector<16x8xbf16>
    %cst = arith.constant dense<0.000000e+00> : vector<128x8xf32>
    %2 = tpu.matmul %0, %1, %cst {dimension_numbers = #tpu.dot_dimension_numbers<[1], [0], [0], [1], [0, 0, 1, 1], [], []>} : vector<128x16xbf16>, vector<16x8xbf16>, vector<128x8xf32> -> vector<128x8xf32>
    %c0_3 = arith.constant 0 : index
    %c0_4 = arith.constant 0 : index
    %3 = vector.load %arg4[%c0_3, %c0_4] : memref<1x8xf32, #tpu.memory_space<vmem>>, vector<1x8xf32>
    %4 = vector.broadcast %3 : vector<1x8xf32> to vector<128x8xf32>
    %5 = arith.addf %2, %4 : vector<128x8xf32>
    %cst_5 = arith.constant 0.000000e+00 : f32
    %6 = vector.broadcast %cst_5 : f32 to vector<128x8xf32>
    %7 = arith.maximumf %5, %6 : vector<128x8xf32>
    %8 = arith.truncf %7 : vector<128x8xf32> to vector<128x8xbf16>
    %c0_6 = arith.constant 0 : index
    %c0_7 = arith.constant 0 : index
    %9 = vector.load %arg5[%c0_6, %c0_7] : memref<128x8xbf16, #tpu.memory_space<vmem>>, vector<128x8xbf16>
    tpu.vector_store %arg5[%c0_6, %c0_7], %8 {strides = array<i32>} : memref<128x8xbf16, #tpu.memory_space<vmem>>, vector<128x8xbf16>,
    return
  }
  func.func @transform_0(%arg0: i32, %arg1: i32) -> (i32, i32) {
    %c0_i32 = arith.constant 0 : i32
    %c0_i32_0 = arith.constant 0 : i32
    return %arg0, %c0_i32 : i32, i32
  }
  func.func @transform_1(%arg0: i32, %arg1: i32) -> (i32, i32) {
    %c0_i32 = arith.constant 0 : i32
    %c0_i32_0 = arith.constant 0 : i32
    return %c0_i32, %arg1 : i32, i32
  }
  func.func @transform_2(%arg0: i32, %arg1: i32) -> (i32, i32) {
    %c0_i32 = arith.constant 0 : i32
    %c0_i32_0 = arith.constant 0 : i32
    return %c0_i32, %arg1 : i32, i32
  }
  func.func @transform_3(%arg0: i32, %arg1: i32) -> (i32, i32) {
    %c0_i32 = arith.constant 0 : i32
    return %arg0, %arg1 : i32, i32
  }
}

module attributes {stable_mosaic.version = 11 : i64} {
  func.func @kernel(%arg0: i32, %arg1: i32, %arg2: memref<128x16xbf16, #tpu.memory_space<vmem>>, %arg3: memref<16x4xbf16, #tpu.memory_space<vmem>>, %arg4: memref<1x4xf32, #tpu.memory_space<vmem>>, %arg5: memref<128x4xbf16, #tpu.memory_space<vmem>>) attributes {dimension_semantics = [#tpu.dimension_semantics<parallel>, #tpu.dimension_semantics<parallel>], iteration_bounds = array<i64: 1, 1>, scalar_prefetch = 0 : i64, scratch_operands = 0 : i64, tpu.core_type = #tpu.core_type<tc>, window_params = [{transform_indices = @transform_0, window_bounds = array<i64: 128, 16>}, {transform_indices = @transform_1, window_bounds = array<i64: 16, 4>}, {transform_indices = @transform_2, window_bounds = array<i64: 1, 4>}, {transform_indices = @transform_3, window_bounds = array<i64: 128, 4>}]} {
    %c0 = arith.constant 0 : index
    %c0_0 = arith.constant 0 : index
    %0 = vector.load %arg2[%c0, %c0_0] : memref<128x16xbf16, #tpu.memory_space<vmem>>, vector<128x16xbf16>
    %c0_1 = arith.constant 0 : index
    %c0_2 = arith.constant 0 : index
    %1 = vector.load %arg3[%c0_1, %c0_2] : memref<16x4xbf16, #tpu.memory_space<vmem>>, vector<16x4xbf16>
    %cst = arith.constant dense<0.000000e+00> : vector<128x4xf32>
    %2 = tpu.matmul %0, %1, %cst {dimension_numbers = #tpu.dot_dimension_numbers<[1], [0], [0], [1], [0, 0, 1, 1], [], []>} : vector<128x16xbf16>, vector<16x4xbf16>, vector<128x4xf32> -> vector<128x4xf32>
    %c0_3 = arith.constant 0 : index
    %c0_4 = arith.constant 0 : index
    %3 = vector.load %arg4[%c0_3, %c0_4] : memref<1x4xf32, #tpu.memory_space<vmem>>, vector<1x4xf32>
    %4 = vector.broadcast %3 : vector<1x4xf32> to vector<128x4xf32>
    %5 = arith.addf %2, %4 : vector<128x4xf32>
    %cst_5 = arith.constant 0.000000e+00 : f32
    %6 = vector.broadcast %cst_5 : f32 to vector<128x4xf32>
    %7 = arith.maximumf %5, %6 : vector<128x4xf32>
    %8 = arith.truncf %7 : vector<128x4xf32> to vector<128x4xbf16>
    %c0_6 = arith.constant 0 : index
    %c0_7 = arith.constant 0 : index
    %9 = vector.load %arg5[%c0_6, %c0_7] : memref<128x4xbf16, #tpu.memory_space<vmem>>, vector<128x4xbf16>
    tpu.vector_store %arg5[%c0_6, %c0_7], %8 {strides = array<i32>} : memref<128x4xbf16, #tpu.memory_space<vmem>>, vector<128x4xbf16>,
    return
  }
  func.func @transform_0(%arg0: i32, %arg1: i32) -> (i32, i32) {
    %c0_i32 = arith.constant 0 : i32
    %c0_i32_0 = arith.constant 0 : i32
    return %arg0, %c0_i32 : i32, i32
  }
  func.func @transform_1(%arg0: i32, %arg1: i32) -> (i32, i32) {
    %c0_i32 = arith.constant 0 : i32
    %c0_i32_0 = arith.constant 0 : i32
    return %c0_i32, %arg1 : i32, i32
  }
  func.func @transform_2(%arg0: i32, %arg1: i32) -> (i32, i32) {
    %c0_i32 = arith.constant 0 : i32
    %c0_i32_0 = arith.constant 0 : i32
    return %c0_i32, %arg1 : i32, i32
  }
  func.func @transform_3(%arg0: i32, %arg1: i32) -> (i32, i32) {
    %c0_i32 = arith.constant 0 : i32
    return %arg0, %arg1 : i32, i32
  }
}

module attributes {stable_mosaic.version = 11 : i64} {
  func.func @kernel(%arg0: i32, %arg1: i32, %arg2: memref<128x144xbf16, #tpu.memory_space<vmem>>, %arg3: memref<144x8xbf16, #tpu.memory_space<vmem>>, %arg4: memref<1x8xf32, #tpu.memory_space<vmem>>, %arg5: memref<128x8xbf16, #tpu.memory_space<vmem>>) attributes {dimension_semantics = [#tpu.dimension_semantics<parallel>, #tpu.dimension_semantics<parallel>], iteration_bounds = array<i64: 1, 1>, scalar_prefetch = 0 : i64, scratch_operands = 0 : i64, tpu.core_type = #tpu.core_type<tc>, window_params = [{transform_indices = @transform_0, window_bounds = array<i64: 128, 144>}, {transform_indices = @transform_1, window_bounds = array<i64: 144, 8>}, {transform_indices = @transform_2, window_bounds = array<i64: 1, 8>}, {transform_indices = @transform_3, window_bounds = array<i64: 128, 8>}]} {
    %c0 = arith.constant 0 : index
    %c0_0 = arith.constant 0 : index
    %0 = vector.load %arg2[%c0, %c0_0] : memref<128x144xbf16, #tpu.memory_space<vmem>>, vector<128x144xbf16>
    %c0_1 = arith.constant 0 : index
    %c0_2 = arith.constant 0 : index
    %1 = vector.load %arg3[%c0_1, %c0_2] : memref<144x8xbf16, #tpu.memory_space<vmem>>, vector<144x8xbf16>
    %cst = arith.constant dense<0.000000e+00> : vector<128x8xf32>
    %2 = tpu.matmul %0, %1, %cst {dimension_numbers = #tpu.dot_dimension_numbers<[1], [0], [0], [1], [0, 0, 1, 1], [], []>} : vector<128x144xbf16>, vector<144x8xbf16>, vector<128x8xf32> -> vector<128x8xf32>
    %c0_3 = arith.constant 0 : index
    %c0_4 = arith.constant 0 : index
    %3 = vector.load %arg4[%c0_3, %c0_4] : memref<1x8xf32, #tpu.memory_space<vmem>>, vector<1x8xf32>
    %4 = vector.broadcast %3 : vector<1x8xf32> to vector<128x8xf32>
    %5 = arith.addf %2, %4 : vector<128x8xf32>
    %cst_5 = arith.constant 0.000000e+00 : f32
    %6 = vector.broadcast %cst_5 : f32 to vector<128x8xf32>
    %7 = arith.maximumf %5, %6 : vector<128x8xf32>
    %8 = arith.truncf %7 : vector<128x8xf32> to vector<128x8xbf16>
    %c0_6 = arith.constant 0 : index
    %c0_7 = arith.constant 0 : index
    %9 = vector.load %arg5[%c0_6, %c0_7] : memref<128x8xbf16, #tpu.memory_space<vmem>>, vector<128x8xbf16>
    tpu.vector_store %arg5[%c0_6, %c0_7], %8 {strides = array<i32>} : memref<128x8xbf16, #tpu.memory_space<vmem>>, vector<128x8xbf16>,
    return
  }
  func.func @transform_0(%arg0: i32, %arg1: i32) -> (i32, i32) {
    %c0_i32 = arith.constant 0 : i32
    %c0_i32_0 = arith.constant 0 : i32
    return %arg0, %c0_i32 : i32, i32
  }
  func.func @transform_1(%arg0: i32, %arg1: i32) -> (i32, i32) {
    %c0_i32 = arith.constant 0 : i32
    %c0_i32_0 = arith.constant 0 : i32
    return %c0_i32, %arg1 : i32, i32
  }
  func.func @transform_2(%arg0: i32, %arg1: i32) -> (i32, i32) {
    %c0_i32 = arith.constant 0 : i32
    %c0_i32_0 = arith.constant 0 : i32
    return %c0_i32, %arg1 : i32, i32
  }
  func.func @transform_3(%arg0: i32, %arg1: i32) -> (i32, i32) {
    %c0_i32 = arith.constant 0 : i32
    return %arg0, %arg1 : i32, i32
  }
}

module attributes {stable_mosaic.version = 11 : i64} {
  func.func @kernel(%arg0: i32, %arg1: i32, %arg2: memref<32x72xbf16, #tpu.memory_space<vmem>>, %arg3: memref<72x8xbf16, #tpu.memory_space<vmem>>, %arg4: memref<1x8xf32, #tpu.memory_space<vmem>>, %arg5: memref<32x8xbf16, #tpu.memory_space<vmem>>) attributes {dimension_semantics = [#tpu.dimension_semantics<parallel>, #tpu.dimension_semantics<parallel>], iteration_bounds = array<i64: 1, 1>, scalar_prefetch = 0 : i64, scratch_operands = 0 : i64, tpu.core_type = #tpu.core_type<tc>, window_params = [{transform_indices = @transform_0, window_bounds = array<i64: 32, 72>}, {transform_indices = @transform_1, window_bounds = array<i64: 72, 8>}, {transform_indices = @transform_2, window_bounds = array<i64: 1, 8>}, {transform_indices = @transform_3, window_bounds = array<i64: 32, 8>}]} {
    %c0 = arith.constant 0 : index
    %c0_0 = arith.constant 0 : index
    %0 = vector.load %arg2[%c0, %c0_0] : memref<32x72xbf16, #tpu.memory_space<vmem>>, vector<32x72xbf16>
    %c0_1 = arith.constant 0 : index
    %c0_2 = arith.constant 0 : index
    %1 = vector.load %arg3[%c0_1, %c0_2] : memref<72x8xbf16, #tpu.memory_space<vmem>>, vector<72x8xbf16>
    %cst = arith.constant dense<0.000000e+00> : vector<32x8xf32>
    %2 = tpu.matmul %0, %1, %cst {dimension_numbers = #tpu.dot_dimension_numbers<[1], [0], [0], [1], [0, 0, 1, 1], [], []>} : vector<32x72xbf16>, vector<72x8xbf16>, vector<32x8xf32> -> vector<32x8xf32>
    %c0_3 = arith.constant 0 : index
    %c0_4 = arith.constant 0 : index
    %3 = vector.load %arg4[%c0_3, %c0_4] : memref<1x8xf32, #tpu.memory_space<vmem>>, vector<1x8xf32>
    %4 = vector.broadcast %3 : vector<1x8xf32> to vector<32x8xf32>
    %5 = arith.addf %2, %4 : vector<32x8xf32>
    %cst_5 = arith.constant 0.000000e+00 : f32
    %6 = vector.broadcast %cst_5 : f32 to vector<32x8xf32>
    %7 = arith.maximumf %5, %6 : vector<32x8xf32>
    %8 = arith.truncf %7 : vector<32x8xf32> to vector<32x8xbf16>
    %c0_6 = arith.constant 0 : index
    %c0_7 = arith.constant 0 : index
    %9 = vector.load %arg5[%c0_6, %c0_7] : memref<32x8xbf16, #tpu.memory_space<vmem>>, vector<32x8xbf16>
    tpu.vector_store %arg5[%c0_6, %c0_7], %8 {strides = array<i32>} : memref<32x8xbf16, #tpu.memory_space<vmem>>, vector<32x8xbf16>,
    return
  }
  func.func @transform_0(%arg0: i32, %arg1: i32) -> (i32, i32) {
    %c0_i32 = arith.constant 0 : i32
    %c0_i32_0 = arith.constant 0 : i32
    return %arg0, %c0_i32 : i32, i32
  }
  func.func @transform_1(%arg0: i32, %arg1: i32) -> (i32, i32) {
    %c0_i32 = arith.constant 0 : i32
    %c0_i32_0 = arith.constant 0 : i32
    return %c0_i32, %arg1 : i32, i32
  }
  func.func @transform_2(%arg0: i32, %arg1: i32) -> (i32, i32) {
    %c0_i32 = arith.constant 0 : i32
    %c0_i32_0 = arith.constant 0 : i32
    return %c0_i32, %arg1 : i32, i32
  }
  func.func @transform_3(%arg0: i32, %arg1: i32) -> (i32, i32) {
    %c0_i32 = arith.constant 0 : i32
    return %arg0, %arg1 : i32, i32
  }
}

module attributes {stable_mosaic.version = 11 : i64} {
  func.func @kernel(%arg0: i32, %arg1: i32, %arg2: memref<32x16xbf16, #tpu.memory_space<vmem>>, %arg3: memref<16x32xbf16, #tpu.memory_space<vmem>>, %arg4: memref<1x32xf32, #tpu.memory_space<vmem>>, %arg5: memref<32x32xbf16, #tpu.memory_space<vmem>>) attributes {dimension_semantics = [#tpu.dimension_semantics<parallel>, #tpu.dimension_semantics<parallel>], iteration_bounds = array<i64: 1, 1>, scalar_prefetch = 0 : i64, scratch_operands = 0 : i64, tpu.core_type = #tpu.core_type<tc>, window_params = [{transform_indices = @transform_0, window_bounds = array<i64: 32, 16>}, {transform_indices = @transform_1, window_bounds = array<i64: 16, 32>}, {transform_indices = @transform_2, window_bounds = array<i64: 1, 32>}, {transform_indices = @transform_3, window_bounds = array<i64: 32, 32>}]} {
    %c0 = arith.constant 0 : index
    %c0_0 = arith.constant 0 : index
    %0 = vector.load %arg2[%c0, %c0_0] : memref<32x16xbf16, #tpu.memory_space<vmem>>, vector<32x16xbf16>
    %c0_1 = arith.constant 0 : index
    %c0_2 = arith.constant 0 : index
    %1 = vector.load %arg3[%c0_1, %c0_2] : memref<16x32xbf16, #tpu.memory_space<vmem>>, vector<16x32xbf16>
    %cst = arith.constant dense<0.000000e+00> : vector<32x32xf32>
    %2 = tpu.matmul %0, %1, %cst {dimension_numbers = #tpu.dot_dimension_numbers<[1], [0], [0], [1], [0, 0, 1, 1], [], []>} : vector<32x16xbf16>, vector<16x32xbf16>, vector<32x32xf32> -> vector<32x32xf32>
    %c0_3 = arith.constant 0 : index
    %c0_4 = arith.constant 0 : index
    %3 = vector.load %arg4[%c0_3, %c0_4] : memref<1x32xf32, #tpu.memory_space<vmem>>, vector<1x32xf32>
    %4 = vector.broadcast %3 : vector<1x32xf32> to vector<32x32xf32>
    %5 = arith.addf %2, %4 : vector<32x32xf32>
    %6 = arith.truncf %5 : vector<32x32xf32> to vector<32x32xbf16>
    %c0_5 = arith.constant 0 : index
    %c0_6 = arith.constant 0 : index
    %7 = vector.load %arg5[%c0_5, %c0_6] : memref<32x32xbf16, #tpu.memory_space<vmem>>, vector<32x32xbf16>
    tpu.vector_store %arg5[%c0_5, %c0_6], %6 {strides = array<i32>} : memref<32x32xbf16, #tpu.memory_space<vmem>>, vector<32x32xbf16>,
    return
  }
  func.func @transform_0(%arg0: i32, %arg1: i32) -> (i32, i32) {
    %c0_i32 = arith.constant 0 : i32
    %c0_i32_0 = arith.constant 0 : i32
    return %arg0, %c0_i32 : i32, i32
  }
  func.func @transform_1(%arg0: i32, %arg1: i32) -> (i32, i32) {
    %c0_i32 = arith.constant 0 : i32
    %c0_i32_0 = arith.constant 0 : i32
    return %c0_i32, %arg1 : i32, i32
  }
  func.func @transform_2(%arg0: i32, %arg1: i32) -> (i32, i32) {
    %c0_i32 = arith.constant 0 : i32
    %c0_i32_0 = arith.constant 0 : i32
    return %c0_i32, %arg1 : i32, i32
  }
  func.func @transform_3(%arg0: i32, %arg1: i32) -> (i32, i32) {
    %c0_i32 = arith.constant 0 : i32
    return %arg0, %arg1 : i32, i32
  }
}

module attributes {stable_mosaic.version = 11 : i64} {
  func.func @kernel(%arg0: i32, %arg1: i32, %arg2: memref<32x8xbf16, #tpu.memory_space<vmem>>, %arg3: memref<8x32xbf16, #tpu.memory_space<vmem>>, %arg4: memref<1x32xf32, #tpu.memory_space<vmem>>, %arg5: memref<32x32xbf16, #tpu.memory_space<vmem>>, %arg6: memref<32x32xbf16, #tpu.memory_space<vmem>>) attributes {dimension_semantics = [#tpu.dimension_semantics<parallel>, #tpu.dimension_semantics<parallel>], iteration_bounds = array<i64: 1, 1>, scalar_prefetch = 0 : i64, scratch_operands = 0 : i64, tpu.core_type = #tpu.core_type<tc>, window_params = [{transform_indices = @transform_0, window_bounds = array<i64: 32, 8>}, {transform_indices = @transform_1, window_bounds = array<i64: 8, 32>}, {transform_indices = @transform_2, window_bounds = array<i64: 1, 32>}, {transform_indices = @transform_3, window_bounds = array<i64: 32, 32>}, {transform_indices = @transform_4, window_bounds = array<i64: 32, 32>}]} {
    %c0 = arith.constant 0 : index
    %c0_0 = arith.constant 0 : index
    %0 = vector.load %arg2[%c0, %c0_0] : memref<32x8xbf16, #tpu.memory_space<vmem>>, vector<32x8xbf16>
    %c0_1 = arith.constant 0 : index
    %c0_2 = arith.constant 0 : index
    %1 = vector.load %arg3[%c0_1, %c0_2] : memref<8x32xbf16, #tpu.memory_space<vmem>>, vector<8x32xbf16>
    %cst = arith.constant dense<0.000000e+00> : vector<32x32xf32>
    %2 = tpu.matmul %0, %1, %cst {dimension_numbers = #tpu.dot_dimension_numbers<[1], [0], [0], [1], [0, 0, 1, 1], [], []>} : vector<32x8xbf16>, vector<8x32xbf16>, vector<32x32xf32> -> vector<32x32xf32>
    %c0_3 = arith.constant 0 : index
    %c0_4 = arith.constant 0 : index
    %3 = vector.load %arg5[%c0_3, %c0_4] : memref<32x32xbf16, #tpu.memory_space<vmem>>, vector<32x32xbf16>
    %c0_5 = arith.constant 0 : index
    %c0_6 = arith.constant 0 : index
    %4 = vector.load %arg4[%c0_5, %c0_6] : memref<1x32xf32, #tpu.memory_space<vmem>>, vector<1x32xf32>
    %5 = vector.broadcast %4 : vector<1x32xf32> to vector<32x32xf32>
    %6 = arith.addf %2, %5 : vector<32x32xf32>
    %7 = arith.extf %3 : vector<32x32xbf16> to vector<32x32xf32>
    %8 = arith.addf %6, %7 : vector<32x32xf32>
    %cst_7 = arith.constant 0.000000e+00 : f32
    %9 = vector.broadcast %cst_7 : f32 to vector<32x32xf32>
    %10 = arith.maximumf %8, %9 : vector<32x32xf32>
    %11 = arith.truncf %10 : vector<32x32xf32> to vector<32x32xbf16>
    %c0_8 = arith.constant 0 : index
    %c0_9 = arith.constant 0 : index
    %12 = vector.load %arg6[%c0_8, %c0_9] : memref<32x32xbf16, #tpu.memory_space<vmem>>, vector<32x32xbf16>
    tpu.vector_store %arg6[%c0_8, %c0_9], %11 {strides = array<i32>} : memref<32x32xbf16, #tpu.memory_space<vmem>>, vector<32x32xbf16>,
    return
  }
  func.func @transform_0(%arg0: i32, %arg1: i32) -> (i32, i32) {
    %c0_i32 = arith.constant 0 : i32
    %c0_i32_0 = arith.constant 0 : i32
    return %arg0, %c0_i32 : i32, i32
  }
  func.func @transform_1(%arg0: i32, %arg1: i32) -> (i32, i32) {
    %c0_i32 = arith.constant 0 : i32
    %c0_i32_0 = arith.constant 0 : i32
    return %c0_i32, %arg1 : i32, i32
  }
  func.func @transform_2(%arg0: i32, %arg1: i32) -> (i32, i32) {
    %c0_i32 = arith.constant 0 : i32
    %c0_i32_0 = arith.constant 0 : i32
    return %c0_i32, %arg1 : i32, i32
  }
  func.func @transform_3(%arg0: i32, %arg1: i32) -> (i32, i32) {
    %c0_i32 = arith.constant 0 : i32
    return %arg0, %arg1 : i32, i32
  }
  func.func @transform_4(%arg0: i32, %arg1: i32) -> (i32, i32) {
    %c0_i32 = arith.constant 0 : i32
    return %arg0, %arg1 : i32, i32
  }
}

module attributes {stable_mosaic.version = 11 : i64} {
  func.func @kernel(%arg0: i32, %arg1: i32, %arg2: memref<32x32xbf16, #tpu.memory_space<vmem>>, %arg3: memref<32x8xbf16, #tpu.memory_space<vmem>>, %arg4: memref<1x8xf32, #tpu.memory_space<vmem>>, %arg5: memref<32x8xbf16, #tpu.memory_space<vmem>>) attributes {dimension_semantics = [#tpu.dimension_semantics<parallel>, #tpu.dimension_semantics<parallel>], iteration_bounds = array<i64: 1, 1>, scalar_prefetch = 0 : i64, scratch_operands = 0 : i64, tpu.core_type = #tpu.core_type<tc>, window_params = [{transform_indices = @transform_0, window_bounds = array<i64: 32, 32>}, {transform_indices = @transform_1, window_bounds = array<i64: 32, 8>}, {transform_indices = @transform_2, window_bounds = array<i64: 1, 8>}, {transform_indices = @transform_3, window_bounds = array<i64: 32, 8>}]} {
    %c0 = arith.constant 0 : index
    %c0_0 = arith.constant 0 : index
    %0 = vector.load %arg2[%c0, %c0_0] : memref<32x32xbf16, #tpu.memory_space<vmem>>, vector<32x32xbf16>
    %c0_1 = arith.constant 0 : index
    %c0_2 = arith.constant 0 : index
    %1 = vector.load %arg3[%c0_1, %c0_2] : memref<32x8xbf16, #tpu.memory_space<vmem>>, vector<32x8xbf16>
    %cst = arith.constant dense<0.000000e+00> : vector<32x8xf32>
    %2 = tpu.matmul %0, %1, %cst {dimension_numbers = #tpu.dot_dimension_numbers<[1], [0], [0], [1], [0, 0, 1, 1], [], []>} : vector<32x32xbf16>, vector<32x8xbf16>, vector<32x8xf32> -> vector<32x8xf32>
    %c0_3 = arith.constant 0 : index
    %c0_4 = arith.constant 0 : index
    %3 = vector.load %arg4[%c0_3, %c0_4] : memref<1x8xf32, #tpu.memory_space<vmem>>, vector<1x8xf32>
    %4 = vector.broadcast %3 : vector<1x8xf32> to vector<32x8xf32>
    %5 = arith.addf %2, %4 : vector<32x8xf32>
    %cst_5 = arith.constant 0.000000e+00 : f32
    %6 = vector.broadcast %cst_5 : f32 to vector<32x8xf32>
    %7 = arith.maximumf %5, %6 : vector<32x8xf32>
    %8 = arith.truncf %7 : vector<32x8xf32> to vector<32x8xbf16>
    %c0_6 = arith.constant 0 : index
    %c0_7 = arith.constant 0 : index
    %9 = vector.load %arg5[%c0_6, %c0_7] : memref<32x8xbf16, #tpu.memory_space<vmem>>, vector<32x8xbf16>
    tpu.vector_store %arg5[%c0_6, %c0_7], %8 {strides = array<i32>} : memref<32x8xbf16, #tpu.memory_space<vmem>>, vector<32x8xbf16>,
    return
  }
  func.func @transform_0(%arg0: i32, %arg1: i32) -> (i32, i32) {
    %c0_i32 = arith.constant 0 : i32
    %c0_i32_0 = arith.constant 0 : i32
    return %arg0, %c0_i32 : i32, i32
  }
  func.func @transform_1(%arg0: i32, %arg1: i32) -> (i32, i32) {
    %c0_i32 = arith.constant 0 : i32
    %c0_i32_0 = arith.constant 0 : i32
    return %c0_i32, %arg1 : i32, i32
  }
  func.func @transform_2(%arg0: i32, %arg1: i32) -> (i32, i32) {
    %c0_i32 = arith.constant 0 : i32
    %c0_i32_0 = arith.constant 0 : i32
    return %c0_i32, %arg1 : i32, i32
  }
  func.func @transform_3(%arg0: i32, %arg1: i32) -> (i32, i32) {
    %c0_i32 = arith.constant 0 : i32
    return %arg0, %arg1 : i32, i32
  }
}

module attributes {stable_mosaic.version = 11 : i64} {
  func.func @kernel(%arg0: i32, %arg1: i32, %arg2: memref<32x288xbf16, #tpu.memory_space<vmem>>, %arg3: memref<288x8xbf16, #tpu.memory_space<vmem>>, %arg4: memref<1x8xf32, #tpu.memory_space<vmem>>, %arg5: memref<32x8xbf16, #tpu.memory_space<vmem>>) attributes {dimension_semantics = [#tpu.dimension_semantics<parallel>, #tpu.dimension_semantics<parallel>], iteration_bounds = array<i64: 1, 1>, scalar_prefetch = 0 : i64, scratch_operands = 0 : i64, tpu.core_type = #tpu.core_type<tc>, window_params = [{transform_indices = @transform_0, window_bounds = array<i64: 32, 288>}, {transform_indices = @transform_1, window_bounds = array<i64: 288, 8>}, {transform_indices = @transform_2, window_bounds = array<i64: 1, 8>}, {transform_indices = @transform_3, window_bounds = array<i64: 32, 8>}]} {
    %c0 = arith.constant 0 : index
    %c0_0 = arith.constant 0 : index
    %0 = vector.load %arg2[%c0, %c0_0] : memref<32x288xbf16, #tpu.memory_space<vmem>>, vector<32x288xbf16>
    %c0_1 = arith.constant 0 : index
    %c0_2 = arith.constant 0 : index
    %1 = vector.load %arg3[%c0_1, %c0_2] : memref<288x8xbf16, #tpu.memory_space<vmem>>, vector<288x8xbf16>
    %cst = arith.constant dense<0.000000e+00> : vector<32x8xf32>
    %2 = tpu.matmul %0, %1, %cst {dimension_numbers = #tpu.dot_dimension_numbers<[1], [0], [0], [1], [0, 0, 1, 1], [], []>} : vector<32x288xbf16>, vector<288x8xbf16>, vector<32x8xf32> -> vector<32x8xf32>
    %c0_3 = arith.constant 0 : index
    %c0_4 = arith.constant 0 : index
    %3 = vector.load %arg4[%c0_3, %c0_4] : memref<1x8xf32, #tpu.memory_space<vmem>>, vector<1x8xf32>
    %4 = vector.broadcast %3 : vector<1x8xf32> to vector<32x8xf32>
    %5 = arith.addf %2, %4 : vector<32x8xf32>
    %cst_5 = arith.constant 0.000000e+00 : f32
    %6 = vector.broadcast %cst_5 : f32 to vector<32x8xf32>
    %7 = arith.maximumf %5, %6 : vector<32x8xf32>
    %8 = arith.truncf %7 : vector<32x8xf32> to vector<32x8xbf16>
    %c0_6 = arith.constant 0 : index
    %c0_7 = arith.constant 0 : index
    %9 = vector.load %arg5[%c0_6, %c0_7] : memref<32x8xbf16, #tpu.memory_space<vmem>>, vector<32x8xbf16>
    tpu.vector_store %arg5[%c0_6, %c0_7], %8 {strides = array<i32>} : memref<32x8xbf16, #tpu.memory_space<vmem>>, vector<32x8xbf16>,
    return
  }
  func.func @transform_0(%arg0: i32, %arg1: i32) -> (i32, i32) {
    %c0_i32 = arith.constant 0 : i32
    %c0_i32_0 = arith.constant 0 : i32
    return %arg0, %c0_i32 : i32, i32
  }
  func.func @transform_1(%arg0: i32, %arg1: i32) -> (i32, i32) {
    %c0_i32 = arith.constant 0 : i32
    %c0_i32_0 = arith.constant 0 : i32
    return %c0_i32, %arg1 : i32, i32
  }
  func.func @transform_2(%arg0: i32, %arg1: i32) -> (i32, i32) {
    %c0_i32 = arith.constant 0 : i32
    %c0_i32_0 = arith.constant 0 : i32
    return %c0_i32, %arg1 : i32, i32
  }
  func.func @transform_3(%arg0: i32, %arg1: i32) -> (i32, i32) {
    %c0_i32 = arith.constant 0 : i32
    return %arg0, %arg1 : i32, i32
  }
}

module attributes {stable_mosaic.version = 11 : i64} {
  func.func @kernel(%arg0: i32, %arg1: i32, %arg2: memref<32x32xbf16, #tpu.memory_space<vmem>>, %arg3: memref<32x16xbf16, #tpu.memory_space<vmem>>, %arg4: memref<1x16xf32, #tpu.memory_space<vmem>>, %arg5: memref<32x16xbf16, #tpu.memory_space<vmem>>) attributes {dimension_semantics = [#tpu.dimension_semantics<parallel>, #tpu.dimension_semantics<parallel>], iteration_bounds = array<i64: 1, 1>, scalar_prefetch = 0 : i64, scratch_operands = 0 : i64, tpu.core_type = #tpu.core_type<tc>, window_params = [{transform_indices = @transform_0, window_bounds = array<i64: 32, 32>}, {transform_indices = @transform_1, window_bounds = array<i64: 32, 16>}, {transform_indices = @transform_2, window_bounds = array<i64: 1, 16>}, {transform_indices = @transform_3, window_bounds = array<i64: 32, 16>}]} {
    %c0 = arith.constant 0 : index
    %c0_0 = arith.constant 0 : index
    %0 = vector.load %arg2[%c0, %c0_0] : memref<32x32xbf16, #tpu.memory_space<vmem>>, vector<32x32xbf16>
    %c0_1 = arith.constant 0 : index
    %c0_2 = arith.constant 0 : index
    %1 = vector.load %arg3[%c0_1, %c0_2] : memref<32x16xbf16, #tpu.memory_space<vmem>>, vector<32x16xbf16>
    %cst = arith.constant dense<0.000000e+00> : vector<32x16xf32>
    %2 = tpu.matmul %0, %1, %cst {dimension_numbers = #tpu.dot_dimension_numbers<[1], [0], [0], [1], [0, 0, 1, 1], [], []>} : vector<32x32xbf16>, vector<32x16xbf16>, vector<32x16xf32> -> vector<32x16xf32>
    %c0_3 = arith.constant 0 : index
    %c0_4 = arith.constant 0 : index
    %3 = vector.load %arg4[%c0_3, %c0_4] : memref<1x16xf32, #tpu.memory_space<vmem>>, vector<1x16xf32>
    %4 = vector.broadcast %3 : vector<1x16xf32> to vector<32x16xf32>
    %5 = arith.addf %2, %4 : vector<32x16xf32>
    %cst_5 = arith.constant 0.000000e+00 : f32
    %6 = vector.broadcast %cst_5 : f32 to vector<32x16xf32>
    %7 = arith.maximumf %5, %6 : vector<32x16xf32>
    %8 = arith.truncf %7 : vector<32x16xf32> to vector<32x16xbf16>
    %c0_6 = arith.constant 0 : index
    %c0_7 = arith.constant 0 : index
    %9 = vector.load %arg5[%c0_6, %c0_7] : memref<32x16xbf16, #tpu.memory_space<vmem>>, vector<32x16xbf16>
    tpu.vector_store %arg5[%c0_6, %c0_7], %8 {strides = array<i32>} : memref<32x16xbf16, #tpu.memory_space<vmem>>, vector<32x16xbf16>,
    return
  }
  func.func @transform_0(%arg0: i32, %arg1: i32) -> (i32, i32) {
    %c0_i32 = arith.constant 0 : i32
    %c0_i32_0 = arith.constant 0 : i32
    return %arg0, %c0_i32 : i32, i32
  }
  func.func @transform_1(%arg0: i32, %arg1: i32) -> (i32, i32) {
    %c0_i32 = arith.constant 0 : i32
    %c0_i32_0 = arith.constant 0 : i32
    return %c0_i32, %arg1 : i32, i32
  }
  func.func @transform_2(%arg0: i32, %arg1: i32) -> (i32, i32) {
    %c0_i32 = arith.constant 0 : i32
    %c0_i32_0 = arith.constant 0 : i32
    return %c0_i32, %arg1 : i32, i32
  }
  func.func @transform_3(%arg0: i32, %arg1: i32) -> (i32, i32) {
    %c0_i32 = arith.constant 0 : i32
    return %arg0, %arg1 : i32, i32
  }
}

module attributes {stable_mosaic.version = 11 : i64} {
  func.func @kernel(%arg0: i32, %arg1: i32, %arg2: memref<32x144xbf16, #tpu.memory_space<vmem>>, %arg3: memref<144x16xbf16, #tpu.memory_space<vmem>>, %arg4: memref<1x16xf32, #tpu.memory_space<vmem>>, %arg5: memref<32x16xbf16, #tpu.memory_space<vmem>>) attributes {dimension_semantics = [#tpu.dimension_semantics<parallel>, #tpu.dimension_semantics<parallel>], iteration_bounds = array<i64: 1, 1>, scalar_prefetch = 0 : i64, scratch_operands = 0 : i64, tpu.core_type = #tpu.core_type<tc>, window_params = [{transform_indices = @transform_0, window_bounds = array<i64: 32, 144>}, {transform_indices = @transform_1, window_bounds = array<i64: 144, 16>}, {transform_indices = @transform_2, window_bounds = array<i64: 1, 16>}, {transform_indices = @transform_3, window_bounds = array<i64: 32, 16>}]} {
    %c0 = arith.constant 0 : index
    %c0_0 = arith.constant 0 : index
    %0 = vector.load %arg2[%c0, %c0_0] : memref<32x144xbf16, #tpu.memory_space<vmem>>, vector<32x144xbf16>
    %c0_1 = arith.constant 0 : index
    %c0_2 = arith.constant 0 : index
    %1 = vector.load %arg3[%c0_1, %c0_2] : memref<144x16xbf16, #tpu.memory_space<vmem>>, vector<144x16xbf16>
    %cst = arith.constant dense<0.000000e+00> : vector<32x16xf32>
    %2 = tpu.matmul %0, %1, %cst {dimension_numbers = #tpu.dot_dimension_numbers<[1], [0], [0], [1], [0, 0, 1, 1], [], []>} : vector<32x144xbf16>, vector<144x16xbf16>, vector<32x16xf32> -> vector<32x16xf32>
    %c0_3 = arith.constant 0 : index
    %c0_4 = arith.constant 0 : index
    %3 = vector.load %arg4[%c0_3, %c0_4] : memref<1x16xf32, #tpu.memory_space<vmem>>, vector<1x16xf32>
    %4 = vector.broadcast %3 : vector<1x16xf32> to vector<32x16xf32>
    %5 = arith.addf %2, %4 : vector<32x16xf32>
    %cst_5 = arith.constant 0.000000e+00 : f32
    %6 = vector.broadcast %cst_5 : f32 to vector<32x16xf32>
    %7 = arith.maximumf %5, %6 : vector<32x16xf32>
    %8 = arith.truncf %7 : vector<32x16xf32> to vector<32x16xbf16>
    %c0_6 = arith.constant 0 : index
    %c0_7 = arith.constant 0 : index
    %9 = vector.load %arg5[%c0_6, %c0_7] : memref<32x16xbf16, #tpu.memory_space<vmem>>, vector<32x16xbf16>
    tpu.vector_store %arg5[%c0_6, %c0_7], %8 {strides = array<i32>} : memref<32x16xbf16, #tpu.memory_space<vmem>>, vector<32x16xbf16>,
    return
  }
  func.func @transform_0(%arg0: i32, %arg1: i32) -> (i32, i32) {
    %c0_i32 = arith.constant 0 : i32
    %c0_i32_0 = arith.constant 0 : i32
    return %arg0, %c0_i32 : i32, i32
  }
  func.func @transform_1(%arg0: i32, %arg1: i32) -> (i32, i32) {
    %c0_i32 = arith.constant 0 : i32
    %c0_i32_0 = arith.constant 0 : i32
    return %c0_i32, %arg1 : i32, i32
  }
  func.func @transform_2(%arg0: i32, %arg1: i32) -> (i32, i32) {
    %c0_i32 = arith.constant 0 : i32
    %c0_i32_0 = arith.constant 0 : i32
    return %c0_i32, %arg1 : i32, i32
  }
  func.func @transform_3(%arg0: i32, %arg1: i32) -> (i32, i32) {
    %c0_i32 = arith.constant 0 : i32
    return %arg0, %arg1 : i32, i32
  }
}

module attributes {stable_mosaic.version = 11 : i64} {
  func.func @kernel(%arg0: i32, %arg1: i32, %arg2: memref<32x32xbf16, #tpu.memory_space<vmem>>, %arg3: memref<32x64xbf16, #tpu.memory_space<vmem>>, %arg4: memref<1x64xf32, #tpu.memory_space<vmem>>, %arg5: memref<32x64xbf16, #tpu.memory_space<vmem>>) attributes {dimension_semantics = [#tpu.dimension_semantics<parallel>, #tpu.dimension_semantics<parallel>], iteration_bounds = array<i64: 1, 1>, scalar_prefetch = 0 : i64, scratch_operands = 0 : i64, tpu.core_type = #tpu.core_type<tc>, window_params = [{transform_indices = @transform_0, window_bounds = array<i64: 32, 32>}, {transform_indices = @transform_1, window_bounds = array<i64: 32, 64>}, {transform_indices = @transform_2, window_bounds = array<i64: 1, 64>}, {transform_indices = @transform_3, window_bounds = array<i64: 32, 64>}]} {
    %c0 = arith.constant 0 : index
    %c0_0 = arith.constant 0 : index
    %0 = vector.load %arg2[%c0, %c0_0] : memref<32x32xbf16, #tpu.memory_space<vmem>>, vector<32x32xbf16>
    %c0_1 = arith.constant 0 : index
    %c0_2 = arith.constant 0 : index
    %1 = vector.load %arg3[%c0_1, %c0_2] : memref<32x64xbf16, #tpu.memory_space<vmem>>, vector<32x64xbf16>
    %cst = arith.constant dense<0.000000e+00> : vector<32x64xf32>
    %2 = tpu.matmul %0, %1, %cst {dimension_numbers = #tpu.dot_dimension_numbers<[1], [0], [0], [1], [0, 0, 1, 1], [], []>} : vector<32x32xbf16>, vector<32x64xbf16>, vector<32x64xf32> -> vector<32x64xf32>
    %c0_3 = arith.constant 0 : index
    %c0_4 = arith.constant 0 : index
    %3 = vector.load %arg4[%c0_3, %c0_4] : memref<1x64xf32, #tpu.memory_space<vmem>>, vector<1x64xf32>
    %4 = vector.broadcast %3 : vector<1x64xf32> to vector<32x64xf32>
    %5 = arith.addf %2, %4 : vector<32x64xf32>
    %6 = arith.truncf %5 : vector<32x64xf32> to vector<32x64xbf16>
    %c0_5 = arith.constant 0 : index
    %c0_6 = arith.constant 0 : index
    %7 = vector.load %arg5[%c0_5, %c0_6] : memref<32x64xbf16, #tpu.memory_space<vmem>>, vector<32x64xbf16>
    tpu.vector_store %arg5[%c0_5, %c0_6], %6 {strides = array<i32>} : memref<32x64xbf16, #tpu.memory_space<vmem>>, vector<32x64xbf16>,
    return
  }
  func.func @transform_0(%arg0: i32, %arg1: i32) -> (i32, i32) {
    %c0_i32 = arith.constant 0 : i32
    %c0_i32_0 = arith.constant 0 : i32
    return %arg0, %c0_i32 : i32, i32
  }
  func.func @transform_1(%arg0: i32, %arg1: i32) -> (i32, i32) {
    %c0_i32 = arith.constant 0 : i32
    %c0_i32_0 = arith.constant 0 : i32
    return %c0_i32, %arg1 : i32, i32
  }
  func.func @transform_2(%arg0: i32, %arg1: i32) -> (i32, i32) {
    %c0_i32 = arith.constant 0 : i32
    %c0_i32_0 = arith.constant 0 : i32
    return %c0_i32, %arg1 : i32, i32
  }
  func.func @transform_3(%arg0: i32, %arg1: i32) -> (i32, i32) {
    %c0_i32 = arith.constant 0 : i32
    return %arg0, %arg1 : i32, i32
  }
}

module attributes {stable_mosaic.version = 11 : i64} {
  func.func @kernel(%arg0: i32, %arg1: i32, %arg2: memref<32x16xbf16, #tpu.memory_space<vmem>>, %arg3: memref<16x64xbf16, #tpu.memory_space<vmem>>, %arg4: memref<1x64xf32, #tpu.memory_space<vmem>>, %arg5: memref<32x64xbf16, #tpu.memory_space<vmem>>, %arg6: memref<32x64xbf16, #tpu.memory_space<vmem>>) attributes {dimension_semantics = [#tpu.dimension_semantics<parallel>, #tpu.dimension_semantics<parallel>], iteration_bounds = array<i64: 1, 1>, scalar_prefetch = 0 : i64, scratch_operands = 0 : i64, tpu.core_type = #tpu.core_type<tc>, window_params = [{transform_indices = @transform_0, window_bounds = array<i64: 32, 16>}, {transform_indices = @transform_1, window_bounds = array<i64: 16, 64>}, {transform_indices = @transform_2, window_bounds = array<i64: 1, 64>}, {transform_indices = @transform_3, window_bounds = array<i64: 32, 64>}, {transform_indices = @transform_4, window_bounds = array<i64: 32, 64>}]} {
    %c0 = arith.constant 0 : index
    %c0_0 = arith.constant 0 : index
    %0 = vector.load %arg2[%c0, %c0_0] : memref<32x16xbf16, #tpu.memory_space<vmem>>, vector<32x16xbf16>
    %c0_1 = arith.constant 0 : index
    %c0_2 = arith.constant 0 : index
    %1 = vector.load %arg3[%c0_1, %c0_2] : memref<16x64xbf16, #tpu.memory_space<vmem>>, vector<16x64xbf16>
    %cst = arith.constant dense<0.000000e+00> : vector<32x64xf32>
    %2 = tpu.matmul %0, %1, %cst {dimension_numbers = #tpu.dot_dimension_numbers<[1], [0], [0], [1], [0, 0, 1, 1], [], []>} : vector<32x16xbf16>, vector<16x64xbf16>, vector<32x64xf32> -> vector<32x64xf32>
    %c0_3 = arith.constant 0 : index
    %c0_4 = arith.constant 0 : index
    %3 = vector.load %arg5[%c0_3, %c0_4] : memref<32x64xbf16, #tpu.memory_space<vmem>>, vector<32x64xbf16>
    %c0_5 = arith.constant 0 : index
    %c0_6 = arith.constant 0 : index
    %4 = vector.load %arg4[%c0_5, %c0_6] : memref<1x64xf32, #tpu.memory_space<vmem>>, vector<1x64xf32>
    %5 = vector.broadcast %4 : vector<1x64xf32> to vector<32x64xf32>
    %6 = arith.addf %2, %5 : vector<32x64xf32>
    %7 = arith.extf %3 : vector<32x64xbf16> to vector<32x64xf32>
    %8 = arith.addf %6, %7 : vector<32x64xf32>
    %cst_7 = arith.constant 0.000000e+00 : f32
    %9 = vector.broadcast %cst_7 : f32 to vector<32x64xf32>
    %10 = arith.maximumf %8, %9 : vector<32x64xf32>
    %11 = arith.truncf %10 : vector<32x64xf32> to vector<32x64xbf16>
    %c0_8 = arith.constant 0 : index
    %c0_9 = arith.constant 0 : index
    %12 = vector.load %arg6[%c0_8, %c0_9] : memref<32x64xbf16, #tpu.memory_space<vmem>>, vector<32x64xbf16>
    tpu.vector_store %arg6[%c0_8, %c0_9], %11 {strides = array<i32>} : memref<32x64xbf16, #tpu.memory_space<vmem>>, vector<32x64xbf16>,
    return
  }
  func.func @transform_0(%arg0: i32, %arg1: i32) -> (i32, i32) {
    %c0_i32 = arith.constant 0 : i32
    %c0_i32_0 = arith.constant 0 : i32
    return %arg0, %c0_i32 : i32, i32
  }
  func.func @transform_1(%arg0: i32, %arg1: i32) -> (i32, i32) {
    %c0_i32 = arith.constant 0 : i32
    %c0_i32_0 = arith.constant 0 : i32
    return %c0_i32, %arg1 : i32, i32
  }
  func.func @transform_2(%arg0: i32, %arg1: i32) -> (i32, i32) {
    %c0_i32 = arith.constant 0 : i32
    %c0_i32_0 = arith.constant 0 : i32
    return %c0_i32, %arg1 : i32, i32
  }
  func.func @transform_3(%arg0: i32, %arg1: i32) -> (i32, i32) {
    %c0_i32 = arith.constant 0 : i32
    return %arg0, %arg1 : i32, i32
  }
  func.func @transform_4(%arg0: i32, %arg1: i32) -> (i32, i32) {
    %c0_i32 = arith.constant 0 : i32
    return %arg0, %arg1 : i32, i32
  }
}

module attributes {stable_mosaic.version = 11 : i64} {
  func.func @kernel(%arg0: i32, %arg1: i32, %arg2: memref<32x64xbf16, #tpu.memory_space<vmem>>, %arg3: memref<64x16xbf16, #tpu.memory_space<vmem>>, %arg4: memref<1x16xf32, #tpu.memory_space<vmem>>, %arg5: memref<32x16xbf16, #tpu.memory_space<vmem>>) attributes {dimension_semantics = [#tpu.dimension_semantics<parallel>, #tpu.dimension_semantics<parallel>], iteration_bounds = array<i64: 1, 1>, scalar_prefetch = 0 : i64, scratch_operands = 0 : i64, tpu.core_type = #tpu.core_type<tc>, window_params = [{transform_indices = @transform_0, window_bounds = array<i64: 32, 64>}, {transform_indices = @transform_1, window_bounds = array<i64: 64, 16>}, {transform_indices = @transform_2, window_bounds = array<i64: 1, 16>}, {transform_indices = @transform_3, window_bounds = array<i64: 32, 16>}]} {
    %c0 = arith.constant 0 : index
    %c0_0 = arith.constant 0 : index
    %0 = vector.load %arg2[%c0, %c0_0] : memref<32x64xbf16, #tpu.memory_space<vmem>>, vector<32x64xbf16>
    %c0_1 = arith.constant 0 : index
    %c0_2 = arith.constant 0 : index
    %1 = vector.load %arg3[%c0_1, %c0_2] : memref<64x16xbf16, #tpu.memory_space<vmem>>, vector<64x16xbf16>
    %cst = arith.constant dense<0.000000e+00> : vector<32x16xf32>
    %2 = tpu.matmul %0, %1, %cst {dimension_numbers = #tpu.dot_dimension_numbers<[1], [0], [0], [1], [0, 0, 1, 1], [], []>} : vector<32x64xbf16>, vector<64x16xbf16>, vector<32x16xf32> -> vector<32x16xf32>
    %c0_3 = arith.constant 0 : index
    %c0_4 = arith.constant 0 : index
    %3 = vector.load %arg4[%c0_3, %c0_4] : memref<1x16xf32, #tpu.memory_space<vmem>>, vector<1x16xf32>
    %4 = vector.broadcast %3 : vector<1x16xf32> to vector<32x16xf32>
    %5 = arith.addf %2, %4 : vector<32x16xf32>
    %cst_5 = arith.constant 0.000000e+00 : f32
    %6 = vector.broadcast %cst_5 : f32 to vector<32x16xf32>
    %7 = arith.maximumf %5, %6 : vector<32x16xf32>
    %8 = arith.truncf %7 : vector<32x16xf32> to vector<32x16xbf16>
    %c0_6 = arith.constant 0 : index
    %c0_7 = arith.constant 0 : index
    %9 = vector.load %arg5[%c0_6, %c0_7] : memref<32x16xbf16, #tpu.memory_space<vmem>>, vector<32x16xbf16>
    tpu.vector_store %arg5[%c0_6, %c0_7], %8 {strides = array<i32>} : memref<32x16xbf16, #tpu.memory_space<vmem>>, vector<32x16xbf16>,
    return
  }
  func.func @transform_0(%arg0: i32, %arg1: i32) -> (i32, i32) {
    %c0_i32 = arith.constant 0 : i32
    %c0_i32_0 = arith.constant 0 : i32
    return %arg0, %c0_i32 : i32, i32
  }
  func.func @transform_1(%arg0: i32, %arg1: i32) -> (i32, i32) {
    %c0_i32 = arith.constant 0 : i32
    %c0_i32_0 = arith.constant 0 : i32
    return %c0_i32, %arg1 : i32, i32
  }
  func.func @transform_2(%arg0: i32, %arg1: i32) -> (i32, i32) {
    %c0_i32 = arith.constant 0 : i32
    %c0_i32_0 = arith.constant 0 : i32
    return %c0_i32, %arg1 : i32, i32
  }
  func.func @transform_3(%arg0: i32, %arg1: i32) -> (i32, i32) {
    %c0_i32 = arith.constant 0 : i32
    return %arg0, %arg1 : i32, i32
  }
}

module attributes {stable_mosaic.version = 11 : i64} {
  func.func @kernel(%arg0: i32, %arg1: i32, %arg2: memref<32x576xbf16, #tpu.memory_space<vmem>>, %arg3: memref<576x8xbf16, #tpu.memory_space<vmem>>, %arg4: memref<1x8xf32, #tpu.memory_space<vmem>>, %arg5: memref<32x8xbf16, #tpu.memory_space<vmem>>) attributes {dimension_semantics = [#tpu.dimension_semantics<parallel>, #tpu.dimension_semantics<parallel>], iteration_bounds = array<i64: 1, 1>, scalar_prefetch = 0 : i64, scratch_operands = 0 : i64, tpu.core_type = #tpu.core_type<tc>, window_params = [{transform_indices = @transform_0, window_bounds = array<i64: 32, 576>}, {transform_indices = @transform_1, window_bounds = array<i64: 576, 8>}, {transform_indices = @transform_2, window_bounds = array<i64: 1, 8>}, {transform_indices = @transform_3, window_bounds = array<i64: 32, 8>}]} {
    %c0 = arith.constant 0 : index
    %c0_0 = arith.constant 0 : index
    %0 = vector.load %arg2[%c0, %c0_0] : memref<32x576xbf16, #tpu.memory_space<vmem>>, vector<32x576xbf16>
    %c0_1 = arith.constant 0 : index
    %c0_2 = arith.constant 0 : index
    %1 = vector.load %arg3[%c0_1, %c0_2] : memref<576x8xbf16, #tpu.memory_space<vmem>>, vector<576x8xbf16>
    %cst = arith.constant dense<0.000000e+00> : vector<32x8xf32>
    %2 = tpu.matmul %0, %1, %cst {dimension_numbers = #tpu.dot_dimension_numbers<[1], [0], [0], [1], [0, 0, 1, 1], [], []>} : vector<32x576xbf16>, vector<576x8xbf16>, vector<32x8xf32> -> vector<32x8xf32>
    %c0_3 = arith.constant 0 : index
    %c0_4 = arith.constant 0 : index
    %3 = vector.load %arg4[%c0_3, %c0_4] : memref<1x8xf32, #tpu.memory_space<vmem>>, vector<1x8xf32>
    %4 = vector.broadcast %3 : vector<1x8xf32> to vector<32x8xf32>
    %5 = arith.addf %2, %4 : vector<32x8xf32>
    %cst_5 = arith.constant 0.000000e+00 : f32
    %6 = vector.broadcast %cst_5 : f32 to vector<32x8xf32>
    %7 = arith.maximumf %5, %6 : vector<32x8xf32>
    %8 = arith.truncf %7 : vector<32x8xf32> to vector<32x8xbf16>
    %c0_6 = arith.constant 0 : index
    %c0_7 = arith.constant 0 : index
    %9 = vector.load %arg5[%c0_6, %c0_7] : memref<32x8xbf16, #tpu.memory_space<vmem>>, vector<32x8xbf16>
    tpu.vector_store %arg5[%c0_6, %c0_7], %8 {strides = array<i32>} : memref<32x8xbf16, #tpu.memory_space<vmem>>, vector<32x8xbf16>,
    return
  }
  func.func @transform_0(%arg0: i32, %arg1: i32) -> (i32, i32) {
    %c0_i32 = arith.constant 0 : i32
    %c0_i32_0 = arith.constant 0 : i32
    return %arg0, %c0_i32 : i32, i32
  }
  func.func @transform_1(%arg0: i32, %arg1: i32) -> (i32, i32) {
    %c0_i32 = arith.constant 0 : i32
    %c0_i32_0 = arith.constant 0 : i32
    return %c0_i32, %arg1 : i32, i32
  }
  func.func @transform_2(%arg0: i32, %arg1: i32) -> (i32, i32) {
    %c0_i32 = arith.constant 0 : i32
    %c0_i32_0 = arith.constant 0 : i32
    return %c0_i32, %arg1 : i32, i32
  }
  func.func @transform_3(%arg0: i32, %arg1: i32) -> (i32, i32) {
    %c0_i32 = arith.constant 0 : i32
    return %arg0, %arg1 : i32, i32
  }
}

module attributes {stable_mosaic.version = 11 : i64} {
  func.func @kernel(%arg0: i32, %arg1: i32, %arg2: memref<32x64xbf16, #tpu.memory_space<vmem>>, %arg3: memref<64x32xbf16, #tpu.memory_space<vmem>>, %arg4: memref<1x32xf32, #tpu.memory_space<vmem>>, %arg5: memref<32x32xbf16, #tpu.memory_space<vmem>>) attributes {dimension_semantics = [#tpu.dimension_semantics<parallel>, #tpu.dimension_semantics<parallel>], iteration_bounds = array<i64: 1, 1>, scalar_prefetch = 0 : i64, scratch_operands = 0 : i64, tpu.core_type = #tpu.core_type<tc>, window_params = [{transform_indices = @transform_0, window_bounds = array<i64: 32, 64>}, {transform_indices = @transform_1, window_bounds = array<i64: 64, 32>}, {transform_indices = @transform_2, window_bounds = array<i64: 1, 32>}, {transform_indices = @transform_3, window_bounds = array<i64: 32, 32>}]} {
    %c0 = arith.constant 0 : index
    %c0_0 = arith.constant 0 : index
    %0 = vector.load %arg2[%c0, %c0_0] : memref<32x64xbf16, #tpu.memory_space<vmem>>, vector<32x64xbf16>
    %c0_1 = arith.constant 0 : index
    %c0_2 = arith.constant 0 : index
    %1 = vector.load %arg3[%c0_1, %c0_2] : memref<64x32xbf16, #tpu.memory_space<vmem>>, vector<64x32xbf16>
    %cst = arith.constant dense<0.000000e+00> : vector<32x32xf32>
    %2 = tpu.matmul %0, %1, %cst {dimension_numbers = #tpu.dot_dimension_numbers<[1], [0], [0], [1], [0, 0, 1, 1], [], []>} : vector<32x64xbf16>, vector<64x32xbf16>, vector<32x32xf32> -> vector<32x32xf32>
    %c0_3 = arith.constant 0 : index
    %c0_4 = arith.constant 0 : index
    %3 = vector.load %arg4[%c0_3, %c0_4] : memref<1x32xf32, #tpu.memory_space<vmem>>, vector<1x32xf32>
    %4 = vector.broadcast %3 : vector<1x32xf32> to vector<32x32xf32>
    %5 = arith.addf %2, %4 : vector<32x32xf32>
    %cst_5 = arith.constant 0.000000e+00 : f32
    %6 = vector.broadcast %cst_5 : f32 to vector<32x32xf32>
    %7 = arith.maximumf %5, %6 : vector<32x32xf32>
    %8 = arith.truncf %7 : vector<32x32xf32> to vector<32x32xbf16>
    %c0_6 = arith.constant 0 : index
    %c0_7 = arith.constant 0 : index
    %9 = vector.load %arg5[%c0_6, %c0_7] : memref<32x32xbf16, #tpu.memory_space<vmem>>, vector<32x32xbf16>
    tpu.vector_store %arg5[%c0_6, %c0_7], %8 {strides = array<i32>} : memref<32x32xbf16, #tpu.memory_space<vmem>>, vector<32x32xbf16>,
    return
  }
  func.func @transform_0(%arg0: i32, %arg1: i32) -> (i32, i32) {
    %c0_i32 = arith.constant 0 : i32
    %c0_i32_0 = arith.constant 0 : i32
    return %arg0, %c0_i32 : i32, i32
  }
  func.func @transform_1(%arg0: i32, %arg1: i32) -> (i32, i32) {
    %c0_i32 = arith.constant 0 : i32
    %c0_i32_0 = arith.constant 0 : i32
    return %c0_i32, %arg1 : i32, i32
  }
  func.func @transform_2(%arg0: i32, %arg1: i32) -> (i32, i32) {
    %c0_i32 = arith.constant 0 : i32
    %c0_i32_0 = arith.constant 0 : i32
    return %c0_i32, %arg1 : i32, i32
  }
  func.func @transform_3(%arg0: i32, %arg1: i32) -> (i32, i32) {
    %c0_i32 = arith.constant 0 : i32
    return %arg0, %arg1 : i32, i32
  }
}

module attributes {stable_mosaic.version = 11 : i64} {
  func.func @kernel(%arg0: i32, %arg1: i32, %arg2: memref<32x64xbf16, #tpu.memory_space<vmem>>, %arg3: memref<64x128xbf16, #tpu.memory_space<vmem>>, %arg4: memref<1x128xf32, #tpu.memory_space<vmem>>, %arg5: memref<32x128xbf16, #tpu.memory_space<vmem>>) attributes {dimension_semantics = [#tpu.dimension_semantics<parallel>, #tpu.dimension_semantics<parallel>], iteration_bounds = array<i64: 1, 1>, scalar_prefetch = 0 : i64, scratch_operands = 0 : i64, tpu.core_type = #tpu.core_type<tc>, window_params = [{transform_indices = @transform_0, window_bounds = array<i64: 32, 64>}, {transform_indices = @transform_1, window_bounds = array<i64: 64, 128>}, {transform_indices = @transform_2, window_bounds = array<i64: 1, 128>}, {transform_indices = @transform_3, window_bounds = array<i64: 32, 128>}]} {
    %c0 = arith.constant 0 : index
    %c0_0 = arith.constant 0 : index
    %0 = vector.load %arg2[%c0, %c0_0] : memref<32x64xbf16, #tpu.memory_space<vmem>>, vector<32x64xbf16>
    %c0_1 = arith.constant 0 : index
    %c0_2 = arith.constant 0 : index
    %1 = vector.load %arg3[%c0_1, %c0_2] : memref<64x128xbf16, #tpu.memory_space<vmem>>, vector<64x128xbf16>
    %cst = arith.constant dense<0.000000e+00> : vector<32x128xf32>
    %2 = tpu.matmul %0, %1, %cst {dimension_numbers = #tpu.dot_dimension_numbers<[1], [0], [0], [1], [0, 0, 1, 1], [], []>} : vector<32x64xbf16>, vector<64x128xbf16>, vector<32x128xf32> -> vector<32x128xf32>
    %c0_3 = arith.constant 0 : index
    %c0_4 = arith.constant 0 : index
    %3 = vector.load %arg4[%c0_3, %c0_4] : memref<1x128xf32, #tpu.memory_space<vmem>>, vector<1x128xf32>
    %4 = vector.broadcast %3 : vector<1x128xf32> to vector<32x128xf32>
    %5 = arith.addf %2, %4 : vector<32x128xf32>
    %6 = arith.truncf %5 : vector<32x128xf32> to vector<32x128xbf16>
    %c0_5 = arith.constant 0 : index
    %c0_6 = arith.constant 0 : index
    %7 = vector.load %arg5[%c0_5, %c0_6] : memref<32x128xbf16, #tpu.memory_space<vmem>>, vector<32x128xbf16>
    tpu.vector_store %arg5[%c0_5, %c0_6], %6 {strides = array<i32>} : memref<32x128xbf16, #tpu.memory_space<vmem>>, vector<32x128xbf16>,
    return
  }
  func.func @transform_0(%arg0: i32, %arg1: i32) -> (i32, i32) {
    %c0_i32 = arith.constant 0 : i32
    %c0_i32_0 = arith.constant 0 : i32
    return %arg0, %c0_i32 : i32, i32
  }
  func.func @transform_1(%arg0: i32, %arg1: i32) -> (i32, i32) {
    %c0_i32 = arith.constant 0 : i32
    %c0_i32_0 = arith.constant 0 : i32
    return %c0_i32, %arg1 : i32, i32
  }
  func.func @transform_2(%arg0: i32, %arg1: i32) -> (i32, i32) {
    %c0_i32 = arith.constant 0 : i32
    %c0_i32_0 = arith.constant 0 : i32
    return %c0_i32, %arg1 : i32, i32
  }
  func.func @transform_3(%arg0: i32, %arg1: i32) -> (i32, i32) {
    %c0_i32 = arith.constant 0 : i32
    return %arg0, %arg1 : i32, i32
  }
}

module attributes {stable_mosaic.version = 11 : i64} {
  func.func @kernel(%arg0: i32, %arg1: i32, %arg2: memref<32x288xbf16, #tpu.memory_space<vmem>>, %arg3: memref<288x32xbf16, #tpu.memory_space<vmem>>, %arg4: memref<1x32xf32, #tpu.memory_space<vmem>>, %arg5: memref<32x32xbf16, #tpu.memory_space<vmem>>) attributes {dimension_semantics = [#tpu.dimension_semantics<parallel>, #tpu.dimension_semantics<parallel>], iteration_bounds = array<i64: 1, 1>, scalar_prefetch = 0 : i64, scratch_operands = 0 : i64, tpu.core_type = #tpu.core_type<tc>, window_params = [{transform_indices = @transform_0, window_bounds = array<i64: 32, 288>}, {transform_indices = @transform_1, window_bounds = array<i64: 288, 32>}, {transform_indices = @transform_2, window_bounds = array<i64: 1, 32>}, {transform_indices = @transform_3, window_bounds = array<i64: 32, 32>}]} {
    %c0 = arith.constant 0 : index
    %c0_0 = arith.constant 0 : index
    %0 = vector.load %arg2[%c0, %c0_0] : memref<32x288xbf16, #tpu.memory_space<vmem>>, vector<32x288xbf16>
    %c0_1 = arith.constant 0 : index
    %c0_2 = arith.constant 0 : index
    %1 = vector.load %arg3[%c0_1, %c0_2] : memref<288x32xbf16, #tpu.memory_space<vmem>>, vector<288x32xbf16>
    %cst = arith.constant dense<0.000000e+00> : vector<32x32xf32>
    %2 = tpu.matmul %0, %1, %cst {dimension_numbers = #tpu.dot_dimension_numbers<[1], [0], [0], [1], [0, 0, 1, 1], [], []>} : vector<32x288xbf16>, vector<288x32xbf16>, vector<32x32xf32> -> vector<32x32xf32>
    %c0_3 = arith.constant 0 : index
    %c0_4 = arith.constant 0 : index
    %3 = vector.load %arg4[%c0_3, %c0_4] : memref<1x32xf32, #tpu.memory_space<vmem>>, vector<1x32xf32>
    %4 = vector.broadcast %3 : vector<1x32xf32> to vector<32x32xf32>
    %5 = arith.addf %2, %4 : vector<32x32xf32>
    %cst_5 = arith.constant 0.000000e+00 : f32
    %6 = vector.broadcast %cst_5 : f32 to vector<32x32xf32>
    %7 = arith.maximumf %5, %6 : vector<32x32xf32>
    %8 = arith.truncf %7 : vector<32x32xf32> to vector<32x32xbf16>
    %c0_6 = arith.constant 0 : index
    %c0_7 = arith.constant 0 : index
    %9 = vector.load %arg5[%c0_6, %c0_7] : memref<32x32xbf16, #tpu.memory_space<vmem>>, vector<32x32xbf16>
    tpu.vector_store %arg5[%c0_6, %c0_7], %8 {strides = array<i32>} : memref<32x32xbf16, #tpu.memory_space<vmem>>, vector<32x32xbf16>,
    return
  }
  func.func @transform_0(%arg0: i32, %arg1: i32) -> (i32, i32) {
    %c0_i32 = arith.constant 0 : i32
    %c0_i32_0 = arith.constant 0 : i32
    return %arg0, %c0_i32 : i32, i32
  }
  func.func @transform_1(%arg0: i32, %arg1: i32) -> (i32, i32) {
    %c0_i32 = arith.constant 0 : i32
    %c0_i32_0 = arith.constant 0 : i32
    return %c0_i32, %arg1 : i32, i32
  }
  func.func @transform_2(%arg0: i32, %arg1: i32) -> (i32, i32) {
    %c0_i32 = arith.constant 0 : i32
    %c0_i32_0 = arith.constant 0 : i32
    return %c0_i32, %arg1 : i32, i32
  }
  func.func @transform_3(%arg0: i32, %arg1: i32) -> (i32, i32) {
    %c0_i32 = arith.constant 0 : i32
    return %arg0, %arg1 : i32, i32
  }
}

module attributes {stable_mosaic.version = 11 : i64} {
  func.func @kernel(%arg0: i32, %arg1: i32, %arg2: memref<32x32xbf16, #tpu.memory_space<vmem>>, %arg3: memref<32x128xbf16, #tpu.memory_space<vmem>>, %arg4: memref<1x128xf32, #tpu.memory_space<vmem>>, %arg5: memref<32x128xbf16, #tpu.memory_space<vmem>>, %arg6: memref<32x128xbf16, #tpu.memory_space<vmem>>) attributes {dimension_semantics = [#tpu.dimension_semantics<parallel>, #tpu.dimension_semantics<parallel>], iteration_bounds = array<i64: 1, 1>, scalar_prefetch = 0 : i64, scratch_operands = 0 : i64, tpu.core_type = #tpu.core_type<tc>, window_params = [{transform_indices = @transform_0, window_bounds = array<i64: 32, 32>}, {transform_indices = @transform_1, window_bounds = array<i64: 32, 128>}, {transform_indices = @transform_2, window_bounds = array<i64: 1, 128>}, {transform_indices = @transform_3, window_bounds = array<i64: 32, 128>}, {transform_indices = @transform_4, window_bounds = array<i64: 32, 128>}]} {
    %c0 = arith.constant 0 : index
    %c0_0 = arith.constant 0 : index
    %0 = vector.load %arg2[%c0, %c0_0] : memref<32x32xbf16, #tpu.memory_space<vmem>>, vector<32x32xbf16>
    %c0_1 = arith.constant 0 : index
    %c0_2 = arith.constant 0 : index
    %1 = vector.load %arg3[%c0_1, %c0_2] : memref<32x128xbf16, #tpu.memory_space<vmem>>, vector<32x128xbf16>
    %cst = arith.constant dense<0.000000e+00> : vector<32x128xf32>
    %2 = tpu.matmul %0, %1, %cst {dimension_numbers = #tpu.dot_dimension_numbers<[1], [0], [0], [1], [0, 0, 1, 1], [], []>} : vector<32x32xbf16>, vector<32x128xbf16>, vector<32x128xf32> -> vector<32x128xf32>
    %c0_3 = arith.constant 0 : index
    %c0_4 = arith.constant 0 : index
    %3 = vector.load %arg5[%c0_3, %c0_4] : memref<32x128xbf16, #tpu.memory_space<vmem>>, vector<32x128xbf16>
    %c0_5 = arith.constant 0 : index
    %c0_6 = arith.constant 0 : index
    %4 = vector.load %arg4[%c0_5, %c0_6] : memref<1x128xf32, #tpu.memory_space<vmem>>, vector<1x128xf32>
    %5 = vector.broadcast %4 : vector<1x128xf32> to vector<32x128xf32>
    %6 = arith.addf %2, %5 : vector<32x128xf32>
    %7 = arith.extf %3 : vector<32x128xbf16> to vector<32x128xf32>
    %8 = arith.addf %6, %7 : vector<32x128xf32>
    %cst_7 = arith.constant 0.000000e+00 : f32
    %9 = vector.broadcast %cst_7 : f32 to vector<32x128xf32>
    %10 = arith.maximumf %8, %9 : vector<32x128xf32>
    %11 = arith.truncf %10 : vector<32x128xf32> to vector<32x128xbf16>
    %c0_8 = arith.constant 0 : index
    %c0_9 = arith.constant 0 : index
    %12 = vector.load %arg6[%c0_8, %c0_9] : memref<32x128xbf16, #tpu.memory_space<vmem>>, vector<32x128xbf16>
    tpu.vector_store %arg6[%c0_8, %c0_9], %11 {strides = array<i32>} : memref<32x128xbf16, #tpu.memory_space<vmem>>, vector<32x128xbf16>,
    return
  }
  func.func @transform_0(%arg0: i32, %arg1: i32) -> (i32, i32) {
    %c0_i32 = arith.constant 0 : i32
    %c0_i32_0 = arith.constant 0 : i32
    return %arg0, %c0_i32 : i32, i32
  }
  func.func @transform_1(%arg0: i32, %arg1: i32) -> (i32, i32) {
    %c0_i32 = arith.constant 0 : i32
    %c0_i32_0 = arith.constant 0 : i32
    return %c0_i32, %arg1 : i32, i32
  }
  func.func @transform_2(%arg0: i32, %arg1: i32) -> (i32, i32) {
    %c0_i32 = arith.constant 0 : i32
    %c0_i32_0 = arith.constant 0 : i32
    return %c0_i32, %arg1 : i32, i32
  }
  func.func @transform_3(%arg0: i32, %arg1: i32) -> (i32, i32) {
    %c0_i32 = arith.constant 0 : i32
    return %arg0, %arg1 : i32, i32
  }
  func.func @transform_4(%arg0: i32, %arg1: i32) -> (i32, i32) {
    %c0_i32 = arith.constant 0 : i32
    return %arg0, %arg1 : i32, i32
  }
}

module attributes {stable_mosaic.version = 11 : i64} {
  func.func @kernel(%arg0: i32, %arg1: i32, %arg2: memref<32x128xbf16, #tpu.memory_space<vmem>>, %arg3: memref<128x32xbf16, #tpu.memory_space<vmem>>, %arg4: memref<1x32xf32, #tpu.memory_space<vmem>>, %arg5: memref<32x32xbf16, #tpu.memory_space<vmem>>) attributes {dimension_semantics = [#tpu.dimension_semantics<parallel>, #tpu.dimension_semantics<parallel>], iteration_bounds = array<i64: 1, 1>, scalar_prefetch = 0 : i64, scratch_operands = 0 : i64, tpu.core_type = #tpu.core_type<tc>, window_params = [{transform_indices = @transform_0, window_bounds = array<i64: 32, 128>}, {transform_indices = @transform_1, window_bounds = array<i64: 128, 32>}, {transform_indices = @transform_2, window_bounds = array<i64: 1, 32>}, {transform_indices = @transform_3, window_bounds = array<i64: 32, 32>}]} {
    %c0 = arith.constant 0 : index
    %c0_0 = arith.constant 0 : index
    %0 = vector.load %arg2[%c0, %c0_0] : memref<32x128xbf16, #tpu.memory_space<vmem>>, vector<32x128xbf16>
    %c0_1 = arith.constant 0 : index
    %c0_2 = arith.constant 0 : index
    %1 = vector.load %arg3[%c0_1, %c0_2] : memref<128x32xbf16, #tpu.memory_space<vmem>>, vector<128x32xbf16>
    %cst = arith.constant dense<0.000000e+00> : vector<32x32xf32>
    %2 = tpu.matmul %0, %1, %cst {dimension_numbers = #tpu.dot_dimension_numbers<[1], [0], [0], [1], [0, 0, 1, 1], [], []>} : vector<32x128xbf16>, vector<128x32xbf16>, vector<32x32xf32> -> vector<32x32xf32>
    %c0_3 = arith.constant 0 : index
    %c0_4 = arith.constant 0 : index
    %3 = vector.load %arg4[%c0_3, %c0_4] : memref<1x32xf32, #tpu.memory_space<vmem>>, vector<1x32xf32>
    %4 = vector.broadcast %3 : vector<1x32xf32> to vector<32x32xf32>
    %5 = arith.addf %2, %4 : vector<32x32xf32>
    %cst_5 = arith.constant 0.000000e+00 : f32
    %6 = vector.broadcast %cst_5 : f32 to vector<32x32xf32>
    %7 = arith.maximumf %5, %6 : vector<32x32xf32>
    %8 = arith.truncf %7 : vector<32x32xf32> to vector<32x32xbf16>
    %c0_6 = arith.constant 0 : index
    %c0_7 = arith.constant 0 : index
    %9 = vector.load %arg5[%c0_6, %c0_7] : memref<32x32xbf16, #tpu.memory_space<vmem>>, vector<32x32xbf16>
    tpu.vector_store %arg5[%c0_6, %c0_7], %8 {strides = array<i32>} : memref<32x32xbf16, #tpu.memory_space<vmem>>, vector<32x32xbf16>,
    return
  }
  func.func @transform_0(%arg0: i32, %arg1: i32) -> (i32, i32) {
    %c0_i32 = arith.constant 0 : i32
    %c0_i32_0 = arith.constant 0 : i32
    return %arg0, %c0_i32 : i32, i32
  }
  func.func @transform_1(%arg0: i32, %arg1: i32) -> (i32, i32) {
    %c0_i32 = arith.constant 0 : i32
    %c0_i32_0 = arith.constant 0 : i32
    return %c0_i32, %arg1 : i32, i32
  }
  func.func @transform_2(%arg0: i32, %arg1: i32) -> (i32, i32) {
    %c0_i32 = arith.constant 0 : i32
    %c0_i32_0 = arith.constant 0 : i32
    return %c0_i32, %arg1 : i32, i32
  }
  func.func @transform_3(%arg0: i32, %arg1: i32) -> (i32, i32) {
    %c0_i32 = arith.constant 0 : i32
    return %arg0, %arg1 : i32, i32
  }
}

module attributes {stable_mosaic.version = 11 : i64} {
  func.func @kernel(%arg0: i32, %arg1: i32, %arg2: memref<32x1152xbf16, #tpu.memory_space<vmem>>, %arg3: memref<1152x8xbf16, #tpu.memory_space<vmem>>, %arg4: memref<1x8xf32, #tpu.memory_space<vmem>>, %arg5: memref<32x8xbf16, #tpu.memory_space<vmem>>) attributes {dimension_semantics = [#tpu.dimension_semantics<parallel>, #tpu.dimension_semantics<parallel>], iteration_bounds = array<i64: 1, 1>, scalar_prefetch = 0 : i64, scratch_operands = 0 : i64, tpu.core_type = #tpu.core_type<tc>, window_params = [{transform_indices = @transform_0, window_bounds = array<i64: 32, 1152>}, {transform_indices = @transform_1, window_bounds = array<i64: 1152, 8>}, {transform_indices = @transform_2, window_bounds = array<i64: 1, 8>}, {transform_indices = @transform_3, window_bounds = array<i64: 32, 8>}]} {
    %c0 = arith.constant 0 : index
    %c0_0 = arith.constant 0 : index
    %0 = vector.load %arg2[%c0, %c0_0] : memref<32x1152xbf16, #tpu.memory_space<vmem>>, vector<32x1152xbf16>
    %c0_1 = arith.constant 0 : index
    %c0_2 = arith.constant 0 : index
    %1 = vector.load %arg3[%c0_1, %c0_2] : memref<1152x8xbf16, #tpu.memory_space<vmem>>, vector<1152x8xbf16>
    %cst = arith.constant dense<0.000000e+00> : vector<32x8xf32>
    %2 = tpu.matmul %0, %1, %cst {dimension_numbers = #tpu.dot_dimension_numbers<[1], [0], [0], [1], [0, 0, 1, 1], [], []>} : vector<32x1152xbf16>, vector<1152x8xbf16>, vector<32x8xf32> -> vector<32x8xf32>
    %c0_3 = arith.constant 0 : index
    %c0_4 = arith.constant 0 : index
    %3 = vector.load %arg4[%c0_3, %c0_4] : memref<1x8xf32, #tpu.memory_space<vmem>>, vector<1x8xf32>
    %4 = vector.broadcast %3 : vector<1x8xf32> to vector<32x8xf32>
    %5 = arith.addf %2, %4 : vector<32x8xf32>
    %cst_5 = arith.constant 0.000000e+00 : f32
    %6 = vector.broadcast %cst_5 : f32 to vector<32x8xf32>
    %7 = arith.maximumf %5, %6 : vector<32x8xf32>
    %8 = arith.truncf %7 : vector<32x8xf32> to vector<32x8xbf16>
    %c0_6 = arith.constant 0 : index
    %c0_7 = arith.constant 0 : index
    %9 = vector.load %arg5[%c0_6, %c0_7] : memref<32x8xbf16, #tpu.memory_space<vmem>>, vector<32x8xbf16>
    tpu.vector_store %arg5[%c0_6, %c0_7], %8 {strides = array<i32>} : memref<32x8xbf16, #tpu.memory_space<vmem>>, vector<32x8xbf16>,
    return
  }
  func.func @transform_0(%arg0: i32, %arg1: i32) -> (i32, i32) {
    %c0_i32 = arith.constant 0 : i32
    %c0_i32_0 = arith.constant 0 : i32
    return %arg0, %c0_i32 : i32, i32
  }
  func.func @transform_1(%arg0: i32, %arg1: i32) -> (i32, i32) {
    %c0_i32 = arith.constant 0 : i32
    %c0_i32_0 = arith.constant 0 : i32
    return %c0_i32, %arg1 : i32, i32
  }
  func.func @transform_2(%arg0: i32, %arg1: i32) -> (i32, i32) {
    %c0_i32 = arith.constant 0 : i32
    %c0_i32_0 = arith.constant 0 : i32
    return %c0_i32, %arg1 : i32, i32
  }
  func.func @transform_3(%arg0: i32, %arg1: i32) -> (i32, i32) {
    %c0_i32 = arith.constant 0 : i32
    return %arg0, %arg1 : i32, i32
  }
}

module attributes {stable_mosaic.version = 11 : i64} {
  func.func @kernel(%arg0: i32, %arg1: i32, %arg2: memref<32x1152xbf16, #tpu.memory_space<vmem>>, %arg3: memref<1152x32xbf16, #tpu.memory_space<vmem>>, %arg4: memref<1x32xf32, #tpu.memory_space<vmem>>, %arg5: memref<32x32xbf16, #tpu.memory_space<vmem>>) attributes {dimension_semantics = [#tpu.dimension_semantics<parallel>, #tpu.dimension_semantics<parallel>], iteration_bounds = array<i64: 1, 1>, scalar_prefetch = 0 : i64, scratch_operands = 0 : i64, tpu.core_type = #tpu.core_type<tc>, window_params = [{transform_indices = @transform_0, window_bounds = array<i64: 32, 1152>}, {transform_indices = @transform_1, window_bounds = array<i64: 1152, 32>}, {transform_indices = @transform_2, window_bounds = array<i64: 1, 32>}, {transform_indices = @transform_3, window_bounds = array<i64: 32, 32>}]} {
    %c0 = arith.constant 0 : index
    %c0_0 = arith.constant 0 : index
    %0 = vector.load %arg2[%c0, %c0_0] : memref<32x1152xbf16, #tpu.memory_space<vmem>>, vector<32x1152xbf16>
    %c0_1 = arith.constant 0 : index
    %c0_2 = arith.constant 0 : index
    %1 = vector.load %arg3[%c0_1, %c0_2] : memref<1152x32xbf16, #tpu.memory_space<vmem>>, vector<1152x32xbf16>
    %cst = arith.constant dense<0.000000e+00> : vector<32x32xf32>
    %2 = tpu.matmul %0, %1, %cst {dimension_numbers = #tpu.dot_dimension_numbers<[1], [0], [0], [1], [0, 0, 1, 1], [], []>} : vector<32x1152xbf16>, vector<1152x32xbf16>, vector<32x32xf32> -> vector<32x32xf32>
    %c0_3 = arith.constant 0 : index
    %c0_4 = arith.constant 0 : index
    %3 = vector.load %arg4[%c0_3, %c0_4] : memref<1x32xf32, #tpu.memory_space<vmem>>, vector<1x32xf32>
    %4 = vector.broadcast %3 : vector<1x32xf32> to vector<32x32xf32>
    %5 = arith.addf %2, %4 : vector<32x32xf32>
    %cst_5 = arith.constant 0.000000e+00 : f32
    %6 = vector.broadcast %cst_5 : f32 to vector<32x32xf32>
    %7 = arith.maximumf %5, %6 : vector<32x32xf32>
    %8 = arith.truncf %7 : vector<32x32xf32> to vector<32x32xbf16>
    %c0_6 = arith.constant 0 : index
    %c0_7 = arith.constant 0 : index
    %9 = vector.load %arg5[%c0_6, %c0_7] : memref<32x32xbf16, #tpu.memory_space<vmem>>, vector<32x32xbf16>
    tpu.vector_store %arg5[%c0_6, %c0_7], %8 {strides = array<i32>} : memref<32x32xbf16, #tpu.memory_space<vmem>>, vector<32x32xbf16>,
    return
  }
  func.func @transform_0(%arg0: i32, %arg1: i32) -> (i32, i32) {
    %c0_i32 = arith.constant 0 : i32
    %c0_i32_0 = arith.constant 0 : i32
    return %arg0, %c0_i32 : i32, i32
  }
  func.func @transform_1(%arg0: i32, %arg1: i32) -> (i32, i32) {
    %c0_i32 = arith.constant 0 : i32
    %c0_i32_0 = arith.constant 0 : i32
    return %c0_i32, %arg1 : i32, i32
  }
  func.func @transform_2(%arg0: i32, %arg1: i32) -> (i32, i32) {
    %c0_i32 = arith.constant 0 : i32
    %c0_i32_0 = arith.constant 0 : i32
    return %c0_i32, %arg1 : i32, i32
  }
  func.func @transform_3(%arg0: i32, %arg1: i32) -> (i32, i32) {
    %c0_i32 = arith.constant 0 : i32
    return %arg0, %arg1 : i32, i32
  }
}

module attributes {stable_mosaic.version = 11 : i64} {
  func.func @_graph_head_kernel(%arg0: i32, %arg1: memref<1x16x32xbf16, #tpu.memory_space<vmem>>, %arg2: memref<1x16x32xbf16, #tpu.memory_space<vmem>>, %arg3: memref<32x8xbf16, #tpu.memory_space<vmem>>, %arg4: memref<1x8xf32, #tpu.memory_space<vmem>>, %arg5: memref<32x8xbf16, #tpu.memory_space<vmem>>, %arg6: memref<1x8xf32, #tpu.memory_space<vmem>>, %arg7: memref<32x32xbf16, #tpu.memory_space<vmem>>, %arg8: memref<32x32xbf16, #tpu.memory_space<vmem>>, %arg9: memref<32x32xbf16, #tpu.memory_space<vmem>>, %arg10: memref<32x32xbf16, #tpu.memory_space<vmem>>, %arg11: memref<1x16x32xbf16, #tpu.memory_space<vmem>>, %arg12: memref<1x16x32xbf16, #tpu.memory_space<vmem>>) attributes {dimension_semantics = [#tpu.dimension_semantics<parallel>], iteration_bounds = array<i64: 2>, scalar_prefetch = 0 : i64, scratch_operands = 0 : i64, tpu.core_type = #tpu.core_type<tc>, window_params = [{transform_indices = @transform_0, window_bounds = array<i64: 1, 16, 32>}, {transform_indices = @transform_1, window_bounds = array<i64: 1, 16, 32>}, {pipeline_mode = #tpu.pipeline_mode<synchronous>, transform_indices = @transform_2, window_bounds = array<i64: 32, 8>}, {pipeline_mode = #tpu.pipeline_mode<synchronous>, transform_indices = @transform_3, window_bounds = array<i64: 1, 8>}, {pipeline_mode = #tpu.pipeline_mode<synchronous>, transform_indices = @transform_4, window_bounds = array<i64: 32, 8>}, {pipeline_mode = #tpu.pipeline_mode<synchronous>, transform_indices = @transform_5, window_bounds = array<i64: 1, 8>}, {pipeline_mode = #tpu.pipeline_mode<synchronous>, transform_indices = @transform_6, window_bounds = array<i64: 32, 32>}, {pipeline_mode = #tpu.pipeline_mode<synchronous>, transform_indices = @transform_7, window_bounds = array<i64: 32, 32>}, {pipeline_mode = #tpu.pipeline_mode<synchronous>, transform_indices = @transform_8, window_bounds = array<i64: 32, 32>}, {pipeline_mode = #tpu.pipeline_mode<synchronous>, transform_indices = @transform_9, window_bounds = array<i64: 32, 32>}, {transform_indices = @transform_10, window_bounds = array<i64: 1, 16, 32>}, {transform_indices = @transform_11, window_bounds = array<i64: 1, 16, 32>}]} {
    %c0 = arith.constant 0 : index
    %c0_0 = arith.constant 0 : index
    %c0_1 = arith.constant 0 : index
    %0 = vector.load %arg1[%c0, %c0_0, %c0_1] : memref<1x16x32xbf16, #tpu.memory_space<vmem>>, vector<1x16x32xbf16>
    %1 = vector.shape_cast %0 : vector<1x16x32xbf16> to vector<16x32xbf16>
    %c0_2 = arith.constant 0 : index
    %c0_3 = arith.constant 0 : index
    %c0_4 = arith.constant 0 : index
    %2 = vector.load %arg2[%c0_2, %c0_3, %c0_4] : memref<1x16x32xbf16, #tpu.memory_space<vmem>>, vector<1x16x32xbf16>
    %3 = vector.shape_cast %2 : vector<1x16x32xbf16> to vector<16x32xbf16>
    %c0_5 = arith.constant 0 : index
    %c0_6 = arith.constant 0 : index
    %4 = vector.load %arg3[%c0_5, %c0_6] : memref<32x8xbf16, #tpu.memory_space<vmem>>, vector<32x8xbf16>
    %cst = arith.constant dense<0.000000e+00> : vector<16x8xf32>
    %5 = tpu.matmul %1, %4, %cst {dimension_numbers = #tpu.dot_dimension_numbers<[1], [0], [0], [1], [0, 0, 1, 1], [], []>} : vector<16x32xbf16>, vector<32x8xbf16>, vector<16x8xf32> -> vector<16x8xf32>
    %c0_7 = arith.constant 0 : index
    %c0_8 = arith.constant 0 : index
    %6 = vector.load %arg4[%c0_7, %c0_8] : memref<1x8xf32, #tpu.memory_space<vmem>>, vector<1x8xf32>
    %7 = vector.broadcast %6 : vector<1x8xf32> to vector<16x8xf32>
    %8 = arith.addf %5, %7 : vector<16x8xf32>
    %cst_9 = arith.constant dense<0xFF800000> : vector<16xf32>
    %9 = vector.multi_reduction <maximumf>, %8, %cst_9 [1] : vector<16x8xf32> to vector<16xf32>
    %10 = vector.shape_cast %9 : vector<16xf32> to vector<16x1xf32>
    %11 = vector.broadcast %10 : vector<16x1xf32> to vector<16x8xf32>
    %12 = arith.subf %8, %11 : vector<16x8xf32>
    %13 = math.exp %12 : vector<16x8xf32>
    %cst_10 = arith.constant dense<0.000000e+00> : vector<16xf32>
    %14 = vector.multi_reduction <add>, %13, %cst_10 [1] : vector<16x8xf32> to vector<16xf32>
    %15 = vector.shape_cast %14 : vector<16xf32> to vector<16x1xf32>
    %16 = tpu.reciprocal %15 {approx = true} : vector<16x1xf32> -> vector<16x1xf32>
    %17 = vector.broadcast %16 : vector<16x1xf32> to vector<16x8xf32>
    %18 = arith.mulf %13, %17 : vector<16x8xf32>
    %cst_11 = arith.constant dense<0.000000e+00> : vector<8xf32>
    %19 = vector.multi_reduction <add>, %18, %cst_11 [0] : vector<16x8xf32> to vector<8xf32>
    %20 = vector.shape_cast %19 : vector<8xf32> to vector<1x8xf32>
    %cst_12 = arith.constant 9.99999997E-7 : f32
    %21 = vector.broadcast %cst_12 : f32 to vector<1x8xf32>
    %22 = arith.addf %20, %21 : vector<1x8xf32>
    %23 = tpu.reciprocal %22 {approx = true} : vector<1x8xf32> -> vector<1x8xf32>
    %24 = vector.broadcast %23 : vector<1x8xf32> to vector<16x8xf32>
    %25 = arith.mulf %18, %24 : vector<16x8xf32>
    %26 = arith.truncf %25 : vector<16x8xf32> to vector<16x8xbf16>
    %cst_13 = arith.constant dense<0.000000e+00> : vector<8x32xf32>
    %27 = tpu.matmul %26, %1, %cst_13 {dimension_numbers = #tpu.dot_dimension_numbers<[0], [0], [1], [1], [0, 1, 1, 1], [], []>} : vector<16x8xbf16>, vector<16x32xbf16>, vector<8x32xf32> -> vector<8x32xf32>
    %c0_14 = arith.constant 0 : index
    %c0_15 = arith.constant 0 : index
    %28 = vector.load %arg5[%c0_14, %c0_15] : memref<32x8xbf16, #tpu.memory_space<vmem>>, vector<32x8xbf16>
    %cst_16 = arith.constant dense<0.000000e+00> : vector<16x8xf32>
    %29 = tpu.matmul %3, %28, %cst_16 {dimension_numbers = #tpu.dot_dimension_numbers<[1], [0], [0], [1], [0, 0, 1, 1], [], []>} : vector<16x32xbf16>, vector<32x8xbf16>, vector<16x8xf32> -> vector<16x8xf32>
    %c0_17 = arith.constant 0 : index
    %c0_18 = arith.constant 0 : index
    %30 = vector.load %arg6[%c0_17, %c0_18] : memref<1x8xf32, #tpu.memory_space<vmem>>, vector<1x8xf32>
    %31 = vector.broadcast %30 : vector<1x8xf32> to vector<16x8xf32>
    %32 = arith.addf %29, %31 : vector<16x8xf32>
    %cst_19 = arith.constant dense<0xFF800000> : vector<16xf32>
    %33 = vector.multi_reduction <maximumf>, %32, %cst_19 [1] : vector<16x8xf32> to vector<16xf32>
    %34 = vector.shape_cast %33 : vector<16xf32> to vector<16x1xf32>
    %35 = vector.broadcast %34 : vector<16x1xf32> to vector<16x8xf32>
    %36 = arith.subf %32, %35 : vector<16x8xf32>
    %37 = math.exp %36 : vector<16x8xf32>
    %cst_20 = arith.constant dense<0.000000e+00> : vector<16xf32>
    %38 = vector.multi_reduction <add>, %37, %cst_20 [1] : vector<16x8xf32> to vector<16xf32>
    %39 = vector.shape_cast %38 : vector<16xf32> to vector<16x1xf32>
    %40 = tpu.reciprocal %39 {approx = true} : vector<16x1xf32> -> vector<16x1xf32>
    %41 = vector.broadcast %40 : vector<16x1xf32> to vector<16x8xf32>
    %42 = arith.mulf %37, %41 : vector<16x8xf32>
    %cst_21 = arith.constant dense<0.000000e+00> : vector<8xf32>
    %43 = vector.multi_reduction <add>, %42, %cst_21 [0] : vector<16x8xf32> to vector<8xf32>
    %44 = vector.shape_cast %43 : vector<8xf32> to vector<1x8xf32>
    %cst_22 = arith.constant 9.99999997E-7 : f32
    %45 = vector.broadcast %cst_22 : f32 to vector<1x8xf32>
    %46 = arith.addf %44, %45 : vector<1x8xf32>
    %47 = tpu.reciprocal %46 {approx = true} : vector<1x8xf32> -> vector<1x8xf32>
    %48 = vector.broadcast %47 : vector<1x8xf32> to vector<16x8xf32>
    %49 = arith.mulf %42, %48 : vector<16x8xf32>
    %50 = arith.truncf %49 : vector<16x8xf32> to vector<16x8xbf16>
    %cst_23 = arith.constant dense<0.000000e+00> : vector<8x32xf32>
    %51 = tpu.matmul %50, %3, %cst_23 {dimension_numbers = #tpu.dot_dimension_numbers<[0], [0], [1], [1], [0, 1, 1, 1], [], []>} : vector<16x8xbf16>, vector<16x32xbf16>, vector<8x32xf32> -> vector<8x32xf32>
    %52 = arith.truncf %27 : vector<8x32xf32> to vector<8x32xbf16>
    %cst_24 = arith.constant dense<0.000000e+00> : vector<8x8xf32>
    %53 = tpu.matmul %52, %52, %cst_24 {dimension_numbers = #tpu.dot_dimension_numbers<[1], [1], [0], [0], [0, 0, 1, 0], [], []>} : vector<8x32xbf16>, vector<8x32xbf16>, vector<8x8xf32> -> vector<8x8xf32>
    %cst_25 = arith.constant dense<0xFF800000> : vector<8xf32>
    %54 = vector.multi_reduction <maximumf>, %53, %cst_25 [1] : vector<8x8xf32> to vector<8xf32>
    %55 = vector.shape_cast %54 : vector<8xf32> to vector<8x1xf32>
    %56 = vector.broadcast %55 : vector<8x1xf32> to vector<8x8xf32>
    %57 = arith.subf %53, %56 : vector<8x8xf32>
    %58 = math.exp %57 : vector<8x8xf32>
    %cst_26 = arith.constant dense<0.000000e+00> : vector<8xf32>
    %59 = vector.multi_reduction <add>, %58, %cst_26 [1] : vector<8x8xf32> to vector<8xf32>
    %60 = vector.shape_cast %59 : vector<8xf32> to vector<8x1xf32>
    %61 = tpu.reciprocal %60 {approx = true} : vector<8x1xf32> -> vector<8x1xf32>
    %62 = vector.broadcast %61 : vector<8x1xf32> to vector<8x8xf32>
    %63 = arith.mulf %58, %62 : vector<8x8xf32>
    %64 = arith.truncf %63 : vector<8x8xf32> to vector<8x8xbf16>
    %cst_27 = arith.constant dense<0.000000e+00> : vector<8x32xf32>
    %65 = tpu.matmul %64, %52, %cst_27 {dimension_numbers = #tpu.dot_dimension_numbers<[1], [0], [0], [1], [0, 0, 1, 1], [], []>} : vector<8x8xbf16>, vector<8x32xbf16>, vector<8x32xf32> -> vector<8x32xf32>
    %66 = arith.truncf %65 : vector<8x32xf32> to vector<8x32xbf16>
    %c0_28 = arith.constant 0 : index
    %c0_29 = arith.constant 0 : index
    %67 = vector.load %arg7[%c0_28, %c0_29] : memref<32x32xbf16, #tpu.memory_space<vmem>>, vector<32x32xbf16>
    %cst_30 = arith.constant dense<0.000000e+00> : vector<8x32xf32>
    %68 = tpu.matmul %66, %67, %cst_30 {dimension_numbers = #tpu.dot_dimension_numbers<[1], [0], [0], [1], [0, 0, 1, 1], [], []>} : vector<8x32xbf16>, vector<32x32xbf16>, vector<8x32xf32> -> vector<8x32xf32>
    %69 = arith.addf %68, %27 : vector<8x32xf32>
    %cst_31 = arith.constant 0.000000e+00 : f32
    %70 = vector.broadcast %cst_31 : f32 to vector<8x32xf32>
    %71 = arith.maximumf %69, %70 : vector<8x32xf32>
    %72 = arith.truncf %51 : vector<8x32xf32> to vector<8x32xbf16>
    %cst_32 = arith.constant dense<0.000000e+00> : vector<8x8xf32>
    %73 = tpu.matmul %72, %72, %cst_32 {dimension_numbers = #tpu.dot_dimension_numbers<[1], [1], [0], [0], [0, 0, 1, 0], [], []>} : vector<8x32xbf16>, vector<8x32xbf16>, vector<8x8xf32> -> vector<8x8xf32>
    %cst_33 = arith.constant dense<0xFF800000> : vector<8xf32>
    %74 = vector.multi_reduction <maximumf>, %73, %cst_33 [1] : vector<8x8xf32> to vector<8xf32>
    %75 = vector.shape_cast %74 : vector<8xf32> to vector<8x1xf32>
    %76 = vector.broadcast %75 : vector<8x1xf32> to vector<8x8xf32>
    %77 = arith.subf %73, %76 : vector<8x8xf32>
    %78 = math.exp %77 : vector<8x8xf32>
    %cst_34 = arith.constant dense<0.000000e+00> : vector<8xf32>
    %79 = vector.multi_reduction <add>, %78, %cst_34 [1] : vector<8x8xf32> to vector<8xf32>
    %80 = vector.shape_cast %79 : vector<8xf32> to vector<8x1xf32>
    %81 = tpu.reciprocal %80 {approx = true} : vector<8x1xf32> -> vector<8x1xf32>
    %82 = vector.broadcast %81 : vector<8x1xf32> to vector<8x8xf32>
    %83 = arith.mulf %78, %82 : vector<8x8xf32>
    %84 = arith.truncf %83 : vector<8x8xf32> to vector<8x8xbf16>
    %cst_35 = arith.constant dense<0.000000e+00> : vector<8x32xf32>
    %85 = tpu.matmul %84, %72, %cst_35 {dimension_numbers = #tpu.dot_dimension_numbers<[1], [0], [0], [1], [0, 0, 1, 1], [], []>} : vector<8x8xbf16>, vector<8x32xbf16>, vector<8x32xf32> -> vector<8x32xf32>
    %86 = arith.truncf %85 : vector<8x32xf32> to vector<8x32xbf16>
    %c0_36 = arith.constant 0 : index
    %c0_37 = arith.constant 0 : index
    %87 = vector.load %arg8[%c0_36, %c0_37] : memref<32x32xbf16, #tpu.memory_space<vmem>>, vector<32x32xbf16>
    %cst_38 = arith.constant dense<0.000000e+00> : vector<8x32xf32>
    %88 = tpu.matmul %86, %87, %cst_38 {dimension_numbers = #tpu.dot_dimension_numbers<[1], [0], [0], [1], [0, 0, 1, 1], [], []>} : vector<8x32xbf16>, vector<32x32xbf16>, vector<8x32xf32> -> vector<8x32xf32>
    %89 = arith.addf %88, %51 : vector<8x32xf32>
    %cst_39 = arith.constant 0.000000e+00 : f32
    %90 = vector.broadcast %cst_39 : f32 to vector<8x32xf32>
    %91 = arith.maximumf %89, %90 : vector<8x32xf32>
    %92 = arith.truncf %71 : vector<8x32xf32> to vector<8x32xbf16>
    %93 = arith.truncf %91 : vector<8x32xf32> to vector<8x32xbf16>
    %c0_40 = arith.constant 0 : index
    %c0_41 = arith.constant 0 : index
    %94 = vector.load %arg9[%c0_40, %c0_41] : memref<32x32xbf16, #tpu.memory_space<vmem>>, vector<32x32xbf16>
    %cst_42 = arith.constant dense<0.000000e+00> : vector<8x32xf32>
    %95 = tpu.matmul %92, %94, %cst_42 {dimension_numbers = #tpu.dot_dimension_numbers<[1], [0], [0], [1], [0, 0, 1, 1], [], []>} : vector<8x32xbf16>, vector<32x32xbf16>, vector<8x32xf32> -> vector<8x32xf32>
    %c0_43 = arith.constant 0 : index
    %c0_44 = arith.constant 0 : index
    %96 = vector.load %arg10[%c0_43, %c0_44] : memref<32x32xbf16, #tpu.memory_space<vmem>>, vector<32x32xbf16>
    %cst_45 = arith.constant dense<0.000000e+00> : vector<8x32xf32>
    %97 = tpu.matmul %93, %96, %cst_45 {dimension_numbers = #tpu.dot_dimension_numbers<[1], [0], [0], [1], [0, 0, 1, 1], [], []>} : vector<8x32xbf16>, vector<32x32xbf16>, vector<8x32xf32> -> vector<8x32xf32>
    %98 = arith.truncf %95 : vector<8x32xf32> to vector<8x32xbf16>
    %99 = arith.truncf %97 : vector<8x32xf32> to vector<8x32xbf16>
    %cst_46 = arith.constant dense<0.000000e+00> : vector<8x8xf32>
    %100 = tpu.matmul %98, %99, %cst_46 {dimension_numbers = #tpu.dot_dimension_numbers<[1], [1], [0], [0], [0, 0, 1, 0], [], []>} : vector<8x32xbf16>, vector<8x32xbf16>, vector<8x8xf32> -> vector<8x8xf32>
    %cst_47 = arith.constant 0.176776692 : f32
    %101 = vector.broadcast %cst_47 : f32 to vector<8x8xf32>
    %102 = arith.mulf %100, %101 : vector<8x8xf32>
    %cst_48 = arith.constant dense<0xFF800000> : vector<8xf32>
    %103 = vector.multi_reduction <maximumf>, %102, %cst_48 [1] : vector<8x8xf32> to vector<8xf32>
    %104 = vector.shape_cast %103 : vector<8xf32> to vector<8x1xf32>
    %105 = vector.broadcast %104 : vector<8x1xf32> to vector<8x8xf32>
    %106 = arith.subf %102, %105 : vector<8x8xf32>
    %107 = math.exp %106 : vector<8x8xf32>
    %cst_49 = arith.constant dense<0.000000e+00> : vector<8xf32>
    %108 = vector.multi_reduction <add>, %107, %cst_49 [1] : vector<8x8xf32> to vector<8xf32>
    %109 = vector.shape_cast %108 : vector<8xf32> to vector<8x1xf32>
    %110 = tpu.reciprocal %109 {approx = true} : vector<8x1xf32> -> vector<8x1xf32>
    %111 = vector.broadcast %110 : vector<8x1xf32> to vector<8x8xf32>
    %112 = arith.mulf %107, %111 : vector<8x8xf32>
    %113 = arith.truncf %112 : vector<8x8xf32> to vector<8x8xbf16>
    %cst_50 = arith.constant dense<0.000000e+00> : vector<8x32xf32>
    %114 = tpu.matmul %113, %93, %cst_50 {dimension_numbers = #tpu.dot_dimension_numbers<[1], [0], [0], [1], [0, 0, 1, 1], [], []>} : vector<8x8xbf16>, vector<8x32xbf16>, vector<8x32xf32> -> vector<8x32xf32>
    %115 = arith.addf %71, %114 : vector<8x32xf32>
    %116 = arith.truncf %91 : vector<8x32xf32> to vector<8x32xbf16>
    %117 = arith.truncf %71 : vector<8x32xf32> to vector<8x32xbf16>
    %c0_51 = arith.constant 0 : index
    %c0_52 = arith.constant 0 : index
    %118 = vector.load %arg9[%c0_51, %c0_52] : memref<32x32xbf16, #tpu.memory_space<vmem>>, vector<32x32xbf16>
    %cst_53 = arith.constant dense<0.000000e+00> : vector<8x32xf32>
    %119 = tpu.matmul %116, %118, %cst_53 {dimension_numbers = #tpu.dot_dimension_numbers<[1], [0], [0], [1], [0, 0, 1, 1], [], []>} : vector<8x32xbf16>, vector<32x32xbf16>, vector<8x32xf32> -> vector<8x32xf32>
    %c0_54 = arith.constant 0 : index
    %c0_55 = arith.constant 0 : index
    %120 = vector.load %arg10[%c0_54, %c0_55] : memref<32x32xbf16, #tpu.memory_space<vmem>>, vector<32x32xbf16>
    %cst_56 = arith.constant dense<0.000000e+00> : vector<8x32xf32>
    %121 = tpu.matmul %117, %120, %cst_56 {dimension_numbers = #tpu.dot_dimension_numbers<[1], [0], [0], [1], [0, 0, 1, 1], [], []>} : vector<8x32xbf16>, vector<32x32xbf16>, vector<8x32xf32> -> vector<8x32xf32>
    %122 = arith.truncf %119 : vector<8x32xf32> to vector<8x32xbf16>
    %123 = arith.truncf %121 : vector<8x32xf32> to vector<8x32xbf16>
    %cst_57 = arith.constant dense<0.000000e+00> : vector<8x8xf32>
    %124 = tpu.matmul %122, %123, %cst_57 {dimension_numbers = #tpu.dot_dimension_numbers<[1], [1], [0], [0], [0, 0, 1, 0], [], []>} : vector<8x32xbf16>, vector<8x32xbf16>, vector<8x8xf32> -> vector<8x8xf32>
    %cst_58 = arith.constant 0.176776692 : f32
    %125 = vector.broadcast %cst_58 : f32 to vector<8x8xf32>
    %126 = arith.mulf %124, %125 : vector<8x8xf32>
    %cst_59 = arith.constant dense<0xFF800000> : vector<8xf32>
    %127 = vector.multi_reduction <maximumf>, %126, %cst_59 [1] : vector<8x8xf32> to vector<8xf32>
    %128 = vector.shape_cast %127 : vector<8xf32> to vector<8x1xf32>
    %129 = vector.broadcast %128 : vector<8x1xf32> to vector<8x8xf32>
    %130 = arith.subf %126, %129 : vector<8x8xf32>
    %131 = math.exp %130 : vector<8x8xf32>
    %cst_60 = arith.constant dense<0.000000e+00> : vector<8xf32>
    %132 = vector.multi_reduction <add>, %131, %cst_60 [1] : vector<8x8xf32> to vector<8xf32>
    %133 = vector.shape_cast %132 : vector<8xf32> to vector<8x1xf32>
    %134 = tpu.reciprocal %133 {approx = true} : vector<8x1xf32> -> vector<8x1xf32>
    %135 = vector.broadcast %134 : vector<8x1xf32> to vector<8x8xf32>
    %136 = arith.mulf %131, %135 : vector<8x8xf32>
    %137 = arith.truncf %136 : vector<8x8xf32> to vector<8x8xbf16>
    %cst_61 = arith.constant dense<0.000000e+00> : vector<8x32xf32>
    %138 = tpu.matmul %137, %117, %cst_61 {dimension_numbers = #tpu.dot_dimension_numbers<[1], [0], [0], [1], [0, 0, 1, 1], [], []>} : vector<8x8xbf16>, vector<8x32xbf16>, vector<8x32xf32> -> vector<8x32xf32>
    %139 = arith.addf %91, %138 : vector<8x32xf32>
    %140 = arith.truncf %18 : vector<16x8xf32> to vector<16x8xbf16>
    %141 = arith.truncf %115 : vector<8x32xf32> to vector<8x32xbf16>
    %cst_62 = arith.constant dense<0.000000e+00> : vector<16x32xf32>
    %142 = tpu.matmul %140, %141, %cst_62 {dimension_numbers = #tpu.dot_dimension_numbers<[1], [0], [0], [1], [0, 0, 1, 1], [], []>} : vector<16x8xbf16>, vector<8x32xbf16>, vector<16x32xf32> -> vector<16x32xf32>
    %143 = arith.truncf %142 : vector<16x32xf32> to vector<16x32xbf16>
    %c0_63 = arith.constant 0 : index
    %c0_64 = arith.constant 0 : index
    %c0_65 = arith.constant 0 : index
    %144 = vector.load %arg11[%c0_63, %c0_64, %c0_65] : memref<1x16x32xbf16, #tpu.memory_space<vmem>>, vector<1x16x32xbf16>
    %145 = vector.shape_cast %144 : vector<1x16x32xbf16> to vector<16x32xbf16>
    %146 = vector.shape_cast %143 : vector<16x32xbf16> to vector<1x16x32xbf16>
    tpu.vector_store %arg11[%c0_63, %c0_64, %c0_65], %146 {strides = array<i32>} : memref<1x16x32xbf16, #tpu.memory_space<vmem>>, vector<1x16x32xbf16>,
    %147 = arith.truncf %42 : vector<16x8xf32> to vector<16x8xbf16>
    %148 = arith.truncf %139 : vector<8x32xf32> to vector<8x32xbf16>
    %cst_66 = arith.constant dense<0.000000e+00> : vector<16x32xf32>
    %149 = tpu.matmul %147, %148, %cst_66 {dimension_numbers = #tpu.dot_dimension_numbers<[1], [0], [0], [1], [0, 0, 1, 1], [], []>} : vector<16x8xbf16>, vector<8x32xbf16>, vector<16x32xf32> -> vector<16x32xf32>
    %150 = arith.truncf %149 : vector<16x32xf32> to vector<16x32xbf16>
    %c0_67 = arith.constant 0 : index
    %c0_68 = arith.constant 0 : index
    %c0_69 = arith.constant 0 : index
    %151 = vector.load %arg12[%c0_67, %c0_68, %c0_69] : memref<1x16x32xbf16, #tpu.memory_space<vmem>>, vector<1x16x32xbf16>
    %152 = vector.shape_cast %151 : vector<1x16x32xbf16> to vector<16x32xbf16>
    %153 = vector.shape_cast %150 : vector<16x32xbf16> to vector<1x16x32xbf16>
    tpu.vector_store %arg12[%c0_67, %c0_68, %c0_69], %153 {strides = array<i32>} : memref<1x16x32xbf16, #tpu.memory_space<vmem>>, vector<1x16x32xbf16>,
    return
  }
  func.func @transform_0(%arg0: i32) -> (i32, i32, i32) {
    %c0_i32 = arith.constant 0 : i32
    %c0_i32_0 = arith.constant 0 : i32
    %c0_i32_1 = arith.constant 0 : i32
    return %arg0, %c0_i32, %c0_i32_0 : i32, i32, i32
  }
  func.func @transform_1(%arg0: i32) -> (i32, i32, i32) {
    %c0_i32 = arith.constant 0 : i32
    %c0_i32_0 = arith.constant 0 : i32
    %c0_i32_1 = arith.constant 0 : i32
    return %arg0, %c0_i32, %c0_i32_0 : i32, i32, i32
  }
  func.func @transform_2(%arg0: i32) -> (i32, i32) {
    %c0_i32 = arith.constant 0 : i32
    %c0_i32_0 = arith.constant 0 : i32
    %c0_i32_1 = arith.constant 0 : i32
    return %c0_i32, %c0_i32_0 : i32, i32
  }
  func.func @transform_3(%arg0: i32) -> (i32, i32) {
    %c0_i32 = arith.constant 0 : i32
    %c0_i32_0 = arith.constant 0 : i32
    %c0_i32_1 = arith.constant 0 : i32
    return %c0_i32, %c0_i32_0 : i32, i32
  }
  func.func @transform_4(%arg0: i32) -> (i32, i32) {
    %c0_i32 = arith.constant 0 : i32
    %c0_i32_0 = arith.constant 0 : i32
    %c0_i32_1 = arith.constant 0 : i32
    return %c0_i32, %c0_i32_0 : i32, i32
  }
  func.func @transform_5(%arg0: i32) -> (i32, i32) {
    %c0_i32 = arith.constant 0 : i32
    %c0_i32_0 = arith.constant 0 : i32
    %c0_i32_1 = arith.constant 0 : i32
    return %c0_i32, %c0_i32_0 : i32, i32
  }
  func.func @transform_6(%arg0: i32) -> (i32, i32) {
    %c0_i32 = arith.constant 0 : i32
    %c0_i32_0 = arith.constant 0 : i32
    %c0_i32_1 = arith.constant 0 : i32
    return %c0_i32, %c0_i32_0 : i32, i32
  }
  func.func @transform_7(%arg0: i32) -> (i32, i32) {
    %c0_i32 = arith.constant 0 : i32
    %c0_i32_0 = arith.constant 0 : i32
    %c0_i32_1 = arith.constant 0 : i32
    return %c0_i32, %c0_i32_0 : i32, i32
  }
  func.func @transform_8(%arg0: i32) -> (i32, i32) {
    %c0_i32 = arith.constant 0 : i32
    %c0_i32_0 = arith.constant 0 : i32
    %c0_i32_1 = arith.constant 0 : i32
    return %c0_i32, %c0_i32_0 : i32, i32
  }
  func.func @transform_9(%arg0: i32) -> (i32, i32) {
    %c0_i32 = arith.constant 0 : i32
    %c0_i32_0 = arith.constant 0 : i32
    %c0_i32_1 = arith.constant 0 : i32
    return %c0_i32, %c0_i32_0 : i32, i32
  }
  func.func @transform_10(%arg0: i32) -> (i32, i32, i32) {
    %c0_i32 = arith.constant 0 : i32
    %c0_i32_0 = arith.constant 0 : i32
    %c0_i32_1 = arith.constant 0 : i32
    return %arg0, %c0_i32, %c0_i32_0 : i32, i32, i32
  }
  func.func @transform_11(%arg0: i32) -> (i32, i32, i32) {
    %c0_i32 = arith.constant 0 : i32
    %c0_i32_0 = arith.constant 0 : i32
    %c0_i32_1 = arith.constant 0 : i32
    return %arg0, %c0_i32, %c0_i32_0 : i32, i32, i32
  }
}

module attributes {stable_mosaic.version = 11 : i64} {
  func.func @kernel(%arg0: i32, %arg1: i32, %arg2: memref<32x32xbf16, #tpu.memory_space<vmem>>, %arg3: memref<32x32xbf16, #tpu.memory_space<vmem>>, %arg4: memref<1x32xf32, #tpu.memory_space<vmem>>, %arg5: memref<32x32xbf16, #tpu.memory_space<vmem>>, %arg6: memref<32x32xbf16, #tpu.memory_space<vmem>>) attributes {dimension_semantics = [#tpu.dimension_semantics<parallel>, #tpu.dimension_semantics<parallel>], iteration_bounds = array<i64: 1, 1>, scalar_prefetch = 0 : i64, scratch_operands = 0 : i64, tpu.core_type = #tpu.core_type<tc>, window_params = [{transform_indices = @transform_0, window_bounds = array<i64: 32, 32>}, {transform_indices = @transform_1, window_bounds = array<i64: 32, 32>}, {transform_indices = @transform_2, window_bounds = array<i64: 1, 32>}, {transform_indices = @transform_3, window_bounds = array<i64: 32, 32>}, {transform_indices = @transform_4, window_bounds = array<i64: 32, 32>}]} {
    %c0 = arith.constant 0 : index
    %c0_0 = arith.constant 0 : index
    %0 = vector.load %arg2[%c0, %c0_0] : memref<32x32xbf16, #tpu.memory_space<vmem>>, vector<32x32xbf16>
    %c0_1 = arith.constant 0 : index
    %c0_2 = arith.constant 0 : index
    %1 = vector.load %arg3[%c0_1, %c0_2] : memref<32x32xbf16, #tpu.memory_space<vmem>>, vector<32x32xbf16>
    %cst = arith.constant dense<0.000000e+00> : vector<32x32xf32>
    %2 = tpu.matmul %0, %1, %cst {dimension_numbers = #tpu.dot_dimension_numbers<[1], [0], [0], [1], [0, 0, 1, 1], [], []>} : vector<32x32xbf16>, vector<32x32xbf16>, vector<32x32xf32> -> vector<32x32xf32>
    %c0_3 = arith.constant 0 : index
    %c0_4 = arith.constant 0 : index
    %3 = vector.load %arg5[%c0_3, %c0_4] : memref<32x32xbf16, #tpu.memory_space<vmem>>, vector<32x32xbf16>
    %c0_5 = arith.constant 0 : index
    %c0_6 = arith.constant 0 : index
    %4 = vector.load %arg4[%c0_5, %c0_6] : memref<1x32xf32, #tpu.memory_space<vmem>>, vector<1x32xf32>
    %5 = vector.broadcast %4 : vector<1x32xf32> to vector<32x32xf32>
    %6 = arith.addf %2, %5 : vector<32x32xf32>
    %cst_7 = arith.constant 0.000000e+00 : f32
    %7 = vector.broadcast %cst_7 : f32 to vector<32x32xf32>
    %8 = arith.maximumf %6, %7 : vector<32x32xf32>
    %9 = arith.extf %3 : vector<32x32xbf16> to vector<32x32xf32>
    %10 = arith.addf %8, %9 : vector<32x32xf32>
    %11 = arith.truncf %10 : vector<32x32xf32> to vector<32x32xbf16>
    %c0_8 = arith.constant 0 : index
    %c0_9 = arith.constant 0 : index
    %12 = vector.load %arg6[%c0_8, %c0_9] : memref<32x32xbf16, #tpu.memory_space<vmem>>, vector<32x32xbf16>
    tpu.vector_store %arg6[%c0_8, %c0_9], %11 {strides = array<i32>} : memref<32x32xbf16, #tpu.memory_space<vmem>>, vector<32x32xbf16>,
    return
  }
  func.func @transform_0(%arg0: i32, %arg1: i32) -> (i32, i32) {
    %c0_i32 = arith.constant 0 : i32
    %c0_i32_0 = arith.constant 0 : i32
    return %arg0, %c0_i32 : i32, i32
  }
  func.func @transform_1(%arg0: i32, %arg1: i32) -> (i32, i32) {
    %c0_i32 = arith.constant 0 : i32
    %c0_i32_0 = arith.constant 0 : i32
    return %c0_i32, %arg1 : i32, i32
  }
  func.func @transform_2(%arg0: i32, %arg1: i32) -> (i32, i32) {
    %c0_i32 = arith.constant 0 : i32
    %c0_i32_0 = arith.constant 0 : i32
    return %c0_i32, %arg1 : i32, i32
  }
  func.func @transform_3(%arg0: i32, %arg1: i32) -> (i32, i32) {
    %c0_i32 = arith.constant 0 : i32
    return %arg0, %arg1 : i32, i32
  }
  func.func @transform_4(%arg0: i32, %arg1: i32) -> (i32, i32) {
    %c0_i32 = arith.constant 0 : i32
    return %arg0, %arg1 : i32, i32
  }
}

module attributes {stable_mosaic.version = 11 : i64} {
  func.func @kernel(%arg0: i32, %arg1: i32, %arg2: memref<32x32xbf16, #tpu.memory_space<vmem>>, %arg3: memref<32x1xbf16, #tpu.memory_space<vmem>>, %arg4: memref<1x1xf32, #tpu.memory_space<vmem>>, %arg5: memref<32x1xf32, #tpu.memory_space<vmem>>) attributes {dimension_semantics = [#tpu.dimension_semantics<parallel>, #tpu.dimension_semantics<parallel>], iteration_bounds = array<i64: 1, 1>, scalar_prefetch = 0 : i64, scratch_operands = 0 : i64, tpu.core_type = #tpu.core_type<tc>, window_params = [{transform_indices = @transform_0, window_bounds = array<i64: 32, 32>}, {transform_indices = @transform_1, window_bounds = array<i64: 32, 1>}, {transform_indices = @transform_2, window_bounds = array<i64: 1, 1>}, {transform_indices = @transform_3, window_bounds = array<i64: 32, 1>}]} {
    %c0 = arith.constant 0 : index
    %c0_0 = arith.constant 0 : index
    %0 = vector.load %arg2[%c0, %c0_0] : memref<32x32xbf16, #tpu.memory_space<vmem>>, vector<32x32xbf16>
    %c0_1 = arith.constant 0 : index
    %c0_2 = arith.constant 0 : index
    %1 = vector.load %arg3[%c0_1, %c0_2] : memref<32x1xbf16, #tpu.memory_space<vmem>>, vector<32x1xbf16>
    %cst = arith.constant dense<0.000000e+00> : vector<32x1xf32>
    %2 = tpu.matmul %0, %1, %cst {dimension_numbers = #tpu.dot_dimension_numbers<[1], [0], [0], [1], [0, 0, 1, 1], [], []>} : vector<32x32xbf16>, vector<32x1xbf16>, vector<32x1xf32> -> vector<32x1xf32>
    %c0_3 = arith.constant 0 : index
    %c0_4 = arith.constant 0 : index
    %3 = vector.load %arg4[%c0_3, %c0_4] : memref<1x1xf32, #tpu.memory_space<vmem>>, vector<1x1xf32>
    %4 = vector.broadcast %3 : vector<1x1xf32> to vector<32x1xf32>
    %5 = arith.addf %2, %4 : vector<32x1xf32>
    %c0_5 = arith.constant 0 : index
    %c0_6 = arith.constant 0 : index
    %6 = vector.load %arg5[%c0_5, %c0_6] : memref<32x1xf32, #tpu.memory_space<vmem>>, vector<32x1xf32>
    tpu.vector_store %arg5[%c0_5, %c0_6], %5 {strides = array<i32>} : memref<32x1xf32, #tpu.memory_space<vmem>>, vector<32x1xf32>,
    return
  }
  func.func @transform_0(%arg0: i32, %arg1: i32) -> (i32, i32) {
    %c0_i32 = arith.constant 0 : i32
    %c0_i32_0 = arith.constant 0 : i32
    return %arg0, %c0_i32 : i32, i32
  }
  func.func @transform_1(%arg0: i32, %arg1: i32) -> (i32, i32) {
    %c0_i32 = arith.constant 0 : i32
    %c0_i32_0 = arith.constant 0 : i32
    return %c0_i32, %arg1 : i32, i32
  }
  func.func @transform_2(%arg0: i32, %arg1: i32) -> (i32, i32) {
    %c0_i32 = arith.constant 0 : i32
    %c0_i32_0 = arith.constant 0 : i32
    return %c0_i32, %arg1 : i32, i32
  }
  func.func @transform_3(%arg0: i32, %arg1: i32) -> (i32, i32) {
    %c0_i32 = arith.constant 0 : i32
    return %arg0, %arg1 : i32, i32
  }
}

</mosaic_0001>

<bundles_post_ra>
// kernel: mglnet_forward.66
= control target key start
LH: loop header
LB: loop body
LE: loop exit
PB: predicated region body
PF: predicated region fallthrough
CT: control target
= control target key end

     0   :  { %vm358_vm0 = vcmask 1044480   ;;  %vm359_vm1 = vcmask 1045504   ;;  %vm261_vm2 = vcmask 220160   ;;  %v1379_v1 = vmov 65535   ;;  %s1859_s1 = inlined_call_operand.vmem [shape: bf16[27,4], index: 1, kind: input, shape index: {}]   ;;  %s1860_s0 = inlined_call_operand.vmem [shape: bf16[512,27], index: 0, kind: input, shape index: {}]   ;;  %s1861_s2 = inlined_call_operand.vmem [shape: f32[1,4], index: 2, kind: input, shape index: {}]   ;;  %s1862_s3 = inlined_call_operand.vmem [shape: bf16[512,4], index: 3, kind: output, shape index: {}]  }
   0x1   :  { %v1345_v0 = vld [vmem:[%s1859_s1] sm:$0xff]   ;;  %v360_v2 = vsel %vm358_vm0, 4294967295, %v1379_v1  ;;  %v1346_v3 = vld [vmem:[%s1859_s1 + $0x8] sm:$0x3f]   ;;  %v1351_v10 = vld [vmem:[%s1860_s0 + $0x10] sm:$0xff]   ;;  %vm974_vm3 = vcmask 27648  }
   0x2   :  { %1272 = vmatprep.subr.bf16.mxu0 %v1345_v0  ;;  %1340 = vmatprep.subr.bf16.mxu1 %v1345_v0  ;;  %v361_v4 = vsel %vm359_vm1, %v360_v2, 0  ;;  %v1347_v5 = vld [vmem:[%s1860_s0] sm:$0xff]   ;;  %v1349_v8 = vld [vmem:[%s1860_s0 + $0x8] sm:$0xff]   ;;  %v1352_v11 = vld [vmem:[%s1860_s0 + $0x90] sm:$0xff]  }
   0x3   :  { %1273 = vmatpush3.bf16.msra.mxu0 %v1345_v0  ;;  %1342 = vmatpush3.bf16.msra.mxu1 %v1345_v0  ;;  %v363_v6 = vand.u32 %v1346_v3, %v361_v4  ;;  %v1348_v7 = vld [vmem:[%s1860_s0 + $0x80] sm:$0xff]   ;;  %v1350_v9 = vld [vmem:[%s1860_s0 + $0x88] sm:$0xff]   ;;  %v1353_v12 = vld [vmem:[%s1860_s0 + $0x18] sm:$0xff]  }
   0x4   :  { %1276 = vmatprep.mubr.msk.bf16.mxu0 %vm261_vm2, %v1347_v5  ;;  %1308 = vmatprep.mubr.msk.bf16.mxu1 %vm261_vm2, %v1348_v7  ;;  %v1354_v13 = vld [vmem:[%s1860_s0 + $0x98] sm:$0xff]   ;;  %v1355_v14 = vld [vmem:[%s1860_s0 + $0x20] sm:$0xff]   ;;  %v1357_v16 = vld [vmem:[%s1860_s0 + $0x28] sm:$0xff]  }
   0x5   :  { %1274 = vmatprep.subr.bf16.mxu0 %v363_v6  ;;  %1341 = vmatprep.subr.bf16.mxu1 %v363_v6  ;;  %v1356_v15 = vld [vmem:[%s1860_s0 + $0xa0] sm:$0xff]   ;;  %v1358_v17 = vld [vmem:[%s1860_s0 + $0xa8] sm:$0xff]   ;;  %v1359_v18 = vld [vmem:[%s1860_s0 + $0x30] sm:$0xff]  }
   0x6   :  { %v1360_v19 = vld [vmem:[%s1860_s0 + $0xb0] sm:$0xff]   ;;  %v1361_v20 = vld [vmem:[%s1860_s0 + $0x38] sm:$0xff]   ;;  %v1363_v22 = vld [vmem:[%s1860_s0 + $0x40] sm:$0xff]  }
   0x7   :  { %1275 = vmatpush3.bf16.msra.mxu0 %v363_v6  ;;  %1343 = vmatpush3.bf16.msra.mxu1 %v363_v6  ;;  %v1362_v21 = vld [vmem:[%s1860_s0 + $0xb8] sm:$0xff]   ;;  %v1364_v23 = vld [vmem:[%s1860_s0 + $0xc0] sm:$0xff]   ;;  %v1365_v24 = vld [vmem:[%s1860_s0 + $0x48] sm:$0xff]  }
   0x8   :  { %v1366_v25 = vld [vmem:[%s1860_s0 + $0xc8] sm:$0xff]   ;;  %v1367_v26 = vld [vmem:[%s1860_s0 + $0x50] sm:$0xff]   ;;  %v1369_v28 = vld [vmem:[%s1860_s0 + $0x58] sm:$0xff]  }
   0x9   :  { %v1368_v27 = vld [vmem:[%s1860_s0 + $0xd0] sm:$0xff]   ;;  %v1370_v29 = vld [vmem:[%s1860_s0 + $0xd8] sm:$0xff]   ;;  %v1371_v30 = vld [vmem:[%s1860_s0 + $0x60] sm:$0xff]  }
   0xa   :  { %1277 = vmatmul.mubr.msk.bf16.vlgmr.msra.gmra.mrb[0].mxu0 %vm261_vm2, %v1349_v8  ;;  %1309 = vmatmul.mubr.msk.bf16.vlgmr.msra.gmra.mrb[0].mxu1 %vm261_vm2, %v1350_v9  ;;  %v1372_v31 = vld [vmem:[%s1860_s0 + $0xe0] sm:$0xff]   ;;  %v1373_v32 = vld [vmem:[%s1860_s0 + $0x68] sm:$0xff]   ;;  %v1375_v34 = vld [vmem:[%s1860_s0 + $0x70] sm:$0xff]  }
   0xb   :  { %1280 = vmatprep.mubr.msk.bf16.mxu0 %vm261_vm2, %v1351_v10  ;;  %1312 = vmatprep.mubr.msk.bf16.mxu1 %vm261_vm2, %v1352_v11  ;;  %v1374_v33 = vld [vmem:[%s1860_s0 + $0xe8] sm:$0xff]   ;;  %v1376_v35 = vld [vmem:[%s1860_s0 + $0xf0] sm:$0xff]   ;;  %v1377_v36 = vld [vmem:[%s1860_s0 + $0x78] sm:$0xff]  }
   0xc   :  { %v1378_v37 = vld [vmem:[%s1860_s0 + $0xf8] sm:$0xff]   ;;  %v1537_v38 = vld [vmem:[%s1861_s2] ss:$0 sm:$0xff] }
  0x12   :  { %1281 = vmatmul.mubr.msk.bf16.gmra.mrb[4].mxu0 %vm261_vm2, %v1353_v12  ;;  %1313 = vmatmul.mubr.msk.bf16.gmra.mrb[4].mxu1 %vm261_vm2, %v1354_v13 }
  0x13   :  { %1284 = vmatprep.mubr.msk.bf16.mxu0 %vm261_vm2, %v1355_v14  ;;  %1316 = vmatprep.mubr.msk.bf16.mxu1 %vm261_vm2, %v1356_v15 }
  0x1a   :  { %1285 = vmatmul.mubr.msk.bf16.gmra.mrb[8].mxu0 %vm261_vm2, %v1357_v16  ;;  %1317 = vmatmul.mubr.msk.bf16.gmra.mrb[8].mxu1 %vm261_vm2, %v1358_v17 }
  0x1b   :  { %1288 = vmatprep.mubr.msk.bf16.mxu0 %vm261_vm2, %v1359_v18  ;;  %1320 = vmatprep.mubr.msk.bf16.mxu1 %vm261_vm2, %v1360_v19 }
  0x22   :  { %1289 = vmatmul.mubr.msk.bf16.gmra.mrb[12].mxu0 %vm261_vm2, %v1361_v20  ;;  %1321 = vmatmul.mubr.msk.bf16.gmra.mrb[12].mxu1 %vm261_vm2, %v1362_v21 }
  0x23   :  { %1292 = vmatprep.mubr.msk.bf16.mxu0 %vm261_vm2, %v1363_v22  ;;  %1324 = vmatprep.mubr.msk.bf16.mxu1 %vm261_vm2, %v1364_v23 }
  0x2a   :  { %1293 = vmatmul.mubr.msk.bf16.gmra.mrb[16].mxu0 %vm261_vm2, %v1365_v24  ;;  %1325 = vmatmul.mubr.msk.bf16.gmra.mrb[16].mxu1 %vm261_vm2, %v1366_v25 }
  0x2b   :  { %1296 = vmatprep.mubr.msk.bf16.mxu0 %vm261_vm2, %v1367_v26  ;;  %1328 = vmatprep.mubr.msk.bf16.mxu1 %vm261_vm2, %v1368_v27 }
  0x32   :  { %1297 = vmatmul.mubr.msk.bf16.gmra.mrb[20].mxu0 %vm261_vm2, %v1369_v28  ;;  %1329 = vmatmul.mubr.msk.bf16.gmra.mrb[20].mxu1 %vm261_vm2, %v1370_v29 }
  0x33   :  { %1300 = vmatprep.mubr.msk.bf16.mxu0 %vm261_vm2, %v1371_v30  ;;  %1332 = vmatprep.mubr.msk.bf16.mxu1 %vm261_vm2, %v1372_v31 }
  0x3a   :  { %1301 = vmatmul.mubr.msk.bf16.gmra.mrb[24].mxu0 %vm261_vm2, %v1373_v32  ;;  %1333 = vmatmul.mubr.msk.bf16.gmra.mrb[24].mxu1 %vm261_vm2, %v1374_v33 }
  0x3b   :  { %1304 = vmatprep.mubr.msk.bf16.mxu0 %vm261_vm2, %v1375_v34  ;;  %1336 = vmatprep.mubr.msk.bf16.mxu1 %vm261_vm2, %v1376_v35 }
  0x42   :  { %1305 = vmatmul.mubr.msk.bf16.gmra.mrb[28].mxu0 %vm261_vm2, %v1377_v36  ;;  %1337 = vmatmul.mubr.msk.bf16.gmra.mrb[28].mxu1 %vm261_vm2, %v1378_v37 }
  0xdd   :  { %v1278_v39 = vpop.f32.mrb[0].mxu0  ;;  %v1310_v40 = vpop.f32.mrb[0].mxu1 }
  0xde   :  { %v408_v41 = vadd.f32 %v1278_v39, %v1537_v38  ;;  %v536_v42 = vadd.f32 %v1310_v40, %v1537_v38  ;;  %v399_v43 = vpop.f32.mrb[1].mxu0  ;;  %v527_v44 = vpop.f32.mrb[1].mxu1 }
  0xdf   :  { %v400_v45 = vadd.f32 %v1537_v38, %v399_v43  ;;  %v528_v46 = vadd.f32 %v1537_v38, %v527_v44  ;;  %v1279_v47 = vpop.f32.mrb[2].mxu0  ;;  %v1311_v48 = vpop.f32.mrb[2].mxu1 }
  0xe0   :  { %v656_v49 = vmax.f32 %v408_v41, 0.0  ;;  %v688_v50 = vmax.f32 %v536_v42, 0.0  ;;  %v411_v51 = vadd.f32 %v1279_v47, %v1537_v38  ;;  %v539_v52 = vadd.f32 %v1311_v48, %v1537_v38  ;;  %v402_v53 = vpop.f32.mrb[3].mxu0  ;;  %v530_v54 = vpop.f32.mrb[3].mxu1 }
  0xe1   :  { %v654_v55 = vmax.f32 %v400_v45, 0.0  ;;  %v686_v56 = vmax.f32 %v528_v46, 0.0  ;;  %v403_v57 = vadd.f32 %v1537_v38, %v402_v53  ;;  %v531_v58 = vadd.f32 %v1537_v38, %v530_v54 }
  0xe2   :  { %v1176_v59 = vpack.c.bf16 %v656_v49, %v656_v49  ;;  %v1208_v60 = vpack.c.bf16 %v688_v50, %v688_v50  ;;  %v657_v61 = vmax.f32 %v411_v51, 0.0  ;;  %v689_v62 = vmax.f32 %v539_v52, 0.0 }
  0xe3   :  { %v1174_v63 = vpack.c.bf16 %v654_v55, %v654_v55  ;;  %v1206_v0 = vpack.c.bf16 %v686_v56, %v686_v56  ;;  %v655_v1 = vmax.f32 %v403_v57, 0.0  ;;  %v687_v2 = vmax.f32 %v531_v58, 0.0 }
  0xe4   :  { %977 = vst.msk [vmem:[%s1862_s3 + $0x8] sm:$0xf] %vm974_vm3, %v1176_v59  ;;  %1009 = vst.msk [vmem:[%s1862_s3 + $0x88] sm:$0xf] %vm974_vm3, %v1208_v60  ;;  %v1177_v3 = vpack.c.bf16 %v657_v61, %v657_v61  ;;  %v1209_v4 = vpack.c.bf16 %v689_v62, %v689_v62 }
  0xe5   :  { %975 = vst.msk [vmem:[%s1862_s3] sm:$0xf] %vm974_vm3, %v1174_v63  ;;  %1007 = vst.msk [vmem:[%s1862_s3 + $0x80] sm:$0xf] %vm974_vm3, %v1206_v0  ;;  %v1175_v5 = vpack.c.bf16 %v655_v1, %v655_v1  ;;  %v1207_v6 = vpack.c.bf16 %v687_v2, %v687_v2  ;;  %v1282_v7 = vpop.f32.mrb[4].mxu0  ;;  %v1314_v8 = vpop.f32.mrb[4].mxu1 }
  0xe6   :  { %978 = vst.msk [vmem:[%s1862_s3 + $0xc] sm:$0xf] %vm974_vm3, %v1177_v3  ;;  %1010 = vst.msk [vmem:[%s1862_s3 + $0x8c] sm:$0xf] %vm974_vm3, %v1209_v4  ;;  %v424_v9 = vadd.f32 %v1282_v7, %v1537_v38  ;;  %v552_v10 = vadd.f32 %v1314_v8, %v1537_v38  ;;  %v415_v11 = vpop.f32.mrb[5].mxu0  ;;  %v543_v12 = vpop.f32.mrb[5].mxu1 }
  0xe7   :  { %976 = vst.msk [vmem:[%s1862_s3 + $0x4] sm:$0xf] %vm974_vm3, %v1175_v5  ;;  %1008 = vst.msk [vmem:[%s1862_s3 + $0x84] sm:$0xf] %vm974_vm3, %v1207_v6  ;;  %v416_v13 = vadd.f32 %v1537_v38, %v415_v11  ;;  %v544_v14 = vadd.f32 %v1537_v38, %v543_v12  ;;  %v1283_v15 = vpop.f32.mrb[6].mxu0  ;;  %v1315_v16 = vpop.f32.mrb[6].mxu1 }
  0xe8   :  { %v660_v17 = vmax.f32 %v424_v9, 0.0  ;;  %v692_v18 = vmax.f32 %v552_v10, 0.0  ;;  %v427_v19 = vadd.f32 %v1283_v15, %v1537_v38  ;;  %v555_v20 = vadd.f32 %v1315_v16, %v1537_v38  ;;  %v418_v21 = vpop.f32.mrb[7].mxu0  ;;  %v546_v22 = vpop.f32.mrb[7].mxu1 }
  0xe9   :  { %v658_v23 = vmax.f32 %v416_v13, 0.0  ;;  %v690_v24 = vmax.f32 %v544_v14, 0.0  ;;  %v419_v25 = vadd.f32 %v1537_v38, %v418_v21  ;;  %v547_v26 = vadd.f32 %v1537_v38, %v546_v22 }
  0xea   :  { %v1180_v27 = vpack.c.bf16 %v660_v17, %v660_v17  ;;  %v1212_v28 = vpack.c.bf16 %v692_v18, %v692_v18  ;;  %v661_v29 = vmax.f32 %v427_v19, 0.0  ;;  %v693_v30 = vmax.f32 %v555_v20, 0.0 }
  0xeb   :  { %v1178_v31 = vpack.c.bf16 %v658_v23, %v658_v23  ;;  %v1210_v32 = vpack.c.bf16 %v690_v24, %v690_v24  ;;  %v659_v33 = vmax.f32 %v419_v25, 0.0  ;;  %v691_v34 = vmax.f32 %v547_v26, 0.0 }
  0xec   :  { %981 = vst.msk [vmem:[%s1862_s3 + $0x18] sm:$0xf] %vm974_vm3, %v1180_v27  ;;  %1013 = vst.msk [vmem:[%s1862_s3 + $0x98] sm:$0xf] %vm974_vm3, %v1212_v28  ;;  %v1181_v35 = vpack.c.bf16 %v661_v29, %v661_v29  ;;  %v1213_v36 = vpack.c.bf16 %v693_v30, %v693_v30 }
  0xed   :  { %979 = vst.msk [vmem:[%s1862_s3 + $0x10] sm:$0xf] %vm974_vm3, %v1178_v31  ;;  %1011 = vst.msk [vmem:[%s1862_s3 + $0x90] sm:$0xf] %vm974_vm3, %v1210_v32  ;;  %v1179_v37 = vpack.c.bf16 %v659_v33, %v659_v33  ;;  %v1211_v39 = vpack.c.bf16 %v691_v34, %v691_v34  ;;  %v1286_v40 = vpop.f32.mrb[8].mxu0  ;;  %v1318_v41 = vpop.f32.mrb[8].mxu1 }
  0xee   :  { %982 = vst.msk [vmem:[%s1862_s3 + $0x1c] sm:$0xf] %vm974_vm3, %v1181_v35  ;;  %1014 = vst.msk [vmem:[%s1862_s3 + $0x9c] sm:$0xf] %vm974_vm3, %v1213_v36  ;;  %v440_v42 = vadd.f32 %v1286_v40, %v1537_v38  ;;  %v568_v43 = vadd.f32 %v1318_v41, %v1537_v38  ;;  %v431_v44 = vpop.f32.mrb[9].mxu0  ;;  %v559_v45 = vpop.f32.mrb[9].mxu1 }
  0xef   :  { %980 = vst.msk [vmem:[%s1862_s3 + $0x14] sm:$0xf] %vm974_vm3, %v1179_v37  ;;  %1012 = vst.msk [vmem:[%s1862_s3 + $0x94] sm:$0xf] %vm974_vm3, %v1211_v39  ;;  %v432_v46 = vadd.f32 %v1537_v38, %v431_v44  ;;  %v560_v47 = vadd.f32 %v1537_v38, %v559_v45  ;;  %v1287_v48 = vpop.f32.mrb[10].mxu0  ;;  %v1319_v49 = vpop.f32.mrb[10].mxu1 }
  0xf0   :  { %v664_v50 = vmax.f32 %v440_v42, 0.0  ;;  %v696_v51 = vmax.f32 %v568_v43, 0.0  ;;  %v443_v52 = vadd.f32 %v1287_v48, %v1537_v38  ;;  %v571_v53 = vadd.f32 %v1319_v49, %v1537_v38  ;;  %v434_v54 = vpop.f32.mrb[11].mxu0  ;;  %v562_v55 = vpop.f32.mrb[11].mxu1 }
  0xf1   :  { %v662_v56 = vmax.f32 %v432_v46, 0.0  ;;  %v694_v57 = vmax.f32 %v560_v47, 0.0  ;;  %v435_v58 = vadd.f32 %v1537_v38, %v434_v54  ;;  %v563_v59 = vadd.f32 %v1537_v38, %v562_v55 }
  0xf2   :  { %v1184_v60 = vpack.c.bf16 %v664_v50, %v664_v50  ;;  %v1216_v61 = vpack.c.bf16 %v696_v51, %v696_v51  ;;  %v665_v62 = vmax.f32 %v443_v52, 0.0  ;;  %v697_v63 = vmax.f32 %v571_v53, 0.0 }
  0xf3   :  { %v1182_v0 = vpack.c.bf16 %v662_v56, %v662_v56  ;;  %v1214_v1 = vpack.c.bf16 %v694_v57, %v694_v57  ;;  %v663_v2 = vmax.f32 %v435_v58, 0.0  ;;  %v695_v3 = vmax.f32 %v563_v59, 0.0 }
  0xf4   :  { %985 = vst.msk [vmem:[%s1862_s3 + $0x28] sm:$0xf] %vm974_vm3, %v1184_v60  ;;  %1017 = vst.msk [vmem:[%s1862_s3 + $0xa8] sm:$0xf] %vm974_vm3, %v1216_v61  ;;  %v1185_v4 = vpack.c.bf16 %v665_v62, %v665_v62  ;;  %v1217_v5 = vpack.c.bf16 %v697_v63, %v697_v63 }
  0xf5   :  { %983 = vst.msk [vmem:[%s1862_s3 + $0x20] sm:$0xf] %vm974_vm3, %v1182_v0  ;;  %1015 = vst.msk [vmem:[%s1862_s3 + $0xa0] sm:$0xf] %vm974_vm3, %v1214_v1  ;;  %v1183_v6 = vpack.c.bf16 %v663_v2, %v663_v2  ;;  %v1215_v7 = vpack.c.bf16 %v695_v3, %v695_v3  ;;  %v1290_v8 = vpop.f32.mrb[12].mxu0  ;;  %v1322_v9 = vpop.f32.mrb[12].mxu1 }
  0xf6   :  { %986 = vst.msk [vmem:[%s1862_s3 + $0x2c] sm:$0xf] %vm974_vm3, %v1185_v4  ;;  %1018 = vst.msk [vmem:[%s1862_s3 + $0xac] sm:$0xf] %vm974_vm3, %v1217_v5  ;;  %v456_v10 = vadd.f32 %v1290_v8, %v1537_v38  ;;  %v584_v11 = vadd.f32 %v1322_v9, %v1537_v38  ;;  %v447_v12 = vpop.f32.mrb[13].mxu0  ;;  %v575_v13 = vpop.f32.mrb[13].mxu1 }
  0xf7   :  { %984 = vst.msk [vmem:[%s1862_s3 + $0x24] sm:$0xf] %vm974_vm3, %v1183_v6  ;;  %1016 = vst.msk [vmem:[%s1862_s3 + $0xa4] sm:$0xf] %vm974_vm3, %v1215_v7  ;;  %v448_v14 = vadd.f32 %v1537_v38, %v447_v12  ;;  %v576_v15 = vadd.f32 %v1537_v38, %v575_v13  ;;  %v1291_v16 = vpop.f32.mrb[14].mxu0  ;;  %v1323_v17 = vpop.f32.mrb[14].mxu1 }
  0xf8   :  { %v668_v18 = vmax.f32 %v456_v10, 0.0  ;;  %v700_v19 = vmax.f32 %v584_v11, 0.0  ;;  %v459_v20 = vadd.f32 %v1291_v16, %v1537_v38  ;;  %v587_v21 = vadd.f32 %v1323_v17, %v1537_v38  ;;  %v450_v22 = vpop.f32.mrb[15].mxu0  ;;  %v578_v23 = vpop.f32.mrb[15].mxu1 }
  0xf9   :  { %v666_v24 = vmax.f32 %v448_v14, 0.0  ;;  %v698_v25 = vmax.f32 %v576_v15, 0.0  ;;  %v451_v26 = vadd.f32 %v1537_v38, %v450_v22  ;;  %v579_v27 = vadd.f32 %v1537_v38, %v578_v23 }
  0xfa   :  { %v1188_v28 = vpack.c.bf16 %v668_v18, %v668_v18  ;;  %v1220_v29 = vpack.c.bf16 %v700_v19, %v700_v19  ;;  %v669_v30 = vmax.f32 %v459_v20, 0.0  ;;  %v701_v31 = vmax.f32 %v587_v21, 0.0 }
  0xfb   :  { %v1186_v32 = vpack.c.bf16 %v666_v24, %v666_v24  ;;  %v1218_v33 = vpack.c.bf16 %v698_v25, %v698_v25  ;;  %v667_v34 = vmax.f32 %v451_v26, 0.0  ;;  %v699_v35 = vmax.f32 %v579_v27, 0.0 }
  0xfc   :  { %989 = vst.msk [vmem:[%s1862_s3 + $0x38] sm:$0xf] %vm974_vm3, %v1188_v28  ;;  %1021 = vst.msk [vmem:[%s1862_s3 + $0xb8] sm:$0xf] %vm974_vm3, %v1220_v29  ;;  %v1189_v36 = vpack.c.bf16 %v669_v30, %v669_v30  ;;  %v1221_v37 = vpack.c.bf16 %v701_v31, %v701_v31 }
  0xfd   :  { %987 = vst.msk [vmem:[%s1862_s3 + $0x30] sm:$0xf] %vm974_vm3, %v1186_v32  ;;  %1019 = vst.msk [vmem:[%s1862_s3 + $0xb0] sm:$0xf] %vm974_vm3, %v1218_v33  ;;  %v1187_v39 = vpack.c.bf16 %v667_v34, %v667_v34  ;;  %v1219_v40 = vpack.c.bf16 %v699_v35, %v699_v35  ;;  %v1294_v41 = vpop.f32.mrb[16].mxu0  ;;  %v1326_v42 = vpop.f32.mrb[16].mxu1 }
  0xfe   :  { %990 = vst.msk [vmem:[%s1862_s3 + $0x3c] sm:$0xf] %vm974_vm3, %v1189_v36  ;;  %1022 = vst.msk [vmem:[%s1862_s3 + $0xbc] sm:$0xf] %vm974_vm3, %v1221_v37  ;;  %v472_v43 = vadd.f32 %v1294_v41, %v1537_v38  ;;  %v600_v44 = vadd.f32 %v1326_v42, %v1537_v38  ;;  %v463_v45 = vpop.f32.mrb[17].mxu0  ;;  %v591_v46 = vpop.f32.mrb[17].mxu1 }
  0xff   :  { %988 = vst.msk [vmem:[%s1862_s3 + $0x34] sm:$0xf] %vm974_vm3, %v1187_v39  ;;  %1020 = vst.msk [vmem:[%s1862_s3 + $0xb4] sm:$0xf] %vm974_vm3, %v1219_v40  ;;  %v464_v47 = vadd.f32 %v1537_v38, %v463_v45  ;;  %v592_v48 = vadd.f32 %v1537_v38, %v591_v46  ;;  %v1295_v49 = vpop.f32.mrb[18].mxu0  ;;  %v1327_v50 = vpop.f32.mrb[18].mxu1 }
 0x100   :  { %v672_v51 = vmax.f32 %v472_v43, 0.0  ;;  %v704_v52 = vmax.f32 %v600_v44, 0.0  ;;  %v475_v53 = vadd.f32 %v1295_v49, %v1537_v38  ;;  %v603_v54 = vadd.f32 %v1327_v50, %v1537_v38  ;;  %v466_v55 = vpop.f32.mrb[19].mxu0  ;;  %v594_v56 = vpop.f32.mrb[19].mxu1 }
 0x101   :  { %v670_v57 = vmax.f32 %v464_v47, 0.0  ;;  %v702_v58 = vmax.f32 %v592_v48, 0.0  ;;  %v467_v59 = vadd.f32 %v1537_v38, %v466_v55  ;;  %v595_v60 = vadd.f32 %v1537_v38, %v594_v56 }
 0x102   :  { %v1192_v61 = vpack.c.bf16 %v672_v51, %v672_v51  ;;  %v1224_v62 = vpack.c.bf16 %v704_v52, %v704_v52  ;;  %v673_v63 = vmax.f32 %v475_v53, 0.0  ;;  %v705_v0 = vmax.f32 %v603_v54, 0.0 }
 0x103   :  { %v1190_v1 = vpack.c.bf16 %v670_v57, %v670_v57  ;;  %v1222_v2 = vpack.c.bf16 %v702_v58, %v702_v58  ;;  %v671_v3 = vmax.f32 %v467_v59, 0.0  ;;  %v703_v4 = vmax.f32 %v595_v60, 0.0 }
 0x104   :  { %993 = vst.msk [vmem:[%s1862_s3 + $0x48] sm:$0xf] %vm974_vm3, %v1192_v61  ;;  %1025 = vst.msk [vmem:[%s1862_s3 + $0xc8] sm:$0xf] %vm974_vm3, %v1224_v62  ;;  %v1193_v5 = vpack.c.bf16 %v673_v63, %v673_v63  ;;  %v1225_v6 = vpack.c.bf16 %v705_v0, %v705_v0 }
 0x105   :  { %991 = vst.msk [vmem:[%s1862_s3 + $0x40] sm:$0xf] %vm974_vm3, %v1190_v1  ;;  %1023 = vst.msk [vmem:[%s1862_s3 + $0xc0] sm:$0xf] %vm974_vm3, %v1222_v2  ;;  %v1191_v7 = vpack.c.bf16 %v671_v3, %v671_v3  ;;  %v1223_v8 = vpack.c.bf16 %v703_v4, %v703_v4  ;;  %v1298_v9 = vpop.f32.mrb[20].mxu0  ;;  %v1330_v10 = vpop.f32.mrb[20].mxu1 }
 0x106   :  { %994 = vst.msk [vmem:[%s1862_s3 + $0x4c] sm:$0xf] %vm974_vm3, %v1193_v5  ;;  %1026 = vst.msk [vmem:[%s1862_s3 + $0xcc] sm:$0xf] %vm974_vm3, %v1225_v6  ;;  %v488_v11 = vadd.f32 %v1298_v9, %v1537_v38  ;;  %v616_v12 = vadd.f32 %v1330_v10, %v1537_v38  ;;  %v479_v13 = vpop.f32.mrb[21].mxu0  ;;  %v607_v14 = vpop.f32.mrb[21].mxu1 }
 0x107   :  { %992 = vst.msk [vmem:[%s1862_s3 + $0x44] sm:$0xf] %vm974_vm3, %v1191_v7  ;;  %1024 = vst.msk [vmem:[%s1862_s3 + $0xc4] sm:$0xf] %vm974_vm3, %v1223_v8  ;;  %v480_v15 = vadd.f32 %v1537_v38, %v479_v13  ;;  %v608_v16 = vadd.f32 %v1537_v38, %v607_v14  ;;  %v1299_v17 = vpop.f32.mrb[22].mxu0  ;;  %v1331_v18 = vpop.f32.mrb[22].mxu1 }
 0x108   :  { %v676_v19 = vmax.f32 %v488_v11, 0.0  ;;  %v708_v20 = vmax.f32 %v616_v12, 0.0  ;;  %v491_v21 = vadd.f32 %v1299_v17, %v1537_v38  ;;  %v619_v22 = vadd.f32 %v1331_v18, %v1537_v38  ;;  %v482_v23 = vpop.f32.mrb[23].mxu0  ;;  %v610_v24 = vpop.f32.mrb[23].mxu1 }
 0x109   :  { %v674_v25 = vmax.f32 %v480_v15, 0.0  ;;  %v706_v26 = vmax.f32 %v608_v16, 0.0  ;;  %v483_v27 = vadd.f32 %v1537_v38, %v482_v23  ;;  %v611_v28 = vadd.f32 %v1537_v38, %v610_v24 }
 0x10a   :  { %v1196_v29 = vpack.c.bf16 %v676_v19, %v676_v19  ;;  %v1228_v30 = vpack.c.bf16 %v708_v20, %v708_v20  ;;  %v677_v31 = vmax.f32 %v491_v21, 0.0  ;;  %v709_v32 = vmax.f32 %v619_v22, 0.0 }
 0x10b   :  { %v1194_v33 = vpack.c.bf16 %v674_v25, %v674_v25  ;;  %v1226_v34 = vpack.c.bf16 %v706_v26, %v706_v26  ;;  %v675_v35 = vmax.f32 %v483_v27, 0.0  ;;  %v707_v36 = vmax.f32 %v611_v28, 0.0 }
 0x10c   :  { %997 = vst.msk [vmem:[%s1862_s3 + $0x58] sm:$0xf] %vm974_vm3, %v1196_v29  ;;  %1029 = vst.msk [vmem:[%s1862_s3 + $0xd8] sm:$0xf] %vm974_vm3, %v1228_v30  ;;  %v1197_v37 = vpack.c.bf16 %v677_v31, %v677_v31  ;;  %v1229_v39 = vpack.c.bf16 %v709_v32, %v709_v32 }
 0x10d   :  { %995 = vst.msk [vmem:[%s1862_s3 + $0x50] sm:$0xf] %vm974_vm3, %v1194_v33  ;;  %1027 = vst.msk [vmem:[%s1862_s3 + $0xd0] sm:$0xf] %vm974_vm3, %v1226_v34  ;;  %v1195_v40 = vpack.c.bf16 %v675_v35, %v675_v35  ;;  %v1227_v41 = vpack.c.bf16 %v707_v36, %v707_v36  ;;  %v1302_v42 = vpop.f32.mrb[24].mxu0  ;;  %v1334_v43 = vpop.f32.mrb[24].mxu1 }
 0x10e   :  { %998 = vst.msk [vmem:[%s1862_s3 + $0x5c] sm:$0xf] %vm974_vm3, %v1197_v37  ;;  %1030 = vst.msk [vmem:[%s1862_s3 + $0xdc] sm:$0xf] %vm974_vm3, %v1229_v39  ;;  %v504_v44 = vadd.f32 %v1302_v42, %v1537_v38  ;;  %v632_v45 = vadd.f32 %v1334_v43, %v1537_v38  ;;  %v495_v46 = vpop.f32.mrb[25].mxu0  ;;  %v623_v47 = vpop.f32.mrb[25].mxu1 }
 0x10f   :  { %996 = vst.msk [vmem:[%s1862_s3 + $0x54] sm:$0xf] %vm974_vm3, %v1195_v40  ;;  %1028 = vst.msk [vmem:[%s1862_s3 + $0xd4] sm:$0xf] %vm974_vm3, %v1227_v41  ;;  %v496_v48 = vadd.f32 %v1537_v38, %v495_v46  ;;  %v624_v49 = vadd.f32 %v1537_v38, %v623_v47  ;;  %v1303_v50 = vpop.f32.mrb[26].mxu0  ;;  %v1335_v51 = vpop.f32.mrb[26].mxu1 }
 0x110   :  { %v680_v52 = vmax.f32 %v504_v44, 0.0  ;;  %v712_v53 = vmax.f32 %v632_v45, 0.0  ;;  %v507_v54 = vadd.f32 %v1303_v50, %v1537_v38  ;;  %v635_v55 = vadd.f32 %v1335_v51, %v1537_v38  ;;  %v498_v56 = vpop.f32.mrb[27].mxu0  ;;  %v626_v57 = vpop.f32.mrb[27].mxu1 }
 0x111   :  { %v678_v58 = vmax.f32 %v496_v48, 0.0  ;;  %v710_v59 = vmax.f32 %v624_v49, 0.0  ;;  %v499_v60 = vadd.f32 %v1537_v38, %v498_v56  ;;  %v627_v61 = vadd.f32 %v1537_v38, %v626_v57 }
 0x112   :  { %v1200_v62 = vpack.c.bf16 %v680_v52, %v680_v52  ;;  %v1232_v63 = vpack.c.bf16 %v712_v53, %v712_v53  ;;  %v681_v0 = vmax.f32 %v507_v54, 0.0  ;;  %v713_v1 = vmax.f32 %v635_v55, 0.0 }
 0x113   :  { %v1198_v2 = vpack.c.bf16 %v678_v58, %v678_v58  ;;  %v1230_v3 = vpack.c.bf16 %v710_v59, %v710_v59  ;;  %v679_v4 = vmax.f32 %v499_v60, 0.0  ;;  %v711_v5 = vmax.f32 %v627_v61, 0.0 }
 0x114   :  { %1001 = vst.msk [vmem:[%s1862_s3 + $0x68] sm:$0xf] %vm974_vm3, %v1200_v62  ;;  %1033 = vst.msk [vmem:[%s1862_s3 + $0xe8] sm:$0xf] %vm974_vm3, %v1232_v63  ;;  %v1201_v6 = vpack.c.bf16 %v681_v0, %v681_v0  ;;  %v1233_v7 = vpack.c.bf16 %v713_v1, %v713_v1 }
 0x115   :  { %999 = vst.msk [vmem:[%s1862_s3 + $0x60] sm:$0xf] %vm974_vm3, %v1198_v2  ;;  %1031 = vst.msk [vmem:[%s1862_s3 + $0xe0] sm:$0xf] %vm974_vm3, %v1230_v3  ;;  %v1199_v8 = vpack.c.bf16 %v679_v4, %v679_v4  ;;  %v1231_v9 = vpack.c.bf16 %v711_v5, %v711_v5  ;;  %v1306_v10 = vpop.f32.mrb[28].mxu0  ;;  %v1338_v11 = vpop.f32.mrb[28].mxu1 }
 0x116   :  { %1002 = vst.msk [vmem:[%s1862_s3 + $0x6c] sm:$0xf] %vm974_vm3, %v1201_v6  ;;  %1034 = vst.msk [vmem:[%s1862_s3 + $0xec] sm:$0xf] %vm974_vm3, %v1233_v7  ;;  %v520_v12 = vadd.f32 %v1306_v10, %v1537_v38  ;;  %v648_v13 = vadd.f32 %v1338_v11, %v1537_v38  ;;  %v511_v14 = vpop.f32.mrb[29].mxu0  ;;  %v639_v15 = vpop.f32.mrb[29].mxu1 }
 0x117   :  { %1000 = vst.msk [vmem:[%s1862_s3 + $0x64] sm:$0xf] %vm974_vm3, %v1199_v8  ;;  %1032 = vst.msk [vmem:[%s1862_s3 + $0xe4] sm:$0xf] %vm974_vm3, %v1231_v9  ;;  %v512_v16 = vadd.f32 %v1537_v38, %v511_v14  ;;  %v640_v17 = vadd.f32 %v1537_v38, %v639_v15  ;;  %v1307_v18 = vpop.f32.mrb[30].mxu0  ;;  %v1339_v19 = vpop.f32.mrb[30].mxu1 }
 0x118   :  { %v684_v20 = vmax.f32 %v520_v12, 0.0  ;;  %v716_v21 = vmax.f32 %v648_v13, 0.0  ;;  %v523_v22 = vadd.f32 %v1307_v18, %v1537_v38  ;;  %v651_v23 = vadd.f32 %v1339_v19, %v1537_v38  ;;  %v514_v24 = vpop.f32.mrb[31].mxu0  ;;  %v642_v25 = vpop.f32.mrb[31].mxu1 }
 0x119   :  { %v682_v26 = vmax.f32 %v512_v16, 0.0  ;;  %v714_v27 = vmax.f32 %v640_v17, 0.0  ;;  %v515_v28 = vadd.f32 %v1537_v38, %v514_v24  ;;  %v643_v29 = vadd.f32 %v1537_v38, %v642_v25 }
 0x11a   :  { %v1204_v30 = vpack.c.bf16 %v684_v20, %v684_v20  ;;  %v1236_v31 = vpack.c.bf16 %v716_v21, %v716_v21  ;;  %v685_v32 = vmax.f32 %v523_v22, 0.0  ;;  %v717_v33 = vmax.f32 %v651_v23, 0.0 }
 0x11b   :  { %v1202_v34 = vpack.c.bf16 %v682_v26, %v682_v26  ;;  %v1234_v35 = vpack.c.bf16 %v714_v27, %v714_v27  ;;  %v683_v36 = vmax.f32 %v515_v28, 0.0  ;;  %v715_v37 = vmax.f32 %v643_v29, 0.0 }
 0x11c   :  { %1005 = vst.msk [vmem:[%s1862_s3 + $0x78] sm:$0xf] %vm974_vm3, %v1204_v30  ;;  %1037 = vst.msk [vmem:[%s1862_s3 + $0xf8] sm:$0xf] %vm974_vm3, %v1236_v31  ;;  %v1205_v39 = vpack.c.bf16 %v685_v32, %v685_v32  ;;  %v1237_v38 = vpack.c.bf16 %v717_v33, %v717_v33 }
 0x11d   :  { %1003 = vst.msk [vmem:[%s1862_s3 + $0x70] sm:$0xf] %vm974_vm3, %v1202_v34  ;;  %1035 = vst.msk [vmem:[%s1862_s3 + $0xf0] sm:$0xf] %vm974_vm3, %v1234_v35  ;;  %v1203_v40 = vpack.c.bf16 %v683_v36, %v683_v36  ;;  %v1235_v41 = vpack.c.bf16 %v715_v37, %v715_v37 }
 0x11e   :  { %1006 = vst.msk [vmem:[%s1862_s3 + $0x7c] sm:$0xf] %vm974_vm3, %v1205_v39  ;;  %1038 = vst.msk [vmem:[%s1862_s3 + $0xfc] sm:$0xf] %vm974_vm3, %v1237_v38 }
 0x11f   :  { %1004 = vst.msk [vmem:[%s1862_s3 + $0x74] sm:$0xf] %vm974_vm3, %v1203_v40  ;;  %1036 = vst.msk [vmem:[%s1862_s3 + $0xf4] sm:$0xf] %vm974_vm3, %v1235_v41 }

// kernel: mglnet_forward.67
= control target key start
LH: loop header
LB: loop body
LE: loop exit
PB: predicated region body
PF: predicated region fallthrough
CT: control target
= control target key end

     0   :  { %vm266_vm0 = vcmask 293888   ;;  %vm363_vm1 = vcmask 1041408   ;;  %vm976_vm2 = vcmask 27648   ;;  %s1871_s1 = inlined_call_operand.vmem [shape: bf16[36,4], index: 1, kind: input, shape index: {}]   ;;  %s1872_s0 = inlined_call_operand.vmem [shape: bf16[512,36], index: 0, kind: input, shape index: {}]   ;;  %s1873_s2 = inlined_call_operand.vmem [shape: f32[1,4], index: 2, kind: input, shape index: {}]   ;;  %s1874_s3 = inlined_call_operand.vmem [shape: bf16[512,4], index: 3, kind: output, shape index: {}]  }
   0x1   :  { %v1354_v0 = vld [vmem:[%s1871_s1] sm:$0xff]   ;;  %v1355_v1 = vld [vmem:[%s1871_s1 + $0x8] sm:$0xff]   ;;  %v1356_v2 = vld [vmem:[%s1871_s1 + $0x10] ss:$0 sps:$4 sm:$0x33]  }
   0x2   :  { %1276 = vmatprep.subr.bf16.mxu0 %v1354_v0  ;;  %1346 = vmatprep.subr.bf16.mxu1 %v1354_v0  ;;  %v1357_v3 = vld [vmem:[%s1872_s0] sm:$0xff]   ;;  %v365_v5 = vsel %vm363_vm1, %v1356_v2, 0  ;;  %v1359_v6 = vld [vmem:[%s1872_s0 + $0x8] sm:$0xff]   ;;  %v1361_v8 = vld [vmem:[%s1872_s0 + $0x10] sm:$0xff]  }
   0x3   :  { %1277 = vmatpush3.bf16.msra.mxu0 %v1354_v0  ;;  %1349 = vmatpush3.bf16.msra.mxu1 %v1354_v0  ;;  %v1358_v4 = vld [vmem:[%s1872_s0 + $0x80] sm:$0xff]   ;;  %v1360_v7 = vld [vmem:[%s1872_s0 + $0x88] sm:$0xff]   ;;  %v1362_v9 = vld [vmem:[%s1872_s0 + $0x90] sm:$0xff]  }
   0x4   :  { %1278 = vmatprep.subr.bf16.mxu0 %v1355_v1  ;;  %1347 = vmatprep.subr.bf16.mxu1 %v1355_v1  ;;  %v1363_v10 = vld [vmem:[%s1872_s0 + $0x18] sm:$0xff]   ;;  %v1365_v12 = vld [vmem:[%s1872_s0 + $0x20] sm:$0xff]   ;;  %v1367_v14 = vld [vmem:[%s1872_s0 + $0x28] sm:$0xff]  }
   0x5   :  { %1282 = vmatprep.mubr.msk.bf16.mxu0 %vm266_vm0, %v1357_v3  ;;  %1314 = vmatprep.mubr.msk.bf16.mxu1 %vm266_vm0, %v1358_v4  ;;  %v1364_v11 = vld [vmem:[%s1872_s0 + $0x98] sm:$0xff]   ;;  %v1366_v13 = vld [vmem:[%s1872_s0 + $0xa0] sm:$0xff]   ;;  %v1368_v15 = vld [vmem:[%s1872_s0 + $0xa8] sm:$0xff]  }
   0x6   :  { %v1369_v16 = vld [vmem:[%s1872_s0 + $0x30] sm:$0xff]   ;;  %v1371_v18 = vld [vmem:[%s1872_s0 + $0x38] sm:$0xff]   ;;  %v1373_v20 = vld [vmem:[%s1872_s0 + $0x40] sm:$0xff]  }
   0x7   :  { %1279 = vmatpush3.bf16.msra.mxu0 %v1355_v1  ;;  %1350 = vmatpush3.bf16.msra.mxu1 %v1355_v1  ;;  %v1370_v17 = vld [vmem:[%s1872_s0 + $0xb0] sm:$0xff]   ;;  %v1372_v19 = vld [vmem:[%s1872_s0 + $0xb8] sm:$0xff]   ;;  %v1374_v21 = vld [vmem:[%s1872_s0 + $0xc0] sm:$0xff]  }
   0x8   :  { %1352 = vmatprep.subr.msk.bf16.mxu0 %vm363_vm1, %v1356_v2  ;;  %1353 = vmatprep.subr.msk.bf16.mxu1 %vm363_vm1, %v1356_v2  ;;  %v1375_v22 = vld [vmem:[%s1872_s0 + $0x48] sm:$0xff]   ;;  %v1377_v24 = vld [vmem:[%s1872_s0 + $0x50] sm:$0xff]   ;;  %v1379_v26 = vld [vmem:[%s1872_s0 + $0x58] sm:$0xff]  }
   0x9   :  { %v1376_v23 = vld [vmem:[%s1872_s0 + $0xc8] sm:$0xff]   ;;  %v1378_v25 = vld [vmem:[%s1872_s0 + $0xd0] sm:$0xff]   ;;  %v1380_v27 = vld [vmem:[%s1872_s0 + $0xd8] sm:$0xff]  }
   0xa   :  { %v1381_v28 = vld [vmem:[%s1872_s0 + $0x60] sm:$0xff]   ;;  %v1383_v30 = vld [vmem:[%s1872_s0 + $0x68] sm:$0xff]   ;;  %v1385_v32 = vld [vmem:[%s1872_s0 + $0x70] sm:$0xff]  }
   0xb   :  { %1281 = vmatpush3.bf16.msra.mxu0 %v365_v5  ;;  %1351 = vmatpush3.bf16.msra.mxu1 %v365_v5  ;;  %v1382_v29 = vld [vmem:[%s1872_s0 + $0xe0] sm:$0xff]   ;;  %v1384_v31 = vld [vmem:[%s1872_s0 + $0xe8] sm:$0xff]   ;;  %v1386_v33 = vld [vmem:[%s1872_s0 + $0xf0] sm:$0xff]  }
   0xc   :  { %v1387_v34 = vld [vmem:[%s1872_s0 + $0x78] sm:$0xff]   ;;  %v1549_v36 = vld [vmem:[%s1873_s2] ss:$0 sm:$0xff] }
   0xd   :  { %v1388_v35 = vld [vmem:[%s1872_s0 + $0xf8] sm:$0xff]  }
   0xe   :  { %1283 = vmatmul.mubr.msk.bf16.vlgmr.msra.gmra.mrb[0].mxu0 %vm266_vm0, %v1359_v6  ;;  %1315 = vmatmul.mubr.msk.bf16.vlgmr.msra.gmra.mrb[0].mxu1 %vm266_vm0, %v1360_v7 }
   0xf   :  { %1286 = vmatprep.mubr.msk.bf16.mxu0 %vm266_vm0, %v1361_v8  ;;  %1318 = vmatprep.mubr.msk.bf16.mxu1 %vm266_vm0, %v1362_v9 }
  0x16   :  { %1287 = vmatmul.mubr.msk.bf16.gmra.mrb[4].mxu0 %vm266_vm0, %v1363_v10  ;;  %1319 = vmatmul.mubr.msk.bf16.gmra.mrb[4].mxu1 %vm266_vm0, %v1364_v11 }
  0x17   :  { %1290 = vmatprep.mubr.msk.bf16.mxu0 %vm266_vm0, %v1365_v12  ;;  %1322 = vmatprep.mubr.msk.bf16.mxu1 %vm266_vm0, %v1366_v13 }
  0x1e   :  { %1291 = vmatmul.mubr.msk.bf16.gmra.mrb[8].mxu0 %vm266_vm0, %v1367_v14  ;;  %1323 = vmatmul.mubr.msk.bf16.gmra.mrb[8].mxu1 %vm266_vm0, %v1368_v15 }
  0x1f   :  { %1294 = vmatprep.mubr.msk.bf16.mxu0 %vm266_vm0, %v1369_v16  ;;  %1326 = vmatprep.mubr.msk.bf16.mxu1 %vm266_vm0, %v1370_v17 }
  0x26   :  { %1295 = vmatmul.mubr.msk.bf16.gmra.mrb[12].mxu0 %vm266_vm0, %v1371_v18  ;;  %1327 = vmatmul.mubr.msk.bf16.gmra.mrb[12].mxu1 %vm266_vm0, %v1372_v19 }
  0x27   :  { %1298 = vmatprep.mubr.msk.bf16.mxu0 %vm266_vm0, %v1373_v20  ;;  %1330 = vmatprep.mubr.msk.bf16.mxu1 %vm266_vm0, %v1374_v21 }
  0x2e   :  { %1299 = vmatmul.mubr.msk.bf16.gmra.mrb[16].mxu0 %vm266_vm0, %v1375_v22  ;;  %1331 = vmatmul.mubr.msk.bf16.gmra.mrb[16].mxu1 %vm266_vm0, %v1376_v23 }
  0x2f   :  { %1302 = vmatprep.mubr.msk.bf16.mxu0 %vm266_vm0, %v1377_v24  ;;  %1334 = vmatprep.mubr.msk.bf16.mxu1 %vm266_vm0, %v1378_v25 }
  0x36   :  { %1303 = vmatmul.mubr.msk.bf16.gmra.mrb[20].mxu0 %vm266_vm0, %v1379_v26  ;;  %1335 = vmatmul.mubr.msk.bf16.gmra.mrb[20].mxu1 %vm266_vm0, %v1380_v27 }
  0x37   :  { %1306 = vmatprep.mubr.msk.bf16.mxu0 %vm266_vm0, %v1381_v28  ;;  %1338 = vmatprep.mubr.msk.bf16.mxu1 %vm266_vm0, %v1382_v29 }
  0x3e   :  { %1307 = vmatmul.mubr.msk.bf16.gmra.mrb[24].mxu0 %vm266_vm0, %v1383_v30  ;;  %1339 = vmatmul.mubr.msk.bf16.gmra.mrb[24].mxu1 %vm266_vm0, %v1384_v31 }
  0x3f   :  { %1310 = vmatprep.mubr.msk.bf16.mxu0 %vm266_vm0, %v1385_v32  ;;  %1342 = vmatprep.mubr.msk.bf16.mxu1 %vm266_vm0, %v1386_v33 }
  0x46   :  { %1311 = vmatmul.mubr.msk.bf16.gmra.mrb[28].mxu0 %vm266_vm0, %v1387_v34  ;;  %1343 = vmatmul.mubr.msk.bf16.gmra.mrb[28].mxu1 %vm266_vm0, %v1388_v35 }
  0xe1   :  { %v1284_v37 = vpop.f32.mrb[0].mxu0  ;;  %v1316_v38 = vpop.f32.mrb[0].mxu1 }
  0xe2   :  { %v410_v39 = vadd.f32 %v1284_v37, %v1549_v36  ;;  %v538_v40 = vadd.f32 %v1316_v38, %v1549_v36  ;;  %v401_v41 = vpop.f32.mrb[1].mxu0  ;;  %v529_v42 = vpop.f32.mrb[1].mxu1 }
  0xe3   :  { %v402_v43 = vadd.f32 %v1549_v36, %v401_v41  ;;  %v530_v44 = vadd.f32 %v1549_v36, %v529_v42  ;;  %v1285_v45 = vpop.f32.mrb[2].mxu0  ;;  %v1317_v46 = vpop.f32.mrb[2].mxu1 }
  0xe4   :  { %v658_v47 = vmax.f32 %v410_v39, 0.0  ;;  %v690_v48 = vmax.f32 %v538_v40, 0.0  ;;  %v413_v49 = vadd.f32 %v1285_v45, %v1549_v36  ;;  %v541_v50 = vadd.f32 %v1317_v46, %v1549_v36  ;;  %v404_v51 = vpop.f32.mrb[3].mxu0  ;;  %v532_v52 = vpop.f32.mrb[3].mxu1 }
  0xe5   :  { %v656_v53 = vmax.f32 %v402_v43, 0.0  ;;  %v688_v54 = vmax.f32 %v530_v44, 0.0  ;;  %v405_v55 = vadd.f32 %v1549_v36, %v404_v51  ;;  %v533_v56 = vadd.f32 %v1549_v36, %v532_v52 }
  0xe6   :  { %v1179_v57 = vpack.c.bf16 %v658_v47, %v658_v47  ;;  %v1211_v58 = vpack.c.bf16 %v690_v48, %v690_v48  ;;  %v659_v59 = vmax.f32 %v413_v49, 0.0  ;;  %v691_v60 = vmax.f32 %v541_v50, 0.0 }
  0xe7   :  { %v1177_v61 = vpack.c.bf16 %v656_v53, %v656_v53  ;;  %v1209_v62 = vpack.c.bf16 %v688_v54, %v688_v54  ;;  %v657_v63 = vmax.f32 %v405_v55, 0.0  ;;  %v689_v0 = vmax.f32 %v533_v56, 0.0 }
  0xe8   :  { %979 = vst.msk [vmem:[%s1874_s3 + $0x8] sm:$0xf] %vm976_vm2, %v1179_v57  ;;  %1011 = vst.msk [vmem:[%s1874_s3 + $0x88] sm:$0xf] %vm976_vm2, %v1211_v58  ;;  %v1180_v1 = vpack.c.bf16 %v659_v59, %v659_v59  ;;  %v1212_v2 = vpack.c.bf16 %v691_v60, %v691_v60 }
  0xe9   :  { %977 = vst.msk [vmem:[%s1874_s3] sm:$0xf] %vm976_vm2, %v1177_v61  ;;  %1009 = vst.msk [vmem:[%s1874_s3 + $0x80] sm:$0xf] %vm976_vm2, %v1209_v62  ;;  %v1178_v3 = vpack.c.bf16 %v657_v63, %v657_v63  ;;  %v1210_v4 = vpack.c.bf16 %v689_v0, %v689_v0  ;;  %v1288_v5 = vpop.f32.mrb[4].mxu0  ;;  %v1320_v6 = vpop.f32.mrb[4].mxu1 }
  0xea   :  { %980 = vst.msk [vmem:[%s1874_s3 + $0xc] sm:$0xf] %vm976_vm2, %v1180_v1  ;;  %1012 = vst.msk [vmem:[%s1874_s3 + $0x8c] sm:$0xf] %vm976_vm2, %v1212_v2  ;;  %v426_v7 = vadd.f32 %v1288_v5, %v1549_v36  ;;  %v554_v8 = vadd.f32 %v1320_v6, %v1549_v36  ;;  %v417_v9 = vpop.f32.mrb[5].mxu0  ;;  %v545_v10 = vpop.f32.mrb[5].mxu1 }
  0xeb   :  { %978 = vst.msk [vmem:[%s1874_s3 + $0x4] sm:$0xf] %vm976_vm2, %v1178_v3  ;;  %1010 = vst.msk [vmem:[%s1874_s3 + $0x84] sm:$0xf] %vm976_vm2, %v1210_v4  ;;  %v418_v11 = vadd.f32 %v1549_v36, %v417_v9  ;;  %v546_v12 = vadd.f32 %v1549_v36, %v545_v10  ;;  %v1289_v13 = vpop.f32.mrb[6].mxu0  ;;  %v1321_v14 = vpop.f32.mrb[6].mxu1 }
  0xec   :  { %v662_v15 = vmax.f32 %v426_v7, 0.0  ;;  %v694_v16 = vmax.f32 %v554_v8, 0.0  ;;  %v429_v17 = vadd.f32 %v1289_v13, %v1549_v36  ;;  %v557_v18 = vadd.f32 %v1321_v14, %v1549_v36  ;;  %v420_v19 = vpop.f32.mrb[7].mxu0  ;;  %v548_v20 = vpop.f32.mrb[7].mxu1 }
  0xed   :  { %v660_v21 = vmax.f32 %v418_v11, 0.0  ;;  %v692_v22 = vmax.f32 %v546_v12, 0.0  ;;  %v421_v23 = vadd.f32 %v1549_v36, %v420_v19  ;;  %v549_v24 = vadd.f32 %v1549_v36, %v548_v20 }
  0xee   :  { %v1183_v25 = vpack.c.bf16 %v662_v15, %v662_v15  ;;  %v1215_v26 = vpack.c.bf16 %v694_v16, %v694_v16  ;;  %v663_v27 = vmax.f32 %v429_v17, 0.0  ;;  %v695_v28 = vmax.f32 %v557_v18, 0.0 }
  0xef   :  { %v1181_v29 = vpack.c.bf16 %v660_v21, %v660_v21  ;;  %v1213_v30 = vpack.c.bf16 %v692_v22, %v692_v22  ;;  %v661_v31 = vmax.f32 %v421_v23, 0.0  ;;  %v693_v32 = vmax.f32 %v549_v24, 0.0 }
  0xf0   :  { %983 = vst.msk [vmem:[%s1874_s3 + $0x18] sm:$0xf] %vm976_vm2, %v1183_v25  ;;  %1015 = vst.msk [vmem:[%s1874_s3 + $0x98] sm:$0xf] %vm976_vm2, %v1215_v26  ;;  %v1184_v33 = vpack.c.bf16 %v663_v27, %v663_v27  ;;  %v1216_v34 = vpack.c.bf16 %v695_v28, %v695_v28 }
  0xf1   :  { %981 = vst.msk [vmem:[%s1874_s3 + $0x10] sm:$0xf] %vm976_vm2, %v1181_v29  ;;  %1013 = vst.msk [vmem:[%s1874_s3 + $0x90] sm:$0xf] %vm976_vm2, %v1213_v30  ;;  %v1182_v35 = vpack.c.bf16 %v661_v31, %v661_v31  ;;  %v1214_v37 = vpack.c.bf16 %v693_v32, %v693_v32  ;;  %v1292_v38 = vpop.f32.mrb[8].mxu0  ;;  %v1324_v39 = vpop.f32.mrb[8].mxu1 }
  0xf2   :  { %984 = vst.msk [vmem:[%s1874_s3 + $0x1c] sm:$0xf] %vm976_vm2, %v1184_v33  ;;  %1016 = vst.msk [vmem:[%s1874_s3 + $0x9c] sm:$0xf] %vm976_vm2, %v1216_v34  ;;  %v442_v40 = vadd.f32 %v1292_v38, %v1549_v36  ;;  %v570_v41 = vadd.f32 %v1324_v39, %v1549_v36  ;;  %v433_v42 = vpop.f32.mrb[9].mxu0  ;;  %v561_v43 = vpop.f32.mrb[9].mxu1 }
  0xf3   :  { %982 = vst.msk [vmem:[%s1874_s3 + $0x14] sm:$0xf] %vm976_vm2, %v1182_v35  ;;  %1014 = vst.msk [vmem:[%s1874_s3 + $0x94] sm:$0xf] %vm976_vm2, %v1214_v37  ;;  %v434_v44 = vadd.f32 %v1549_v36, %v433_v42  ;;  %v562_v45 = vadd.f32 %v1549_v36, %v561_v43  ;;  %v1293_v46 = vpop.f32.mrb[10].mxu0  ;;  %v1325_v47 = vpop.f32.mrb[10].mxu1 }
  0xf4   :  { %v666_v48 = vmax.f32 %v442_v40, 0.0  ;;  %v698_v49 = vmax.f32 %v570_v41, 0.0  ;;  %v445_v50 = vadd.f32 %v1293_v46, %v1549_v36  ;;  %v573_v51 = vadd.f32 %v1325_v47, %v1549_v36  ;;  %v436_v52 = vpop.f32.mrb[11].mxu0  ;;  %v564_v53 = vpop.f32.mrb[11].mxu1 }
  0xf5   :  { %v664_v54 = vmax.f32 %v434_v44, 0.0  ;;  %v696_v55 = vmax.f32 %v562_v45, 0.0  ;;  %v437_v56 = vadd.f32 %v1549_v36, %v436_v52  ;;  %v565_v57 = vadd.f32 %v1549_v36, %v564_v53 }
  0xf6   :  { %v1187_v58 = vpack.c.bf16 %v666_v48, %v666_v48  ;;  %v1219_v59 = vpack.c.bf16 %v698_v49, %v698_v49  ;;  %v667_v60 = vmax.f32 %v445_v50, 0.0  ;;  %v699_v61 = vmax.f32 %v573_v51, 0.0 }
  0xf7   :  { %v1185_v62 = vpack.c.bf16 %v664_v54, %v664_v54  ;;  %v1217_v63 = vpack.c.bf16 %v696_v55, %v696_v55  ;;  %v665_v0 = vmax.f32 %v437_v56, 0.0  ;;  %v697_v1 = vmax.f32 %v565_v57, 0.0 }
  0xf8   :  { %987 = vst.msk [vmem:[%s1874_s3 + $0x28] sm:$0xf] %vm976_vm2, %v1187_v58  ;;  %1019 = vst.msk [vmem:[%s1874_s3 + $0xa8] sm:$0xf] %vm976_vm2, %v1219_v59  ;;  %v1188_v2 = vpack.c.bf16 %v667_v60, %v667_v60  ;;  %v1220_v3 = vpack.c.bf16 %v699_v61, %v699_v61 }
  0xf9   :  { %985 = vst.msk [vmem:[%s1874_s3 + $0x20] sm:$0xf] %vm976_vm2, %v1185_v62  ;;  %1017 = vst.msk [vmem:[%s1874_s3 + $0xa0] sm:$0xf] %vm976_vm2, %v1217_v63  ;;  %v1186_v4 = vpack.c.bf16 %v665_v0, %v665_v0  ;;  %v1218_v5 = vpack.c.bf16 %v697_v1, %v697_v1  ;;  %v1296_v6 = vpop.f32.mrb[12].mxu0  ;;  %v1328_v7 = vpop.f32.mrb[12].mxu1 }
  0xfa   :  { %988 = vst.msk [vmem:[%s1874_s3 + $0x2c] sm:$0xf] %vm976_vm2, %v1188_v2  ;;  %1020 = vst.msk [vmem:[%s1874_s3 + $0xac] sm:$0xf] %vm976_vm2, %v1220_v3  ;;  %v458_v8 = vadd.f32 %v1296_v6, %v1549_v36  ;;  %v586_v9 = vadd.f32 %v1328_v7, %v1549_v36  ;;  %v449_v10 = vpop.f32.mrb[13].mxu0  ;;  %v577_v11 = vpop.f32.mrb[13].mxu1 }
  0xfb   :  { %986 = vst.msk [vmem:[%s1874_s3 + $0x24] sm:$0xf] %vm976_vm2, %v1186_v4  ;;  %1018 = vst.msk [vmem:[%s1874_s3 + $0xa4] sm:$0xf] %vm976_vm2, %v1218_v5  ;;  %v450_v12 = vadd.f32 %v1549_v36, %v449_v10  ;;  %v578_v13 = vadd.f32 %v1549_v36, %v577_v11  ;;  %v1297_v14 = vpop.f32.mrb[14].mxu0  ;;  %v1329_v15 = vpop.f32.mrb[14].mxu1 }
  0xfc   :  { %v670_v16 = vmax.f32 %v458_v8, 0.0  ;;  %v702_v17 = vmax.f32 %v586_v9, 0.0  ;;  %v461_v18 = vadd.f32 %v1297_v14, %v1549_v36  ;;  %v589_v19 = vadd.f32 %v1329_v15, %v1549_v36  ;;  %v452_v20 = vpop.f32.mrb[15].mxu0  ;;  %v580_v21 = vpop.f32.mrb[15].mxu1 }
  0xfd   :  { %v668_v22 = vmax.f32 %v450_v12, 0.0  ;;  %v700_v23 = vmax.f32 %v578_v13, 0.0  ;;  %v453_v24 = vadd.f32 %v1549_v36, %v452_v20  ;;  %v581_v25 = vadd.f32 %v1549_v36, %v580_v21 }
  0xfe   :  { %v1191_v26 = vpack.c.bf16 %v670_v16, %v670_v16  ;;  %v1223_v27 = vpack.c.bf16 %v702_v17, %v702_v17  ;;  %v671_v28 = vmax.f32 %v461_v18, 0.0  ;;  %v703_v29 = vmax.f32 %v589_v19, 0.0 }
  0xff   :  { %v1189_v30 = vpack.c.bf16 %v668_v22, %v668_v22  ;;  %v1221_v31 = vpack.c.bf16 %v700_v23, %v700_v23  ;;  %v669_v32 = vmax.f32 %v453_v24, 0.0  ;;  %v701_v33 = vmax.f32 %v581_v25, 0.0 }
 0x100   :  { %991 = vst.msk [vmem:[%s1874_s3 + $0x38] sm:$0xf] %vm976_vm2, %v1191_v26  ;;  %1023 = vst.msk [vmem:[%s1874_s3 + $0xb8] sm:$0xf] %vm976_vm2, %v1223_v27  ;;  %v1192_v34 = vpack.c.bf16 %v671_v28, %v671_v28  ;;  %v1224_v35 = vpack.c.bf16 %v703_v29, %v703_v29 }
 0x101   :  { %989 = vst.msk [vmem:[%s1874_s3 + $0x30] sm:$0xf] %vm976_vm2, %v1189_v30  ;;  %1021 = vst.msk [vmem:[%s1874_s3 + $0xb0] sm:$0xf] %vm976_vm2, %v1221_v31  ;;  %v1190_v37 = vpack.c.bf16 %v669_v32, %v669_v32  ;;  %v1222_v38 = vpack.c.bf16 %v701_v33, %v701_v33  ;;  %v1300_v39 = vpop.f32.mrb[16].mxu0  ;;  %v1332_v40 = vpop.f32.mrb[16].mxu1 }
 0x102   :  { %992 = vst.msk [vmem:[%s1874_s3 + $0x3c] sm:$0xf] %vm976_vm2, %v1192_v34  ;;  %1024 = vst.msk [vmem:[%s1874_s3 + $0xbc] sm:$0xf] %vm976_vm2, %v1224_v35  ;;  %v474_v41 = vadd.f32 %v1300_v39, %v1549_v36  ;;  %v602_v42 = vadd.f32 %v1332_v40, %v1549_v36  ;;  %v465_v43 = vpop.f32.mrb[17].mxu0  ;;  %v593_v44 = vpop.f32.mrb[17].mxu1 }
 0x103   :  { %990 = vst.msk [vmem:[%s1874_s3 + $0x34] sm:$0xf] %vm976_vm2, %v1190_v37  ;;  %1022 = vst.msk [vmem:[%s1874_s3 + $0xb4] sm:$0xf] %vm976_vm2, %v1222_v38  ;;  %v466_v45 = vadd.f32 %v1549_v36, %v465_v43  ;;  %v594_v46 = vadd.f32 %v1549_v36, %v593_v44  ;;  %v1301_v47 = vpop.f32.mrb[18].mxu0  ;;  %v1333_v48 = vpop.f32.mrb[18].mxu1 }
 0x104   :  { %v674_v49 = vmax.f32 %v474_v41, 0.0  ;;  %v706_v50 = vmax.f32 %v602_v42, 0.0  ;;  %v477_v51 = vadd.f32 %v1301_v47, %v1549_v36  ;;  %v605_v52 = vadd.f32 %v1333_v48, %v1549_v36  ;;  %v468_v53 = vpop.f32.mrb[19].mxu0  ;;  %v596_v54 = vpop.f32.mrb[19].mxu1 }
 0x105   :  { %v672_v55 = vmax.f32 %v466_v45, 0.0  ;;  %v704_v56 = vmax.f32 %v594_v46, 0.0  ;;  %v469_v57 = vadd.f32 %v1549_v36, %v468_v53  ;;  %v597_v58 = vadd.f32 %v1549_v36, %v596_v54 }
 0x106   :  { %v1195_v59 = vpack.c.bf16 %v674_v49, %v674_v49  ;;  %v1227_v60 = vpack.c.bf16 %v706_v50, %v706_v50  ;;  %v675_v61 = vmax.f32 %v477_v51, 0.0  ;;  %v707_v62 = vmax.f32 %v605_v52, 0.0 }
 0x107   :  { %v1193_v63 = vpack.c.bf16 %v672_v55, %v672_v55  ;;  %v1225_v0 = vpack.c.bf16 %v704_v56, %v704_v56  ;;  %v673_v1 = vmax.f32 %v469_v57, 0.0  ;;  %v705_v2 = vmax.f32 %v597_v58, 0.0 }
 0x108   :  { %995 = vst.msk [vmem:[%s1874_s3 + $0x48] sm:$0xf] %vm976_vm2, %v1195_v59  ;;  %1027 = vst.msk [vmem:[%s1874_s3 + $0xc8] sm:$0xf] %vm976_vm2, %v1227_v60  ;;  %v1196_v3 = vpack.c.bf16 %v675_v61, %v675_v61  ;;  %v1228_v4 = vpack.c.bf16 %v707_v62, %v707_v62 }
 0x109   :  { %993 = vst.msk [vmem:[%s1874_s3 + $0x40] sm:$0xf] %vm976_vm2, %v1193_v63  ;;  %1025 = vst.msk [vmem:[%s1874_s3 + $0xc0] sm:$0xf] %vm976_vm2, %v1225_v0  ;;  %v1194_v5 = vpack.c.bf16 %v673_v1, %v673_v1  ;;  %v1226_v6 = vpack.c.bf16 %v705_v2, %v705_v2  ;;  %v1304_v7 = vpop.f32.mrb[20].mxu0  ;;  %v1336_v8 = vpop.f32.mrb[20].mxu1 }
 0x10a   :  { %996 = vst.msk [vmem:[%s1874_s3 + $0x4c] sm:$0xf] %vm976_vm2, %v1196_v3  ;;  %1028 = vst.msk [vmem:[%s1874_s3 + $0xcc] sm:$0xf] %vm976_vm2, %v1228_v4  ;;  %v490_v9 = vadd.f32 %v1304_v7, %v1549_v36  ;;  %v618_v10 = vadd.f32 %v1336_v8, %v1549_v36  ;;  %v481_v11 = vpop.f32.mrb[21].mxu0  ;;  %v609_v12 = vpop.f32.mrb[21].mxu1 }
 0x10b   :  { %994 = vst.msk [vmem:[%s1874_s3 + $0x44] sm:$0xf] %vm976_vm2, %v1194_v5  ;;  %1026 = vst.msk [vmem:[%s1874_s3 + $0xc4] sm:$0xf] %vm976_vm2, %v1226_v6  ;;  %v482_v13 = vadd.f32 %v1549_v36, %v481_v11  ;;  %v610_v14 = vadd.f32 %v1549_v36, %v609_v12  ;;  %v1305_v15 = vpop.f32.mrb[22].mxu0  ;;  %v1337_v16 = vpop.f32.mrb[22].mxu1 }
 0x10c   :  { %v678_v17 = vmax.f32 %v490_v9, 0.0  ;;  %v710_v18 = vmax.f32 %v618_v10, 0.0  ;;  %v493_v19 = vadd.f32 %v1305_v15, %v1549_v36  ;;  %v621_v20 = vadd.f32 %v1337_v16, %v1549_v36  ;;  %v484_v21 = vpop.f32.mrb[23].mxu0  ;;  %v612_v22 = vpop.f32.mrb[23].mxu1 }
 0x10d   :  { %v676_v23 = vmax.f32 %v482_v13, 0.0  ;;  %v708_v24 = vmax.f32 %v610_v14, 0.0  ;;  %v485_v25 = vadd.f32 %v1549_v36, %v484_v21  ;;  %v613_v26 = vadd.f32 %v1549_v36, %v612_v22 }
 0x10e   :  { %v1199_v27 = vpack.c.bf16 %v678_v17, %v678_v17  ;;  %v1231_v28 = vpack.c.bf16 %v710_v18, %v710_v18  ;;  %v679_v29 = vmax.f32 %v493_v19, 0.0  ;;  %v711_v30 = vmax.f32 %v621_v20, 0.0 }
 0x10f   :  { %v1197_v31 = vpack.c.bf16 %v676_v23, %v676_v23  ;;  %v1229_v32 = vpack.c.bf16 %v708_v24, %v708_v24  ;;  %v677_v33 = vmax.f32 %v485_v25, 0.0  ;;  %v709_v34 = vmax.f32 %v613_v26, 0.0 }
 0x110   :  { %999 = vst.msk [vmem:[%s1874_s3 + $0x58] sm:$0xf] %vm976_vm2, %v1199_v27  ;;  %1031 = vst.msk [vmem:[%s1874_s3 + $0xd8] sm:$0xf] %vm976_vm2, %v1231_v28  ;;  %v1200_v35 = vpack.c.bf16 %v679_v29, %v679_v29  ;;  %v1232_v37 = vpack.c.bf16 %v711_v30, %v711_v30 }
 0x111   :  { %997 = vst.msk [vmem:[%s1874_s3 + $0x50] sm:$0xf] %vm976_vm2, %v1197_v31  ;;  %1029 = vst.msk [vmem:[%s1874_s3 + $0xd0] sm:$0xf] %vm976_vm2, %v1229_v32  ;;  %v1198_v38 = vpack.c.bf16 %v677_v33, %v677_v33  ;;  %v1230_v39 = vpack.c.bf16 %v709_v34, %v709_v34  ;;  %v1308_v40 = vpop.f32.mrb[24].mxu0  ;;  %v1340_v41 = vpop.f32.mrb[24].mxu1 }
 0x112   :  { %1000 = vst.msk [vmem:[%s1874_s3 + $0x5c] sm:$0xf] %vm976_vm2, %v1200_v35  ;;  %1032 = vst.msk [vmem:[%s1874_s3 + $0xdc] sm:$0xf] %vm976_vm2, %v1232_v37  ;;  %v506_v42 = vadd.f32 %v1308_v40, %v1549_v36  ;;  %v634_v43 = vadd.f32 %v1340_v41, %v1549_v36  ;;  %v497_v44 = vpop.f32.mrb[25].mxu0  ;;  %v625_v45 = vpop.f32.mrb[25].mxu1 }
 0x113   :  { %998 = vst.msk [vmem:[%s1874_s3 + $0x54] sm:$0xf] %vm976_vm2, %v1198_v38  ;;  %1030 = vst.msk [vmem:[%s1874_s3 + $0xd4] sm:$0xf] %vm976_vm2, %v1230_v39  ;;  %v498_v46 = vadd.f32 %v1549_v36, %v497_v44  ;;  %v626_v47 = vadd.f32 %v1549_v36, %v625_v45  ;;  %v1309_v48 = vpop.f32.mrb[26].mxu0  ;;  %v1341_v49 = vpop.f32.mrb[26].mxu1 }
 0x114   :  { %v682_v50 = vmax.f32 %v506_v42, 0.0  ;;  %v714_v51 = vmax.f32 %v634_v43, 0.0  ;;  %v509_v52 = vadd.f32 %v1309_v48, %v1549_v36  ;;  %v637_v53 = vadd.f32 %v1341_v49, %v1549_v36  ;;  %v500_v54 = vpop.f32.mrb[27].mxu0  ;;  %v628_v55 = vpop.f32.mrb[27].mxu1 }
 0x115   :  { %v680_v56 = vmax.f32 %v498_v46, 0.0  ;;  %v712_v57 = vmax.f32 %v626_v47, 0.0  ;;  %v501_v58 = vadd.f32 %v1549_v36, %v500_v54  ;;  %v629_v59 = vadd.f32 %v1549_v36, %v628_v55 }
 0x116   :  { %v1203_v60 = vpack.c.bf16 %v682_v50, %v682_v50  ;;  %v1235_v61 = vpack.c.bf16 %v714_v51, %v714_v51  ;;  %v683_v62 = vmax.f32 %v509_v52, 0.0  ;;  %v715_v63 = vmax.f32 %v637_v53, 0.0 }
 0x117   :  { %v1201_v0 = vpack.c.bf16 %v680_v56, %v680_v56  ;;  %v1233_v1 = vpack.c.bf16 %v712_v57, %v712_v57  ;;  %v681_v2 = vmax.f32 %v501_v58, 0.0  ;;  %v713_v3 = vmax.f32 %v629_v59, 0.0 }
 0x118   :  { %1003 = vst.msk [vmem:[%s1874_s3 + $0x68] sm:$0xf] %vm976_vm2, %v1203_v60  ;;  %1035 = vst.msk [vmem:[%s1874_s3 + $0xe8] sm:$0xf] %vm976_vm2, %v1235_v61  ;;  %v1204_v4 = vpack.c.bf16 %v683_v62, %v683_v62  ;;  %v1236_v5 = vpack.c.bf16 %v715_v63, %v715_v63 }
 0x119   :  { %1001 = vst.msk [vmem:[%s1874_s3 + $0x60] sm:$0xf] %vm976_vm2, %v1201_v0  ;;  %1033 = vst.msk [vmem:[%s1874_s3 + $0xe0] sm:$0xf] %vm976_vm2, %v1233_v1  ;;  %v1202_v6 = vpack.c.bf16 %v681_v2, %v681_v2  ;;  %v1234_v7 = vpack.c.bf16 %v713_v3, %v713_v3  ;;  %v1312_v8 = vpop.f32.mrb[28].mxu0  ;;  %v1344_v9 = vpop.f32.mrb[28].mxu1 }
 0x11a   :  { %1004 = vst.msk [vmem:[%s1874_s3 + $0x6c] sm:$0xf] %vm976_vm2, %v1204_v4  ;;  %1036 = vst.msk [vmem:[%s1874_s3 + $0xec] sm:$0xf] %vm976_vm2, %v1236_v5  ;;  %v522_v10 = vadd.f32 %v1312_v8, %v1549_v36  ;;  %v650_v11 = vadd.f32 %v1344_v9, %v1549_v36  ;;  %v513_v12 = vpop.f32.mrb[29].mxu0  ;;  %v641_v13 = vpop.f32.mrb[29].mxu1 }
 0x11b   :  { %1002 = vst.msk [vmem:[%s1874_s3 + $0x64] sm:$0xf] %vm976_vm2, %v1202_v6  ;;  %1034 = vst.msk [vmem:[%s1874_s3 + $0xe4] sm:$0xf] %vm976_vm2, %v1234_v7  ;;  %v514_v14 = vadd.f32 %v1549_v36, %v513_v12  ;;  %v642_v15 = vadd.f32 %v1549_v36, %v641_v13  ;;  %v1313_v16 = vpop.f32.mrb[30].mxu0  ;;  %v1345_v17 = vpop.f32.mrb[30].mxu1 }
 0x11c   :  { %v686_v18 = vmax.f32 %v522_v10, 0.0  ;;  %v718_v19 = vmax.f32 %v650_v11, 0.0  ;;  %v525_v20 = vadd.f32 %v1313_v16, %v1549_v36  ;;  %v653_v21 = vadd.f32 %v1345_v17, %v1549_v36  ;;  %v516_v22 = vpop.f32.mrb[31].mxu0  ;;  %v644_v23 = vpop.f32.mrb[31].mxu1 }
 0x11d   :  { %v684_v24 = vmax.f32 %v514_v14, 0.0  ;;  %v716_v25 = vmax.f32 %v642_v15, 0.0  ;;  %v517_v26 = vadd.f32 %v1549_v36, %v516_v22  ;;  %v645_v27 = vadd.f32 %v1549_v36, %v644_v23 }
 0x11e   :  { %v1207_v28 = vpack.c.bf16 %v686_v18, %v686_v18  ;;  %v1239_v29 = vpack.c.bf16 %v718_v19, %v718_v19  ;;  %v687_v30 = vmax.f32 %v525_v20, 0.0  ;;  %v719_v31 = vmax.f32 %v653_v21, 0.0 }
 0x11f   :  { %v1205_v32 = vpack.c.bf16 %v684_v24, %v684_v24  ;;  %v1237_v33 = vpack.c.bf16 %v716_v25, %v716_v25  ;;  %v685_v34 = vmax.f32 %v517_v26, 0.0  ;;  %v717_v35 = vmax.f32 %v645_v27, 0.0 }
 0x120   :  { %1007 = vst.msk [vmem:[%s1874_s3 + $0x78] sm:$0xf] %vm976_vm2, %v1207_v28  ;;  %1039 = vst.msk [vmem:[%s1874_s3 + $0xf8] sm:$0xf] %vm976_vm2, %v1239_v29  ;;  %v1208_v37 = vpack.c.bf16 %v687_v30, %v687_v30  ;;  %v1240_v36 = vpack.c.bf16 %v719_v31, %v719_v31 }
 0x121   :  { %1005 = vst.msk [vmem:[%s1874_s3 + $0x70] sm:$0xf] %vm976_vm2, %v1205_v32  ;;  %1037 = vst.msk [vmem:[%s1874_s3 + $0xf0] sm:$0xf] %vm976_vm2, %v1237_v33  ;;  %v1206_v38 = vpack.c.bf16 %v685_v34, %v685_v34  ;;  %v1238_v39 = vpack.c.bf16 %v717_v35, %v717_v35 }
 0x122   :  { %1008 = vst.msk [vmem:[%s1874_s3 + $0x7c] sm:$0xf] %vm976_vm2, %v1208_v37  ;;  %1040 = vst.msk [vmem:[%s1874_s3 + $0xfc] sm:$0xf] %vm976_vm2, %v1240_v36 }
 0x123   :  { %1006 = vst.msk [vmem:[%s1874_s3 + $0x74] sm:$0xf] %vm976_vm2, %v1206_v38  ;;  %1038 = vst.msk [vmem:[%s1874_s3 + $0xf4] sm:$0xf] %vm976_vm2, %v1238_v39 }

// kernel: mglnet_forward.68
= control target key start
LH: loop header
LB: loop body
LE: loop exit
PB: predicated region body
PF: predicated region fallthrough
CT: control target
= control target key end

     0   :  { %vm266_vm0 = vcmask 293888   ;;  %vm363_vm1 = vcmask 1041408   ;;  %vm976_vm2 = vcmask 60416   ;;  %s1871_s1 = inlined_call_operand.vmem [shape: bf16[36,8], index: 1, kind: input, shape index: {}]   ;;  %s1872_s0 = inlined_call_operand.vmem [shape: bf16[512,36], index: 0, kind: input, shape index: {}]   ;;  %s1873_s2 = inlined_call_operand.vmem [shape: f32[1,8], index: 2, kind: input, shape index: {}]   ;;  %s1874_s3 = inlined_call_operand.vmem [shape: bf16[512,8], index: 3, kind: output, shape index: {}]  }
   0x1   :  { %v1354_v0 = vld [vmem:[%s1871_s1] sm:$0xff]   ;;  %v1355_v1 = vld [vmem:[%s1871_s1 + $0x8] sm:$0xff]   ;;  %v1356_v2 = vld [vmem:[%s1871_s1 + $0x10] ss:$0 sps:$4 sm:$0x33]  }
   0x2   :  { %1276 = vmatprep.subr.bf16.mxu0 %v1354_v0  ;;  %1346 = vmatprep.subr.bf16.mxu1 %v1354_v0  ;;  %v1357_v3 = vld [vmem:[%s1872_s0] sm:$0xff]   ;;  %v365_v5 = vsel %vm363_vm1, %v1356_v2, 0  ;;  %v1359_v6 = vld [vmem:[%s1872_s0 + $0x8] sm:$0xff]   ;;  %v1361_v8 = vld [vmem:[%s1872_s0 + $0x10] sm:$0xff]  }
   0x3   :  { %1277 = vmatpush3.bf16.msra.mxu0 %v1354_v0  ;;  %1349 = vmatpush3.bf16.msra.mxu1 %v1354_v0  ;;  %v1358_v4 = vld [vmem:[%s1872_s0 + $0x80] sm:$0xff]   ;;  %v1360_v7 = vld [vmem:[%s1872_s0 + $0x88] sm:$0xff]   ;;  %v1362_v9 = vld [vmem:[%s1872_s0 + $0x90] sm:$0xff]  }
   0x4   :  { %1278 = vmatprep.subr.bf16.mxu0 %v1355_v1  ;;  %1347 = vmatprep.subr.bf16.mxu1 %v1355_v1  ;;  %v1363_v10 = vld [vmem:[%s1872_s0 + $0x18] sm:$0xff]   ;;  %v1365_v12 = vld [vmem:[%s1872_s0 + $0x20] sm:$0xff]   ;;  %v1367_v14 = vld [vmem:[%s1872_s0 + $0x28] sm:$0xff]  }
   0x5   :  { %1282 = vmatprep.mubr.msk.bf16.mxu0 %vm266_vm0, %v1357_v3  ;;  %1314 = vmatprep.mubr.msk.bf16.mxu1 %vm266_vm0, %v1358_v4  ;;  %v1364_v11 = vld [vmem:[%s1872_s0 + $0x98] sm:$0xff]   ;;  %v1366_v13 = vld [vmem:[%s1872_s0 + $0xa0] sm:$0xff]   ;;  %v1368_v15 = vld [vmem:[%s1872_s0 + $0xa8] sm:$0xff]  }
   0x6   :  { %v1369_v16 = vld [vmem:[%s1872_s0 + $0x30] sm:$0xff]   ;;  %v1371_v18 = vld [vmem:[%s1872_s0 + $0x38] sm:$0xff]   ;;  %v1373_v20 = vld [vmem:[%s1872_s0 + $0x40] sm:$0xff]  }
   0x7   :  { %1279 = vmatpush3.bf16.msra.mxu0 %v1355_v1  ;;  %1350 = vmatpush3.bf16.msra.mxu1 %v1355_v1  ;;  %v1370_v17 = vld [vmem:[%s1872_s0 + $0xb0] sm:$0xff]   ;;  %v1372_v19 = vld [vmem:[%s1872_s0 + $0xb8] sm:$0xff]   ;;  %v1374_v21 = vld [vmem:[%s1872_s0 + $0xc0] sm:$0xff]  }
   0x8   :  { %1352 = vmatprep.subr.msk.bf16.mxu0 %vm363_vm1, %v1356_v2  ;;  %1353 = vmatprep.subr.msk.bf16.mxu1 %vm363_vm1, %v1356_v2  ;;  %v1375_v22 = vld [vmem:[%s1872_s0 + $0x48] sm:$0xff]   ;;  %v1377_v24 = vld [vmem:[%s1872_s0 + $0x50] sm:$0xff]   ;;  %v1379_v26 = vld [vmem:[%s1872_s0 + $0x58] sm:$0xff]  }
   0x9   :  { %v1376_v23 = vld [vmem:[%s1872_s0 + $0xc8] sm:$0xff]   ;;  %v1378_v25 = vld [vmem:[%s1872_s0 + $0xd0] sm:$0xff]   ;;  %v1380_v27 = vld [vmem:[%s1872_s0 + $0xd8] sm:$0xff]  }
   0xa   :  { %v1381_v28 = vld [vmem:[%s1872_s0 + $0x60] sm:$0xff]   ;;  %v1383_v30 = vld [vmem:[%s1872_s0 + $0x68] sm:$0xff]   ;;  %v1385_v32 = vld [vmem:[%s1872_s0 + $0x70] sm:$0xff]  }
   0xb   :  { %1281 = vmatpush3.bf16.msra.mxu0 %v365_v5  ;;  %1351 = vmatpush3.bf16.msra.mxu1 %v365_v5  ;;  %v1382_v29 = vld [vmem:[%s1872_s0 + $0xe0] sm:$0xff]   ;;  %v1384_v31 = vld [vmem:[%s1872_s0 + $0xe8] sm:$0xff]   ;;  %v1386_v33 = vld [vmem:[%s1872_s0 + $0xf0] sm:$0xff]  }
   0xc   :  { %v1387_v34 = vld [vmem:[%s1872_s0 + $0x78] sm:$0xff]   ;;  %v1549_v36 = vld [vmem:[%s1873_s2] ss:$0 sm:$0xff] }
   0xd   :  { %v1388_v35 = vld [vmem:[%s1872_s0 + $0xf8] sm:$0xff]  }
   0xe   :  { %1283 = vmatmul.mubr.msk.bf16.vlgmr.msra.gmra.mrb[0].mxu0 %vm266_vm0, %v1359_v6  ;;  %1315 = vmatmul.mubr.msk.bf16.vlgmr.msra.gmra.mrb[0].mxu1 %vm266_vm0, %v1360_v7 }
   0xf   :  { %1286 = vmatprep.mubr.msk.bf16.mxu0 %vm266_vm0, %v1361_v8  ;;  %1318 = vmatprep.mubr.msk.bf16.mxu1 %vm266_vm0, %v1362_v9 }
  0x16   :  { %1287 = vmatmul.mubr.msk.bf16.gmra.mrb[4].mxu0 %vm266_vm0, %v1363_v10  ;;  %1319 = vmatmul.mubr.msk.bf16.gmra.mrb[4].mxu1 %vm266_vm0, %v1364_v11 }
  0x17   :  { %1290 = vmatprep.mubr.msk.bf16.mxu0 %vm266_vm0, %v1365_v12  ;;  %1322 = vmatprep.mubr.msk.bf16.mxu1 %vm266_vm0, %v1366_v13 }
  0x1e   :  { %1291 = vmatmul.mubr.msk.bf16.gmra.mrb[8].mxu0 %vm266_vm0, %v1367_v14  ;;  %1323 = vmatmul.mubr.msk.bf16.gmra.mrb[8].mxu1 %vm266_vm0, %v1368_v15 }
  0x1f   :  { %1294 = vmatprep.mubr.msk.bf16.mxu0 %vm266_vm0, %v1369_v16  ;;  %1326 = vmatprep.mubr.msk.bf16.mxu1 %vm266_vm0, %v1370_v17 }
  0x26   :  { %1295 = vmatmul.mubr.msk.bf16.gmra.mrb[12].mxu0 %vm266_vm0, %v1371_v18  ;;  %1327 = vmatmul.mubr.msk.bf16.gmra.mrb[12].mxu1 %vm266_vm0, %v1372_v19 }
  0x27   :  { %1298 = vmatprep.mubr.msk.bf16.mxu0 %vm266_vm0, %v1373_v20  ;;  %1330 = vmatprep.mubr.msk.bf16.mxu1 %vm266_vm0, %v1374_v21 }
  0x2e   :  { %1299 = vmatmul.mubr.msk.bf16.gmra.mrb[16].mxu0 %vm266_vm0, %v1375_v22  ;;  %1331 = vmatmul.mubr.msk.bf16.gmra.mrb[16].mxu1 %vm266_vm0, %v1376_v23 }
  0x2f   :  { %1302 = vmatprep.mubr.msk.bf16.mxu0 %vm266_vm0, %v1377_v24  ;;  %1334 = vmatprep.mubr.msk.bf16.mxu1 %vm266_vm0, %v1378_v25 }
  0x36   :  { %1303 = vmatmul.mubr.msk.bf16.gmra.mrb[20].mxu0 %vm266_vm0, %v1379_v26  ;;  %1335 = vmatmul.mubr.msk.bf16.gmra.mrb[20].mxu1 %vm266_vm0, %v1380_v27 }
  0x37   :  { %1306 = vmatprep.mubr.msk.bf16.mxu0 %vm266_vm0, %v1381_v28  ;;  %1338 = vmatprep.mubr.msk.bf16.mxu1 %vm266_vm0, %v1382_v29 }
  0x3e   :  { %1307 = vmatmul.mubr.msk.bf16.gmra.mrb[24].mxu0 %vm266_vm0, %v1383_v30  ;;  %1339 = vmatmul.mubr.msk.bf16.gmra.mrb[24].mxu1 %vm266_vm0, %v1384_v31 }
  0x3f   :  { %1310 = vmatprep.mubr.msk.bf16.mxu0 %vm266_vm0, %v1385_v32  ;;  %1342 = vmatprep.mubr.msk.bf16.mxu1 %vm266_vm0, %v1386_v33 }
  0x46   :  { %1311 = vmatmul.mubr.msk.bf16.gmra.mrb[28].mxu0 %vm266_vm0, %v1387_v34  ;;  %1343 = vmatmul.mubr.msk.bf16.gmra.mrb[28].mxu1 %vm266_vm0, %v1388_v35 }
  0xe1   :  { %v1284_v37 = vpop.f32.mrb[0].mxu0  ;;  %v1316_v38 = vpop.f32.mrb[0].mxu1 }
  0xe2   :  { %v410_v39 = vadd.f32 %v1284_v37, %v1549_v36  ;;  %v538_v40 = vadd.f32 %v1316_v38, %v1549_v36  ;;  %v401_v41 = vpop.f32.mrb[1].mxu0  ;;  %v529_v42 = vpop.f32.mrb[1].mxu1 }
  0xe3   :  { %v402_v43 = vadd.f32 %v1549_v36, %v401_v41  ;;  %v530_v44 = vadd.f32 %v1549_v36, %v529_v42  ;;  %v1285_v45 = vpop.f32.mrb[2].mxu0  ;;  %v1317_v46 = vpop.f32.mrb[2].mxu1 }
  0xe4   :  { %v658_v47 = vmax.f32 %v410_v39, 0.0  ;;  %v690_v48 = vmax.f32 %v538_v40, 0.0  ;;  %v413_v49 = vadd.f32 %v1285_v45, %v1549_v36  ;;  %v541_v50 = vadd.f32 %v1317_v46, %v1549_v36  ;;  %v404_v51 = vpop.f32.mrb[3].mxu0  ;;  %v532_v52 = vpop.f32.mrb[3].mxu1 }
  0xe5   :  { %v656_v53 = vmax.f32 %v402_v43, 0.0  ;;  %v688_v54 = vmax.f32 %v530_v44, 0.0  ;;  %v405_v55 = vadd.f32 %v1549_v36, %v404_v51  ;;  %v533_v56 = vadd.f32 %v1549_v36, %v532_v52 }
  0xe6   :  { %v1179_v57 = vpack.c.bf16 %v658_v47, %v658_v47  ;;  %v1211_v58 = vpack.c.bf16 %v690_v48, %v690_v48  ;;  %v659_v59 = vmax.f32 %v413_v49, 0.0  ;;  %v691_v60 = vmax.f32 %v541_v50, 0.0 }
  0xe7   :  { %v1177_v61 = vpack.c.bf16 %v656_v53, %v656_v53  ;;  %v1209_v62 = vpack.c.bf16 %v688_v54, %v688_v54  ;;  %v657_v63 = vmax.f32 %v405_v55, 0.0  ;;  %v689_v0 = vmax.f32 %v533_v56, 0.0 }
  0xe8   :  { %979 = vst.msk [vmem:[%s1874_s3 + $0x8] sm:$0xf] %vm976_vm2, %v1179_v57  ;;  %1011 = vst.msk [vmem:[%s1874_s3 + $0x88] sm:$0xf] %vm976_vm2, %v1211_v58  ;;  %v1180_v1 = vpack.c.bf16 %v659_v59, %v659_v59  ;;  %v1212_v2 = vpack.c.bf16 %v691_v60, %v691_v60 }
  0xe9   :  { %977 = vst.msk [vmem:[%s1874_s3] sm:$0xf] %vm976_vm2, %v1177_v61  ;;  %1009 = vst.msk [vmem:[%s1874_s3 + $0x80] sm:$0xf] %vm976_vm2, %v1209_v62  ;;  %v1178_v3 = vpack.c.bf16 %v657_v63, %v657_v63  ;;  %v1210_v4 = vpack.c.bf16 %v689_v0, %v689_v0  ;;  %v1288_v5 = vpop.f32.mrb[4].mxu0  ;;  %v1320_v6 = vpop.f32.mrb[4].mxu1 }
  0xea   :  { %980 = vst.msk [vmem:[%s1874_s3 + $0xc] sm:$0xf] %vm976_vm2, %v1180_v1  ;;  %1012 = vst.msk [vmem:[%s1874_s3 + $0x8c] sm:$0xf] %vm976_vm2, %v1212_v2  ;;  %v426_v7 = vadd.f32 %v1288_v5, %v1549_v36  ;;  %v554_v8 = vadd.f32 %v1320_v6, %v1549_v36  ;;  %v417_v9 = vpop.f32.mrb[5].mxu0  ;;  %v545_v10 = vpop.f32.mrb[5].mxu1 }
  0xeb   :  { %978 = vst.msk [vmem:[%s1874_s3 + $0x4] sm:$0xf] %vm976_vm2, %v1178_v3  ;;  %1010 = vst.msk [vmem:[%s1874_s3 + $0x84] sm:$0xf] %vm976_vm2, %v1210_v4  ;;  %v418_v11 = vadd.f32 %v1549_v36, %v417_v9  ;;  %v546_v12 = vadd.f32 %v1549_v36, %v545_v10  ;;  %v1289_v13 = vpop.f32.mrb[6].mxu0  ;;  %v1321_v14 = vpop.f32.mrb[6].mxu1 }
  0xec   :  { %v662_v15 = vmax.f32 %v426_v7, 0.0  ;;  %v694_v16 = vmax.f32 %v554_v8, 0.0  ;;  %v429_v17 = vadd.f32 %v1289_v13, %v1549_v36  ;;  %v557_v18 = vadd.f32 %v1321_v14, %v1549_v36  ;;  %v420_v19 = vpop.f32.mrb[7].mxu0  ;;  %v548_v20 = vpop.f32.mrb[7].mxu1 }
  0xed   :  { %v660_v21 = vmax.f32 %v418_v11, 0.0  ;;  %v692_v22 = vmax.f32 %v546_v12, 0.0  ;;  %v421_v23 = vadd.f32 %v1549_v36, %v420_v19  ;;  %v549_v24 = vadd.f32 %v1549_v36, %v548_v20 }
  0xee   :  { %v1183_v25 = vpack.c.bf16 %v662_v15, %v662_v15  ;;  %v1215_v26 = vpack.c.bf16 %v694_v16, %v694_v16  ;;  %v663_v27 = vmax.f32 %v429_v17, 0.0  ;;  %v695_v28 = vmax.f32 %v557_v18, 0.0 }
  0xef   :  { %v1181_v29 = vpack.c.bf16 %v660_v21, %v660_v21  ;;  %v1213_v30 = vpack.c.bf16 %v692_v22, %v692_v22  ;;  %v661_v31 = vmax.f32 %v421_v23, 0.0  ;;  %v693_v32 = vmax.f32 %v549_v24, 0.0 }
  0xf0   :  { %983 = vst.msk [vmem:[%s1874_s3 + $0x18] sm:$0xf] %vm976_vm2, %v1183_v25  ;;  %1015 = vst.msk [vmem:[%s1874_s3 + $0x98] sm:$0xf] %vm976_vm2, %v1215_v26  ;;  %v1184_v33 = vpack.c.bf16 %v663_v27, %v663_v27  ;;  %v1216_v34 = vpack.c.bf16 %v695_v28, %v695_v28 }
  0xf1   :  { %981 = vst.msk [vmem:[%s1874_s3 + $0x10] sm:$0xf] %vm976_vm2, %v1181_v29  ;;  %1013 = vst.msk [vmem:[%s1874_s3 + $0x90] sm:$0xf] %vm976_vm2, %v1213_v30  ;;  %v1182_v35 = vpack.c.bf16 %v661_v31, %v661_v31  ;;  %v1214_v37 = vpack.c.bf16 %v693_v32, %v693_v32  ;;  %v1292_v38 = vpop.f32.mrb[8].mxu0  ;;  %v1324_v39 = vpop.f32.mrb[8].mxu1 }
  0xf2   :  { %984 = vst.msk [vmem:[%s1874_s3 + $0x1c] sm:$0xf] %vm976_vm2, %v1184_v33  ;;  %1016 = vst.msk [vmem:[%s1874_s3 + $0x9c] sm:$0xf] %vm976_vm2, %v1216_v34  ;;  %v442_v40 = vadd.f32 %v1292_v38, %v1549_v36  ;;  %v570_v41 = vadd.f32 %v1324_v39, %v1549_v36  ;;  %v433_v42 = vpop.f32.mrb[9].mxu0  ;;  %v561_v43 = vpop.f32.mrb[9].mxu1 }
  0xf3   :  { %982 = vst.msk [vmem:[%s1874_s3 + $0x14] sm:$0xf] %vm976_vm2, %v1182_v35  ;;  %1014 = vst.msk [vmem:[%s1874_s3 + $0x94] sm:$0xf] %vm976_vm2, %v1214_v37  ;;  %v434_v44 = vadd.f32 %v1549_v36, %v433_v42  ;;  %v562_v45 = vadd.f32 %v1549_v36, %v561_v43  ;;  %v1293_v46 = vpop.f32.mrb[10].mxu0  ;;  %v1325_v47 = vpop.f32.mrb[10].mxu1 }
  0xf4   :  { %v666_v48 = vmax.f32 %v442_v40, 0.0  ;;  %v698_v49 = vmax.f32 %v570_v41, 0.0  ;;  %v445_v50 = vadd.f32 %v1293_v46, %v1549_v36  ;;  %v573_v51 = vadd.f32 %v1325_v47, %v1549_v36  ;;  %v436_v52 = vpop.f32.mrb[11].mxu0  ;;  %v564_v53 = vpop.f32.mrb[11].mxu1 }
  0xf5   :  { %v664_v54 = vmax.f32 %v434_v44, 0.0  ;;  %v696_v55 = vmax.f32 %v562_v45, 0.0  ;;  %v437_v56 = vadd.f32 %v1549_v36, %v436_v52  ;;  %v565_v57 = vadd.f32 %v1549_v36, %v564_v53 }
  0xf6   :  { %v1187_v58 = vpack.c.bf16 %v666_v48, %v666_v48  ;;  %v1219_v59 = vpack.c.bf16 %v698_v49, %v698_v49  ;;  %v667_v60 = vmax.f32 %v445_v50, 0.0  ;;  %v699_v61 = vmax.f32 %v573_v51, 0.0 }
  0xf7   :  { %v1185_v62 = vpack.c.bf16 %v664_v54, %v664_v54  ;;  %v1217_v63 = vpack.c.bf16 %v696_v55, %v696_v55  ;;  %v665_v0 = vmax.f32 %v437_v56, 0.0  ;;  %v697_v1 = vmax.f32 %v565_v57, 0.0 }
  0xf8   :  { %987 = vst.msk [vmem:[%s1874_s3 + $0x28] sm:$0xf] %vm976_vm2, %v1187_v58  ;;  %1019 = vst.msk [vmem:[%s1874_s3 + $0xa8] sm:$0xf] %vm976_vm2, %v1219_v59  ;;  %v1188_v2 = vpack.c.bf16 %v667_v60, %v667_v60  ;;  %v1220_v3 = vpack.c.bf16 %v699_v61, %v699_v61 }
  0xf9   :  { %985 = vst.msk [vmem:[%s1874_s3 + $0x20] sm:$0xf] %vm976_vm2, %v1185_v62  ;;  %1017 = vst.msk [vmem:[%s1874_s3 + $0xa0] sm:$0xf] %vm976_vm2, %v1217_v63  ;;  %v1186_v4 = vpack.c.bf16 %v665_v0, %v665_v0  ;;  %v1218_v5 = vpack.c.bf16 %v697_v1, %v697_v1  ;;  %v1296_v6 = vpop.f32.mrb[12].mxu0  ;;  %v1328_v7 = vpop.f32.mrb[12].mxu1 }
  0xfa   :  { %988 = vst.msk [vmem:[%s1874_s3 + $0x2c] sm:$0xf] %vm976_vm2, %v1188_v2  ;;  %1020 = vst.msk [vmem:[%s1874_s3 + $0xac] sm:$0xf] %vm976_vm2, %v1220_v3  ;;  %v458_v8 = vadd.f32 %v1296_v6, %v1549_v36  ;;  %v586_v9 = vadd.f32 %v1328_v7, %v1549_v36  ;;  %v449_v10 = vpop.f32.mrb[13].mxu0  ;;  %v577_v11 = vpop.f32.mrb[13].mxu1 }
  0xfb   :  { %986 = vst.msk [vmem:[%s1874_s3 + $0x24] sm:$0xf] %vm976_vm2, %v1186_v4  ;;  %1018 = vst.msk [vmem:[%s1874_s3 + $0xa4] sm:$0xf] %vm976_vm2, %v1218_v5  ;;  %v450_v12 = vadd.f32 %v1549_v36, %v449_v10  ;;  %v578_v13 = vadd.f32 %v1549_v36, %v577_v11  ;;  %v1297_v14 = vpop.f32.mrb[14].mxu0  ;;  %v1329_v15 = vpop.f32.mrb[14].mxu1 }
  0xfc   :  { %v670_v16 = vmax.f32 %v458_v8, 0.0  ;;  %v702_v17 = vmax.f32 %v586_v9, 0.0  ;;  %v461_v18 = vadd.f32 %v1297_v14, %v1549_v36  ;;  %v589_v19 = vadd.f32 %v1329_v15, %v1549_v36  ;;  %v452_v20 = vpop.f32.mrb[15].mxu0  ;;  %v580_v21 = vpop.f32.mrb[15].mxu1 }
  0xfd   :  { %v668_v22 = vmax.f32 %v450_v12, 0.0  ;;  %v700_v23 = vmax.f32 %v578_v13, 0.0  ;;  %v453_v24 = vadd.f32 %v1549_v36, %v452_v20  ;;  %v581_v25 = vadd.f32 %v1549_v36, %v580_v21 }
  0xfe   :  { %v1191_v26 = vpack.c.bf16 %v670_v16, %v670_v16  ;;  %v1223_v27 = vpack.c.bf16 %v702_v17, %v702_v17  ;;  %v671_v28 = vmax.f32 %v461_v18, 0.0  ;;  %v703_v29 = vmax.f32 %v589_v19, 0.0 }
  0xff   :  { %v1189_v30 = vpack.c.bf16 %v668_v22, %v668_v22  ;;  %v1221_v31 = vpack.c.bf16 %v700_v23, %v700_v23  ;;  %v669_v32 = vmax.f32 %v453_v24, 0.0  ;;  %v701_v33 = vmax.f32 %v581_v25, 0.0 }
 0x100   :  { %991 = vst.msk [vmem:[%s1874_s3 + $0x38] sm:$0xf] %vm976_vm2, %v1191_v26  ;;  %1023 = vst.msk [vmem:[%s1874_s3 + $0xb8] sm:$0xf] %vm976_vm2, %v1223_v27  ;;  %v1192_v34 = vpack.c.bf16 %v671_v28, %v671_v28  ;;  %v1224_v35 = vpack.c.bf16 %v703_v29, %v703_v29 }
 0x101   :  { %989 = vst.msk [vmem:[%s1874_s3 + $0x30] sm:$0xf] %vm976_vm2, %v1189_v30  ;;  %1021 = vst.msk [vmem:[%s1874_s3 + $0xb0] sm:$0xf] %vm976_vm2, %v1221_v31  ;;  %v1190_v37 = vpack.c.bf16 %v669_v32, %v669_v32  ;;  %v1222_v38 = vpack.c.bf16 %v701_v33, %v701_v33  ;;  %v1300_v39 = vpop.f32.mrb[16].mxu0  ;;  %v1332_v40 = vpop.f32.mrb[16].mxu1 }
 0x102   :  { %992 = vst.msk [vmem:[%s1874_s3 + $0x3c] sm:$0xf] %vm976_vm2, %v1192_v34  ;;  %1024 = vst.msk [vmem:[%s1874_s3 + $0xbc] sm:$0xf] %vm976_vm2, %v1224_v35  ;;  %v474_v41 = vadd.f32 %v1300_v39, %v1549_v36  ;;  %v602_v42 = vadd.f32 %v1332_v40, %v1549_v36  ;;  %v465_v43 = vpop.f32.mrb[17].mxu0  ;;  %v593_v44 = vpop.f32.mrb[17].mxu1 }
 0x103   :  { %990 = vst.msk [vmem:[%s1874_s3 + $0x34] sm:$0xf] %vm976_vm2, %v1190_v37  ;;  %1022 = vst.msk [vmem:[%s1874_s3 + $0xb4] sm:$0xf] %vm976_vm2, %v1222_v38  ;;  %v466_v45 = vadd.f32 %v1549_v36, %v465_v43  ;;  %v594_v46 = vadd.f32 %v1549_v36, %v593_v44  ;;  %v1301_v47 = vpop.f32.mrb[18].mxu0  ;;  %v1333_v48 = vpop.f32.mrb[18].mxu1 }
 0x104   :  { %v674_v49 = vmax.f32 %v474_v41, 0.0  ;;  %v706_v50 = vmax.f32 %v602_v42, 0.0  ;;  %v477_v51 = vadd.f32 %v1301_v47, %v1549_v36  ;;  %v605_v52 = vadd.f32 %v1333_v48, %v1549_v36  ;;  %v468_v53 = vpop.f32.mrb[19].mxu0  ;;  %v596_v54 = vpop.f32.mrb[19].mxu1 }
 0x105   :  { %v672_v55 = vmax.f32 %v466_v45, 0.0  ;;  %v704_v56 = vmax.f32 %v594_v46, 0.0  ;;  %v469_v57 = vadd.f32 %v1549_v36, %v468_v53  ;;  %v597_v58 = vadd.f32 %v1549_v36, %v596_v54 }
 0x106   :  { %v1195_v59 = vpack.c.bf16 %v674_v49, %v674_v49  ;;  %v1227_v60 = vpack.c.bf16 %v706_v50, %v706_v50  ;;  %v675_v61 = vmax.f32 %v477_v51, 0.0  ;;  %v707_v62 = vmax.f32 %v605_v52, 0.0 }
 0x107   :  { %v1193_v63 = vpack.c.bf16 %v672_v55, %v672_v55  ;;  %v1225_v0 = vpack.c.bf16 %v704_v56, %v704_v56  ;;  %v673_v1 = vmax.f32 %v469_v57, 0.0  ;;  %v705_v2 = vmax.f32 %v597_v58, 0.0 }
 0x108   :  { %995 = vst.msk [vmem:[%s1874_s3 + $0x48] sm:$0xf] %vm976_vm2, %v1195_v59  ;;  %1027 = vst.msk [vmem:[%s1874_s3 + $0xc8] sm:$0xf] %vm976_vm2, %v1227_v60  ;;  %v1196_v3 = vpack.c.bf16 %v675_v61, %v675_v61  ;;  %v1228_v4 = vpack.c.bf16 %v707_v62, %v707_v62 }
 0x109   :  { %993 = vst.msk [vmem:[%s1874_s3 + $0x40] sm:$0xf] %vm976_vm2, %v1193_v63  ;;  %1025 = vst.msk [vmem:[%s1874_s3 + $0xc0] sm:$0xf] %vm976_vm2, %v1225_v0  ;;  %v1194_v5 = vpack.c.bf16 %v673_v1, %v673_v1  ;;  %v1226_v6 = vpack.c.bf16 %v705_v2, %v705_v2  ;;  %v1304_v7 = vpop.f32.mrb[20].mxu0  ;;  %v1336_v8 = vpop.f32.mrb[20].mxu1 }
 0x10a   :  { %996 = vst.msk [vmem:[%s1874_s3 + $0x4c] sm:$0xf] %vm976_vm2, %v1196_v3  ;;  %1028 = vst.msk [vmem:[%s1874_s3 + $0xcc] sm:$0xf] %vm976_vm2, %v1228_v4  ;;  %v490_v9 = vadd.f32 %v1304_v7, %v1549_v36  ;;  %v618_v10 = vadd.f32 %v1336_v8, %v1549_v36  ;;  %v481_v11 = vpop.f32.mrb[21].mxu0  ;;  %v609_v12 = vpop.f32.mrb[21].mxu1 }
 0x10b   :  { %994 = vst.msk [vmem:[%s1874_s3 + $0x44] sm:$0xf] %vm976_vm2, %v1194_v5  ;;  %1026 = vst.msk [vmem:[%s1874_s3 + $0xc4] sm:$0xf] %vm976_vm2, %v1226_v6  ;;  %v482_v13 = vadd.f32 %v1549_v36, %v481_v11  ;;  %v610_v14 = vadd.f32 %v1549_v36, %v609_v12  ;;  %v1305_v15 = vpop.f32.mrb[22].mxu0  ;;  %v1337_v16 = vpop.f32.mrb[22].mxu1 }
 0x10c   :  { %v678_v17 = vmax.f32 %v490_v9, 0.0  ;;  %v710_v18 = vmax.f32 %v618_v10, 0.0  ;;  %v493_v19 = vadd.f32 %v1305_v15, %v1549_v36  ;;  %v621_v20 = vadd.f32 %v1337_v16, %v1549_v36  ;;  %v484_v21 = vpop.f32.mrb[23].mxu0  ;;  %v612_v22 = vpop.f32.mrb[23].mxu1 }
 0x10d   :  { %v676_v23 = vmax.f32 %v482_v13, 0.0  ;;  %v708_v24 = vmax.f32 %v610_v14, 0.0  ;;  %v485_v25 = vadd.f32 %v1549_v36, %v484_v21  ;;  %v613_v26 = vadd.f32 %v1549_v36, %v612_v22 }
 0x10e   :  { %v1199_v27 = vpack.c.bf16 %v678_v17, %v678_v17  ;;  %v1231_v28 = vpack.c.bf16 %v710_v18, %v710_v18  ;;  %v679_v29 = vmax.f32 %v493_v19, 0.0  ;;  %v711_v30 = vmax.f32 %v621_v20, 0.0 }
 0x10f   :  { %v1197_v31 = vpack.c.bf16 %v676_v23, %v676_v23  ;;  %v1229_v32 = vpack.c.bf16 %v708_v24, %v708_v24  ;;  %v677_v33 = vmax.f32 %v485_v25, 0.0  ;;  %v709_v34 = vmax.f32 %v613_v26, 0.0 }
 0x110   :  { %999 = vst.msk [vmem:[%s1874_s3 + $0x58] sm:$0xf] %vm976_vm2, %v1199_v27  ;;  %1031 = vst.msk [vmem:[%s1874_s3 + $0xd8] sm:$0xf] %vm976_vm2, %v1231_v28  ;;  %v1200_v35 = vpack.c.bf16 %v679_v29, %v679_v29  ;;  %v1232_v37 = vpack.c.bf16 %v711_v30, %v711_v30 }
 0x111   :  { %997 = vst.msk [vmem:[%s1874_s3 + $0x50] sm:$0xf] %vm976_vm2, %v1197_v31  ;;  %1029 = vst.msk [vmem:[%s1874_s3 + $0xd0] sm:$0xf] %vm976_vm2, %v1229_v32  ;;  %v1198_v38 = vpack.c.bf16 %v677_v33, %v677_v33  ;;  %v1230_v39 = vpack.c.bf16 %v709_v34, %v709_v34  ;;  %v1308_v40 = vpop.f32.mrb[24].mxu0  ;;  %v1340_v41 = vpop.f32.mrb[24].mxu1 }
 0x112   :  { %1000 = vst.msk [vmem:[%s1874_s3 + $0x5c] sm:$0xf] %vm976_vm2, %v1200_v35  ;;  %1032 = vst.msk [vmem:[%s1874_s3 + $0xdc] sm:$0xf] %vm976_vm2, %v1232_v37  ;;  %v506_v42 = vadd.f32 %v1308_v40, %v1549_v36  ;;  %v634_v43 = vadd.f32 %v1340_v41, %v1549_v36  ;;  %v497_v44 = vpop.f32.mrb[25].mxu0  ;;  %v625_v45 = vpop.f32.mrb[25].mxu1 }
 0x113   :  { %998 = vst.msk [vmem:[%s1874_s3 + $0x54] sm:$0xf] %vm976_vm2, %v1198_v38  ;;  %1030 = vst.msk [vmem:[%s1874_s3 + $0xd4] sm:$0xf] %vm976_vm2, %v1230_v39  ;;  %v498_v46 = vadd.f32 %v1549_v36, %v497_v44  ;;  %v626_v47 = vadd.f32 %v1549_v36, %v625_v45  ;;  %v1309_v48 = vpop.f32.mrb[26].mxu0  ;;  %v1341_v49 = vpop.f32.mrb[26].mxu1 }
 0x114   :  { %v682_v50 = vmax.f32 %v506_v42, 0.0  ;;  %v714_v51 = vmax.f32 %v634_v43, 0.0  ;;  %v509_v52 = vadd.f32 %v1309_v48, %v1549_v36  ;;  %v637_v53 = vadd.f32 %v1341_v49, %v1549_v36  ;;  %v500_v54 = vpop.f32.mrb[27].mxu0  ;;  %v628_v55 = vpop.f32.mrb[27].mxu1 }
 0x115   :  { %v680_v56 = vmax.f32 %v498_v46, 0.0  ;;  %v712_v57 = vmax.f32 %v626_v47, 0.0  ;;  %v501_v58 = vadd.f32 %v1549_v36, %v500_v54  ;;  %v629_v59 = vadd.f32 %v1549_v36, %v628_v55 }
 0x116   :  { %v1203_v60 = vpack.c.bf16 %v682_v50, %v682_v50  ;;  %v1235_v61 = vpack.c.bf16 %v714_v51, %v714_v51  ;;  %v683_v62 = vmax.f32 %v509_v52, 0.0  ;;  %v715_v63 = vmax.f32 %v637_v53, 0.0 }
 0x117   :  { %v1201_v0 = vpack.c.bf16 %v680_v56, %v680_v56  ;;  %v1233_v1 = vpack.c.bf16 %v712_v57, %v712_v57  ;;  %v681_v2 = vmax.f32 %v501_v58, 0.0  ;;  %v713_v3 = vmax.f32 %v629_v59, 0.0 }
 0x118   :  { %1003 = vst.msk [vmem:[%s1874_s3 + $0x68] sm:$0xf] %vm976_vm2, %v1203_v60  ;;  %1035 = vst.msk [vmem:[%s1874_s3 + $0xe8] sm:$0xf] %vm976_vm2, %v1235_v61  ;;  %v1204_v4 = vpack.c.bf16 %v683_v62, %v683_v62  ;;  %v1236_v5 = vpack.c.bf16 %v715_v63, %v715_v63 }
 0x119   :  { %1001 = vst.msk [vmem:[%s1874_s3 + $0x60] sm:$0xf] %vm976_vm2, %v1201_v0  ;;  %1033 = vst.msk [vmem:[%s1874_s3 + $0xe0] sm:$0xf] %vm976_vm2, %v1233_v1  ;;  %v1202_v6 = vpack.c.bf16 %v681_v2, %v681_v2  ;;  %v1234_v7 = vpack.c.bf16 %v713_v3, %v713_v3  ;;  %v1312_v8 = vpop.f32.mrb[28].mxu0  ;;  %v1344_v9 = vpop.f32.mrb[28].mxu1 }
 0x11a   :  { %1004 = vst.msk [vmem:[%s1874_s3 + $0x6c] sm:$0xf] %vm976_vm2, %v1204_v4  ;;  %1036 = vst.msk [vmem:[%s1874_s3 + $0xec] sm:$0xf] %vm976_vm2, %v1236_v5  ;;  %v522_v10 = vadd.f32 %v1312_v8, %v1549_v36  ;;  %v650_v11 = vadd.f32 %v1344_v9, %v1549_v36  ;;  %v513_v12 = vpop.f32.mrb[29].mxu0  ;;  %v641_v13 = vpop.f32.mrb[29].mxu1 }
 0x11b   :  { %1002 = vst.msk [vmem:[%s1874_s3 + $0x64] sm:$0xf] %vm976_vm2, %v1202_v6  ;;  %1034 = vst.msk [vmem:[%s1874_s3 + $0xe4] sm:$0xf] %vm976_vm2, %v1234_v7  ;;  %v514_v14 = vadd.f32 %v1549_v36, %v513_v12  ;;  %v642_v15 = vadd.f32 %v1549_v36, %v641_v13  ;;  %v1313_v16 = vpop.f32.mrb[30].mxu0  ;;  %v1345_v17 = vpop.f32.mrb[30].mxu1 }
 0x11c   :  { %v686_v18 = vmax.f32 %v522_v10, 0.0  ;;  %v718_v19 = vmax.f32 %v650_v11, 0.0  ;;  %v525_v20 = vadd.f32 %v1313_v16, %v1549_v36  ;;  %v653_v21 = vadd.f32 %v1345_v17, %v1549_v36  ;;  %v516_v22 = vpop.f32.mrb[31].mxu0  ;;  %v644_v23 = vpop.f32.mrb[31].mxu1 }
 0x11d   :  { %v684_v24 = vmax.f32 %v514_v14, 0.0  ;;  %v716_v25 = vmax.f32 %v642_v15, 0.0  ;;  %v517_v26 = vadd.f32 %v1549_v36, %v516_v22  ;;  %v645_v27 = vadd.f32 %v1549_v36, %v644_v23 }
 0x11e   :  { %v1207_v28 = vpack.c.bf16 %v686_v18, %v686_v18  ;;  %v1239_v29 = vpack.c.bf16 %v718_v19, %v718_v19  ;;  %v687_v30 = vmax.f32 %v525_v20, 0.0  ;;  %v719_v31 = vmax.f32 %v653_v21, 0.0 }
 0x11f   :  { %v1205_v32 = vpack.c.bf16 %v684_v24, %v684_v24  ;;  %v1237_v33 = vpack.c.bf16 %v716_v25, %v716_v25  ;;  %v685_v34 = vmax.f32 %v517_v26, 0.0  ;;  %v717_v35 = vmax.f32 %v645_v27, 0.0 }
 0x120   :  { %1007 = vst.msk [vmem:[%s1874_s3 + $0x78] sm:$0xf] %vm976_vm2, %v1207_v28  ;;  %1039 = vst.msk [vmem:[%s1874_s3 + $0xf8] sm:$0xf] %vm976_vm2, %v1239_v29  ;;  %v1208_v37 = vpack.c.bf16 %v687_v30, %v687_v30  ;;  %v1240_v36 = vpack.c.bf16 %v719_v31, %v719_v31 }
 0x121   :  { %1005 = vst.msk [vmem:[%s1874_s3 + $0x70] sm:$0xf] %vm976_vm2, %v1205_v32  ;;  %1037 = vst.msk [vmem:[%s1874_s3 + $0xf0] sm:$0xf] %vm976_vm2, %v1237_v33  ;;  %v1206_v38 = vpack.c.bf16 %v685_v34, %v685_v34  ;;  %v1238_v39 = vpack.c.bf16 %v717_v35, %v717_v35 }
 0x122   :  { %1008 = vst.msk [vmem:[%s1874_s3 + $0x7c] sm:$0xf] %vm976_vm2, %v1208_v37  ;;  %1040 = vst.msk [vmem:[%s1874_s3 + $0xfc] sm:$0xf] %vm976_vm2, %v1240_v36 }
 0x123   :  { %1006 = vst.msk [vmem:[%s1874_s3 + $0x74] sm:$0xf] %vm976_vm2, %v1206_v38  ;;  %1038 = vst.msk [vmem:[%s1874_s3 + $0xf4] sm:$0xf] %vm976_vm2, %v1238_v39 }

// kernel: mglnet_forward.69
= control target key start
LH: loop header
LB: loop body
LE: loop exit
PB: predicated region body
PF: predicated region fallthrough
CT: control target
= control target key end

     0   :  { %vm104_vm0 = vcmask 1043456   ;;  %vm79_vm1 = vcmask 64512   ;;  %vm285_vm2 = vcmask 27648   ;;  %s534_s1 = inlined_call_operand.vmem [shape: bf16[8,4], index: 1, kind: input, shape index: {}]   ;;  %s535_s0 = inlined_call_operand.vmem [shape: bf16[128,8], index: 0, kind: input, shape index: {}]   ;;  %s536_s2 = inlined_call_operand.vmem [shape: f32[1,4], index: 2, kind: input, shape index: {}]   ;;  %s537_s3 = inlined_call_operand.vmem [shape: bf16[128,4], index: 3, kind: output, shape index: {}]  }
   0x1   :  { %v31_v0 = vld [vmem:[%s534_s1] sm:$0xf]  ;;  %v388_v4 = vld [vmem:[%s535_s0 + $0x8] sm:$0xff]   ;;  %v390_v6 = vld [vmem:[%s535_s0 + $0x10] sm:$0xff]  }
   0x2   :  { %384 = vmatprep.subr.msk.bf16.mxu0 %vm104_vm0, %v31_v0  ;;  %385 = vmatprep.subr.msk.bf16.mxu1 %vm104_vm0, %v31_v0  ;;  %v106_v1 = vsel %vm104_vm0, %v31_v0, 0  ;;  %v386_v2 = vld [vmem:[%s535_s0] sm:$0xff]   ;;  %v389_v5 = vld [vmem:[%s535_s0 + $0x28] sm:$0xff]   ;;  %v391_v7 = vld [vmem:[%s535_s0 + $0x30] sm:$0xff]  }
   0x3   :  { %365 = vmatpush3.bf16.msra.mxu0 %v106_v1  ;;  %383 = vmatpush3.bf16.msra.mxu1 %v106_v1  ;;  %v387_v3 = vld [vmem:[%s535_s0 + $0x20] sm:$0xff]   ;;  %v392_v8 = vld [vmem:[%s535_s0 + $0x18] sm:$0xff]  }
   0x4   :  { %366 = vmatprep.mubr.msk.bf16.mxu0 %vm79_vm1, %v386_v2  ;;  %374 = vmatprep.mubr.msk.bf16.mxu1 %vm79_vm1, %v387_v3  ;;  %v393_v9 = vld [vmem:[%s535_s0 + $0x38] sm:$0xff]   ;;  %v452_v10 = vld [vmem:[%s536_s2] ss:$0 sm:$0xff] }
   0x6   :  { %367 = vmatmul.mubr.msk.bf16.vlgmr.msra.gmra.mrb[0].mxu0 %vm79_vm1, %v388_v4  ;;  %375 = vmatmul.mubr.msk.bf16.vlgmr.msra.gmra.mrb[0].mxu1 %vm79_vm1, %v389_v5 }
   0x7   :  { %370 = vmatprep.mubr.msk.bf16.mxu0 %vm79_vm1, %v390_v6  ;;  %378 = vmatprep.mubr.msk.bf16.mxu1 %vm79_vm1, %v391_v7 }
   0xe   :  { %371 = vmatmul.mubr.msk.bf16.gmra.mrb[4].mxu0 %vm79_vm1, %v392_v8  ;;  %379 = vmatmul.mubr.msk.bf16.gmra.mrb[4].mxu1 %vm79_vm1, %v393_v9 }
  0xd9   :  { %v368_v11 = vpop.f32.mrb[0].mxu0  ;;  %v376_v13 = vpop.f32.mrb[0].mxu1 }
  0xda   :  { %v151_v12 = vadd.f32 %v368_v11, %v452_v10  ;;  %v142_v14 = vpop.f32.mrb[1].mxu0  ;;  %v183_v15 = vadd.f32 %v376_v13, %v452_v10  ;;  %v174_v17 = vpop.f32.mrb[1].mxu1 }
  0xdb   :  { %v143_v16 = vadd.f32 %v452_v10, %v142_v14  ;;  %v369_v18 = vpop.f32.mrb[2].mxu0  ;;  %v175_v20 = vadd.f32 %v452_v10, %v174_v17  ;;  %v377_v22 = vpop.f32.mrb[2].mxu1 }
  0xdc   :  { %v207_v19 = vmax.f32 %v151_v12, 0.0  ;;  %v154_v21 = vadd.f32 %v369_v18, %v452_v10  ;;  %v145_v23 = vpop.f32.mrb[3].mxu0  ;;  %v215_v24 = vmax.f32 %v183_v15, 0.0  ;;  %v186_v26 = vadd.f32 %v377_v22, %v452_v10  ;;  %v177_v28 = vpop.f32.mrb[3].mxu1 }
  0xdd   :  { %v205_v25 = vmax.f32 %v143_v16, 0.0  ;;  %v146_v27 = vadd.f32 %v452_v10, %v145_v23  ;;  %v213_v30 = vmax.f32 %v175_v20, 0.0  ;;  %v178_v32 = vadd.f32 %v452_v10, %v177_v28 }
  0xde   :  { %v341_v29 = vpack.c.bf16 %v207_v19, %v207_v19  ;;  %v208_v31 = vmax.f32 %v154_v21, 0.0  ;;  %v349_v33 = vpack.c.bf16 %v215_v24, %v215_v24  ;;  %v216_v35 = vmax.f32 %v186_v26, 0.0 }
  0xdf   :  { %v339_v34 = vpack.c.bf16 %v205_v25, %v205_v25  ;;  %v206_v36 = vmax.f32 %v146_v27, 0.0  ;;  %v347_v37 = vpack.c.bf16 %v213_v30, %v213_v30  ;;  %v214_v39 = vmax.f32 %v178_v32, 0.0 }
  0xe0   :  { %288 = vst.msk [vmem:[%s537_s3 + $0x8] sm:$0xf] %vm285_vm2, %v341_v29  ;;  %v342_v38 = vpack.c.bf16 %v208_v31, %v208_v31  ;;  %296 = vst.msk [vmem:[%s537_s3 + $0x28] sm:$0xf] %vm285_vm2, %v349_v33  ;;  %v350_v40 = vpack.c.bf16 %v216_v35, %v216_v35 }
  0xe1   :  { %286 = vst.msk [vmem:[%s537_s3] sm:$0xf] %vm285_vm2, %v339_v34  ;;  %v340_v41 = vpack.c.bf16 %v206_v36, %v206_v36  ;;  %v372_v42 = vpop.f32.mrb[4].mxu0  ;;  %294 = vst.msk [vmem:[%s537_s3 + $0x20] sm:$0xf] %vm285_vm2, %v347_v37  ;;  %v348_v43 = vpack.c.bf16 %v214_v39, %v214_v39  ;;  %v380_v45 = vpop.f32.mrb[4].mxu1 }
  0xe2   :  { %289 = vst.msk [vmem:[%s537_s3 + $0xc] sm:$0xf] %vm285_vm2, %v342_v38  ;;  %v167_v44 = vadd.f32 %v372_v42, %v452_v10  ;;  %v158_v46 = vpop.f32.mrb[5].mxu0  ;;  %297 = vst.msk [vmem:[%s537_s3 + $0x2c] sm:$0xf] %vm285_vm2, %v350_v40  ;;  %v199_v47 = vadd.f32 %v380_v45, %v452_v10  ;;  %v190_v49 = vpop.f32.mrb[5].mxu1 }
  0xe3   :  { %287 = vst.msk [vmem:[%s537_s3 + $0x4] sm:$0xf] %vm285_vm2, %v340_v41  ;;  %v159_v48 = vadd.f32 %v452_v10, %v158_v46  ;;  %v373_v50 = vpop.f32.mrb[6].mxu0  ;;  %295 = vst.msk [vmem:[%s537_s3 + $0x24] sm:$0xf] %vm285_vm2, %v348_v43  ;;  %v191_v52 = vadd.f32 %v452_v10, %v190_v49  ;;  %v381_v54 = vpop.f32.mrb[6].mxu1 }
  0xe4   :  { %v211_v51 = vmax.f32 %v167_v44, 0.0  ;;  %v170_v53 = vadd.f32 %v373_v50, %v452_v10  ;;  %v161_v55 = vpop.f32.mrb[7].mxu0  ;;  %v219_v56 = vmax.f32 %v199_v47, 0.0  ;;  %v202_v58 = vadd.f32 %v381_v54, %v452_v10  ;;  %v193_v60 = vpop.f32.mrb[7].mxu1 }
  0xe5   :  { %v209_v57 = vmax.f32 %v159_v48, 0.0  ;;  %v162_v59 = vadd.f32 %v452_v10, %v161_v55  ;;  %v217_v62 = vmax.f32 %v191_v52, 0.0  ;;  %v194_v0 = vadd.f32 %v452_v10, %v193_v60 }
  0xe6   :  { %v345_v61 = vpack.c.bf16 %v211_v51, %v211_v51  ;;  %v212_v63 = vmax.f32 %v170_v53, 0.0  ;;  %v353_v1 = vpack.c.bf16 %v219_v56, %v219_v56  ;;  %v220_v3 = vmax.f32 %v202_v58, 0.0 }
  0xe7   :  { %v343_v2 = vpack.c.bf16 %v209_v57, %v209_v57  ;;  %v210_v4 = vmax.f32 %v162_v59, 0.0  ;;  %v351_v5 = vpack.c.bf16 %v217_v62, %v217_v62  ;;  %v218_v7 = vmax.f32 %v194_v0, 0.0 }
  0xe8   :  { %292 = vst.msk [vmem:[%s537_s3 + $0x18] sm:$0xf] %vm285_vm2, %v345_v61  ;;  %v346_v6 = vpack.c.bf16 %v212_v63, %v212_v63  ;;  %300 = vst.msk [vmem:[%s537_s3 + $0x38] sm:$0xf] %vm285_vm2, %v353_v1  ;;  %v354_v8 = vpack.c.bf16 %v220_v3, %v220_v3 }
  0xe9   :  { %290 = vst.msk [vmem:[%s537_s3 + $0x10] sm:$0xf] %vm285_vm2, %v343_v2  ;;  %v344_v9 = vpack.c.bf16 %v210_v4, %v210_v4  ;;  %298 = vst.msk [vmem:[%s537_s3 + $0x30] sm:$0xf] %vm285_vm2, %v351_v5  ;;  %v352_v10 = vpack.c.bf16 %v218_v7, %v218_v7 }
  0xea   :  { %293 = vst.msk [vmem:[%s537_s3 + $0x1c] sm:$0xf] %vm285_vm2, %v346_v6  ;;  %301 = vst.msk [vmem:[%s537_s3 + $0x3c] sm:$0xf] %vm285_vm2, %v354_v8 }
  0xeb   :  { %291 = vst.msk [vmem:[%s537_s3 + $0x14] sm:$0xf] %vm285_vm2, %v344_v9  ;;  %299 = vst.msk [vmem:[%s537_s3 + $0x34] sm:$0xf] %vm285_vm2, %v352_v10 }

// kernel: mglnet_forward.71
= control target key start
LH: loop header
LB: loop body
LE: loop exit
PB: predicated region body
PF: predicated region fallthrough
CT: control target
= control target key end

     0   :  { %vm104_vm0 = vcmask 1043456   ;;  %vm79_vm1 = vcmask 64512   ;;  %vm269_vm2 = vcmask 125952   ;;  %s500_s1 = inlined_call_operand.vmem [shape: bf16[8,16], index: 1, kind: input, shape index: {}]   ;;  %s501_s0 = inlined_call_operand.vmem [shape: bf16[128,8], index: 0, kind: input, shape index: {}]   ;;  %s502_s2 = inlined_call_operand.vmem [shape: f32[1,16], index: 2, kind: input, shape index: {}]   ;;  %s503_s3 = inlined_call_operand.vmem [shape: bf16[128,16], index: 3, kind: output, shape index: {}]  }
   0x1   :  { %v31_v0 = vld [vmem:[%s500_s1] sm:$0xf]  ;;  %v372_v4 = vld [vmem:[%s501_s0 + $0x8] sm:$0xff]   ;;  %v374_v6 = vld [vmem:[%s501_s0 + $0x10] sm:$0xff]  }
   0x2   :  { %368 = vmatprep.subr.msk.bf16.mxu0 %vm104_vm0, %v31_v0  ;;  %369 = vmatprep.subr.msk.bf16.mxu1 %vm104_vm0, %v31_v0  ;;  %v106_v1 = vsel %vm104_vm0, %v31_v0, 0  ;;  %v370_v2 = vld [vmem:[%s501_s0] sm:$0xff]   ;;  %v373_v5 = vld [vmem:[%s501_s0 + $0x28] sm:$0xff]   ;;  %v375_v7 = vld [vmem:[%s501_s0 + $0x30] sm:$0xff]  }
   0x3   :  { %349 = vmatpush3.bf16.msra.mxu0 %v106_v1  ;;  %367 = vmatpush3.bf16.msra.mxu1 %v106_v1  ;;  %v371_v3 = vld [vmem:[%s501_s0 + $0x20] sm:$0xff]   ;;  %v376_v8 = vld [vmem:[%s501_s0 + $0x18] sm:$0xff]  }
   0x4   :  { %350 = vmatprep.mubr.msk.bf16.mxu0 %vm79_vm1, %v370_v2  ;;  %358 = vmatprep.mubr.msk.bf16.mxu1 %vm79_vm1, %v371_v3  ;;  %v377_v9 = vld [vmem:[%s501_s0 + $0x38] sm:$0xff]   ;;  %v290_v10 = vld [vmem:[%s502_s2] ss:$0 sm:$0xff] }
   0x6   :  { %351 = vmatmul.mubr.msk.bf16.vlgmr.msra.gmra.mrb[0].mxu0 %vm79_vm1, %v372_v4  ;;  %359 = vmatmul.mubr.msk.bf16.vlgmr.msra.gmra.mrb[0].mxu1 %vm79_vm1, %v373_v5 }
   0x7   :  { %354 = vmatprep.mubr.msk.bf16.mxu0 %vm79_vm1, %v374_v6  ;;  %362 = vmatprep.mubr.msk.bf16.mxu1 %vm79_vm1, %v375_v7 }
   0xe   :  { %355 = vmatmul.mubr.msk.bf16.gmra.mrb[4].mxu0 %vm79_vm1, %v376_v8  ;;  %363 = vmatmul.mubr.msk.bf16.gmra.mrb[4].mxu1 %vm79_vm1, %v377_v9 }
  0xd9   :  { %v352_v11 = vpop.f32.mrb[0].mxu0  ;;  %v360_v13 = vpop.f32.mrb[0].mxu1 }
  0xda   :  { %v151_v12 = vadd.f32 %v352_v11, %v290_v10  ;;  %v142_v14 = vpop.f32.mrb[1].mxu0  ;;  %v183_v15 = vadd.f32 %v360_v13, %v290_v10  ;;  %v174_v17 = vpop.f32.mrb[1].mxu1 }
  0xdb   :  { %v143_v16 = vadd.f32 %v290_v10, %v142_v14  ;;  %v353_v18 = vpop.f32.mrb[2].mxu0  ;;  %v175_v20 = vadd.f32 %v290_v10, %v174_v17  ;;  %v361_v22 = vpop.f32.mrb[2].mxu1 }
  0xdc   :  { %v325_v19 = vpack.c.bf16 %v151_v12, %v151_v12  ;;  %v154_v21 = vadd.f32 %v353_v18, %v290_v10  ;;  %v145_v23 = vpop.f32.mrb[3].mxu0  ;;  %v333_v24 = vpack.c.bf16 %v183_v15, %v183_v15  ;;  %v186_v26 = vadd.f32 %v361_v22, %v290_v10  ;;  %v177_v28 = vpop.f32.mrb[3].mxu1 }
  0xdd   :  { %v323_v25 = vpack.c.bf16 %v143_v16, %v143_v16  ;;  %v146_v27 = vadd.f32 %v290_v10, %v145_v23  ;;  %v331_v29 = vpack.c.bf16 %v175_v20, %v175_v20  ;;  %v178_v31 = vadd.f32 %v290_v10, %v177_v28 }
  0xde   :  { %272 = vst.msk [vmem:[%s503_s3 + $0x8] sm:$0xf] %vm269_vm2, %v325_v19  ;;  %v326_v30 = vpack.c.bf16 %v154_v21, %v154_v21  ;;  %280 = vst.msk [vmem:[%s503_s3 + $0x28] sm:$0xf] %vm269_vm2, %v333_v24  ;;  %v334_v32 = vpack.c.bf16 %v186_v26, %v186_v26 }
  0xdf   :  { %270 = vst.msk [vmem:[%s503_s3] sm:$0xf] %vm269_vm2, %v323_v25  ;;  %v324_v33 = vpack.c.bf16 %v146_v27, %v146_v27  ;;  %278 = vst.msk [vmem:[%s503_s3 + $0x20] sm:$0xf] %vm269_vm2, %v331_v29  ;;  %v332_v34 = vpack.c.bf16 %v178_v31, %v178_v31 }
  0xe0   :  { %273 = vst.msk [vmem:[%s503_s3 + $0xc] sm:$0xf] %vm269_vm2, %v326_v30  ;;  %281 = vst.msk [vmem:[%s503_s3 + $0x2c] sm:$0xf] %vm269_vm2, %v334_v32 }
  0xe1   :  { %271 = vst.msk [vmem:[%s503_s3 + $0x4] sm:$0xf] %vm269_vm2, %v324_v33  ;;  %v356_v35 = vpop.f32.mrb[4].mxu0  ;;  %279 = vst.msk [vmem:[%s503_s3 + $0x24] sm:$0xf] %vm269_vm2, %v332_v34  ;;  %v364_v37 = vpop.f32.mrb[4].mxu1 }
  0xe2   :  { %v167_v36 = vadd.f32 %v356_v35, %v290_v10  ;;  %v158_v38 = vpop.f32.mrb[5].mxu0  ;;  %v199_v39 = vadd.f32 %v364_v37, %v290_v10  ;;  %v190_v41 = vpop.f32.mrb[5].mxu1 }
  0xe3   :  { %v159_v40 = vadd.f32 %v290_v10, %v158_v38  ;;  %v357_v42 = vpop.f32.mrb[6].mxu0  ;;  %v191_v44 = vadd.f32 %v290_v10, %v190_v41  ;;  %v365_v46 = vpop.f32.mrb[6].mxu1 }
  0xe4   :  { %v329_v43 = vpack.c.bf16 %v167_v36, %v167_v36  ;;  %v170_v45 = vadd.f32 %v357_v42, %v290_v10  ;;  %v161_v47 = vpop.f32.mrb[7].mxu0  ;;  %v337_v48 = vpack.c.bf16 %v199_v39, %v199_v39  ;;  %v202_v50 = vadd.f32 %v365_v46, %v290_v10  ;;  %v193_v52 = vpop.f32.mrb[7].mxu1 }
  0xe5   :  { %v327_v49 = vpack.c.bf16 %v159_v40, %v159_v40  ;;  %v162_v51 = vadd.f32 %v290_v10, %v161_v47  ;;  %v335_v53 = vpack.c.bf16 %v191_v44, %v191_v44  ;;  %v194_v55 = vadd.f32 %v290_v10, %v193_v52 }
  0xe6   :  { %276 = vst.msk [vmem:[%s503_s3 + $0x18] sm:$0xf] %vm269_vm2, %v329_v43  ;;  %v330_v54 = vpack.c.bf16 %v170_v45, %v170_v45  ;;  %284 = vst.msk [vmem:[%s503_s3 + $0x38] sm:$0xf] %vm269_vm2, %v337_v48  ;;  %v338_v56 = vpack.c.bf16 %v202_v50, %v202_v50 }
  0xe7   :  { %274 = vst.msk [vmem:[%s503_s3 + $0x10] sm:$0xf] %vm269_vm2, %v327_v49  ;;  %v328_v57 = vpack.c.bf16 %v162_v51, %v162_v51  ;;  %282 = vst.msk [vmem:[%s503_s3 + $0x30] sm:$0xf] %vm269_vm2, %v335_v53  ;;  %v336_v58 = vpack.c.bf16 %v194_v55, %v194_v55 }
  0xe8   :  { %277 = vst.msk [vmem:[%s503_s3 + $0x1c] sm:$0xf] %vm269_vm2, %v330_v54  ;;  %285 = vst.msk [vmem:[%s503_s3 + $0x3c] sm:$0xf] %vm269_vm2, %v338_v56 }
  0xe9   :  { %275 = vst.msk [vmem:[%s503_s3 + $0x14] sm:$0xf] %vm269_vm2, %v328_v57  ;;  %283 = vst.msk [vmem:[%s503_s3 + $0x34] sm:$0xf] %vm269_vm2, %v336_v58 }

// kernel: mglnet_forward.72
= control target key start
LH: loop header
LB: loop body
LE: loop exit
PB: predicated region body
PF: predicated region fallthrough
CT: control target
= control target key end

     0   :  { %vm123_vm0 = vcmask 1041408   ;;  %vm98_vm1 = vcmask 31744   ;;  %vm336_vm2 = vcmask 125952   ;;  %s683_s1 = inlined_call_operand.vmem [shape: bf16[4,16], index: 1, kind: input, shape index: {}]   ;;  %s684_s0 = inlined_call_operand.vmem [shape: bf16[128,4], index: 0, kind: input, shape index: {}]   ;;  %s685_s3 = inlined_call_operand.vmem [shape: bf16[128,16], index: 3, kind: input, shape index: {}]   ;;  %s686_s2 = inlined_call_operand.vmem [shape: f32[1,16], index: 2, kind: input, shape index: {}]   ;;  %s687_s4 = inlined_call_operand.vmem [shape: bf16[128,16], index: 4, kind: output, shape index: {}]  }
   0x1   :  { %v34_v0 = vld [vmem:[%s683_s1] sm:$0x3]  ;;  %v478_v4 = vld [vmem:[%s684_s0 + $0x8] sm:$0xff]   ;;  %v480_v6 = vld [vmem:[%s684_s0 + $0x10] sm:$0xff]  }
   0x2   :  { %474 = vmatprep.subr.msk.bf16.mxu0 %vm123_vm0, %v34_v0  ;;  %475 = vmatprep.subr.msk.bf16.mxu1 %vm123_vm0, %v34_v0  ;;  %v125_v1 = vsel %vm123_vm0, %v34_v0, 0  ;;  %v476_v2 = vld [vmem:[%s684_s0] sm:$0xff]   ;;  %v479_v5 = vld [vmem:[%s684_s0 + $0x28] sm:$0xff]   ;;  %v481_v7 = vld [vmem:[%s684_s0 + $0x30] sm:$0xff]  }
   0x3   :  { %455 = vmatpush3.bf16.msra.mxu0 %v125_v1  ;;  %473 = vmatpush3.bf16.msra.mxu1 %v125_v1  ;;  %v477_v3 = vld [vmem:[%s684_s0 + $0x20] sm:$0xff]   ;;  %v482_v8 = vld [vmem:[%s684_s0 + $0x18] sm:$0xff]   ;;  %v438_v10 = vld [vmem:[%s685_s3 + $0x8] sm:$0xff]  }
   0x4   :  { %456 = vmatprep.mubr.msk.bf16.mxu0 %vm98_vm1, %v476_v2  ;;  %464 = vmatprep.mubr.msk.bf16.mxu1 %vm98_vm1, %v477_v3  ;;  %v483_v9 = vld [vmem:[%s684_s0 + $0x38] sm:$0xff]   ;;  %v442_v11 = vld [vmem:[%s685_s3 + $0x28] sm:$0xff]   ;;  %v407_v12 = vld [vmem:[%s685_s3] sm:$0xff]   ;;  %v412_v16 = vunpack.c.l.bf16 %v438_v10  ;;  %v413_v23 = vunpack.c.h.bf16 %v438_v10 }
   0x5   :  { %v441_v13 = vld [vmem:[%s685_s3 + $0x20] sm:$0xff]   ;;  %v559_v14 = vld [vmem:[%s685_s3 + $0x18] sm:$0xff]   ;;  %v428_v18 = vunpack.c.l.bf16 %v442_v11  ;;  %v408_v19 = vunpack.c.l.bf16 %v407_v12  ;;  %v574_v20 = vld [vmem:[%s685_s3 + $0x10] sm:$0xff]   ;;  %v429_v24 = vunpack.c.h.bf16 %v442_v11  ;;  %v409_v25 = vunpack.c.h.bf16 %v407_v12 }
   0x6   :  { %457 = vmatmul.mubr.msk.bf16.vlgmr.msra.gmra.mrb[0].mxu0 %vm98_vm1, %v478_v4  ;;  %465 = vmatmul.mubr.msk.bf16.vlgmr.msra.gmra.mrb[0].mxu1 %vm98_vm1, %v479_v5  ;;  %v564_v15 = vld [vmem:[%s685_s3 + $0x38] sm:$0xff]   ;;  %v569_v17 = vld [vmem:[%s686_s2] ss:$0 sm:$0xff]  ;;  %v579_v21 = vld [vmem:[%s685_s3 + $0x30] sm:$0xff]   ;;  %v424_v22 = vunpack.c.l.bf16 %v441_v13  ;;  %v425_v27 = vunpack.c.h.bf16 %v441_v13  ;;  %v420_v28 = vunpack.c.l.bf16 %v559_v14  ;;  %v416_v33 = vunpack.c.l.bf16 %v574_v20 }
   0x7   :  { %460 = vmatprep.mubr.msk.bf16.mxu0 %vm98_vm1, %v480_v6  ;;  %468 = vmatprep.mubr.msk.bf16.mxu1 %vm98_vm1, %v481_v7  ;;  %v436_v29 = vunpack.c.l.bf16 %v564_v15  ;;  %v432_v34 = vunpack.c.l.bf16 %v579_v21  ;;  %v421_v35 = vunpack.c.h.bf16 %v559_v14  ;;  %v437_v40 = vunpack.c.h.bf16 %v564_v15 }
   0x8   :  { %v417_v41 = vunpack.c.h.bf16 %v574_v20  ;;  %v433_v47 = vunpack.c.h.bf16 %v579_v21 }
   0xe   :  { %461 = vmatmul.mubr.msk.bf16.gmra.mrb[4].mxu0 %vm98_vm1, %v482_v8  ;;  %469 = vmatmul.mubr.msk.bf16.gmra.mrb[4].mxu1 %vm98_vm1, %v483_v9 }
  0xd9   :  { %v458_v26 = vpop.f32.mrb[0].mxu0  ;;  %v466_v31 = vpop.f32.mrb[0].mxu1 }
  0xda   :  { %v170_v30 = vadd.f32 %v458_v26, %v569_v17  ;;  %v161_v32 = vpop.f32.mrb[1].mxu0  ;;  %v202_v36 = vadd.f32 %v466_v31, %v569_v17  ;;  %v193_v38 = vpop.f32.mrb[1].mxu1 }
  0xdb   :  { %v162_v37 = vadd.f32 %v569_v17, %v161_v32  ;;  %v459_v39 = vpop.f32.mrb[2].mxu0  ;;  %v194_v43 = vadd.f32 %v569_v17, %v193_v38  ;;  %v467_v45 = vpop.f32.mrb[2].mxu1 }
  0xdc   :  { %v242_v42 = vadd.f32 %v412_v16, %v170_v30  ;;  %v173_v44 = vadd.f32 %v459_v39, %v569_v17  ;;  %v164_v46 = vpop.f32.mrb[3].mxu0  ;;  %v250_v48 = vadd.f32 %v428_v18, %v202_v36  ;;  %v205_v50 = vadd.f32 %v467_v45, %v569_v17  ;;  %v196_v52 = vpop.f32.mrb[3].mxu1 }
  0xdd   :  { %v240_v49 = vadd.f32 %v408_v19, %v162_v37  ;;  %v165_v51 = vadd.f32 %v569_v17, %v164_v46  ;;  %v248_v54 = vadd.f32 %v424_v22, %v194_v43  ;;  %v197_v56 = vadd.f32 %v569_v17, %v196_v52 }
  0xde   :  { %v258_v53 = vmax.f32 %v242_v42, 0.0  ;;  %v243_v55 = vadd.f32 %v413_v23, %v173_v44  ;;  %v266_v57 = vmax.f32 %v250_v48, 0.0  ;;  %v251_v59 = vadd.f32 %v429_v24, %v205_v50 }
  0xdf   :  { %v256_v58 = vmax.f32 %v240_v49, 0.0  ;;  %v241_v60 = vadd.f32 %v409_v25, %v165_v51  ;;  %v264_v62 = vmax.f32 %v248_v54, 0.0  ;;  %v249_v0 = vadd.f32 %v425_v27, %v197_v56 }
  0xe0   :  { %v392_v61 = vpack.c.bf16 %v258_v53, %v258_v53  ;;  %v259_v63 = vmax.f32 %v243_v55, 0.0  ;;  %v400_v1 = vpack.c.bf16 %v266_v57, %v266_v57  ;;  %v267_v3 = vmax.f32 %v251_v59, 0.0 }
  0xe1   :  { %v390_v2 = vpack.c.bf16 %v256_v58, %v256_v58  ;;  %v257_v4 = vmax.f32 %v241_v60, 0.0  ;;  %v462_v5 = vpop.f32.mrb[4].mxu0  ;;  %v398_v6 = vpack.c.bf16 %v264_v62, %v264_v62  ;;  %v265_v8 = vmax.f32 %v249_v0, 0.0  ;;  %v470_v10 = vpop.f32.mrb[4].mxu1 }
  0xe2   :  { %339 = vst.msk [vmem:[%s687_s4 + $0x8] sm:$0xf] %vm336_vm2, %v392_v61  ;;  %v393_v7 = vpack.c.bf16 %v259_v63, %v259_v63  ;;  %v186_v9 = vadd.f32 %v462_v5, %v569_v17  ;;  %v177_v11 = vpop.f32.mrb[5].mxu0  ;;  %347 = vst.msk [vmem:[%s687_s4 + $0x28] sm:$0xf] %vm336_vm2, %v400_v1  ;;  %v401_v12 = vpack.c.bf16 %v267_v3, %v267_v3  ;;  %v209_v19 = vpop.f32.mrb[5].mxu1 }
  0xe3   :  { %337 = vst.msk [vmem:[%s687_s4] sm:$0xf] %vm336_vm2, %v390_v2  ;;  %v391_v13 = vpack.c.bf16 %v257_v4, %v257_v4  ;;  %v218_v16 = vadd.f32 %v470_v10, %v569_v17  ;;  %v178_v18 = vadd.f32 %v569_v17, %v177_v11  ;;  %v463_v22 = vpop.f32.mrb[6].mxu0  ;;  %345 = vst.msk [vmem:[%s687_s4 + $0x20] sm:$0xf] %vm336_vm2, %v398_v6  ;;  %v471_v27 = vpop.f32.mrb[6].mxu1 }
  0xe4   :  { %340 = vst.msk [vmem:[%s687_s4 + $0xc] sm:$0xf] %vm336_vm2, %v393_v7  ;;  %v399_v23 = vpack.c.bf16 %v265_v8, %v265_v8  ;;  %v246_v24 = vadd.f32 %v420_v28, %v186_v9  ;;  %v210_v25 = vadd.f32 %v569_v17, %v209_v19  ;;  %v189_v26 = vadd.f32 %v463_v22, %v569_v17  ;;  %v180_v30 = vpop.f32.mrb[7].mxu0  ;;  %v212_v37 = vpop.f32.mrb[7].mxu1 }
  0xe5   :  { %348 = vst.msk [vmem:[%s687_s4 + $0x2c] sm:$0xf] %vm336_vm2, %v401_v12  ;;  %338 = vst.msk [vmem:[%s687_s4 + $0x4] sm:$0xf] %vm336_vm2, %v391_v13  ;;  %v254_v31 = vadd.f32 %v436_v29, %v218_v16  ;;  %v244_v28 = vadd.f32 %v416_v33, %v178_v18  ;;  %v221_v32 = vadd.f32 %v471_v27, %v569_v17 }
  0xe6   :  { %v181_v36 = vadd.f32 %v569_v17, %v180_v30  ;;  %346 = vst.msk [vmem:[%s687_s4 + $0x24] sm:$0xf] %vm336_vm2, %v399_v23  ;;  %v262_v38 = vmax.f32 %v246_v24, 0.0  ;;  %v252_v39 = vadd.f32 %v432_v34, %v210_v25  ;;  %v247_v29 = vadd.f32 %v421_v35, %v189_v26 }
  0xe7   :  { %v213_v42 = vadd.f32 %v569_v17, %v212_v37  ;;  %v270_v33 = vmax.f32 %v254_v31, 0.0  ;;  %v260_v43 = vmax.f32 %v244_v28, 0.0  ;;  %v255_v44 = vadd.f32 %v437_v40, %v221_v32 }
  0xe8   :  { %v245_v45 = vadd.f32 %v417_v41, %v181_v36  ;;  %v396_v46 = vpack.c.bf16 %v262_v38, %v262_v38  ;;  %v268_v48 = vmax.f32 %v252_v39, 0.0  ;;  %v263_v49 = vmax.f32 %v247_v29, 0.0 }
  0xe9   :  { %v253_v50 = vadd.f32 %v433_v47, %v213_v42  ;;  %v404_v34 = vpack.c.bf16 %v270_v33, %v270_v33  ;;  %v394_v51 = vpack.c.bf16 %v260_v43, %v260_v43  ;;  %v271_v14 = vmax.f32 %v255_v44, 0.0 }
  0xea   :  { %v261_v35 = vmax.f32 %v245_v45, 0.0  ;;  %343 = vst.msk [vmem:[%s687_s4 + $0x18] sm:$0xf] %vm336_vm2, %v396_v46  ;;  %v402_v15 = vpack.c.bf16 %v268_v48, %v268_v48  ;;  %v397_v17 = vpack.c.bf16 %v263_v49, %v263_v49 }
  0xeb   :  { %v269_v40 = vmax.f32 %v253_v50, 0.0  ;;  %351 = vst.msk [vmem:[%s687_s4 + $0x38] sm:$0xf] %vm336_vm2, %v404_v34  ;;  %341 = vst.msk [vmem:[%s687_s4 + $0x10] sm:$0xf] %vm336_vm2, %v394_v51  ;;  %v405_v20 = vpack.c.bf16 %v271_v14, %v271_v14 }
  0xec   :  { %v395_v21 = vpack.c.bf16 %v261_v35, %v261_v35  ;;  %349 = vst.msk [vmem:[%s687_s4 + $0x30] sm:$0xf] %vm336_vm2, %v402_v15  ;;  %344 = vst.msk [vmem:[%s687_s4 + $0x1c] sm:$0xf] %vm336_vm2, %v397_v17 }
  0xed   :  { %v403_v41 = vpack.c.bf16 %v269_v40, %v269_v40  ;;  %352 = vst.msk [vmem:[%s687_s4 + $0x3c] sm:$0xf] %vm336_vm2, %v405_v20 }
  0xee   :  { %342 = vst.msk [vmem:[%s687_s4 + $0x14] sm:$0xf] %vm336_vm2, %v395_v21 }
  0xef   :  { %350 = vst.msk [vmem:[%s687_s4 + $0x34] sm:$0xf] %vm336_vm2, %v403_v41 }

// kernel: mglnet_forward.70
= control target key start
LH: loop header
LB: loop body
LE: loop exit
PB: predicated region body
PF: predicated region fallthrough
CT: control target
= control target key end

     0   :  { %vm98_vm0 = vcmask 293888   ;;  %vm123_vm1 = vcmask 1041408   ;;  %vm304_vm2 = vcmask 27648   ;;  %s557_s1 = inlined_call_operand.vmem [shape: bf16[36,4], index: 1, kind: input, shape index: {}]   ;;  %s558_s0 = inlined_call_operand.vmem [shape: bf16[128,36], index: 0, kind: input, shape index: {}]   ;;  %s559_s2 = inlined_call_operand.vmem [shape: f32[1,4], index: 2, kind: input, shape index: {}]   ;;  %s560_s3 = inlined_call_operand.vmem [shape: bf16[128,4], index: 3, kind: output, shape index: {}]  }
   0x1   :  { %v418_v0 = vld [vmem:[%s557_s1] sm:$0xff]   ;;  %v419_v1 = vld [vmem:[%s557_s1 + $0x8] sm:$0xff]   ;;  %v420_v2 = vld [vmem:[%s557_s1 + $0x10] ss:$0 sps:$4 sm:$0x33]  }
   0x2   :  { %388 = vmatprep.subr.bf16.mxu0 %v418_v0  ;;  %410 = vmatprep.subr.bf16.mxu1 %v418_v0  ;;  %v421_v3 = vld [vmem:[%s558_s0] sm:$0xff]   ;;  %v125_v5 = vsel %vm123_vm1, %v420_v2, 0  ;;  %v423_v6 = vld [vmem:[%s558_s0 + $0x8] sm:$0xff]   ;;  %v425_v8 = vld [vmem:[%s558_s0 + $0x10] sm:$0xff]  }
   0x3   :  { %389 = vmatpush3.bf16.msra.mxu0 %v418_v0  ;;  %413 = vmatpush3.bf16.msra.mxu1 %v418_v0  ;;  %v422_v4 = vld [vmem:[%s558_s0 + $0x20] sm:$0xff]   ;;  %v424_v7 = vld [vmem:[%s558_s0 + $0x28] sm:$0xff]   ;;  %v426_v9 = vld [vmem:[%s558_s0 + $0x30] sm:$0xff]  }
   0x4   :  { %390 = vmatprep.subr.bf16.mxu0 %v419_v1  ;;  %411 = vmatprep.subr.bf16.mxu1 %v419_v1  ;;  %v427_v10 = vld [vmem:[%s558_s0 + $0x18] sm:$0xff]   ;;  %v325_v12 = vld [vmem:[%s559_s2] ss:$0 sm:$0xff] }
   0x5   :  { %394 = vmatprep.mubr.msk.bf16.mxu0 %vm98_vm0, %v421_v3  ;;  %402 = vmatprep.mubr.msk.bf16.mxu1 %vm98_vm0, %v422_v4  ;;  %v428_v11 = vld [vmem:[%s558_s0 + $0x38] sm:$0xff]  }
   0x7   :  { %391 = vmatpush3.bf16.msra.mxu0 %v419_v1  ;;  %414 = vmatpush3.bf16.msra.mxu1 %v419_v1 }
   0x8   :  { %416 = vmatprep.subr.msk.bf16.mxu0 %vm123_vm1, %v420_v2  ;;  %417 = vmatprep.subr.msk.bf16.mxu1 %vm123_vm1, %v420_v2 }
   0xb   :  { %393 = vmatpush3.bf16.msra.mxu0 %v125_v5  ;;  %415 = vmatpush3.bf16.msra.mxu1 %v125_v5 }
   0xe   :  { %395 = vmatmul.mubr.msk.bf16.vlgmr.msra.gmra.mrb[0].mxu0 %vm98_vm0, %v423_v6  ;;  %403 = vmatmul.mubr.msk.bf16.vlgmr.msra.gmra.mrb[0].mxu1 %vm98_vm0, %v424_v7 }
   0xf   :  { %398 = vmatprep.mubr.msk.bf16.mxu0 %vm98_vm0, %v425_v8  ;;  %406 = vmatprep.mubr.msk.bf16.mxu1 %vm98_vm0, %v426_v9 }
  0x16   :  { %399 = vmatmul.mubr.msk.bf16.gmra.mrb[4].mxu0 %vm98_vm0, %v427_v10  ;;  %407 = vmatmul.mubr.msk.bf16.gmra.mrb[4].mxu1 %vm98_vm0, %v428_v11 }
  0xe1   :  { %v396_v13 = vpop.f32.mrb[0].mxu0  ;;  %v404_v14 = vpop.f32.mrb[0].mxu1 }
  0xe2   :  { %v170_v15 = vadd.f32 %v396_v13, %v325_v12  ;;  %v202_v16 = vadd.f32 %v404_v14, %v325_v12  ;;  %v161_v17 = vpop.f32.mrb[1].mxu0  ;;  %v193_v18 = vpop.f32.mrb[1].mxu1 }
  0xe3   :  { %v162_v19 = vadd.f32 %v325_v12, %v161_v17  ;;  %v194_v20 = vadd.f32 %v325_v12, %v193_v18  ;;  %v397_v21 = vpop.f32.mrb[2].mxu0  ;;  %v405_v22 = vpop.f32.mrb[2].mxu1 }
  0xe4   :  { %v226_v23 = vmax.f32 %v170_v15, 0.0  ;;  %v234_v24 = vmax.f32 %v202_v16, 0.0  ;;  %v173_v25 = vadd.f32 %v397_v21, %v325_v12  ;;  %v205_v26 = vadd.f32 %v405_v22, %v325_v12  ;;  %v164_v27 = vpop.f32.mrb[3].mxu0  ;;  %v196_v28 = vpop.f32.mrb[3].mxu1 }
  0xe5   :  { %v224_v29 = vmax.f32 %v162_v19, 0.0  ;;  %v232_v30 = vmax.f32 %v194_v20, 0.0  ;;  %v165_v31 = vadd.f32 %v325_v12, %v164_v27  ;;  %v197_v32 = vadd.f32 %v325_v12, %v196_v28 }
  0xe6   :  { %v363_v33 = vpack.c.bf16 %v226_v23, %v226_v23  ;;  %v371_v34 = vpack.c.bf16 %v234_v24, %v234_v24  ;;  %v227_v35 = vmax.f32 %v173_v25, 0.0  ;;  %v235_v36 = vmax.f32 %v205_v26, 0.0 }
  0xe7   :  { %v361_v37 = vpack.c.bf16 %v224_v29, %v224_v29  ;;  %v369_v38 = vpack.c.bf16 %v232_v30, %v232_v30  ;;  %v225_v39 = vmax.f32 %v165_v31, 0.0  ;;  %v233_v40 = vmax.f32 %v197_v32, 0.0 }
  0xe8   :  { %307 = vst.msk [vmem:[%s560_s3 + $0x8] sm:$0xf] %vm304_vm2, %v363_v33  ;;  %315 = vst.msk [vmem:[%s560_s3 + $0x28] sm:$0xf] %vm304_vm2, %v371_v34  ;;  %v364_v41 = vpack.c.bf16 %v227_v35, %v227_v35  ;;  %v372_v42 = vpack.c.bf16 %v235_v36, %v235_v36 }
  0xe9   :  { %305 = vst.msk [vmem:[%s560_s3] sm:$0xf] %vm304_vm2, %v361_v37  ;;  %313 = vst.msk [vmem:[%s560_s3 + $0x20] sm:$0xf] %vm304_vm2, %v369_v38  ;;  %v362_v43 = vpack.c.bf16 %v225_v39, %v225_v39  ;;  %v370_v44 = vpack.c.bf16 %v233_v40, %v233_v40  ;;  %v400_v45 = vpop.f32.mrb[4].mxu0  ;;  %v408_v46 = vpop.f32.mrb[4].mxu1 }
  0xea   :  { %308 = vst.msk [vmem:[%s560_s3 + $0xc] sm:$0xf] %vm304_vm2, %v364_v41  ;;  %316 = vst.msk [vmem:[%s560_s3 + $0x2c] sm:$0xf] %vm304_vm2, %v372_v42  ;;  %v186_v47 = vadd.f32 %v400_v45, %v325_v12  ;;  %v218_v48 = vadd.f32 %v408_v46, %v325_v12  ;;  %v177_v49 = vpop.f32.mrb[5].mxu0  ;;  %v209_v50 = vpop.f32.mrb[5].mxu1 }
  0xeb   :  { %306 = vst.msk [vmem:[%s560_s3 + $0x4] sm:$0xf] %vm304_vm2, %v362_v43  ;;  %314 = vst.msk [vmem:[%s560_s3 + $0x24] sm:$0xf] %vm304_vm2, %v370_v44  ;;  %v178_v51 = vadd.f32 %v325_v12, %v177_v49  ;;  %v210_v52 = vadd.f32 %v325_v12, %v209_v50  ;;  %v401_v53 = vpop.f32.mrb[6].mxu0  ;;  %v409_v54 = vpop.f32.mrb[6].mxu1 }
  0xec   :  { %v230_v55 = vmax.f32 %v186_v47, 0.0  ;;  %v238_v56 = vmax.f32 %v218_v48, 0.0  ;;  %v189_v57 = vadd.f32 %v401_v53, %v325_v12  ;;  %v221_v58 = vadd.f32 %v409_v54, %v325_v12  ;;  %v180_v59 = vpop.f32.mrb[7].mxu0  ;;  %v212_v60 = vpop.f32.mrb[7].mxu1 }
  0xed   :  { %v228_v61 = vmax.f32 %v178_v51, 0.0  ;;  %v236_v62 = vmax.f32 %v210_v52, 0.0  ;;  %v181_v63 = vadd.f32 %v325_v12, %v180_v59  ;;  %v213_v0 = vadd.f32 %v325_v12, %v212_v60 }
  0xee   :  { %v367_v1 = vpack.c.bf16 %v230_v55, %v230_v55  ;;  %v375_v2 = vpack.c.bf16 %v238_v56, %v238_v56  ;;  %v231_v3 = vmax.f32 %v189_v57, 0.0  ;;  %v239_v4 = vmax.f32 %v221_v58, 0.0 }
  0xef   :  { %v365_v5 = vpack.c.bf16 %v228_v61, %v228_v61  ;;  %v373_v6 = vpack.c.bf16 %v236_v62, %v236_v62  ;;  %v229_v7 = vmax.f32 %v181_v63, 0.0  ;;  %v237_v8 = vmax.f32 %v213_v0, 0.0 }
  0xf0   :  { %311 = vst.msk [vmem:[%s560_s3 + $0x18] sm:$0xf] %vm304_vm2, %v367_v1  ;;  %319 = vst.msk [vmem:[%s560_s3 + $0x38] sm:$0xf] %vm304_vm2, %v375_v2  ;;  %v368_v9 = vpack.c.bf16 %v231_v3, %v231_v3  ;;  %v376_v10 = vpack.c.bf16 %v239_v4, %v239_v4 }
  0xf1   :  { %309 = vst.msk [vmem:[%s560_s3 + $0x10] sm:$0xf] %vm304_vm2, %v365_v5  ;;  %317 = vst.msk [vmem:[%s560_s3 + $0x30] sm:$0xf] %vm304_vm2, %v373_v6  ;;  %v366_v11 = vpack.c.bf16 %v229_v7, %v229_v7  ;;  %v374_v12 = vpack.c.bf16 %v237_v8, %v237_v8 }
  0xf2   :  { %312 = vst.msk [vmem:[%s560_s3 + $0x1c] sm:$0xf] %vm304_vm2, %v368_v9  ;;  %320 = vst.msk [vmem:[%s560_s3 + $0x3c] sm:$0xf] %vm304_vm2, %v376_v10 }
  0xf3   :  { %310 = vst.msk [vmem:[%s560_s3 + $0x14] sm:$0xf] %vm304_vm2, %v366_v11  ;;  %318 = vst.msk [vmem:[%s560_s3 + $0x34] sm:$0xf] %vm304_vm2, %v374_v12 }

// kernel: mglnet_forward.79
= control target key start
LH: loop header
LB: loop body
LE: loop exit
PB: predicated region body
PF: predicated region fallthrough
CT: control target
= control target key end

     0   :  { %vm86_vm0 = vcmask 130048   ;;  %vm288_vm1 = vcmask 60416   ;;  %s519_s1 = inlined_call_operand.vmem [shape: bf16[16,8], index: 1, kind: input, shape index: {}]   ;;  %s520_s0 = inlined_call_operand.vmem [shape: bf16[128,16], index: 0, kind: input, shape index: {}]   ;;  %s521_s2 = inlined_call_operand.vmem [shape: f32[1,8], index: 2, kind: input, shape index: {}]   ;;  %s522_s3 = inlined_call_operand.vmem [shape: bf16[128,8], index: 3, kind: output, shape index: {}]  }
   0x1   :  { %v388_v0 = vld [vmem:[%s519_s1] sm:$0xff]   ;;  %v391_v3 = vld [vmem:[%s520_s0 + $0x8] sm:$0xff]   ;;  %v393_v5 = vld [vmem:[%s520_s0 + $0x10] sm:$0xff]  }
   0x2   :  { %v389_v1 = vld [vmem:[%s520_s0] sm:$0xff]   ;;  %368 = vmatprep.subr.bf16.mxu0 %v388_v0  ;;  %386 = vmatprep.subr.bf16.mxu1 %v388_v0  ;;  %v392_v4 = vld [vmem:[%s520_s0 + $0x28] sm:$0xff]   ;;  %v394_v6 = vld [vmem:[%s520_s0 + $0x30] sm:$0xff]  }
   0x3   :  { %v390_v2 = vld [vmem:[%s520_s0 + $0x20] sm:$0xff]   ;;  %369 = vmatpush3.bf16.msra.mxu0 %v388_v0  ;;  %387 = vmatpush3.bf16.msra.mxu1 %v388_v0  ;;  %v395_v7 = vld [vmem:[%s520_s0 + $0x18] sm:$0xff]  }
   0x4   :  { %370 = vmatprep.mubr.msk.bf16.mxu0 %vm86_vm0, %v389_v1  ;;  %378 = vmatprep.mubr.msk.bf16.mxu1 %vm86_vm0, %v390_v2  ;;  %v396_v8 = vld [vmem:[%s520_s0 + $0x38] sm:$0xff]   ;;  %v309_v9 = vld [vmem:[%s521_s2] ss:$0 sm:$0xff] }
   0x6   :  { %371 = vmatmul.mubr.msk.bf16.vlgmr.msra.gmra.mrb[0].mxu0 %vm86_vm0, %v391_v3  ;;  %379 = vmatmul.mubr.msk.bf16.vlgmr.msra.gmra.mrb[0].mxu1 %vm86_vm0, %v392_v4 }
   0x7   :  { %374 = vmatprep.mubr.msk.bf16.mxu0 %vm86_vm0, %v393_v5  ;;  %382 = vmatprep.mubr.msk.bf16.mxu1 %vm86_vm0, %v394_v6 }
   0xe   :  { %375 = vmatmul.mubr.msk.bf16.gmra.mrb[4].mxu0 %vm86_vm0, %v395_v7  ;;  %383 = vmatmul.mubr.msk.bf16.gmra.mrb[4].mxu1 %vm86_vm0, %v396_v8 }
  0xd9   :  { %v372_v10 = vpop.f32.mrb[0].mxu0  ;;  %v380_v11 = vpop.f32.mrb[0].mxu1 }
  0xda   :  { %v154_v12 = vadd.f32 %v372_v10, %v309_v9  ;;  %v186_v13 = vadd.f32 %v380_v11, %v309_v9  ;;  %v145_v14 = vpop.f32.mrb[1].mxu0  ;;  %v177_v15 = vpop.f32.mrb[1].mxu1 }
  0xdb   :  { %v146_v16 = vadd.f32 %v309_v9, %v145_v14  ;;  %v178_v17 = vadd.f32 %v309_v9, %v177_v15  ;;  %v373_v18 = vpop.f32.mrb[2].mxu0  ;;  %v381_v19 = vpop.f32.mrb[2].mxu1 }
  0xdc   :  { %v210_v20 = vmax.f32 %v154_v12, 0.0  ;;  %v218_v21 = vmax.f32 %v186_v13, 0.0  ;;  %v157_v22 = vadd.f32 %v373_v18, %v309_v9  ;;  %v189_v23 = vadd.f32 %v381_v19, %v309_v9  ;;  %v148_v24 = vpop.f32.mrb[3].mxu0  ;;  %v180_v25 = vpop.f32.mrb[3].mxu1 }
  0xdd   :  { %v208_v26 = vmax.f32 %v146_v16, 0.0  ;;  %v216_v27 = vmax.f32 %v178_v17, 0.0  ;;  %v149_v28 = vadd.f32 %v309_v9, %v148_v24  ;;  %v181_v29 = vadd.f32 %v309_v9, %v180_v25 }
  0xde   :  { %v345_v30 = vpack.c.bf16 %v210_v20, %v210_v20  ;;  %v353_v31 = vpack.c.bf16 %v218_v21, %v218_v21  ;;  %v211_v32 = vmax.f32 %v157_v22, 0.0  ;;  %v219_v33 = vmax.f32 %v189_v23, 0.0 }
  0xdf   :  { %v343_v34 = vpack.c.bf16 %v208_v26, %v208_v26  ;;  %v351_v35 = vpack.c.bf16 %v216_v27, %v216_v27  ;;  %v209_v36 = vmax.f32 %v149_v28, 0.0  ;;  %v217_v37 = vmax.f32 %v181_v29, 0.0 }
  0xe0   :  { %291 = vst.msk [vmem:[%s522_s3 + $0x8] sm:$0xf] %vm288_vm1, %v345_v30  ;;  %299 = vst.msk [vmem:[%s522_s3 + $0x28] sm:$0xf] %vm288_vm1, %v353_v31  ;;  %v346_v38 = vpack.c.bf16 %v211_v32, %v211_v32  ;;  %v354_v39 = vpack.c.bf16 %v219_v33, %v219_v33 }
  0xe1   :  { %289 = vst.msk [vmem:[%s522_s3] sm:$0xf] %vm288_vm1, %v343_v34  ;;  %297 = vst.msk [vmem:[%s522_s3 + $0x20] sm:$0xf] %vm288_vm1, %v351_v35  ;;  %v344_v40 = vpack.c.bf16 %v209_v36, %v209_v36  ;;  %v352_v41 = vpack.c.bf16 %v217_v37, %v217_v37  ;;  %v376_v42 = vpop.f32.mrb[4].mxu0  ;;  %v384_v43 = vpop.f32.mrb[4].mxu1 }
  0xe2   :  { %292 = vst.msk [vmem:[%s522_s3 + $0xc] sm:$0xf] %vm288_vm1, %v346_v38  ;;  %300 = vst.msk [vmem:[%s522_s3 + $0x2c] sm:$0xf] %vm288_vm1, %v354_v39  ;;  %v170_v44 = vadd.f32 %v376_v42, %v309_v9  ;;  %v202_v45 = vadd.f32 %v384_v43, %v309_v9  ;;  %v161_v46 = vpop.f32.mrb[5].mxu0  ;;  %v193_v47 = vpop.f32.mrb[5].mxu1 }
  0xe3   :  { %290 = vst.msk [vmem:[%s522_s3 + $0x4] sm:$0xf] %vm288_vm1, %v344_v40  ;;  %298 = vst.msk [vmem:[%s522_s3 + $0x24] sm:$0xf] %vm288_vm1, %v352_v41  ;;  %v162_v48 = vadd.f32 %v309_v9, %v161_v46  ;;  %v194_v49 = vadd.f32 %v309_v9, %v193_v47  ;;  %v377_v50 = vpop.f32.mrb[6].mxu0  ;;  %v385_v51 = vpop.f32.mrb[6].mxu1 }
  0xe4   :  { %v214_v52 = vmax.f32 %v170_v44, 0.0  ;;  %v222_v53 = vmax.f32 %v202_v45, 0.0  ;;  %v173_v54 = vadd.f32 %v377_v50, %v309_v9  ;;  %v205_v55 = vadd.f32 %v385_v51, %v309_v9  ;;  %v164_v56 = vpop.f32.mrb[7].mxu0  ;;  %v196_v57 = vpop.f32.mrb[7].mxu1 }
  0xe5   :  { %v212_v58 = vmax.f32 %v162_v48, 0.0  ;;  %v220_v59 = vmax.f32 %v194_v49, 0.0  ;;  %v165_v60 = vadd.f32 %v309_v9, %v164_v56  ;;  %v197_v61 = vadd.f32 %v309_v9, %v196_v57 }
  0xe6   :  { %v349_v62 = vpack.c.bf16 %v214_v52, %v214_v52  ;;  %v357_v63 = vpack.c.bf16 %v222_v53, %v222_v53  ;;  %v215_v0 = vmax.f32 %v173_v54, 0.0  ;;  %v223_v1 = vmax.f32 %v205_v55, 0.0 }
  0xe7   :  { %v347_v2 = vpack.c.bf16 %v212_v58, %v212_v58  ;;  %v355_v3 = vpack.c.bf16 %v220_v59, %v220_v59  ;;  %v213_v4 = vmax.f32 %v165_v60, 0.0  ;;  %v221_v5 = vmax.f32 %v197_v61, 0.0 }
  0xe8   :  { %295 = vst.msk [vmem:[%s522_s3 + $0x18] sm:$0xf] %vm288_vm1, %v349_v62  ;;  %303 = vst.msk [vmem:[%s522_s3 + $0x38] sm:$0xf] %vm288_vm1, %v357_v63  ;;  %v350_v6 = vpack.c.bf16 %v215_v0, %v215_v0  ;;  %v358_v7 = vpack.c.bf16 %v223_v1, %v223_v1 }
  0xe9   :  { %293 = vst.msk [vmem:[%s522_s3 + $0x10] sm:$0xf] %vm288_vm1, %v347_v2  ;;  %301 = vst.msk [vmem:[%s522_s3 + $0x30] sm:$0xf] %vm288_vm1, %v355_v3  ;;  %v348_v8 = vpack.c.bf16 %v213_v4, %v213_v4  ;;  %v356_v9 = vpack.c.bf16 %v221_v5, %v221_v5 }
  0xea   :  { %296 = vst.msk [vmem:[%s522_s3 + $0x1c] sm:$0xf] %vm288_vm1, %v350_v6  ;;  %304 = vst.msk [vmem:[%s522_s3 + $0x3c] sm:$0xf] %vm288_vm1, %v358_v7 }
  0xeb   :  { %294 = vst.msk [vmem:[%s522_s3 + $0x14] sm:$0xf] %vm288_vm1, %v348_v8  ;;  %302 = vst.msk [vmem:[%s522_s3 + $0x34] sm:$0xf] %vm288_vm1, %v356_v9 }

// kernel: mglnet_forward.73
= control target key start
LH: loop header
LB: loop body
LE: loop exit
PB: predicated region body
PF: predicated region fallthrough
CT: control target
= control target key end

     0   :  { %vm86_vm0 = vcmask 130048   ;;  %vm288_vm1 = vcmask 27648   ;;  %s519_s1 = inlined_call_operand.vmem [shape: bf16[16,4], index: 1, kind: input, shape index: {}]   ;;  %s520_s0 = inlined_call_operand.vmem [shape: bf16[128,16], index: 0, kind: input, shape index: {}]   ;;  %s521_s2 = inlined_call_operand.vmem [shape: f32[1,4], index: 2, kind: input, shape index: {}]   ;;  %s522_s3 = inlined_call_operand.vmem [shape: bf16[128,4], index: 3, kind: output, shape index: {}]  }
   0x1   :  { %v388_v0 = vld [vmem:[%s519_s1] sm:$0xff]   ;;  %v391_v3 = vld [vmem:[%s520_s0 + $0x8] sm:$0xff]   ;;  %v393_v5 = vld [vmem:[%s520_s0 + $0x10] sm:$0xff]  }
   0x2   :  { %v389_v1 = vld [vmem:[%s520_s0] sm:$0xff]   ;;  %368 = vmatprep.subr.bf16.mxu0 %v388_v0  ;;  %386 = vmatprep.subr.bf16.mxu1 %v388_v0  ;;  %v392_v4 = vld [vmem:[%s520_s0 + $0x28] sm:$0xff]   ;;  %v394_v6 = vld [vmem:[%s520_s0 + $0x30] sm:$0xff]  }
   0x3   :  { %v390_v2 = vld [vmem:[%s520_s0 + $0x20] sm:$0xff]   ;;  %369 = vmatpush3.bf16.msra.mxu0 %v388_v0  ;;  %387 = vmatpush3.bf16.msra.mxu1 %v388_v0  ;;  %v395_v7 = vld [vmem:[%s520_s0 + $0x18] sm:$0xff]  }
   0x4   :  { %370 = vmatprep.mubr.msk.bf16.mxu0 %vm86_vm0, %v389_v1  ;;  %378 = vmatprep.mubr.msk.bf16.mxu1 %vm86_vm0, %v390_v2  ;;  %v396_v8 = vld [vmem:[%s520_s0 + $0x38] sm:$0xff]   ;;  %v309_v9 = vld [vmem:[%s521_s2] ss:$0 sm:$0xff] }
   0x6   :  { %371 = vmatmul.mubr.msk.bf16.vlgmr.msra.gmra.mrb[0].mxu0 %vm86_vm0, %v391_v3  ;;  %379 = vmatmul.mubr.msk.bf16.vlgmr.msra.gmra.mrb[0].mxu1 %vm86_vm0, %v392_v4 }
   0x7   :  { %374 = vmatprep.mubr.msk.bf16.mxu0 %vm86_vm0, %v393_v5  ;;  %382 = vmatprep.mubr.msk.bf16.mxu1 %vm86_vm0, %v394_v6 }
   0xe   :  { %375 = vmatmul.mubr.msk.bf16.gmra.mrb[4].mxu0 %vm86_vm0, %v395_v7  ;;  %383 = vmatmul.mubr.msk.bf16.gmra.mrb[4].mxu1 %vm86_vm0, %v396_v8 }
  0xd9   :  { %v372_v10 = vpop.f32.mrb[0].mxu0  ;;  %v380_v11 = vpop.f32.mrb[0].mxu1 }
  0xda   :  { %v154_v12 = vadd.f32 %v372_v10, %v309_v9  ;;  %v186_v13 = vadd.f32 %v380_v11, %v309_v9  ;;  %v145_v14 = vpop.f32.mrb[1].mxu0  ;;  %v177_v15 = vpop.f32.mrb[1].mxu1 }
  0xdb   :  { %v146_v16 = vadd.f32 %v309_v9, %v145_v14  ;;  %v178_v17 = vadd.f32 %v309_v9, %v177_v15  ;;  %v373_v18 = vpop.f32.mrb[2].mxu0  ;;  %v381_v19 = vpop.f32.mrb[2].mxu1 }
  0xdc   :  { %v210_v20 = vmax.f32 %v154_v12, 0.0  ;;  %v218_v21 = vmax.f32 %v186_v13, 0.0  ;;  %v157_v22 = vadd.f32 %v373_v18, %v309_v9  ;;  %v189_v23 = vadd.f32 %v381_v19, %v309_v9  ;;  %v148_v24 = vpop.f32.mrb[3].mxu0  ;;  %v180_v25 = vpop.f32.mrb[3].mxu1 }
  0xdd   :  { %v208_v26 = vmax.f32 %v146_v16, 0.0  ;;  %v216_v27 = vmax.f32 %v178_v17, 0.0  ;;  %v149_v28 = vadd.f32 %v309_v9, %v148_v24  ;;  %v181_v29 = vadd.f32 %v309_v9, %v180_v25 }
  0xde   :  { %v345_v30 = vpack.c.bf16 %v210_v20, %v210_v20  ;;  %v353_v31 = vpack.c.bf16 %v218_v21, %v218_v21  ;;  %v211_v32 = vmax.f32 %v157_v22, 0.0  ;;  %v219_v33 = vmax.f32 %v189_v23, 0.0 }
  0xdf   :  { %v343_v34 = vpack.c.bf16 %v208_v26, %v208_v26  ;;  %v351_v35 = vpack.c.bf16 %v216_v27, %v216_v27  ;;  %v209_v36 = vmax.f32 %v149_v28, 0.0  ;;  %v217_v37 = vmax.f32 %v181_v29, 0.0 }
  0xe0   :  { %291 = vst.msk [vmem:[%s522_s3 + $0x8] sm:$0xf] %vm288_vm1, %v345_v30  ;;  %299 = vst.msk [vmem:[%s522_s3 + $0x28] sm:$0xf] %vm288_vm1, %v353_v31  ;;  %v346_v38 = vpack.c.bf16 %v211_v32, %v211_v32  ;;  %v354_v39 = vpack.c.bf16 %v219_v33, %v219_v33 }
  0xe1   :  { %289 = vst.msk [vmem:[%s522_s3] sm:$0xf] %vm288_vm1, %v343_v34  ;;  %297 = vst.msk [vmem:[%s522_s3 + $0x20] sm:$0xf] %vm288_vm1, %v351_v35  ;;  %v344_v40 = vpack.c.bf16 %v209_v36, %v209_v36  ;;  %v352_v41 = vpack.c.bf16 %v217_v37, %v217_v37  ;;  %v376_v42 = vpop.f32.mrb[4].mxu0  ;;  %v384_v43 = vpop.f32.mrb[4].mxu1 }
  0xe2   :  { %292 = vst.msk [vmem:[%s522_s3 + $0xc] sm:$0xf] %vm288_vm1, %v346_v38  ;;  %300 = vst.msk [vmem:[%s522_s3 + $0x2c] sm:$0xf] %vm288_vm1, %v354_v39  ;;  %v170_v44 = vadd.f32 %v376_v42, %v309_v9  ;;  %v202_v45 = vadd.f32 %v384_v43, %v309_v9  ;;  %v161_v46 = vpop.f32.mrb[5].mxu0  ;;  %v193_v47 = vpop.f32.mrb[5].mxu1 }
  0xe3   :  { %290 = vst.msk [vmem:[%s522_s3 + $0x4] sm:$0xf] %vm288_vm1, %v344_v40  ;;  %298 = vst.msk [vmem:[%s522_s3 + $0x24] sm:$0xf] %vm288_vm1, %v352_v41  ;;  %v162_v48 = vadd.f32 %v309_v9, %v161_v46  ;;  %v194_v49 = vadd.f32 %v309_v9, %v193_v47  ;;  %v377_v50 = vpop.f32.mrb[6].mxu0  ;;  %v385_v51 = vpop.f32.mrb[6].mxu1 }
  0xe4   :  { %v214_v52 = vmax.f32 %v170_v44, 0.0  ;;  %v222_v53 = vmax.f32 %v202_v45, 0.0  ;;  %v173_v54 = vadd.f32 %v377_v50, %v309_v9  ;;  %v205_v55 = vadd.f32 %v385_v51, %v309_v9  ;;  %v164_v56 = vpop.f32.mrb[7].mxu0  ;;  %v196_v57 = vpop.f32.mrb[7].mxu1 }
  0xe5   :  { %v212_v58 = vmax.f32 %v162_v48, 0.0  ;;  %v220_v59 = vmax.f32 %v194_v49, 0.0  ;;  %v165_v60 = vadd.f32 %v309_v9, %v164_v56  ;;  %v197_v61 = vadd.f32 %v309_v9, %v196_v57 }
  0xe6   :  { %v349_v62 = vpack.c.bf16 %v214_v52, %v214_v52  ;;  %v357_v63 = vpack.c.bf16 %v222_v53, %v222_v53  ;;  %v215_v0 = vmax.f32 %v173_v54, 0.0  ;;  %v223_v1 = vmax.f32 %v205_v55, 0.0 }
  0xe7   :  { %v347_v2 = vpack.c.bf16 %v212_v58, %v212_v58  ;;  %v355_v3 = vpack.c.bf16 %v220_v59, %v220_v59  ;;  %v213_v4 = vmax.f32 %v165_v60, 0.0  ;;  %v221_v5 = vmax.f32 %v197_v61, 0.0 }
  0xe8   :  { %295 = vst.msk [vmem:[%s522_s3 + $0x18] sm:$0xf] %vm288_vm1, %v349_v62  ;;  %303 = vst.msk [vmem:[%s522_s3 + $0x38] sm:$0xf] %vm288_vm1, %v357_v63  ;;  %v350_v6 = vpack.c.bf16 %v215_v0, %v215_v0  ;;  %v358_v7 = vpack.c.bf16 %v223_v1, %v223_v1 }
  0xe9   :  { %293 = vst.msk [vmem:[%s522_s3 + $0x10] sm:$0xf] %vm288_vm1, %v347_v2  ;;  %301 = vst.msk [vmem:[%s522_s3 + $0x30] sm:$0xf] %vm288_vm1, %v355_v3  ;;  %v348_v8 = vpack.c.bf16 %v213_v4, %v213_v4  ;;  %v356_v9 = vpack.c.bf16 %v221_v5, %v221_v5 }
  0xea   :  { %296 = vst.msk [vmem:[%s522_s3 + $0x1c] sm:$0xf] %vm288_vm1, %v350_v6  ;;  %304 = vst.msk [vmem:[%s522_s3 + $0x3c] sm:$0xf] %vm288_vm1, %v358_v7 }
  0xeb   :  { %294 = vst.msk [vmem:[%s522_s3 + $0x14] sm:$0xf] %vm288_vm1, %v348_v8  ;;  %302 = vst.msk [vmem:[%s522_s3 + $0x34] sm:$0xf] %vm288_vm1, %v356_v9 }

// kernel: mglnet_forward.122
= control target key start
LH: loop header
LB: loop body
LE: loop exit
PB: predicated region body
PF: predicated region fallthrough
CT: control target
= control target key end

     0   :  { %v523_v0 = vmov 0   ;;  %vm182_vm0 = vcmask 130048   ;;  %vm384_vm1 = vcmask 60416   ;;  %s712_s1 = inlined_call_operand.vmem [shape: bf16[144,8], index: 1, kind: input, shape index: {}]   ;;  %s713_s0 = inlined_call_operand.vmem [shape: bf16[128,144], index: 0, kind: input, shape index: {}]   ;;  %s714_s2 = inlined_call_operand.vmem [shape: f32[1,8], index: 2, kind: input, shape index: {}]   ;;  %s715_s3 = inlined_call_operand.vmem [shape: bf16[128,8], index: 3, kind: output, shape index: {}]  }
   0x1   :  { %207 = vmatprep.subr.bf16.mxu0 %v523_v0  ;;  %471 = vmatprep.subr.bf16.mxu1 %v523_v0  ;;  %v490_v1 = vld [vmem:[%s712_s1] sm:$0xff]   ;;  %v491_v2 = vld [vmem:[%s712_s1 + $0x8] sm:$0xff]   ;;  %v492_v3 = vld [vmem:[%s712_s1 + $0x10] sm:$0xff]  }
   0x2   :  { %208 = vmatpush1.bf16.msra.mxu0 %v490_v1  ;;  %480 = vmatpush1.bf16.msra.mxu1 %v490_v1  ;;  %v493_v4 = vld [vmem:[%s712_s1 + $0x18] sm:$0xff]   ;;  %v501_v5 = vld [vmem:[%s713_s0 + $0x4] ss:$8 sps:$4 sm:$0xff]   ;;  %v496_v9 = vld [vmem:[%s712_s1 + $0x30] sm:$0xff]  }
   0x3   :  { %209 = vmatprep.subr.bf16.mxu0 %v523_v0  ;;  %472 = vmatprep.subr.bf16.mxu1 %v523_v0  ;;  %v504_v6 = vld [vmem:[%s713_s0 + $0x44] ss:$8 sps:$4 sm:$0xff]   ;;  %v497_v10 = vld [vmem:[%s712_s1 + $0x38] sm:$0xff]   ;;  %v499_v12 = vld [vmem:[%s713_s0] ss:$8 sps:$4 sm:$0xff]  }
   0x4   :  { %431 = vmatprep.mubr.msk.bf16.mxu0 %vm182_vm0, %v501_v5  ;;  %435 = vmatprep.mubr.msk.bf16.mxu1 %vm182_vm0, %v504_v6  ;;  %v494_v7 = vld [vmem:[%s712_s1 + $0x20] sm:$0xff]   ;;  %v495_v8 = vld [vmem:[%s712_s1 + $0x28] sm:$0xff]   ;;  %v505_v14 = vld [vmem:[%s713_s0 + $0x14] ss:$8 sps:$4 sm:$0xff]  }
   0x5   :  { %v498_v11 = vld [vmem:[%s712_s1 + $0x40] sm:$0xff]   ;;  %v507_v15 = vld [vmem:[%s713_s0 + $0x54] ss:$8 sps:$4 sm:$0xff]   ;;  %v509_v16 = vld [vmem:[%s713_s0 + $0x10] ss:$8 sps:$4 sm:$0xff]  }
   0x6   :  { %210 = vmatpush1.bf16.msra.mxu0 %v491_v2  ;;  %481 = vmatpush1.bf16.msra.mxu1 %v491_v2  ;;  %v502_v13 = vld [vmem:[%s713_s0 + $0x40] ss:$8 sps:$4 sm:$0xff]   ;;  %v510_v17 = vld [vmem:[%s713_s0 + $0x50] ss:$8 sps:$4 sm:$0xff]   ;;  %v511_v18 = vld [vmem:[%s713_s0 + $0x24] ss:$8 sps:$4 sm:$0xff]  }
   0x7   :  { %211 = vmatprep.subr.bf16.mxu0 %v523_v0  ;;  %473 = vmatprep.subr.bf16.mxu1 %v523_v0  ;;  %v513_v19 = vld [vmem:[%s713_s0 + $0x64] ss:$8 sps:$4 sm:$0xff]   ;;  %v515_v20 = vld [vmem:[%s713_s0 + $0x20] ss:$8 sps:$4 sm:$0xff]   ;;  %v517_v22 = vld [vmem:[%s713_s0 + $0x34] ss:$8 sps:$4 sm:$0xff]  }
   0x8   :  { %v516_v21 = vld [vmem:[%s713_s0 + $0x60] ss:$8 sps:$4 sm:$0xff]   ;;  %v519_v23 = vld [vmem:[%s713_s0 + $0x74] ss:$8 sps:$4 sm:$0xff]   ;;  %v521_v24 = vld [vmem:[%s713_s0 + $0x30] ss:$8 sps:$4 sm:$0xff]  }
   0x9   :  { %v522_v25 = vld [vmem:[%s713_s0 + $0x70] ss:$8 sps:$4 sm:$0xff]   ;;  %v630_v26 = vld [vmem:[%s714_s2] ss:$0 sm:$0xff] }
   0xa   :  { %212 = vmatpush1.bf16.msra.mxu0 %v492_v3  ;;  %482 = vmatpush1.bf16.msra.mxu1 %v492_v3 }
   0xb   :  { %213 = vmatprep.subr.bf16.mxu0 %v523_v0  ;;  %474 = vmatprep.subr.bf16.mxu1 %v523_v0 }
   0xe   :  { %214 = vmatpush1.bf16.msra.mxu0 %v493_v4  ;;  %483 = vmatpush1.bf16.msra.mxu1 %v493_v4 }
   0xf   :  { %215 = vmatprep.subr.bf16.mxu0 %v523_v0  ;;  %475 = vmatprep.subr.bf16.mxu1 %v523_v0 }
  0x12   :  { %216 = vmatpush1.bf16.msra.mxu0 %v494_v7  ;;  %484 = vmatpush1.bf16.msra.mxu1 %v494_v7 }
  0x13   :  { %217 = vmatprep.subr.bf16.mxu0 %v523_v0  ;;  %476 = vmatprep.subr.bf16.mxu1 %v523_v0 }
  0x16   :  { %218 = vmatpush1.bf16.msra.mxu0 %v495_v8  ;;  %485 = vmatpush1.bf16.msra.mxu1 %v495_v8 }
  0x17   :  { %219 = vmatprep.subr.bf16.mxu0 %v523_v0  ;;  %477 = vmatprep.subr.bf16.mxu1 %v523_v0 }
  0x1a   :  { %220 = vmatpush1.bf16.msra.mxu0 %v496_v9  ;;  %486 = vmatpush1.bf16.msra.mxu1 %v496_v9 }
  0x1b   :  { %221 = vmatprep.subr.bf16.mxu0 %v523_v0  ;;  %478 = vmatprep.subr.bf16.mxu1 %v523_v0 }
  0x1e   :  { %222 = vmatpush1.bf16.msra.mxu0 %v497_v10  ;;  %487 = vmatpush1.bf16.msra.mxu1 %v497_v10 }
  0x1f   :  { %223 = vmatprep.subr.bf16.mxu0 %v523_v0  ;;  %479 = vmatprep.subr.bf16.mxu1 %v523_v0 }
  0x22   :  { %224 = vmatpush1.bf16.msra.mxu0 %v498_v11  ;;  %488 = vmatpush1.bf16.msra.mxu1 %v498_v11 }
  0x25   :  { %240 = vmatmul.mubr.bf16.vlgmr.msra.gmra.mrb[0].mxu0 %v499_v12  ;;  %272 = vmatmul.mubr.bf16.vlgmr.msra.gmra.mrb[0].mxu1 %v502_v13 }
  0x26   :  { %432 = vmatprep.mubr.msk.bf16.mxu0 %vm182_vm0, %v505_v14  ;;  %436 = vmatprep.mubr.msk.bf16.mxu1 %vm182_vm0, %v507_v15 }
  0x2d   :  { %248 = vmatmul.mubr.bf16.gmra.mrb[4].mxu0 %v509_v16  ;;  %280 = vmatmul.mubr.bf16.gmra.mrb[4].mxu1 %v510_v17 }
  0x2e   :  { %433 = vmatprep.mubr.msk.bf16.mxu0 %vm182_vm0, %v511_v18  ;;  %437 = vmatprep.mubr.msk.bf16.mxu1 %vm182_vm0, %v513_v19 }
  0x35   :  { %256 = vmatmul.mubr.bf16.gmra.mrb[8].mxu0 %v515_v20  ;;  %288 = vmatmul.mubr.bf16.gmra.mrb[8].mxu1 %v516_v21 }
  0x36   :  { %434 = vmatprep.mubr.msk.bf16.mxu0 %vm182_vm0, %v517_v22  ;;  %438 = vmatprep.mubr.msk.bf16.mxu1 %vm182_vm0, %v519_v23 }
  0x3d   :  { %264 = vmatmul.mubr.bf16.gmra.mrb[12].mxu0 %v521_v24  ;;  %296 = vmatmul.mubr.bf16.gmra.mrb[12].mxu1 %v522_v25 }
  0xf8   :  { %v241_v27 = vpop.f32.mrb[0].mxu0  ;;  %v273_v28 = vpop.f32.mrb[0].mxu1 }
  0xf9   :  { %v242_v29 = vadd.f32 %v630_v26, %v241_v27  ;;  %v274_v30 = vadd.f32 %v630_v26, %v273_v28  ;;  %v243_v31 = vpop.f32.mrb[1].mxu0  ;;  %v275_v32 = vpop.f32.mrb[1].mxu1 }
  0xfa   :  { %v244_v33 = vpop.f32.mrb[2].mxu0  ;;  %v276_v34 = vpop.f32.mrb[2].mxu1 }
  0xfb   :  { %v304_v35 = vmax.f32 %v242_v29, 0.0  ;;  %v312_v36 = vmax.f32 %v274_v30, 0.0  ;;  %v245_v37 = vadd.f32 %v630_v26, %v244_v33  ;;  %v277_v38 = vadd.f32 %v630_v26, %v276_v34  ;;  %v246_v39 = vpop.f32.mrb[3].mxu0  ;;  %v278_v40 = vpop.f32.mrb[3].mxu1 }
  0xfd   :  { %v455_v41 = vpack.c.bf16 %v304_v35, %v304_v35  ;;  %v463_v42 = vpack.c.bf16 %v312_v36, %v312_v36  ;;  %v305_v43 = vmax.f32 %v245_v37, 0.0  ;;  %v313_v44 = vmax.f32 %v277_v38, 0.0 }
  0xff   :  { %385 = vst.msk [vmem:[%s715_s3] sm:$0xf] %vm384_vm1, %v455_v41  ;;  %393 = vst.msk [vmem:[%s715_s3 + $0x20] sm:$0xf] %vm384_vm1, %v463_v42  ;;  %v456_v45 = vpack.c.bf16 %v305_v43, %v305_v43  ;;  %v464_v46 = vpack.c.bf16 %v313_v44, %v313_v44 }
 0x100   :  { %v249_v47 = vpop.f32.mrb[4].mxu0  ;;  %v281_v48 = vpop.f32.mrb[4].mxu1 }
 0x101   :  { %386 = vst.msk [vmem:[%s715_s3 + $0x4] sm:$0xf] %vm384_vm1, %v456_v45  ;;  %394 = vst.msk [vmem:[%s715_s3 + $0x24] sm:$0xf] %vm384_vm1, %v464_v46  ;;  %v250_v49 = vadd.f32 %v630_v26, %v249_v47  ;;  %v282_v50 = vadd.f32 %v630_v26, %v281_v48  ;;  %v251_v51 = vpop.f32.mrb[5].mxu0  ;;  %v283_v52 = vpop.f32.mrb[5].mxu1 }
 0x102   :  { %v252_v53 = vpop.f32.mrb[6].mxu0  ;;  %v284_v54 = vpop.f32.mrb[6].mxu1 }
 0x103   :  { %v306_v55 = vmax.f32 %v250_v49, 0.0  ;;  %v314_v56 = vmax.f32 %v282_v50, 0.0  ;;  %v253_v57 = vadd.f32 %v630_v26, %v252_v53  ;;  %v285_v58 = vadd.f32 %v630_v26, %v284_v54  ;;  %v254_v59 = vpop.f32.mrb[7].mxu0  ;;  %v286_v60 = vpop.f32.mrb[7].mxu1 }
 0x105   :  { %v457_v61 = vpack.c.bf16 %v306_v55, %v306_v55  ;;  %v465_v62 = vpack.c.bf16 %v314_v56, %v314_v56  ;;  %v307_v63 = vmax.f32 %v253_v57, 0.0  ;;  %v315_v0 = vmax.f32 %v285_v58, 0.0 }
 0x107   :  { %387 = vst.msk [vmem:[%s715_s3 + $0x8] sm:$0xf] %vm384_vm1, %v457_v61  ;;  %395 = vst.msk [vmem:[%s715_s3 + $0x28] sm:$0xf] %vm384_vm1, %v465_v62  ;;  %v458_v1 = vpack.c.bf16 %v307_v63, %v307_v63  ;;  %v466_v2 = vpack.c.bf16 %v315_v0, %v315_v0 }
 0x108   :  { %v257_v3 = vpop.f32.mrb[8].mxu0  ;;  %v289_v4 = vpop.f32.mrb[8].mxu1 }
 0x109   :  { %388 = vst.msk [vmem:[%s715_s3 + $0xc] sm:$0xf] %vm384_vm1, %v458_v1  ;;  %396 = vst.msk [vmem:[%s715_s3 + $0x2c] sm:$0xf] %vm384_vm1, %v466_v2  ;;  %v258_v5 = vadd.f32 %v630_v26, %v257_v3  ;;  %v290_v6 = vadd.f32 %v630_v26, %v289_v4  ;;  %v259_v7 = vpop.f32.mrb[9].mxu0  ;;  %v291_v8 = vpop.f32.mrb[9].mxu1 }
 0x10a   :  { %v260_v9 = vpop.f32.mrb[10].mxu0  ;;  %v292_v10 = vpop.f32.mrb[10].mxu1 }
 0x10b   :  { %v308_v11 = vmax.f32 %v258_v5, 0.0  ;;  %v316_v12 = vmax.f32 %v290_v6, 0.0  ;;  %v261_v13 = vadd.f32 %v630_v26, %v260_v9  ;;  %v293_v14 = vadd.f32 %v630_v26, %v292_v10  ;;  %v262_v15 = vpop.f32.mrb[11].mxu0  ;;  %v294_v16 = vpop.f32.mrb[11].mxu1 }
 0x10d   :  { %v459_v17 = vpack.c.bf16 %v308_v11, %v308_v11  ;;  %v467_v18 = vpack.c.bf16 %v316_v12, %v316_v12  ;;  %v309_v19 = vmax.f32 %v261_v13, 0.0  ;;  %v317_v20 = vmax.f32 %v293_v14, 0.0 }
 0x10f   :  { %389 = vst.msk [vmem:[%s715_s3 + $0x10] sm:$0xf] %vm384_vm1, %v459_v17  ;;  %397 = vst.msk [vmem:[%s715_s3 + $0x30] sm:$0xf] %vm384_vm1, %v467_v18  ;;  %v460_v21 = vpack.c.bf16 %v309_v19, %v309_v19  ;;  %v468_v22 = vpack.c.bf16 %v317_v20, %v317_v20 }
 0x110   :  { %v265_v23 = vpop.f32.mrb[12].mxu0  ;;  %v297_v24 = vpop.f32.mrb[12].mxu1 }
 0x111   :  { %390 = vst.msk [vmem:[%s715_s3 + $0x14] sm:$0xf] %vm384_vm1, %v460_v21  ;;  %398 = vst.msk [vmem:[%s715_s3 + $0x34] sm:$0xf] %vm384_vm1, %v468_v22  ;;  %v266_v25 = vadd.f32 %v630_v26, %v265_v23  ;;  %v298_v27 = vadd.f32 %v630_v26, %v297_v24  ;;  %v267_v28 = vpop.f32.mrb[13].mxu0  ;;  %v299_v29 = vpop.f32.mrb[13].mxu1 }
 0x112   :  { %v268_v30 = vpop.f32.mrb[14].mxu0  ;;  %v300_v31 = vpop.f32.mrb[14].mxu1 }
 0x113   :  { %v310_v32 = vmax.f32 %v266_v25, 0.0  ;;  %v318_v33 = vmax.f32 %v298_v27, 0.0  ;;  %v269_v34 = vadd.f32 %v630_v26, %v268_v30  ;;  %v301_v35 = vadd.f32 %v630_v26, %v300_v31  ;;  %v270_v36 = vpop.f32.mrb[15].mxu0  ;;  %v302_v37 = vpop.f32.mrb[15].mxu1 }
 0x115   :  { %v461_v38 = vpack.c.bf16 %v310_v32, %v310_v32  ;;  %v469_v39 = vpack.c.bf16 %v318_v33, %v318_v33  ;;  %v311_v40 = vmax.f32 %v269_v34, 0.0  ;;  %v319_v41 = vmax.f32 %v301_v35, 0.0 }
 0x117   :  { %391 = vst.msk [vmem:[%s715_s3 + $0x18] sm:$0xf] %vm384_vm1, %v461_v38  ;;  %399 = vst.msk [vmem:[%s715_s3 + $0x38] sm:$0xf] %vm384_vm1, %v469_v39  ;;  %v462_v42 = vpack.c.bf16 %v311_v40, %v311_v40  ;;  %v470_v43 = vpack.c.bf16 %v319_v41, %v319_v41 }
 0x119   :  { %392 = vst.msk [vmem:[%s715_s3 + $0x1c] sm:$0xf] %vm384_vm1, %v462_v42  ;;  %400 = vst.msk [vmem:[%s715_s3 + $0x3c] sm:$0xf] %vm384_vm1, %v470_v43 }

// kernel: mglnet_forward.80
= control target key start
LH: loop header
LB: loop body
LE: loop exit
PB: predicated region body
PF: predicated region fallthrough
CT: control target
= control target key end

     0   :  { %vm72_vm0 = vcmask 588800   ;;  %vm79_vm1 = vcmask 1043456   ;;  %vm152_vm2 = vcmask 60416   ;;  %s264_s1 = inlined_call_operand.vmem [shape: bf16[72,8], index: 1, kind: input, shape index: {}]   ;;  %s265_s0 = inlined_call_operand.vmem [shape: bf16[32,72], index: 0, kind: input, shape index: {}]   ;;  %s266_s2 = inlined_call_operand.vmem [shape: f32[1,8], index: 2, kind: input, shape index: {}]   ;;  %s267_s3 = inlined_call_operand.vmem [shape: bf16[32,8], index: 3, kind: output, shape index: {}]  }
   0x1   :  { %v201_v0 = vld [vmem:[%s264_s1] sm:$0xff]   ;;  %v202_v1 = vld [vmem:[%s264_s1 + $0x8] sm:$0xff]   ;;  %v203_v2 = vld [vmem:[%s264_s1 + $0x10] sm:$0xff]  }
   0x2   :  { %186 = vmatprep.subr.bf16.mxu0 %v201_v0  ;;  %v206_v3 = vld [vmem:[%s265_s0] sm:$0xff]   ;;  %v204_v4 = vld [vmem:[%s264_s1 + $0x18] sm:$0xff]   ;;  %v207_v7 = vld [vmem:[%s265_s0 + $0x8] sm:$0xff]  }
   0x3   :  { %187 = vmatpush3.bf16.msra.mxu0 %v201_v0  ;;  %196 = vmatprep.mubr.msk.bf16.mxu0 %vm72_vm0, %v206_v3  ;;  %v205_v5 = vld [vmem:[%s264_s1 + $0x20] ss:$0 sps:$4 sm:$0xff]  }
   0x4   :  { %188 = vmatprep.subr.bf16.mxu0 %v202_v1  ;;  %v81_v6 = vsel %vm79_vm1, %v205_v5, 0  ;;  %v161_v8 = vld [vmem:[%s266_s2] ss:$0 sm:$0xff] }
   0x7   :  { %189 = vmatpush3.bf16.msra.mxu0 %v202_v1 }
   0x8   :  { %190 = vmatprep.subr.bf16.mxu0 %v203_v2 }
   0xb   :  { %191 = vmatpush3.bf16.msra.mxu0 %v203_v2 }
   0xc   :  { %192 = vmatprep.subr.bf16.mxu0 %v204_v4 }
   0xf   :  { %193 = vmatpush3.bf16.msra.mxu0 %v204_v4 }
  0x10   :  { %200 = vmatprep.subr.msk.bf16.mxu0 %vm79_vm1, %v205_v5 }
  0x13   :  { %195 = vmatpush3.bf16.msra.mxu0 %v81_v6 }
  0x16   :  { %197 = vmatmul.mubr.msk.bf16.vlgmr.msra.gmra.mrb[0].mxu0 %vm72_vm0, %v207_v7 }
  0xe9   :  { %v198_v9 = vpop.f32.mrb[0].mxu0 }
  0xea   :  { %v126_v10 = vadd.f32 %v198_v9, %v161_v8  ;;  %v117_v11 = vpop.f32.mrb[1].mxu0 }
  0xeb   :  { %v118_v12 = vadd.f32 %v161_v8, %v117_v11  ;;  %v199_v13 = vpop.f32.mrb[2].mxu0 }
  0xec   :  { %v134_v14 = vmax.f32 %v126_v10, 0.0  ;;  %v129_v15 = vadd.f32 %v199_v13, %v161_v8  ;;  %v120_v16 = vpop.f32.mrb[3].mxu0 }
  0xed   :  { %v132_v17 = vmax.f32 %v118_v12, 0.0  ;;  %v121_v18 = vadd.f32 %v161_v8, %v120_v16 }
  0xee   :  { %v177_v19 = vpack.c.bf16 %v134_v14, %v134_v14  ;;  %v135_v20 = vmax.f32 %v129_v15, 0.0 }
  0xef   :  { %v175_v21 = vpack.c.bf16 %v132_v17, %v132_v17  ;;  %v133_v22 = vmax.f32 %v121_v18, 0.0 }
  0xf0   :  { %155 = vst.msk [vmem:[%s267_s3 + $0x8] sm:$0xf] %vm152_vm2, %v177_v19  ;;  %v178_v23 = vpack.c.bf16 %v135_v20, %v135_v20 }
  0xf1   :  { %153 = vst.msk [vmem:[%s267_s3] sm:$0xf] %vm152_vm2, %v175_v21  ;;  %v176_v24 = vpack.c.bf16 %v133_v22, %v133_v22 }
  0xf2   :  { %156 = vst.msk [vmem:[%s267_s3 + $0xc] sm:$0xf] %vm152_vm2, %v178_v23 }
  0xf3   :  { %154 = vst.msk [vmem:[%s267_s3 + $0x4] sm:$0xf] %vm152_vm2, %v176_v24 }

// kernel: mglnet_forward.81
= control target key start
LH: loop header
LB: loop body
LE: loop exit
PB: predicated region body
PF: predicated region fallthrough
CT: control target
= control target key end

     0   :  { %vm44_vm0 = vcmask 130048   ;;  %vm116_vm1 = vcmask 257024   ;;  %s195_s1 = inlined_call_operand.vmem [shape: bf16[16,32], index: 1, kind: input, shape index: {}]   ;;  %s196_s0 = inlined_call_operand.vmem [shape: bf16[32,16], index: 0, kind: input, shape index: {}]   ;;  %s197_s2 = inlined_call_operand.vmem [shape: f32[1,32], index: 2, kind: input, shape index: {}]   ;;  %s198_s3 = inlined_call_operand.vmem [shape: bf16[32,32], index: 3, kind: output, shape index: {}]  }
   0x1   :  { %v148_v0 = vld [vmem:[%s195_s1] sm:$0xff]   ;;  %v150_v2 = vld [vmem:[%s196_s0 + $0x8] sm:$0xff]  }
   0x2   :  { %v149_v1 = vld [vmem:[%s196_s0] sm:$0xff]   ;;  %142 = vmatprep.subr.bf16.mxu0 %v148_v0 }
   0x3   :  { %143 = vmatpush3.bf16.msra.mxu0 %v148_v0  ;;  %144 = vmatprep.mubr.msk.bf16.mxu0 %vm44_vm0, %v149_v1  ;;  %v125_v3 = vld [vmem:[%s197_s2] ss:$0 sm:$0xff] }
   0x6   :  { %145 = vmatmul.mubr.msk.bf16.vlgmr.msra.gmra.mrb[0].mxu0 %vm44_vm0, %v150_v2 }
  0xd9   :  { %v146_v4 = vpop.f32.mrb[0].mxu0 }
  0xda   :  { %v94_v5 = vadd.f32 %v146_v4, %v125_v3  ;;  %v85_v6 = vpop.f32.mrb[1].mxu0 }
  0xdb   :  { %v86_v7 = vadd.f32 %v125_v3, %v85_v6  ;;  %v147_v8 = vpop.f32.mrb[2].mxu0 }
  0xdc   :  { %v137_v9 = vpack.c.bf16 %v94_v5, %v94_v5  ;;  %v97_v10 = vadd.f32 %v147_v8, %v125_v3  ;;  %v88_v11 = vpop.f32.mrb[3].mxu0 }
  0xdd   :  { %v135_v12 = vpack.c.bf16 %v86_v7, %v86_v7  ;;  %v89_v13 = vadd.f32 %v125_v3, %v88_v11 }
  0xde   :  { %119 = vst.msk [vmem:[%s198_s3 + $0x8] sm:$0xf] %vm116_vm1, %v137_v9  ;;  %v138_v14 = vpack.c.bf16 %v97_v10, %v97_v10 }
  0xdf   :  { %117 = vst.msk [vmem:[%s198_s3] sm:$0xf] %vm116_vm1, %v135_v12  ;;  %v136_v15 = vpack.c.bf16 %v89_v13, %v89_v13 }
  0xe0   :  { %120 = vst.msk [vmem:[%s198_s3 + $0xc] sm:$0xf] %vm116_vm1, %v138_v14 }
  0xe1   :  { %118 = vst.msk [vmem:[%s198_s3 + $0x4] sm:$0xf] %vm116_vm1, %v136_v15 }

// kernel: mglnet_forward.82
= control target key start
LH: loop header
LB: loop body
LE: loop exit
PB: predicated region body
PF: predicated region fallthrough
CT: control target
= control target key end

     0   :  { %vm51_vm0 = vcmask 1043456   ;;  %vm44_vm1 = vcmask 64512   ;;  %vm132_vm2 = vcmask 257024   ;;  %s230_s1 = inlined_call_operand.vmem [shape: bf16[8,32], index: 1, kind: input, shape index: {}]   ;;  %s231_s0 = inlined_call_operand.vmem [shape: bf16[32,8], index: 0, kind: input, shape index: {}]   ;;  %s232_s3 = inlined_call_operand.vmem [shape: bf16[32,32], index: 3, kind: input, shape index: {}]   ;;  %s233_s2 = inlined_call_operand.vmem [shape: f32[1,32], index: 2, kind: input, shape index: {}]   ;;  %s234_s4 = inlined_call_operand.vmem [shape: bf16[32,32], index: 4, kind: output, shape index: {}]  }
   0x1   :  { %v22_v0 = vld [vmem:[%s230_s1] sm:$0xf]  ;;  %v174_v3 = vld [vmem:[%s231_s0 + $0x8] sm:$0xff]  }
   0x2   :  { %172 = vmatprep.subr.msk.bf16.mxu0 %vm51_vm0, %v22_v0  ;;  %v53_v1 = vsel %vm51_vm0, %v22_v0, 0  ;;  %v173_v2 = vld [vmem:[%s231_s0] sm:$0xff]   ;;  %v162_v4 = vld [vmem:[%s232_s3 + $0x8] sm:$0xff]  }
   0x3   :  { %167 = vmatpush3.bf16.msra.mxu0 %v53_v1  ;;  %168 = vmatprep.mubr.msk.bf16.mxu0 %vm44_vm1, %v173_v2  ;;  %v155_v5 = vld [vmem:[%s232_s3] sm:$0xff]   ;;  %v160_v7 = vunpack.c.l.bf16 %v162_v4  ;;  %v161_v12 = vunpack.c.h.bf16 %v162_v4 }
   0x4   :  { %v141_v6 = vld [vmem:[%s233_s2] ss:$0 sm:$0xff]  ;;  %v156_v9 = vunpack.c.l.bf16 %v155_v5  ;;  %v157_v15 = vunpack.c.h.bf16 %v155_v5 }
   0x6   :  { %169 = vmatmul.mubr.msk.bf16.vlgmr.msra.gmra.mrb[0].mxu0 %vm44_vm1, %v174_v3 }
  0xd9   :  { %v170_v8 = vpop.f32.mrb[0].mxu0 }
  0xda   :  { %v98_v10 = vadd.f32 %v170_v8, %v141_v6  ;;  %v89_v11 = vpop.f32.mrb[1].mxu0 }
  0xdb   :  { %v90_v13 = vadd.f32 %v141_v6, %v89_v11  ;;  %v171_v14 = vpop.f32.mrb[2].mxu0 }
  0xdc   :  { %v110_v16 = vadd.f32 %v160_v7, %v98_v10  ;;  %v101_v17 = vadd.f32 %v171_v14, %v141_v6  ;;  %v92_v18 = vpop.f32.mrb[3].mxu0 }
  0xdd   :  { %v108_v19 = vadd.f32 %v156_v9, %v90_v13  ;;  %v93_v20 = vadd.f32 %v141_v6, %v92_v18 }
  0xde   :  { %v114_v21 = vmax.f32 %v110_v16, 0.0  ;;  %v111_v22 = vadd.f32 %v161_v12, %v101_v17 }
  0xdf   :  { %v112_v23 = vmax.f32 %v108_v19, 0.0  ;;  %v109_v24 = vadd.f32 %v157_v15, %v93_v20 }
  0xe0   :  { %v152_v25 = vpack.c.bf16 %v114_v21, %v114_v21  ;;  %v115_v26 = vmax.f32 %v111_v22, 0.0 }
  0xe1   :  { %v150_v27 = vpack.c.bf16 %v112_v23, %v112_v23  ;;  %v113_v28 = vmax.f32 %v109_v24, 0.0 }
  0xe2   :  { %135 = vst.msk [vmem:[%s234_s4 + $0x8] sm:$0xf] %vm132_vm2, %v152_v25  ;;  %v153_v29 = vpack.c.bf16 %v115_v26, %v115_v26 }
  0xe3   :  { %133 = vst.msk [vmem:[%s234_s4] sm:$0xf] %vm132_vm2, %v150_v27  ;;  %v151_v30 = vpack.c.bf16 %v113_v28, %v113_v28 }
  0xe4   :  { %136 = vst.msk [vmem:[%s234_s4 + $0xc] sm:$0xf] %vm132_vm2, %v153_v29 }
  0xe5   :  { %134 = vst.msk [vmem:[%s234_s4 + $0x4] sm:$0xf] %vm132_vm2, %v151_v30 }

// kernel: mglnet_forward.83
= control target key start
LH: loop header
LB: loop body
LE: loop exit
PB: predicated region body
PF: predicated region fallthrough
CT: control target
= control target key end

     0   :  { %vm52_vm0 = vcmask 261120   ;;  %vm128_vm1 = vcmask 60416   ;;  %s215_s1 = inlined_call_operand.vmem [shape: bf16[32,8], index: 1, kind: input, shape index: {}]   ;;  %s216_s0 = inlined_call_operand.vmem [shape: bf16[32,32], index: 0, kind: input, shape index: {}]   ;;  %s217_s2 = inlined_call_operand.vmem [shape: f32[1,8], index: 2, kind: input, shape index: {}]   ;;  %s218_s3 = inlined_call_operand.vmem [shape: bf16[32,8], index: 3, kind: output, shape index: {}]  }
   0x1   :  { %v164_v0 = vld [vmem:[%s215_s1] sm:$0xff]   ;;  %v165_v1 = vld [vmem:[%s215_s1 + $0x8] sm:$0xff]  }
   0x2   :  { %156 = vmatprep.subr.bf16.mxu0 %v164_v0  ;;  %v166_v2 = vld [vmem:[%s216_s0] sm:$0xff]   ;;  %v167_v3 = vld [vmem:[%s216_s0 + $0x8] sm:$0xff]  }
   0x3   :  { %157 = vmatpush3.bf16.msra.mxu0 %v164_v0  ;;  %160 = vmatprep.mubr.msk.bf16.mxu0 %vm52_vm0, %v166_v2  ;;  %v137_v4 = vld [vmem:[%s217_s2] ss:$0 sm:$0xff] }
   0x4   :  { %158 = vmatprep.subr.bf16.mxu0 %v165_v1 }
   0x7   :  { %159 = vmatpush3.bf16.msra.mxu0 %v165_v1 }
   0xa   :  { %161 = vmatmul.mubr.msk.bf16.vlgmr.msra.gmra.mrb[0].mxu0 %vm52_vm0, %v167_v3 }
  0xdd   :  { %v162_v5 = vpop.f32.mrb[0].mxu0 }
  0xde   :  { %v102_v6 = vadd.f32 %v162_v5, %v137_v4  ;;  %v93_v7 = vpop.f32.mrb[1].mxu0 }
  0xdf   :  { %v94_v8 = vadd.f32 %v137_v4, %v93_v7  ;;  %v163_v9 = vpop.f32.mrb[2].mxu0 }
  0xe0   :  { %v110_v10 = vmax.f32 %v102_v6, 0.0  ;;  %v105_v11 = vadd.f32 %v163_v9, %v137_v4  ;;  %v96_v12 = vpop.f32.mrb[3].mxu0 }
  0xe1   :  { %v108_v13 = vmax.f32 %v94_v8, 0.0  ;;  %v97_v14 = vadd.f32 %v137_v4, %v96_v12 }
  0xe2   :  { %v150_v15 = vpack.c.bf16 %v110_v10, %v110_v10  ;;  %v111_v16 = vmax.f32 %v105_v11, 0.0 }
  0xe3   :  { %v148_v17 = vpack.c.bf16 %v108_v13, %v108_v13  ;;  %v109_v18 = vmax.f32 %v97_v14, 0.0 }
  0xe4   :  { %131 = vst.msk [vmem:[%s218_s3 + $0x8] sm:$0xf] %vm128_vm1, %v150_v15  ;;  %v151_v19 = vpack.c.bf16 %v111_v16, %v111_v16 }
  0xe5   :  { %129 = vst.msk [vmem:[%s218_s3] sm:$0xf] %vm128_vm1, %v148_v17  ;;  %v149_v20 = vpack.c.bf16 %v109_v18, %v109_v18 }
  0xe6   :  { %132 = vst.msk [vmem:[%s218_s3 + $0xc] sm:$0xf] %vm128_vm1, %v151_v19 }
  0xe7   :  { %130 = vst.msk [vmem:[%s218_s3 + $0x4] sm:$0xf] %vm128_vm1, %v149_v20 }

// kernel: mglnet_forward.123
= control target key start
LH: loop header
LB: loop body
LE: loop exit
PB: predicated region body
PF: predicated region fallthrough
CT: control target
= control target key end

     0   :  { %vm204_vm0 = vcmask 261120   ;;  %vm329_vm1 = vcmask 60416   ;;  %s550_s1 = inlined_call_operand.vmem [shape: bf16[288,8], index: 1, kind: input, shape index: {}]   ;;  %s551_s0 = inlined_call_operand.vmem [shape: bf16[32,288], index: 0, kind: input, shape index: {}]   ;;  %s552_s2 = inlined_call_operand.vmem [shape: f32[1,8], index: 2, kind: input, shape index: {}]   ;;  %s553_s3 = inlined_call_operand.vmem [shape: bf16[32,8], index: 3, kind: output, shape index: {}]  }
   0x1   :  { %v413_v0 = vld [vmem:[%s550_s1 + $0x40] sm:$0xff]   ;;  %v415_v2 = vld [vmem:[%s550_s1 + $0x48] sm:$0xff]   ;;  %v417_v4 = vld [vmem:[%s550_s1 + $0x50] sm:$0xff]  }
   0x2   :  { %v414_v1 = vld [vmem:[%s550_s1] sm:$0xff]   ;;  %373 = vmatprep.subr.bf16.mxu0 %v413_v0  ;;  %v416_v3 = vld [vmem:[%s550_s1 + $0x8] sm:$0xff]   ;;  %v418_v5 = vld [vmem:[%s550_s1 + $0x10] sm:$0xff]  }
   0x3   :  { %374 = vmatpush3.bf16.msra.mxu0 %v414_v1  ;;  %v419_v6 = vld [vmem:[%s550_s1 + $0x58] sm:$0xff]   ;;  %v421_v8 = vld [vmem:[%s550_s1 + $0x60] sm:$0xff]   ;;  %v423_v11 = vld [vmem:[%s550_s1 + $0x68] sm:$0xff]  }
   0x4   :  { %375 = vmatprep.subr.bf16.mxu0 %v415_v2  ;;  %v420_v7 = vld [vmem:[%s550_s1 + $0x18] sm:$0xff]   ;;  %v422_v9 = vld [vmem:[%s550_s1 + $0x20] sm:$0xff]   ;;  %v424_v12 = vld [vmem:[%s550_s1 + $0x28] sm:$0xff]  }
   0x5   :  { %v428_v10 = vld [vmem:[%s550_s1 + $0x80] sm:$0xff]   ;;  %v425_v13 = vld [vmem:[%s550_s1 + $0x70] sm:$0xff]   ;;  %v433_v15 = vld [vmem:[%s550_s1 + $0x88] sm:$0xff]  }
   0x6   :  { %405 = vmatprep.subr.bf16.mxu1 %v428_v10  ;;  %v432_v14 = vld [vmem:[%s551_s0 + $0x4] ss:$12 sps:$4 sm:$0xff]   ;;  %v434_v16 = vld [vmem:[%s551_s0 + $0x8] ss:$12 sps:$4 sm:$0xff]   ;;  %v435_v17 = vld [vmem:[%s551_s0 + $0x20] ss:$12 sps:$4 sm:$0xff]  }
   0x7   :  { %376 = vmatpush3.bf16.msra.mxu0 %v416_v3  ;;  %406 = vmatpush3.bf16.msra.mxu1 %v428_v10  ;;  %v426_v18 = vld [vmem:[%s550_s1 + $0x30] sm:$0xff]   ;;  %v427_v19 = vld [vmem:[%s550_s1 + $0x78] sm:$0xff]   ;;  %v430_v21 = vld [vmem:[%s551_s0] ss:$12 sps:$4 sm:$0xff]  }
   0x8   :  { %377 = vmatprep.subr.bf16.mxu0 %v417_v4  ;;  %243 = vmatprep.mubr.bf16.mxu0 %v432_v14  ;;  %v429_v20 = vld [vmem:[%s550_s1 + $0x38] sm:$0xff]   ;;  %v338_v30 = vld [vmem:[%s552_s2] ss:$0 sm:$0xff] }
   0x9   :  { %407 = vmatprep.subr.bf16.mxu1 %v433_v15  ;;  %409 = vmatprep.mubr.msk.bf16.mxu1 %vm204_vm0, %v434_v16  ;;  %v436_v22 = vld [vmem:[%s551_s0 + $0x1c] ss:$12 sps:$4 sm:$0xff]   ;;  %v438_v23 = vld [vmem:[%s551_s0 + $0x18] ss:$12 sps:$4 sm:$0xff]  }
   0xb   :  { %378 = vmatpush3.bf16.msra.mxu0 %v418_v5  ;;  %408 = vmatpush3.bf16.msra.mxu1 %v433_v15 }
   0xc   :  { %379 = vmatprep.subr.bf16.mxu0 %v419_v6 }
   0xe   :  { %410 = vmatmul.mubr.msk.bf16.vlgmr.msra.gmra.mrb[0].mxu1 %vm204_vm0, %v435_v17 }
   0xf   :  { %380 = vmatpush3.bf16.msra.mxu0 %v420_v7 }
  0x10   :  { %381 = vmatprep.subr.bf16.mxu0 %v421_v8 }
  0x13   :  { %382 = vmatpush3.bf16.msra.mxu0 %v422_v9 }
  0x14   :  { %383 = vmatprep.subr.bf16.mxu0 %v423_v11 }
  0x17   :  { %384 = vmatpush3.bf16.msra.mxu0 %v424_v12 }
  0x18   :  { %385 = vmatprep.subr.bf16.mxu0 %v425_v13 }
  0x1b   :  { %386 = vmatpush3.bf16.msra.mxu0 %v426_v18 }
  0x1c   :  { %387 = vmatprep.subr.bf16.mxu0 %v427_v19 }
  0x1f   :  { %388 = vmatpush3.bf16.msra.mxu0 %v429_v20 }
  0x22   :  { %244 = vmatmul.mubr.bf16.vlgmr.msra.gmra.mrb[0].mxu0 %v430_v21 }
  0x23   :  { %251 = vmatprep.mubr.bf16.mxu0 %v436_v22 }
  0x2a   :  { %252 = vmatmul.mubr.bf16.gmra.mrb[4].mxu0 %v438_v23 }
  0xe1   :  { %v411_v24 = vpop.f32.mrb[0].mxu1 }
  0xe2   :  { %v294_v25 = vpop.f32.mrb[1].mxu1 }
  0xe3   :  { %v412_v26 = vpop.f32.mrb[2].mxu1 }
  0xe4   :  { %v297_v27 = vpop.f32.mrb[3].mxu1 }
  0xf5   :  { %v389_v28 = vpop.f32.mrb[0].mxu0 }
  0xf6   :  { %v390_v29 = vpop.f32.mrb[1].mxu0 }
  0xf7   :  { %v391_v31 = vadd.f32 %v390_v29, %v389_v28  ;;  %v392_v32 = vpop.f32.mrb[2].mxu0 }
  0xf8   :  { %v393_v33 = vpop.f32.mrb[3].mxu0 }
  0xf9   :  { %v394_v34 = vadd.f32 %v393_v33, %v392_v32  ;;  %v246_v35 = vadd.f32 %v391_v31, %v338_v30 }
  0xfb   :  { %v295_v36 = vadd.f32 %v294_v25, %v246_v35  ;;  %v249_v37 = vadd.f32 %v394_v34, %v338_v30 }
  0xfd   :  { %v309_v38 = vmax.f32 %v295_v36, 0.0  ;;  %v298_v39 = vadd.f32 %v297_v27, %v249_v37  ;;  %v395_v40 = vpop.f32.mrb[4].mxu0 }
  0xfe   :  { %v396_v41 = vpop.f32.mrb[5].mxu0 }
  0xff   :  { %v369_v42 = vpack.c.bf16 %v309_v38, %v309_v38  ;;  %v310_v43 = vmax.f32 %v298_v39, 0.0  ;;  %v397_v44 = vadd.f32 %v396_v41, %v395_v40  ;;  %v398_v45 = vpop.f32.mrb[6].mxu0 }
 0x100   :  { %v399_v46 = vpop.f32.mrb[7].mxu0 }
 0x101   :  { %330 = vst.msk [vmem:[%s553_s3] sm:$0xf] %vm329_vm1, %v369_v42  ;;  %v370_v47 = vpack.c.bf16 %v310_v43, %v310_v43  ;;  %v254_v48 = vadd.f32 %v397_v44, %v338_v30  ;;  %v400_v49 = vadd.f32 %v399_v46, %v398_v45 }
 0x103   :  { %331 = vst.msk [vmem:[%s553_s3 + $0x4] sm:$0xf] %vm329_vm1, %v370_v47  ;;  %v303_v50 = vadd.f32 %v411_v24, %v254_v48  ;;  %v257_v51 = vadd.f32 %v400_v49, %v338_v30 }
 0x105   :  { %v311_v52 = vmax.f32 %v303_v50, 0.0  ;;  %v306_v53 = vadd.f32 %v412_v26, %v257_v51 }
 0x107   :  { %v371_v54 = vpack.c.bf16 %v311_v52, %v311_v52  ;;  %v312_v55 = vmax.f32 %v306_v53, 0.0 }
 0x109   :  { %332 = vst.msk [vmem:[%s553_s3 + $0x8] sm:$0xf] %vm329_vm1, %v371_v54  ;;  %v372_v56 = vpack.c.bf16 %v312_v55, %v312_v55 }
 0x10b   :  { %333 = vst.msk [vmem:[%s553_s3 + $0xc] sm:$0xf] %vm329_vm1, %v372_v56 }

// kernel: mglnet_forward.92
= control target key start
LH: loop header
LB: loop body
LE: loop exit
PB: predicated region body
PF: predicated region fallthrough
CT: control target
= control target key end

     0   :  { %vm52_vm0 = vcmask 261120   ;;  %vm128_vm1 = vcmask 125952   ;;  %s215_s1 = inlined_call_operand.vmem [shape: bf16[32,16], index: 1, kind: input, shape index: {}]   ;;  %s216_s0 = inlined_call_operand.vmem [shape: bf16[32,32], index: 0, kind: input, shape index: {}]   ;;  %s217_s2 = inlined_call_operand.vmem [shape: f32[1,16], index: 2, kind: input, shape index: {}]   ;;  %s218_s3 = inlined_call_operand.vmem [shape: bf16[32,16], index: 3, kind: output, shape index: {}]  }
   0x1   :  { %v164_v0 = vld [vmem:[%s215_s1] sm:$0xff]   ;;  %v165_v1 = vld [vmem:[%s215_s1 + $0x8] sm:$0xff]  }
   0x2   :  { %156 = vmatprep.subr.bf16.mxu0 %v164_v0  ;;  %v166_v2 = vld [vmem:[%s216_s0] sm:$0xff]   ;;  %v167_v3 = vld [vmem:[%s216_s0 + $0x8] sm:$0xff]  }
   0x3   :  { %157 = vmatpush3.bf16.msra.mxu0 %v164_v0  ;;  %160 = vmatprep.mubr.msk.bf16.mxu0 %vm52_vm0, %v166_v2  ;;  %v137_v4 = vld [vmem:[%s217_s2] ss:$0 sm:$0xff] }
   0x4   :  { %158 = vmatprep.subr.bf16.mxu0 %v165_v1 }
   0x7   :  { %159 = vmatpush3.bf16.msra.mxu0 %v165_v1 }
   0xa   :  { %161 = vmatmul.mubr.msk.bf16.vlgmr.msra.gmra.mrb[0].mxu0 %vm52_vm0, %v167_v3 }
  0xdd   :  { %v162_v5 = vpop.f32.mrb[0].mxu0 }
  0xde   :  { %v102_v6 = vadd.f32 %v162_v5, %v137_v4  ;;  %v93_v7 = vpop.f32.mrb[1].mxu0 }
  0xdf   :  { %v94_v8 = vadd.f32 %v137_v4, %v93_v7  ;;  %v163_v9 = vpop.f32.mrb[2].mxu0 }
  0xe0   :  { %v110_v10 = vmax.f32 %v102_v6, 0.0  ;;  %v105_v11 = vadd.f32 %v163_v9, %v137_v4  ;;  %v96_v12 = vpop.f32.mrb[3].mxu0 }
  0xe1   :  { %v108_v13 = vmax.f32 %v94_v8, 0.0  ;;  %v97_v14 = vadd.f32 %v137_v4, %v96_v12 }
  0xe2   :  { %v150_v15 = vpack.c.bf16 %v110_v10, %v110_v10  ;;  %v111_v16 = vmax.f32 %v105_v11, 0.0 }
  0xe3   :  { %v148_v17 = vpack.c.bf16 %v108_v13, %v108_v13  ;;  %v109_v18 = vmax.f32 %v97_v14, 0.0 }
  0xe4   :  { %131 = vst.msk [vmem:[%s218_s3 + $0x8] sm:$0xf] %vm128_vm1, %v150_v15  ;;  %v151_v19 = vpack.c.bf16 %v111_v16, %v111_v16 }
  0xe5   :  { %129 = vst.msk [vmem:[%s218_s3] sm:$0xf] %vm128_vm1, %v148_v17  ;;  %v149_v20 = vpack.c.bf16 %v109_v18, %v109_v18 }
  0xe6   :  { %132 = vst.msk [vmem:[%s218_s3 + $0xc] sm:$0xf] %vm128_vm1, %v151_v19 }
  0xe7   :  { %130 = vst.msk [vmem:[%s218_s3 + $0x4] sm:$0xf] %vm128_vm1, %v149_v20 }

// kernel: mglnet_forward.93
= control target key start
LH: loop header
LB: loop body
LE: loop exit
PB: predicated region body
PF: predicated region fallthrough
CT: control target
= control target key end

     0   :  { %v259_v0 = vmov 0   ;;  %vm116_vm0 = vcmask 130048   ;;  %vm192_vm1 = vcmask 125952   ;;  %s334_s1 = inlined_call_operand.vmem [shape: bf16[144,16], index: 1, kind: input, shape index: {}]   ;;  %s335_s0 = inlined_call_operand.vmem [shape: bf16[32,144], index: 0, kind: input, shape index: {}]   ;;  %s336_s2 = inlined_call_operand.vmem [shape: f32[1,16], index: 2, kind: input, shape index: {}]   ;;  %s337_s3 = inlined_call_operand.vmem [shape: bf16[32,16], index: 3, kind: output, shape index: {}]  }
   0x1   :  { %123 = vmatprep.subr.bf16.mxu0 %v259_v0  ;;  %225 = vmatprep.subr.bf16.mxu1 %v259_v0  ;;  %v244_v1 = vld [vmem:[%s334_s1] sm:$0xff]   ;;  %v245_v2 = vld [vmem:[%s334_s1 + $0x8] sm:$0xff]   ;;  %v246_v3 = vld [vmem:[%s334_s1 + $0x10] sm:$0xff]  }
   0x2   :  { %124 = vmatpush1.bf16.msra.mxu0 %v244_v1  ;;  %234 = vmatpush1.bf16.msra.mxu1 %v244_v1  ;;  %v247_v4 = vld [vmem:[%s334_s1 + $0x18] sm:$0xff]   ;;  %v255_v5 = vld [vmem:[%s335_s0 + $0x4] ss:$8 sps:$4 sm:$0xff]   ;;  %v250_v9 = vld [vmem:[%s334_s1 + $0x30] sm:$0xff]  }
   0x3   :  { %125 = vmatprep.subr.bf16.mxu0 %v259_v0  ;;  %226 = vmatprep.subr.bf16.mxu1 %v259_v0  ;;  %v258_v6 = vld [vmem:[%s335_s0 + $0x14] ss:$8 sps:$4 sm:$0xff]   ;;  %v248_v7 = vld [vmem:[%s334_s1 + $0x20] sm:$0xff]   ;;  %v249_v8 = vld [vmem:[%s334_s1 + $0x28] sm:$0xff]  }
   0x4   :  { %215 = vmatprep.mubr.msk.bf16.mxu0 %vm116_vm0, %v255_v5  ;;  %216 = vmatprep.mubr.msk.bf16.mxu1 %vm116_vm0, %v258_v6  ;;  %v251_v10 = vld [vmem:[%s334_s1 + $0x38] sm:$0xff]   ;;  %v252_v11 = vld [vmem:[%s334_s1 + $0x40] sm:$0xff]  }
   0x5   :  { %v253_v12 = vld [vmem:[%s335_s0] ss:$8 sps:$4 sm:$0xff]   ;;  %v256_v13 = vld [vmem:[%s335_s0 + $0x10] ss:$8 sps:$4 sm:$0xff]  }
   0x6   :  { %126 = vmatpush1.bf16.msra.mxu0 %v245_v2  ;;  %235 = vmatpush1.bf16.msra.mxu1 %v245_v2  ;;  %v201_v14 = vld [vmem:[%s336_s2] ss:$0 sm:$0xff] }
   0x7   :  { %127 = vmatprep.subr.bf16.mxu0 %v259_v0  ;;  %227 = vmatprep.subr.bf16.mxu1 %v259_v0 }
   0xa   :  { %128 = vmatpush1.bf16.msra.mxu0 %v246_v3  ;;  %236 = vmatpush1.bf16.msra.mxu1 %v246_v3 }
   0xb   :  { %129 = vmatprep.subr.bf16.mxu0 %v259_v0  ;;  %228 = vmatprep.subr.bf16.mxu1 %v259_v0 }
   0xe   :  { %130 = vmatpush1.bf16.msra.mxu0 %v247_v4  ;;  %237 = vmatpush1.bf16.msra.mxu1 %v247_v4 }
   0xf   :  { %131 = vmatprep.subr.bf16.mxu0 %v259_v0  ;;  %229 = vmatprep.subr.bf16.mxu1 %v259_v0 }
  0x12   :  { %132 = vmatpush1.bf16.msra.mxu0 %v248_v7  ;;  %238 = vmatpush1.bf16.msra.mxu1 %v248_v7 }
  0x13   :  { %133 = vmatprep.subr.bf16.mxu0 %v259_v0  ;;  %230 = vmatprep.subr.bf16.mxu1 %v259_v0 }
  0x16   :  { %134 = vmatpush1.bf16.msra.mxu0 %v249_v8  ;;  %239 = vmatpush1.bf16.msra.mxu1 %v249_v8 }
  0x17   :  { %135 = vmatprep.subr.bf16.mxu0 %v259_v0  ;;  %231 = vmatprep.subr.bf16.mxu1 %v259_v0 }
  0x1a   :  { %136 = vmatpush1.bf16.msra.mxu0 %v250_v9  ;;  %240 = vmatpush1.bf16.msra.mxu1 %v250_v9 }
  0x1b   :  { %137 = vmatprep.subr.bf16.mxu0 %v259_v0  ;;  %232 = vmatprep.subr.bf16.mxu1 %v259_v0 }
  0x1e   :  { %138 = vmatpush1.bf16.msra.mxu0 %v251_v10  ;;  %241 = vmatpush1.bf16.msra.mxu1 %v251_v10 }
  0x1f   :  { %139 = vmatprep.subr.bf16.mxu0 %v259_v0  ;;  %233 = vmatprep.subr.bf16.mxu1 %v259_v0 }
  0x22   :  { %140 = vmatpush1.bf16.msra.mxu0 %v252_v11  ;;  %242 = vmatpush1.bf16.msra.mxu1 %v252_v11 }
  0x25   :  { %156 = vmatmul.mubr.bf16.vlgmr.msra.gmra.mrb[0].mxu0 %v253_v12  ;;  %164 = vmatmul.mubr.bf16.vlgmr.msra.gmra.mrb[0].mxu1 %v256_v13 }
  0xf8   :  { %v157_v15 = vpop.f32.mrb[0].mxu0  ;;  %v165_v16 = vpop.f32.mrb[0].mxu1 }
  0xf9   :  { %v158_v17 = vadd.f32 %v201_v14, %v157_v15  ;;  %v166_v18 = vadd.f32 %v201_v14, %v165_v16  ;;  %v159_v19 = vpop.f32.mrb[1].mxu0  ;;  %v167_v20 = vpop.f32.mrb[1].mxu1 }
  0xfa   :  { %v160_v21 = vpop.f32.mrb[2].mxu0  ;;  %v168_v22 = vpop.f32.mrb[2].mxu1 }
  0xfb   :  { %v172_v23 = vmax.f32 %v158_v17, 0.0  ;;  %v174_v24 = vmax.f32 %v166_v18, 0.0  ;;  %v161_v25 = vadd.f32 %v201_v14, %v160_v21  ;;  %v169_v26 = vadd.f32 %v201_v14, %v168_v22  ;;  %v162_v27 = vpop.f32.mrb[3].mxu0  ;;  %v170_v28 = vpop.f32.mrb[3].mxu1 }
  0xfd   :  { %v221_v29 = vpack.c.bf16 %v172_v23, %v172_v23  ;;  %v223_v30 = vpack.c.bf16 %v174_v24, %v174_v24  ;;  %v173_v31 = vmax.f32 %v161_v25, 0.0  ;;  %v175_v32 = vmax.f32 %v169_v26, 0.0 }
  0xff   :  { %193 = vst.msk [vmem:[%s337_s3] sm:$0xf] %vm192_vm1, %v221_v29  ;;  %195 = vst.msk [vmem:[%s337_s3 + $0x8] sm:$0xf] %vm192_vm1, %v223_v30  ;;  %v222_v33 = vpack.c.bf16 %v173_v31, %v173_v31  ;;  %v224_v34 = vpack.c.bf16 %v175_v32, %v175_v32 }
 0x101   :  { %194 = vst.msk [vmem:[%s337_s3 + $0x4] sm:$0xf] %vm192_vm1, %v222_v33  ;;  %196 = vst.msk [vmem:[%s337_s3 + $0xc] sm:$0xf] %vm192_vm1, %v224_v34 }

// kernel: mglnet_forward.94
= control target key start
LH: loop header
LB: loop body
LE: loop exit
PB: predicated region body
PF: predicated region fallthrough
CT: control target
= control target key end

     0   :  { %vm52_vm0 = vcmask 261120   ;;  %vm124_vm1 = vcmask 519168   ;;  %s211_s1 = inlined_call_operand.vmem [shape: bf16[32,64], index: 1, kind: input, shape index: {}]   ;;  %s212_s0 = inlined_call_operand.vmem [shape: bf16[32,32], index: 0, kind: input, shape index: {}]   ;;  %s213_s2 = inlined_call_operand.vmem [shape: f32[1,64], index: 2, kind: input, shape index: {}]   ;;  %s214_s3 = inlined_call_operand.vmem [shape: bf16[32,64], index: 3, kind: output, shape index: {}]  }
   0x1   :  { %v160_v0 = vld [vmem:[%s211_s1] sm:$0xff]   ;;  %v161_v1 = vld [vmem:[%s211_s1 + $0x8] sm:$0xff]  }
   0x2   :  { %152 = vmatprep.subr.bf16.mxu0 %v160_v0  ;;  %v162_v2 = vld [vmem:[%s212_s0] sm:$0xff]   ;;  %v163_v3 = vld [vmem:[%s212_s0 + $0x8] sm:$0xff]  }
   0x3   :  { %153 = vmatpush3.bf16.msra.mxu0 %v160_v0  ;;  %156 = vmatprep.mubr.msk.bf16.mxu0 %vm52_vm0, %v162_v2  ;;  %v133_v4 = vld [vmem:[%s213_s2] ss:$0 sm:$0xff] }
   0x4   :  { %154 = vmatprep.subr.bf16.mxu0 %v161_v1 }
   0x7   :  { %155 = vmatpush3.bf16.msra.mxu0 %v161_v1 }
   0xa   :  { %157 = vmatmul.mubr.msk.bf16.vlgmr.msra.gmra.mrb[0].mxu0 %vm52_vm0, %v163_v3 }
  0xdd   :  { %v158_v5 = vpop.f32.mrb[0].mxu0 }
  0xde   :  { %v102_v6 = vadd.f32 %v158_v5, %v133_v4  ;;  %v93_v7 = vpop.f32.mrb[1].mxu0 }
  0xdf   :  { %v94_v8 = vadd.f32 %v133_v4, %v93_v7  ;;  %v159_v9 = vpop.f32.mrb[2].mxu0 }
  0xe0   :  { %v146_v10 = vpack.c.bf16 %v102_v6, %v102_v6  ;;  %v105_v11 = vadd.f32 %v159_v9, %v133_v4  ;;  %v96_v12 = vpop.f32.mrb[3].mxu0 }
  0xe1   :  { %v144_v13 = vpack.c.bf16 %v94_v8, %v94_v8  ;;  %v97_v14 = vadd.f32 %v133_v4, %v96_v12 }
  0xe2   :  { %127 = vst.msk [vmem:[%s214_s3 + $0x8] sm:$0xf] %vm124_vm1, %v146_v10  ;;  %v147_v15 = vpack.c.bf16 %v105_v11, %v105_v11 }
  0xe3   :  { %125 = vst.msk [vmem:[%s214_s3] sm:$0xf] %vm124_vm1, %v144_v13  ;;  %v145_v16 = vpack.c.bf16 %v97_v14, %v97_v14 }
  0xe4   :  { %128 = vst.msk [vmem:[%s214_s3 + $0xc] sm:$0xf] %vm124_vm1, %v147_v15 }
  0xe5   :  { %126 = vst.msk [vmem:[%s214_s3 + $0x4] sm:$0xf] %vm124_vm1, %v145_v16 }

// kernel: mglnet_forward.95
= control target key start
LH: loop header
LB: loop body
LE: loop exit
PB: predicated region body
PF: predicated region fallthrough
CT: control target
= control target key end

     0   :  { %vm51_vm0 = vcmask 130048   ;;  %vm135_vm1 = vcmask 519168   ;;  %s234_s1 = inlined_call_operand.vmem [shape: bf16[16,64], index: 1, kind: input, shape index: {}]   ;;  %s235_s0 = inlined_call_operand.vmem [shape: bf16[32,16], index: 0, kind: input, shape index: {}]   ;;  %s236_s3 = inlined_call_operand.vmem [shape: bf16[32,64], index: 3, kind: input, shape index: {}]   ;;  %s237_s2 = inlined_call_operand.vmem [shape: f32[1,64], index: 2, kind: input, shape index: {}]   ;;  %s238_s4 = inlined_call_operand.vmem [shape: bf16[32,64], index: 4, kind: output, shape index: {}]  }
   0x1   :  { %v176_v0 = vld [vmem:[%s234_s1] sm:$0xff]   ;;  %v178_v2 = vld [vmem:[%s235_s0 + $0x8] sm:$0xff]  }
   0x2   :  { %v177_v1 = vld [vmem:[%s235_s0] sm:$0xff]   ;;  %170 = vmatprep.subr.bf16.mxu0 %v176_v0  ;;  %v166_v3 = vld [vmem:[%s236_s3 + $0x8] sm:$0xff]  }
   0x3   :  { %171 = vmatpush3.bf16.msra.mxu0 %v176_v0  ;;  %172 = vmatprep.mubr.msk.bf16.mxu0 %vm51_vm0, %v177_v1  ;;  %v159_v4 = vld [vmem:[%s236_s3] sm:$0xff]   ;;  %v164_v6 = vunpack.c.l.bf16 %v166_v3  ;;  %v165_v11 = vunpack.c.h.bf16 %v166_v3 }
   0x4   :  { %v144_v5 = vld [vmem:[%s237_s2] ss:$0 sm:$0xff]  ;;  %v160_v8 = vunpack.c.l.bf16 %v159_v4  ;;  %v161_v14 = vunpack.c.h.bf16 %v159_v4 }
   0x6   :  { %173 = vmatmul.mubr.msk.bf16.vlgmr.msra.gmra.mrb[0].mxu0 %vm51_vm0, %v178_v2 }
  0xd9   :  { %v174_v7 = vpop.f32.mrb[0].mxu0 }
  0xda   :  { %v101_v9 = vadd.f32 %v174_v7, %v144_v5  ;;  %v92_v10 = vpop.f32.mrb[1].mxu0 }
  0xdb   :  { %v93_v12 = vadd.f32 %v144_v5, %v92_v10  ;;  %v175_v13 = vpop.f32.mrb[2].mxu0 }
  0xdc   :  { %v113_v15 = vadd.f32 %v164_v6, %v101_v9  ;;  %v104_v16 = vadd.f32 %v175_v13, %v144_v5  ;;  %v95_v17 = vpop.f32.mrb[3].mxu0 }
  0xdd   :  { %v111_v18 = vadd.f32 %v160_v8, %v93_v12  ;;  %v96_v19 = vadd.f32 %v144_v5, %v95_v17 }
  0xde   :  { %v117_v20 = vmax.f32 %v113_v15, 0.0  ;;  %v114_v21 = vadd.f32 %v165_v11, %v104_v16 }
  0xdf   :  { %v115_v22 = vmax.f32 %v111_v18, 0.0  ;;  %v112_v23 = vadd.f32 %v161_v14, %v96_v19 }
  0xe0   :  { %v156_v24 = vpack.c.bf16 %v117_v20, %v117_v20  ;;  %v118_v25 = vmax.f32 %v114_v21, 0.0 }
  0xe1   :  { %v154_v26 = vpack.c.bf16 %v115_v22, %v115_v22  ;;  %v116_v27 = vmax.f32 %v112_v23, 0.0 }
  0xe2   :  { %138 = vst.msk [vmem:[%s238_s4 + $0x8] sm:$0xf] %vm135_vm1, %v156_v24  ;;  %v157_v28 = vpack.c.bf16 %v118_v25, %v118_v25 }
  0xe3   :  { %136 = vst.msk [vmem:[%s238_s4] sm:$0xf] %vm135_vm1, %v154_v26  ;;  %v155_v29 = vpack.c.bf16 %v116_v27, %v116_v27 }
  0xe4   :  { %139 = vst.msk [vmem:[%s238_s4 + $0xc] sm:$0xf] %vm135_vm1, %v157_v28 }
  0xe5   :  { %137 = vst.msk [vmem:[%s238_s4 + $0x4] sm:$0xf] %vm135_vm1, %v155_v29 }

// kernel: mglnet_forward.96
= control target key start
LH: loop header
LB: loop body
LE: loop exit
PB: predicated region body
PF: predicated region fallthrough
CT: control target
= control target key end

     0   :  { %vm68_vm0 = vcmask 523264   ;;  %vm144_vm1 = vcmask 125952   ;;  %s247_s1 = inlined_call_operand.vmem [shape: bf16[64,16], index: 1, kind: input, shape index: {}]   ;;  %s248_s0 = inlined_call_operand.vmem [shape: bf16[32,64], index: 0, kind: input, shape index: {}]   ;;  %s249_s2 = inlined_call_operand.vmem [shape: f32[1,16], index: 2, kind: input, shape index: {}]   ;;  %s250_s3 = inlined_call_operand.vmem [shape: bf16[32,16], index: 3, kind: output, shape index: {}]  }
   0x1   :  { %v188_v0 = vld [vmem:[%s247_s1] sm:$0xff]   ;;  %v189_v1 = vld [vmem:[%s247_s1 + $0x8] sm:$0xff]   ;;  %v190_v2 = vld [vmem:[%s247_s1 + $0x10] sm:$0xff]  }
   0x2   :  { %176 = vmatprep.subr.bf16.mxu0 %v188_v0  ;;  %v192_v3 = vld [vmem:[%s248_s0] sm:$0xff]   ;;  %v191_v4 = vld [vmem:[%s247_s1 + $0x18] sm:$0xff]   ;;  %v193_v5 = vld [vmem:[%s248_s0 + $0x8] sm:$0xff]  }
   0x3   :  { %177 = vmatpush3.bf16.msra.mxu0 %v188_v0  ;;  %184 = vmatprep.mubr.msk.bf16.mxu0 %vm68_vm0, %v192_v3  ;;  %v153_v6 = vld [vmem:[%s249_s2] ss:$0 sm:$0xff] }
   0x4   :  { %178 = vmatprep.subr.bf16.mxu0 %v189_v1 }
   0x7   :  { %179 = vmatpush3.bf16.msra.mxu0 %v189_v1 }
   0x8   :  { %180 = vmatprep.subr.bf16.mxu0 %v190_v2 }
   0xb   :  { %181 = vmatpush3.bf16.msra.mxu0 %v190_v2 }
   0xc   :  { %182 = vmatprep.subr.bf16.mxu0 %v191_v4 }
   0xf   :  { %183 = vmatpush3.bf16.msra.mxu0 %v191_v4 }
  0x12   :  { %185 = vmatmul.mubr.msk.bf16.vlgmr.msra.gmra.mrb[0].mxu0 %vm68_vm0, %v193_v5 }
  0xe5   :  { %v186_v7 = vpop.f32.mrb[0].mxu0 }
  0xe6   :  { %v118_v8 = vadd.f32 %v186_v7, %v153_v6  ;;  %v109_v9 = vpop.f32.mrb[1].mxu0 }
  0xe7   :  { %v110_v10 = vadd.f32 %v153_v6, %v109_v9  ;;  %v187_v11 = vpop.f32.mrb[2].mxu0 }
  0xe8   :  { %v126_v12 = vmax.f32 %v118_v8, 0.0  ;;  %v121_v13 = vadd.f32 %v187_v11, %v153_v6  ;;  %v112_v14 = vpop.f32.mrb[3].mxu0 }
  0xe9   :  { %v124_v15 = vmax.f32 %v110_v10, 0.0  ;;  %v113_v16 = vadd.f32 %v153_v6, %v112_v14 }
  0xea   :  { %v168_v17 = vpack.c.bf16 %v126_v12, %v126_v12  ;;  %v127_v18 = vmax.f32 %v121_v13, 0.0 }
  0xeb   :  { %v166_v19 = vpack.c.bf16 %v124_v15, %v124_v15  ;;  %v125_v20 = vmax.f32 %v113_v16, 0.0 }
  0xec   :  { %147 = vst.msk [vmem:[%s250_s3 + $0x8] sm:$0xf] %vm144_vm1, %v168_v17  ;;  %v169_v21 = vpack.c.bf16 %v127_v18, %v127_v18 }
  0xed   :  { %145 = vst.msk [vmem:[%s250_s3] sm:$0xf] %vm144_vm1, %v166_v19  ;;  %v167_v22 = vpack.c.bf16 %v125_v20, %v125_v20 }
  0xee   :  { %148 = vst.msk [vmem:[%s250_s3 + $0xc] sm:$0xf] %vm144_vm1, %v169_v21 }
  0xef   :  { %146 = vst.msk [vmem:[%s250_s3 + $0x4] sm:$0xf] %vm144_vm1, %v167_v22 }

// kernel: mglnet_forward.124
= control target key start
LH: loop header
LB: loop body
LE: loop exit
PB: predicated region body
PF: predicated region fallthrough
CT: control target
= control target key end

     0   :  { %vm372_vm0 = vcmask 523264   ;;  %vm546_vm1 = vcmask 60416   ;;  %s909_s1 = inlined_call_operand.vmem [shape: bf16[576,8], index: 1, kind: input, shape index: {}]   ;;  %s910_s0 = inlined_call_operand.vmem [shape: bf16[32,576], index: 0, kind: input, shape index: {}]   ;;  %s911_s2 = inlined_call_operand.vmem [shape: f32[1,8], index: 2, kind: input, shape index: {}]   ;;  %s912_s3 = inlined_call_operand.vmem [shape: bf16[32,8], index: 3, kind: output, shape index: {}]  }
   0x1   :  { %v686_v0 = vld [vmem:[%s909_s1 + $0x40] sm:$0xff]   ;;  %v690_v4 = vld [vmem:[%s909_s1 + $0x48] sm:$0xff]   ;;  %v694_v8 = vld [vmem:[%s909_s1 + $0x50] sm:$0xff]  }
   0x2   :  { %v687_v1 = vld [vmem:[%s909_s1] sm:$0xff]   ;;  %612 = vmatprep.subr.bf16.mxu0 %v686_v0  ;;  %v691_v5 = vld [vmem:[%s909_s1 + $0x8] sm:$0xff]   ;;  %v695_v9 = vld [vmem:[%s909_s1 + $0x10] sm:$0xff]  }
   0x3   :  { %v688_v2 = vld [vmem:[%s909_s1 + $0xc0] sm:$0xff]   ;;  %613 = vmatpush3.bf16.msra.mxu0 %v687_v1  ;;  %v692_v6 = vld [vmem:[%s909_s1 + $0xc8] sm:$0xff]   ;;  %v696_v10 = vld [vmem:[%s909_s1 + $0xd0] sm:$0xff]  }
   0x4   :  { %v689_v3 = vld [vmem:[%s909_s1 + $0x80] sm:$0xff]   ;;  %640 = vmatprep.subr.bf16.mxu1 %v688_v2  ;;  %614 = vmatprep.subr.bf16.mxu0 %v690_v4  ;;  %v693_v7 = vld [vmem:[%s909_s1 + $0x88] sm:$0xff]   ;;  %v697_v11 = vld [vmem:[%s909_s1 + $0x90] sm:$0xff]  }
   0x5   :  { %641 = vmatpush3.bf16.msra.mxu1 %v689_v3  ;;  %v698_v12 = vld [vmem:[%s909_s1 + $0x58] sm:$0xff]   ;;  %v702_v16 = vld [vmem:[%s909_s1 + $0x60] sm:$0xff]   ;;  %v706_v20 = vld [vmem:[%s909_s1 + $0x68] sm:$0xff]  }
   0x6   :  { %642 = vmatprep.subr.bf16.mxu1 %v692_v6  ;;  %v699_v13 = vld [vmem:[%s909_s1 + $0x18] sm:$0xff]   ;;  %v703_v17 = vld [vmem:[%s909_s1 + $0x20] sm:$0xff]   ;;  %v707_v21 = vld [vmem:[%s909_s1 + $0x28] sm:$0xff]  }
   0x7   :  { %615 = vmatpush3.bf16.msra.mxu0 %v691_v5  ;;  %v700_v14 = vld [vmem:[%s909_s1 + $0xd8] sm:$0xff]   ;;  %v704_v18 = vld [vmem:[%s909_s1 + $0xe0] sm:$0xff]   ;;  %v708_v22 = vld [vmem:[%s909_s1 + $0xe8] sm:$0xff]  }
   0x8   :  { %616 = vmatprep.subr.bf16.mxu0 %v694_v8  ;;  %v701_v15 = vld [vmem:[%s909_s1 + $0x98] sm:$0xff]   ;;  %v705_v19 = vld [vmem:[%s909_s1 + $0xa0] sm:$0xff]   ;;  %v709_v23 = vld [vmem:[%s909_s1 + $0xa8] sm:$0xff]  }
   0x9   :  { %643 = vmatpush3.bf16.msra.mxu1 %v693_v7  ;;  %v710_v24 = vld [vmem:[%s909_s1 + $0x70] sm:$0xff]   ;;  %v714_v28 = vld [vmem:[%s909_s1 + $0x78] sm:$0xff]   ;;  %v721_v34 = vld [vmem:[%s909_s1 + $0x100] sm:$0xff]  }
   0xa   :  { %644 = vmatprep.subr.bf16.mxu1 %v696_v10  ;;  %v711_v25 = vld [vmem:[%s909_s1 + $0x30] sm:$0xff]   ;;  %v715_v29 = vld [vmem:[%s909_s1 + $0x38] sm:$0xff]   ;;  %v724_v36 = vld [vmem:[%s910_s0 + $0xc] ss:$20 sps:$4 sm:$0xff]  }
   0xb   :  { %617 = vmatpush3.bf16.msra.mxu0 %v695_v9  ;;  %v712_v26 = vld [vmem:[%s909_s1 + $0xf0] sm:$0xff]   ;;  %v716_v30 = vld [vmem:[%s909_s1 + $0xf8] sm:$0xff]   ;;  %v725_v37 = vld [vmem:[%s909_s1 + $0x108] sm:$0xff]   ;;  %460 = vmatprep.mubr.bf16.mxu1 %v724_v36 }
   0xc   :  { %618 = vmatprep.subr.bf16.mxu0 %v698_v12  ;;  %v713_v27 = vld [vmem:[%s909_s1 + $0xb0] sm:$0xff]   ;;  %v719_v32 = vld [vmem:[%s910_s0 + $0x4] ss:$20 sps:$4 sm:$0xff]   ;;  %v722_v35 = vld [vmem:[%s910_s0 + $0x8] ss:$20 sps:$4 sm:$0xff]  }
   0xd   :  { %645 = vmatpush3.bf16.msra.mxu1 %v697_v11  ;;  %v717_v31 = vld [vmem:[%s910_s0] ss:$20 sps:$4 sm:$0xff]   ;;  %v720_v33 = vld [vmem:[%s909_s1 + $0xb8] sm:$0xff]   ;;  %411 = vmatprep.mubr.bf16.mxu0 %v719_v32  ;;  %v732_v42 = vld [vmem:[%s910_s0 + $0x30] ss:$20 sps:$4 sm:$0xff]  }
   0xe   :  { %646 = vmatprep.subr.bf16.mxu1 %v700_v14  ;;  %v726_v38 = vld [vmem:[%s910_s0 + $0x2c] ss:$20 sps:$4 sm:$0xff]   ;;  %v728_v39 = vld [vmem:[%s910_s0 + $0x28] ss:$20 sps:$4 sm:$0xff]   ;;  %v729_v40 = vld [vmem:[%s909_s1 + $0x110] sm:$0xff]  }
   0xf   :  { %619 = vmatpush3.bf16.msra.mxu0 %v699_v13  ;;  %v730_v41 = vld [vmem:[%s910_s0 + $0x34] ss:$20 sps:$4 sm:$0xff]   ;;  %v733_v43 = vld [vmem:[%s909_s1 + $0x118] sm:$0xff]   ;;  %v734_v44 = vld [vmem:[%s910_s0 + $0x10] ss:$20 sps:$4 sm:$0xff]  }
  0x10   :  { %620 = vmatprep.subr.bf16.mxu0 %v702_v16  ;;  %v735_v45 = vld [vmem:[%s910_s0 + $0x38] ss:$20 sps:$4 sm:$0xff]   ;;  %v555_v47 = vld [vmem:[%s911_s2] ss:$0 sm:$0xff] }
  0x11   :  { %647 = vmatpush3.bf16.msra.mxu1 %v701_v15 }
  0x12   :  { %648 = vmatprep.subr.bf16.mxu1 %v704_v18 }
  0x13   :  { %621 = vmatpush3.bf16.msra.mxu0 %v703_v17 }
  0x14   :  { %622 = vmatprep.subr.bf16.mxu0 %v706_v20 }
  0x15   :  { %649 = vmatpush3.bf16.msra.mxu1 %v705_v19 }
  0x16   :  { %650 = vmatprep.subr.bf16.mxu1 %v708_v22 }
  0x17   :  { %623 = vmatpush3.bf16.msra.mxu0 %v707_v21 }
  0x18   :  { %624 = vmatprep.subr.bf16.mxu0 %v710_v24 }
  0x19   :  { %651 = vmatpush3.bf16.msra.mxu1 %v709_v23 }
  0x1a   :  { %652 = vmatprep.subr.bf16.mxu1 %v712_v26 }
  0x1b   :  { %625 = vmatpush3.bf16.msra.mxu0 %v711_v25 }
  0x1c   :  { %626 = vmatprep.subr.bf16.mxu0 %v714_v28 }
  0x1d   :  { %653 = vmatpush3.bf16.msra.mxu1 %v713_v27 }
  0x1e   :  { %654 = vmatprep.subr.bf16.mxu1 %v716_v30 }
  0x1f   :  { %627 = vmatpush3.bf16.msra.mxu0 %v715_v29 }
  0x20   :  { %674 = vmatprep.subr.bf16.mxu0 %v721_v34 }
  0x21   :  { %655 = vmatpush3.bf16.msra.mxu1 %v720_v33 }
  0x22   :  { %412 = vmatmul.mubr.bf16.vlgmr.msra.gmra.mrb[0].mxu0 %v717_v31 }
  0x23   :  { %675 = vmatpush3.bf16.msra.mxu0 %v721_v34  ;;  %419 = vmatprep.mubr.bf16.mxu0 %v726_v38 }
  0x24   :  { %461 = vmatmul.mubr.bf16.vlgmr.msra.gmra.mrb[0].mxu1 %v722_v35  ;;  %676 = vmatprep.subr.bf16.mxu0 %v725_v37 }
  0x25   :  { %468 = vmatprep.mubr.bf16.mxu1 %v730_v41 }
  0x27   :  { %677 = vmatpush3.bf16.msra.mxu0 %v725_v37 }
  0x28   :  { %678 = vmatprep.subr.bf16.mxu0 %v729_v40 }
  0x2a   :  { %420 = vmatmul.mubr.bf16.gmra.mrb[4].mxu0 %v728_v39 }
  0x2b   :  { %682 = vmatprep.mubr.msk.bf16.mxu0 %vm372_vm0, %v734_v44  ;;  %679 = vmatpush3.bf16.msra.mxu0 %v729_v40 }
  0x2c   :  { %469 = vmatmul.mubr.bf16.gmra.mrb[4].mxu1 %v732_v42  ;;  %680 = vmatprep.subr.bf16.mxu0 %v733_v43 }
  0x2f   :  { %681 = vmatpush3.bf16.msra.mxu0 %v733_v43 }
  0x32   :  { %683 = vmatmul.mubr.msk.bf16.vlgmr.msra.gmra.mrb[8].mxu0 %vm372_vm0, %v735_v45 }
  0xf5   :  { %v628_v46 = vpop.f32.mrb[0].mxu0 }
  0xf6   :  { %v629_v48 = vpop.f32.mrb[1].mxu0 }
  0xf7   :  { %v630_v49 = vadd.f32 %v629_v48, %v628_v46  ;;  %v631_v50 = vpop.f32.mrb[2].mxu0  ;;  %v656_v51 = vpop.f32.mrb[0].mxu1 }
  0xf8   :  { %v632_v52 = vpop.f32.mrb[3].mxu0  ;;  %v657_v55 = vpop.f32.mrb[1].mxu1 }
  0xf9   :  { %v414_v53 = vadd.f32 %v630_v49, %v555_v47  ;;  %v633_v54 = vadd.f32 %v632_v52, %v631_v50  ;;  %v658_v56 = vadd.f32 %v657_v55, %v656_v51  ;;  %v659_v57 = vpop.f32.mrb[2].mxu1 }
  0xfa   :  { %v660_v59 = vpop.f32.mrb[3].mxu1 }
  0xfb   :  { %v417_v58 = vadd.f32 %v633_v54, %v555_v47  ;;  %v661_v60 = vadd.f32 %v660_v59, %v659_v57  ;;  %v463_v61 = vadd.f32 %v658_v56, %v414_v53 }
  0xfd   :  { %v634_v62 = vpop.f32.mrb[4].mxu0  ;;  %v466_v0 = vadd.f32 %v661_v60, %v417_v58 }
  0xfe   :  { %v635_v63 = vpop.f32.mrb[5].mxu0 }
  0xff   :  { %v636_v1 = vadd.f32 %v635_v63, %v634_v62  ;;  %v637_v2 = vpop.f32.mrb[6].mxu0  ;;  %v662_v3 = vpop.f32.mrb[4].mxu1 }
 0x100   :  { %v638_v4 = vpop.f32.mrb[7].mxu0  ;;  %v663_v7 = vpop.f32.mrb[5].mxu1 }
 0x101   :  { %v422_v5 = vadd.f32 %v636_v1, %v555_v47  ;;  %v639_v6 = vadd.f32 %v638_v4, %v637_v2  ;;  %v664_v8 = vadd.f32 %v663_v7, %v662_v3  ;;  %v665_v9 = vpop.f32.mrb[6].mxu1 }
 0x102   :  { %v666_v11 = vpop.f32.mrb[7].mxu1 }
 0x103   :  { %v425_v10 = vadd.f32 %v639_v6, %v555_v47  ;;  %v667_v12 = vadd.f32 %v666_v11, %v665_v9  ;;  %v471_v13 = vadd.f32 %v664_v8, %v422_v5 }
 0x105   :  { %v684_v14 = vpop.f32.mrb[8].mxu0  ;;  %v474_v15 = vadd.f32 %v667_v12, %v425_v10 }
 0x106   :  { %v520_v16 = vadd.f32 %v684_v14, %v471_v13  ;;  %v511_v17 = vpop.f32.mrb[9].mxu0 }
 0x107   :  { %v512_v18 = vadd.f32 %v511_v17, %v463_v61  ;;  %v685_v19 = vpop.f32.mrb[10].mxu0 }
 0x108   :  { %v528_v20 = vmax.f32 %v520_v16, 0.0  ;;  %v523_v21 = vadd.f32 %v685_v19, %v474_v15  ;;  %v514_v22 = vpop.f32.mrb[11].mxu0 }
 0x109   :  { %v526_v23 = vmax.f32 %v512_v18, 0.0  ;;  %v515_v24 = vadd.f32 %v514_v22, %v466_v0 }
 0x10a   :  { %v610_v25 = vpack.c.bf16 %v528_v20, %v528_v20  ;;  %v529_v26 = vmax.f32 %v523_v21, 0.0 }
 0x10b   :  { %v608_v27 = vpack.c.bf16 %v526_v23, %v526_v23  ;;  %v527_v28 = vmax.f32 %v515_v24, 0.0 }
 0x10c   :  { %549 = vst.msk [vmem:[%s912_s3 + $0x8] sm:$0xf] %vm546_vm1, %v610_v25  ;;  %v611_v29 = vpack.c.bf16 %v529_v26, %v529_v26 }
 0x10d   :  { %547 = vst.msk [vmem:[%s912_s3] sm:$0xf] %vm546_vm1, %v608_v27  ;;  %v609_v30 = vpack.c.bf16 %v527_v28, %v527_v28 }
 0x10e   :  { %550 = vst.msk [vmem:[%s912_s3 + $0xc] sm:$0xf] %vm546_vm1, %v611_v29 }
 0x10f   :  { %548 = vst.msk [vmem:[%s912_s3 + $0x4] sm:$0xf] %vm546_vm1, %v609_v30 }

// kernel: mglnet_forward.111
= control target key start
LH: loop header
LB: loop body
LE: loop exit
PB: predicated region body
PF: predicated region fallthrough
CT: control target
= control target key end

     0   :  { %vm68_vm0 = vcmask 523264   ;;  %vm144_vm1 = vcmask 257024   ;;  %s247_s1 = inlined_call_operand.vmem [shape: bf16[64,32], index: 1, kind: input, shape index: {}]   ;;  %s248_s0 = inlined_call_operand.vmem [shape: bf16[32,64], index: 0, kind: input, shape index: {}]   ;;  %s249_s2 = inlined_call_operand.vmem [shape: f32[1,32], index: 2, kind: input, shape index: {}]   ;;  %s250_s3 = inlined_call_operand.vmem [shape: bf16[32,32], index: 3, kind: output, shape index: {}]  }
   0x1   :  { %v188_v0 = vld [vmem:[%s247_s1] sm:$0xff]   ;;  %v189_v1 = vld [vmem:[%s247_s1 + $0x8] sm:$0xff]   ;;  %v190_v2 = vld [vmem:[%s247_s1 + $0x10] sm:$0xff]  }
   0x2   :  { %176 = vmatprep.subr.bf16.mxu0 %v188_v0  ;;  %v192_v3 = vld [vmem:[%s248_s0] sm:$0xff]   ;;  %v191_v4 = vld [vmem:[%s247_s1 + $0x18] sm:$0xff]   ;;  %v193_v5 = vld [vmem:[%s248_s0 + $0x8] sm:$0xff]  }
   0x3   :  { %177 = vmatpush3.bf16.msra.mxu0 %v188_v0  ;;  %184 = vmatprep.mubr.msk.bf16.mxu0 %vm68_vm0, %v192_v3  ;;  %v153_v6 = vld [vmem:[%s249_s2] ss:$0 sm:$0xff] }
   0x4   :  { %178 = vmatprep.subr.bf16.mxu0 %v189_v1 }
   0x7   :  { %179 = vmatpush3.bf16.msra.mxu0 %v189_v1 }
   0x8   :  { %180 = vmatprep.subr.bf16.mxu0 %v190_v2 }
   0xb   :  { %181 = vmatpush3.bf16.msra.mxu0 %v190_v2 }
   0xc   :  { %182 = vmatprep.subr.bf16.mxu0 %v191_v4 }
   0xf   :  { %183 = vmatpush3.bf16.msra.mxu0 %v191_v4 }
  0x12   :  { %185 = vmatmul.mubr.msk.bf16.vlgmr.msra.gmra.mrb[0].mxu0 %vm68_vm0, %v193_v5 }
  0xe5   :  { %v186_v7 = vpop.f32.mrb[0].mxu0 }
  0xe6   :  { %v118_v8 = vadd.f32 %v186_v7, %v153_v6  ;;  %v109_v9 = vpop.f32.mrb[1].mxu0 }
  0xe7   :  { %v110_v10 = vadd.f32 %v153_v6, %v109_v9  ;;  %v187_v11 = vpop.f32.mrb[2].mxu0 }
  0xe8   :  { %v126_v12 = vmax.f32 %v118_v8, 0.0  ;;  %v121_v13 = vadd.f32 %v187_v11, %v153_v6  ;;  %v112_v14 = vpop.f32.mrb[3].mxu0 }
  0xe9   :  { %v124_v15 = vmax.f32 %v110_v10, 0.0  ;;  %v113_v16 = vadd.f32 %v153_v6, %v112_v14 }
  0xea   :  { %v168_v17 = vpack.c.bf16 %v126_v12, %v126_v12  ;;  %v127_v18 = vmax.f32 %v121_v13, 0.0 }
  0xeb   :  { %v166_v19 = vpack.c.bf16 %v124_v15, %v124_v15  ;;  %v125_v20 = vmax.f32 %v113_v16, 0.0 }
  0xec   :  { %147 = vst.msk [vmem:[%s250_s3 + $0x8] sm:$0xf] %vm144_vm1, %v168_v17  ;;  %v169_v21 = vpack.c.bf16 %v127_v18, %v127_v18 }
  0xed   :  { %145 = vst.msk [vmem:[%s250_s3] sm:$0xf] %vm144_vm1, %v166_v19  ;;  %v167_v22 = vpack.c.bf16 %v125_v20, %v125_v20 }
  0xee   :  { %148 = vst.msk [vmem:[%s250_s3 + $0xc] sm:$0xf] %vm144_vm1, %v169_v21 }
  0xef   :  { %146 = vst.msk [vmem:[%s250_s3 + $0x4] sm:$0xf] %vm144_vm1, %v167_v22 }

// kernel: mglnet_forward.113
= control target key start
LH: loop header
LB: loop body
LE: loop exit
PB: predicated region body
PF: predicated region fallthrough
CT: control target
= control target key end

     0   :  { %vm68_vm0 = vcmask 523264   ;;  %s247_s1 = inlined_call_operand.vmem [shape: bf16[64,128], index: 1, kind: input, shape index: {}]   ;;  %s248_s0 = inlined_call_operand.vmem [shape: bf16[32,64], index: 0, kind: input, shape index: {}]   ;;  %s249_s2 = inlined_call_operand.vmem [shape: f32[1,128], index: 2, kind: input, shape index: {}]   ;;  %s250_s3 = inlined_call_operand.vmem [shape: bf16[32,128], index: 3, kind: output, shape index: {}]  }
   0x1   :  { %v194_v0 = vld [vmem:[%s247_s1] sm:$0xff]   ;;  %v195_v1 = vld [vmem:[%s247_s1 + $0x8] sm:$0xff]   ;;  %v196_v2 = vld [vmem:[%s247_s1 + $0x10] sm:$0xff]  }
   0x2   :  { %182 = vmatprep.subr.bf16.mxu0 %v194_v0  ;;  %v198_v3 = vld [vmem:[%s248_s0] sm:$0xff]   ;;  %v197_v4 = vld [vmem:[%s247_s1 + $0x18] sm:$0xff]   ;;  %v199_v5 = vld [vmem:[%s248_s0 + $0x8] sm:$0xff]  }
   0x3   :  { %183 = vmatpush3.bf16.msra.mxu0 %v194_v0  ;;  %190 = vmatprep.mubr.msk.bf16.mxu0 %vm68_vm0, %v198_v3  ;;  %v148_v7 = vld [vmem:[%s249_s2] ss:$0 sm:$0xff] }
   0x4   :  { %184 = vmatprep.subr.bf16.mxu0 %v195_v1 }
   0x7   :  { %185 = vmatpush3.bf16.msra.mxu0 %v195_v1 }
   0x8   :  { %186 = vmatprep.subr.bf16.mxu0 %v196_v2 }
   0xb   :  { %187 = vmatpush3.bf16.msra.mxu0 %v196_v2 }
   0xc   :  { %188 = vmatprep.subr.bf16.mxu0 %v197_v4 }
   0xf   :  { %189 = vmatpush3.bf16.msra.mxu0 %v197_v4 }
  0x12   :  { %191 = vmatmul.mubr.msk.bf16.vlgmr.msra.gmra.mrb[0].mxu0 %vm68_vm0, %v199_v5 }
  0xe5   :  { %v192_v6 = vpop.f32.mrb[0].mxu0 }
  0xe6   :  { %v109_v8 = vpop.f32.mrb[1].mxu0  ;;  %v118_v10 = vadd.f32 %v192_v6, %v148_v7 }
  0xe7   :  { %v193_v9 = vpop.f32.mrb[2].mxu0  ;;  %v110_v13 = vadd.f32 %v148_v7, %v109_v8 }
  0xe8   :  { %v121_v11 = vadd.f32 %v193_v9, %v148_v7  ;;  %v112_v12 = vpop.f32.mrb[3].mxu0 }
  0xe9   :  { %v113_v14 = vadd.f32 %v148_v7, %v112_v12 }
  0xea   :  { %v173_v15 = vpack.c.bf16 %v121_v11, %v118_v10 }
  0xeb   :  { %v168_v16 = vpack.c.bf16 %v113_v14, %v110_v13 }
  0xec   :  { %175 = vst [vmem:[%s250_s3 + $0x8] sm:$0xff] %v173_v15  }
  0xed   :  { %169 = vst [vmem:[%s250_s3] sm:$0xff] %v168_v16  }

// kernel: mglnet_forward.112
= control target key start
LH: loop header
LB: loop body
LE: loop exit
PB: predicated region body
PF: predicated region fallthrough
CT: control target
= control target key end

     0   :  { %vm204_vm0 = vcmask 261120   ;;  %vm329_vm1 = vcmask 257024   ;;  %s550_s1 = inlined_call_operand.vmem [shape: bf16[288,32], index: 1, kind: input, shape index: {}]   ;;  %s551_s0 = inlined_call_operand.vmem [shape: bf16[32,288], index: 0, kind: input, shape index: {}]   ;;  %s552_s2 = inlined_call_operand.vmem [shape: f32[1,32], index: 2, kind: input, shape index: {}]   ;;  %s553_s3 = inlined_call_operand.vmem [shape: bf16[32,32], index: 3, kind: output, shape index: {}]  }
   0x1   :  { %v413_v0 = vld [vmem:[%s550_s1 + $0x40] sm:$0xff]   ;;  %v415_v2 = vld [vmem:[%s550_s1 + $0x48] sm:$0xff]   ;;  %v417_v4 = vld [vmem:[%s550_s1 + $0x50] sm:$0xff]  }
   0x2   :  { %v414_v1 = vld [vmem:[%s550_s1] sm:$0xff]   ;;  %373 = vmatprep.subr.bf16.mxu0 %v413_v0  ;;  %v416_v3 = vld [vmem:[%s550_s1 + $0x8] sm:$0xff]   ;;  %v418_v5 = vld [vmem:[%s550_s1 + $0x10] sm:$0xff]  }
   0x3   :  { %374 = vmatpush3.bf16.msra.mxu0 %v414_v1  ;;  %v419_v6 = vld [vmem:[%s550_s1 + $0x58] sm:$0xff]   ;;  %v421_v8 = vld [vmem:[%s550_s1 + $0x60] sm:$0xff]   ;;  %v423_v11 = vld [vmem:[%s550_s1 + $0x68] sm:$0xff]  }
   0x4   :  { %375 = vmatprep.subr.bf16.mxu0 %v415_v2  ;;  %v420_v7 = vld [vmem:[%s550_s1 + $0x18] sm:$0xff]   ;;  %v422_v9 = vld [vmem:[%s550_s1 + $0x20] sm:$0xff]   ;;  %v424_v12 = vld [vmem:[%s550_s1 + $0x28] sm:$0xff]  }
   0x5   :  { %v428_v10 = vld [vmem:[%s550_s1 + $0x80] sm:$0xff]   ;;  %v425_v13 = vld [vmem:[%s550_s1 + $0x70] sm:$0xff]   ;;  %v433_v15 = vld [vmem:[%s550_s1 + $0x88] sm:$0xff]  }
   0x6   :  { %405 = vmatprep.subr.bf16.mxu1 %v428_v10  ;;  %v432_v14 = vld [vmem:[%s551_s0 + $0x4] ss:$12 sps:$4 sm:$0xff]   ;;  %v434_v16 = vld [vmem:[%s551_s0 + $0x8] ss:$12 sps:$4 sm:$0xff]   ;;  %v435_v17 = vld [vmem:[%s551_s0 + $0x20] ss:$12 sps:$4 sm:$0xff]  }
   0x7   :  { %376 = vmatpush3.bf16.msra.mxu0 %v416_v3  ;;  %406 = vmatpush3.bf16.msra.mxu1 %v428_v10  ;;  %v426_v18 = vld [vmem:[%s550_s1 + $0x30] sm:$0xff]   ;;  %v427_v19 = vld [vmem:[%s550_s1 + $0x78] sm:$0xff]   ;;  %v430_v21 = vld [vmem:[%s551_s0] ss:$12 sps:$4 sm:$0xff]  }
   0x8   :  { %377 = vmatprep.subr.bf16.mxu0 %v417_v4  ;;  %243 = vmatprep.mubr.bf16.mxu0 %v432_v14  ;;  %v429_v20 = vld [vmem:[%s550_s1 + $0x38] sm:$0xff]   ;;  %v338_v30 = vld [vmem:[%s552_s2] ss:$0 sm:$0xff] }
   0x9   :  { %407 = vmatprep.subr.bf16.mxu1 %v433_v15  ;;  %409 = vmatprep.mubr.msk.bf16.mxu1 %vm204_vm0, %v434_v16  ;;  %v436_v22 = vld [vmem:[%s551_s0 + $0x1c] ss:$12 sps:$4 sm:$0xff]   ;;  %v438_v23 = vld [vmem:[%s551_s0 + $0x18] ss:$12 sps:$4 sm:$0xff]  }
   0xb   :  { %378 = vmatpush3.bf16.msra.mxu0 %v418_v5  ;;  %408 = vmatpush3.bf16.msra.mxu1 %v433_v15 }
   0xc   :  { %379 = vmatprep.subr.bf16.mxu0 %v419_v6 }
   0xe   :  { %410 = vmatmul.mubr.msk.bf16.vlgmr.msra.gmra.mrb[0].mxu1 %vm204_vm0, %v435_v17 }
   0xf   :  { %380 = vmatpush3.bf16.msra.mxu0 %v420_v7 }
  0x10   :  { %381 = vmatprep.subr.bf16.mxu0 %v421_v8 }
  0x13   :  { %382 = vmatpush3.bf16.msra.mxu0 %v422_v9 }
  0x14   :  { %383 = vmatprep.subr.bf16.mxu0 %v423_v11 }
  0x17   :  { %384 = vmatpush3.bf16.msra.mxu0 %v424_v12 }
  0x18   :  { %385 = vmatprep.subr.bf16.mxu0 %v425_v13 }
  0x1b   :  { %386 = vmatpush3.bf16.msra.mxu0 %v426_v18 }
  0x1c   :  { %387 = vmatprep.subr.bf16.mxu0 %v427_v19 }
  0x1f   :  { %388 = vmatpush3.bf16.msra.mxu0 %v429_v20 }
  0x22   :  { %244 = vmatmul.mubr.bf16.vlgmr.msra.gmra.mrb[0].mxu0 %v430_v21 }
  0x23   :  { %251 = vmatprep.mubr.bf16.mxu0 %v436_v22 }
  0x2a   :  { %252 = vmatmul.mubr.bf16.gmra.mrb[4].mxu0 %v438_v23 }
  0xe1   :  { %v411_v24 = vpop.f32.mrb[0].mxu1 }
  0xe2   :  { %v294_v25 = vpop.f32.mrb[1].mxu1 }
  0xe3   :  { %v412_v26 = vpop.f32.mrb[2].mxu1 }
  0xe4   :  { %v297_v27 = vpop.f32.mrb[3].mxu1 }
  0xf5   :  { %v389_v28 = vpop.f32.mrb[0].mxu0 }
  0xf6   :  { %v390_v29 = vpop.f32.mrb[1].mxu0 }
  0xf7   :  { %v391_v31 = vadd.f32 %v390_v29, %v389_v28  ;;  %v392_v32 = vpop.f32.mrb[2].mxu0 }
  0xf8   :  { %v393_v33 = vpop.f32.mrb[3].mxu0 }
  0xf9   :  { %v394_v34 = vadd.f32 %v393_v33, %v392_v32  ;;  %v246_v35 = vadd.f32 %v391_v31, %v338_v30 }
  0xfb   :  { %v295_v36 = vadd.f32 %v294_v25, %v246_v35  ;;  %v249_v37 = vadd.f32 %v394_v34, %v338_v30 }
  0xfd   :  { %v309_v38 = vmax.f32 %v295_v36, 0.0  ;;  %v298_v39 = vadd.f32 %v297_v27, %v249_v37  ;;  %v395_v40 = vpop.f32.mrb[4].mxu0 }
  0xfe   :  { %v396_v41 = vpop.f32.mrb[5].mxu0 }
  0xff   :  { %v369_v42 = vpack.c.bf16 %v309_v38, %v309_v38  ;;  %v310_v43 = vmax.f32 %v298_v39, 0.0  ;;  %v397_v44 = vadd.f32 %v396_v41, %v395_v40  ;;  %v398_v45 = vpop.f32.mrb[6].mxu0 }
 0x100   :  { %v399_v46 = vpop.f32.mrb[7].mxu0 }
 0x101   :  { %330 = vst.msk [vmem:[%s553_s3] sm:$0xf] %vm329_vm1, %v369_v42  ;;  %v370_v47 = vpack.c.bf16 %v310_v43, %v310_v43  ;;  %v254_v48 = vadd.f32 %v397_v44, %v338_v30  ;;  %v400_v49 = vadd.f32 %v399_v46, %v398_v45 }
 0x103   :  { %331 = vst.msk [vmem:[%s553_s3 + $0x4] sm:$0xf] %vm329_vm1, %v370_v47  ;;  %v303_v50 = vadd.f32 %v411_v24, %v254_v48  ;;  %v257_v51 = vadd.f32 %v400_v49, %v338_v30 }
 0x105   :  { %v311_v52 = vmax.f32 %v303_v50, 0.0  ;;  %v306_v53 = vadd.f32 %v412_v26, %v257_v51 }
 0x107   :  { %v371_v54 = vpack.c.bf16 %v311_v52, %v311_v52  ;;  %v312_v55 = vmax.f32 %v306_v53, 0.0 }
 0x109   :  { %332 = vst.msk [vmem:[%s553_s3 + $0x8] sm:$0xf] %vm329_vm1, %v371_v54  ;;  %v372_v56 = vpack.c.bf16 %v312_v55, %v312_v55 }
 0x10b   :  { %333 = vst.msk [vmem:[%s553_s3 + $0xc] sm:$0xf] %vm329_vm1, %v372_v56 }

// kernel: mglnet_forward.114
= control target key start
LH: loop header
LB: loop body
LE: loop exit
PB: predicated region body
PF: predicated region fallthrough
CT: control target
= control target key end

     0   :  { %vm59_vm0 = vcmask 261120   ;;  %s254_s1 = inlined_call_operand.vmem [shape: bf16[32,128], index: 1, kind: input, shape index: {}]   ;;  %s255_s0 = inlined_call_operand.vmem [shape: bf16[32,32], index: 0, kind: input, shape index: {}]   ;;  %s256_s3 = inlined_call_operand.vmem [shape: bf16[32,128], index: 3, kind: input, shape index: {}]   ;;  %s257_s2 = inlined_call_operand.vmem [shape: f32[1,128], index: 2, kind: input, shape index: {}]   ;;  %s258_s4 = inlined_call_operand.vmem [shape: bf16[32,128], index: 4, kind: output, shape index: {}]  }
   0x1   :  { %v198_v0 = vld [vmem:[%s254_s1] sm:$0xff]   ;;  %v199_v1 = vld [vmem:[%s254_s1 + $0x8] sm:$0xff]  }
   0x2   :  { %190 = vmatprep.subr.bf16.mxu0 %v198_v0  ;;  %v200_v2 = vld [vmem:[%s255_s0] sm:$0xff]   ;;  %v201_v3 = vld [vmem:[%s255_s0 + $0x8] sm:$0xff]  }
   0x3   :  { %191 = vmatpush3.bf16.msra.mxu0 %v198_v0  ;;  %194 = vmatprep.mubr.msk.bf16.mxu0 %vm59_vm0, %v200_v2  ;;  %v184_v4 = vld [vmem:[%s256_s3 + $0x8] sm:$0xff]   ;;  %v167_v5 = vld [vmem:[%s256_s3] sm:$0xff]  }
   0x4   :  { %192 = vmatprep.subr.bf16.mxu0 %v199_v1  ;;  %v151_v6 = vld [vmem:[%s257_s2] ss:$0 sm:$0xff]  ;;  %v172_v7 = vunpack.c.l.bf16 %v184_v4  ;;  %v168_v9 = vunpack.c.l.bf16 %v167_v5  ;;  %v173_v12 = vunpack.c.h.bf16 %v184_v4  ;;  %v169_v15 = vunpack.c.h.bf16 %v167_v5 }
   0x7   :  { %193 = vmatpush3.bf16.msra.mxu0 %v199_v1 }
   0xa   :  { %195 = vmatmul.mubr.msk.bf16.vlgmr.msra.gmra.mrb[0].mxu0 %vm59_vm0, %v201_v3 }
  0xdd   :  { %v196_v8 = vpop.f32.mrb[0].mxu0 }
  0xde   :  { %v109_v10 = vadd.f32 %v196_v8, %v151_v6  ;;  %v100_v11 = vpop.f32.mrb[1].mxu0 }
  0xdf   :  { %v101_v13 = vadd.f32 %v151_v6, %v100_v11  ;;  %v197_v14 = vpop.f32.mrb[2].mxu0 }
  0xe0   :  { %v121_v16 = vadd.f32 %v172_v7, %v109_v10  ;;  %v112_v17 = vadd.f32 %v197_v14, %v151_v6  ;;  %v103_v18 = vpop.f32.mrb[3].mxu0 }
  0xe1   :  { %v119_v19 = vadd.f32 %v168_v9, %v101_v13  ;;  %v104_v20 = vadd.f32 %v151_v6, %v103_v18 }
  0xe2   :  { %v122_v21 = vadd.f32 %v173_v12, %v112_v17  ;;  %v125_v23 = vmax.f32 %v121_v16, 0.0 }
  0xe3   :  { %v120_v22 = vadd.f32 %v169_v15, %v104_v20  ;;  %v123_v25 = vmax.f32 %v119_v19, 0.0 }
  0xe4   :  { %v126_v24 = vmax.f32 %v122_v21, 0.0 }
  0xe5   :  { %v124_v26 = vmax.f32 %v120_v22, 0.0 }
  0xe6   :  { %v182_v27 = vpack.c.bf16 %v126_v24, %v125_v23 }
  0xe7   :  { %v177_v28 = vpack.c.bf16 %v124_v26, %v123_v25 }
  0xe8   :  { %185 = vst [vmem:[%s258_s4 + $0x8] sm:$0xff] %v182_v27  }
  0xe9   :  { %178 = vst [vmem:[%s258_s4] sm:$0xff] %v177_v28  }

// kernel: mglnet_forward.115
= control target key start
LH: loop header
LB: loop body
LE: loop exit
PB: predicated region body
PF: predicated region fallthrough
CT: control target
= control target key end

     0   :  { %vm171_vm0 = vcmask 257024   ;;  %s304_s1 = inlined_call_operand.vmem [shape: bf16[128,32], index: 1, kind: input, shape index: {}]   ;;  %s305_s0 = inlined_call_operand.vmem [shape: bf16[32,128], index: 0, kind: input, shape index: {}]   ;;  %s306_s2 = inlined_call_operand.vmem [shape: f32[1,32], index: 2, kind: input, shape index: {}]   ;;  %s307_s3 = inlined_call_operand.vmem [shape: bf16[32,32], index: 3, kind: output, shape index: {}]  }
   0x1   :  { %v229_v0 = vld [vmem:[%s304_s1] sm:$0xff]   ;;  %v230_v1 = vld [vmem:[%s304_s1 + $0x8] sm:$0xff]   ;;  %v231_v2 = vld [vmem:[%s304_s1 + $0x10] sm:$0xff]  }
   0x2   :  { %209 = vmatprep.subr.bf16.mxu0 %v229_v0  ;;  %v232_v3 = vld [vmem:[%s304_s1 + $0x18] sm:$0xff]   ;;  %v237_v4 = vld [vmem:[%s305_s0] sm:$0xff]   ;;  %v234_v6 = vld [vmem:[%s304_s1 + $0x28] sm:$0xff]  }
   0x3   :  { %210 = vmatpush3.bf16.msra.mxu0 %v229_v0  ;;  %225 = vmatprep.mubr.bf16.mxu0 %v237_v4  ;;  %v233_v5 = vld [vmem:[%s304_s1 + $0x20] sm:$0xff]   ;;  %v235_v7 = vld [vmem:[%s304_s1 + $0x30] sm:$0xff]   ;;  %v236_v8 = vld [vmem:[%s304_s1 + $0x38] sm:$0xff]  }
   0x4   :  { %211 = vmatprep.subr.bf16.mxu0 %v230_v1  ;;  %v238_v9 = vld [vmem:[%s305_s0 + $0x8] sm:$0xff]   ;;  %v180_v10 = vld [vmem:[%s306_s2] ss:$0 sm:$0xff] }
   0x7   :  { %212 = vmatpush3.bf16.msra.mxu0 %v230_v1 }
   0x8   :  { %213 = vmatprep.subr.bf16.mxu0 %v231_v2 }
   0xb   :  { %214 = vmatpush3.bf16.msra.mxu0 %v231_v2 }
   0xc   :  { %215 = vmatprep.subr.bf16.mxu0 %v232_v3 }
   0xf   :  { %216 = vmatpush3.bf16.msra.mxu0 %v232_v3 }
  0x10   :  { %217 = vmatprep.subr.bf16.mxu0 %v233_v5 }
  0x13   :  { %218 = vmatpush3.bf16.msra.mxu0 %v233_v5 }
  0x14   :  { %219 = vmatprep.subr.bf16.mxu0 %v234_v6 }
  0x17   :  { %220 = vmatpush3.bf16.msra.mxu0 %v234_v6 }
  0x18   :  { %221 = vmatprep.subr.bf16.mxu0 %v235_v7 }
  0x1b   :  { %222 = vmatpush3.bf16.msra.mxu0 %v235_v7 }
  0x1c   :  { %223 = vmatprep.subr.bf16.mxu0 %v236_v8 }
  0x1f   :  { %224 = vmatpush3.bf16.msra.mxu0 %v236_v8 }
  0x22   :  { %226 = vmatmul.mubr.bf16.vlgmr.msra.gmra.mrb[0].mxu0 %v238_v9 }
  0xf5   :  { %v227_v11 = vpop.f32.mrb[0].mxu0 }
  0xf6   :  { %v145_v12 = vadd.f32 %v227_v11, %v180_v10  ;;  %v136_v13 = vpop.f32.mrb[1].mxu0 }
  0xf7   :  { %v137_v14 = vadd.f32 %v180_v10, %v136_v13  ;;  %v228_v15 = vpop.f32.mrb[2].mxu0 }
  0xf8   :  { %v153_v16 = vmax.f32 %v145_v12, 0.0  ;;  %v148_v17 = vadd.f32 %v228_v15, %v180_v10  ;;  %v139_v18 = vpop.f32.mrb[3].mxu0 }
  0xf9   :  { %v151_v19 = vmax.f32 %v137_v14, 0.0  ;;  %v140_v20 = vadd.f32 %v180_v10, %v139_v18 }
  0xfa   :  { %v197_v21 = vpack.c.bf16 %v153_v16, %v153_v16  ;;  %v154_v22 = vmax.f32 %v148_v17, 0.0 }
  0xfb   :  { %v195_v23 = vpack.c.bf16 %v151_v19, %v151_v19  ;;  %v152_v24 = vmax.f32 %v140_v20, 0.0 }
  0xfc   :  { %174 = vst.msk [vmem:[%s307_s3 + $0x8] sm:$0xf] %vm171_vm0, %v197_v21  ;;  %v198_v25 = vpack.c.bf16 %v154_v22, %v154_v22 }
  0xfd   :  { %172 = vst.msk [vmem:[%s307_s3] sm:$0xf] %vm171_vm0, %v195_v23  ;;  %v196_v26 = vpack.c.bf16 %v152_v24, %v152_v24 }
  0xfe   :  { %175 = vst.msk [vmem:[%s307_s3 + $0xc] sm:$0xf] %vm171_vm0, %v198_v25 }
  0xff   :  { %173 = vst.msk [vmem:[%s307_s3 + $0x4] sm:$0xf] %vm171_vm0, %v196_v26 }

// kernel: mglnet_forward.125
= control target key start
LH: loop header
LB: loop body
LE: loop exit
PB: predicated region body
PF: predicated region fallthrough
CT: control target
= control target key end

     0   :  { %vm975_vm0 = vcmask 60416   ;;  %s1628_s1 = inlined_call_operand.vmem [shape: bf16[1152,8], index: 1, kind: input, shape index: {}]   ;;  %s1629_s0 = inlined_call_operand.vmem [shape: bf16[32,1152], index: 0, kind: input, shape index: {}]   ;;  %s1630_s2 = inlined_call_operand.vmem [shape: f32[1,8], index: 2, kind: input, shape index: {}]   ;;  %s1631_s3 = inlined_call_operand.vmem [shape: bf16[32,8], index: 3, kind: output, shape index: {}]  }
   0x1   :  { %v1225_v0 = vld [vmem:[%s1628_s1 + $0x40] sm:$0xff]   ;;  %v1229_v4 = vld [vmem:[%s1628_s1 + $0x48] sm:$0xff]   ;;  %v1233_v8 = vld [vmem:[%s1628_s1 + $0x50] sm:$0xff]  }
   0x2   :  { %v1226_v1 = vld [vmem:[%s1628_s1] sm:$0xff]   ;;  %1083 = vmatprep.subr.bf16.mxu0 %v1225_v0  ;;  %v1230_v5 = vld [vmem:[%s1628_s1 + $0x8] sm:$0xff]   ;;  %v1234_v9 = vld [vmem:[%s1628_s1 + $0x10] sm:$0xff]  }
   0x3   :  { %v1227_v2 = vld [vmem:[%s1628_s1 + $0xc0] sm:$0xff]   ;;  %1084 = vmatpush3.bf16.msra.mxu0 %v1226_v1  ;;  %v1231_v6 = vld [vmem:[%s1628_s1 + $0xc8] sm:$0xff]   ;;  %v1235_v10 = vld [vmem:[%s1628_s1 + $0xd0] sm:$0xff]  }
   0x4   :  { %v1228_v3 = vld [vmem:[%s1628_s1 + $0x80] sm:$0xff]   ;;  %1111 = vmatprep.subr.bf16.mxu1 %v1227_v2  ;;  %1085 = vmatprep.subr.bf16.mxu0 %v1229_v4  ;;  %v1232_v7 = vld [vmem:[%s1628_s1 + $0x88] sm:$0xff]   ;;  %v1236_v11 = vld [vmem:[%s1628_s1 + $0x90] sm:$0xff]  }
   0x5   :  { %1112 = vmatpush3.bf16.msra.mxu1 %v1228_v3  ;;  %v1237_v12 = vld [vmem:[%s1628_s1 + $0x58] sm:$0xff]   ;;  %v1241_v16 = vld [vmem:[%s1628_s1 + $0x60] sm:$0xff]   ;;  %v1245_v20 = vld [vmem:[%s1628_s1 + $0x68] sm:$0xff]  }
   0x6   :  { %1113 = vmatprep.subr.bf16.mxu1 %v1231_v6  ;;  %v1238_v13 = vld [vmem:[%s1628_s1 + $0x18] sm:$0xff]   ;;  %v1242_v17 = vld [vmem:[%s1628_s1 + $0x20] sm:$0xff]   ;;  %v1246_v21 = vld [vmem:[%s1628_s1 + $0x28] sm:$0xff]  }
   0x7   :  { %1086 = vmatpush3.bf16.msra.mxu0 %v1230_v5  ;;  %v1239_v14 = vld [vmem:[%s1628_s1 + $0xd8] sm:$0xff]   ;;  %v1243_v18 = vld [vmem:[%s1628_s1 + $0xe0] sm:$0xff]   ;;  %v1247_v22 = vld [vmem:[%s1628_s1 + $0xe8] sm:$0xff]  }
   0x8   :  { %1087 = vmatprep.subr.bf16.mxu0 %v1233_v8  ;;  %v1240_v15 = vld [vmem:[%s1628_s1 + $0x98] sm:$0xff]   ;;  %v1244_v19 = vld [vmem:[%s1628_s1 + $0xa0] sm:$0xff]   ;;  %v1248_v23 = vld [vmem:[%s1628_s1 + $0xa8] sm:$0xff]  }
   0x9   :  { %1114 = vmatpush3.bf16.msra.mxu1 %v1232_v7  ;;  %v1249_v24 = vld [vmem:[%s1628_s1 + $0x70] sm:$0xff]   ;;  %v1253_v28 = vld [vmem:[%s1628_s1 + $0x78] sm:$0xff]   ;;  %v1256_v31 = vld [vmem:[%s1629_s0] ss:$36 sps:$4 sm:$0xff]  }
   0xa   :  { %1115 = vmatprep.subr.bf16.mxu1 %v1235_v10  ;;  %v1250_v25 = vld [vmem:[%s1628_s1 + $0x30] sm:$0xff]   ;;  %v1254_v29 = vld [vmem:[%s1628_s1 + $0x38] sm:$0xff]   ;;  %v1258_v32 = vld [vmem:[%s1629_s0 + $0x4] ss:$36 sps:$4 sm:$0xff]  }
   0xb   :  { %1088 = vmatpush3.bf16.msra.mxu0 %v1234_v9  ;;  %v1251_v26 = vld [vmem:[%s1628_s1 + $0xf0] sm:$0xff]   ;;  %v1255_v30 = vld [vmem:[%s1628_s1 + $0xf8] sm:$0xff]   ;;  %742 = vmatprep.mubr.bf16.mxu0 %v1258_v32  ;;  %v1260_v34 = vld [vmem:[%s1628_s1 + $0x140] sm:$0xff]  }
   0xc   :  { %1089 = vmatprep.subr.bf16.mxu0 %v1237_v12  ;;  %v1252_v27 = vld [vmem:[%s1628_s1 + $0xb0] sm:$0xff]   ;;  %v1259_v33 = vld [vmem:[%s1628_s1 + $0xb8] sm:$0xff]   ;;  %v1261_v35 = vld [vmem:[%s1629_s0 + $0x8] ss:$36 sps:$4 sm:$0xff]  }
   0xd   :  { %1116 = vmatpush3.bf16.msra.mxu1 %v1236_v11  ;;  %v1263_v36 = vld [vmem:[%s1629_s0 + $0xc] ss:$36 sps:$4 sm:$0xff]   ;;  %v1264_v37 = vld [vmem:[%s1628_s1 + $0x100] sm:$0xff]   ;;  %v1275_v48 = vld [vmem:[%s1628_s1 + $0x158] sm:$0xff]  }
   0xe   :  { %1117 = vmatprep.subr.bf16.mxu1 %v1239_v14  ;;  %791 = vmatprep.mubr.bf16.mxu1 %v1263_v36  ;;  %v1265_v38 = vld [vmem:[%s1628_s1 + $0x1c0] sm:$0xff]   ;;  %v1267_v40 = vld [vmem:[%s1628_s1 + $0x148] sm:$0xff]   ;;  %v1271_v44 = vld [vmem:[%s1628_s1 + $0x150] sm:$0xff]  }
   0xf   :  { %1090 = vmatpush3.bf16.msra.mxu0 %v1238_v13  ;;  %v1266_v39 = vld [vmem:[%s1628_s1 + $0x180] sm:$0xff]   ;;  %v1268_v41 = vld [vmem:[%s1628_s1 + $0x108] sm:$0xff]   ;;  %v1272_v45 = vld [vmem:[%s1628_s1 + $0x110] sm:$0xff]  }
  0x10   :  { %1091 = vmatprep.subr.bf16.mxu0 %v1241_v16  ;;  %v1269_v42 = vld [vmem:[%s1628_s1 + $0x1c8] sm:$0xff]   ;;  %v1273_v46 = vld [vmem:[%s1628_s1 + $0x1d0] sm:$0xff]   ;;  %v1276_v49 = vld [vmem:[%s1628_s1 + $0x118] sm:$0xff]  }
  0x11   :  { %1118 = vmatpush3.bf16.msra.mxu1 %v1240_v15  ;;  %v1270_v43 = vld [vmem:[%s1628_s1 + $0x188] sm:$0xff]   ;;  %v1274_v47 = vld [vmem:[%s1628_s1 + $0x190] sm:$0xff]   ;;  %v1277_v50 = vld [vmem:[%s1628_s1 + $0x1d8] sm:$0xff]  }
  0x12   :  { %1119 = vmatprep.subr.bf16.mxu1 %v1243_v18  ;;  %v1278_v51 = vld [vmem:[%s1628_s1 + $0x198] sm:$0xff]   ;;  %v1279_v52 = vld [vmem:[%s1628_s1 + $0x160] sm:$0xff]   ;;  %v1283_v56 = vld [vmem:[%s1628_s1 + $0x168] sm:$0xff]  }
  0x13   :  { %1092 = vmatpush3.bf16.msra.mxu0 %v1242_v17  ;;  %v1280_v53 = vld [vmem:[%s1628_s1 + $0x120] sm:$0xff]   ;;  %v1284_v57 = vld [vmem:[%s1629_s0 + $0x4c] ss:$36 sps:$4 sm:$0xff]   ;;  %v1289_v61 = vld [vmem:[%s1629_s0 + $0x54] ss:$36 sps:$4 sm:$0xff]  }
  0x14   :  { %1093 = vmatprep.subr.bf16.mxu0 %v1245_v20  ;;  %v1281_v54 = vld [vmem:[%s1628_s1 + $0x1e0] sm:$0xff]   ;;  %v1286_v58 = vld [vmem:[%s1628_s1 + $0x128] sm:$0xff]   ;;  %v1292_v63 = vld [vmem:[%s1629_s0 + $0x50] ss:$36 sps:$4 sm:$0xff]  }
  0x15   :  { %1120 = vmatpush3.bf16.msra.mxu1 %v1244_v19  ;;  %v1282_v55 = vld [vmem:[%s1628_s1 + $0x1a0] sm:$0xff]   ;;  %v1287_v59 = vld [vmem:[%s1629_s0 + $0x48] ss:$36 sps:$4 sm:$0xff]   ;;  %v1293_v0 = vld [vmem:[%s1628_s1 + $0x170] sm:$0xff]  }
  0x16   :  { %1121 = vmatprep.subr.bf16.mxu1 %v1247_v22  ;;  %v1288_v60 = vld [vmem:[%s1628_s1 + $0x1e8] sm:$0xff]   ;;  %v1294_v1 = vld [vmem:[%s1628_s1 + $0x130] sm:$0xff]   ;;  %v1297_v4 = vld [vmem:[%s1628_s1 + $0x178] sm:$0xff]  }
  0x17   :  { %1094 = vmatpush3.bf16.msra.mxu0 %v1246_v21  ;;  %v1291_v62 = vld [vmem:[%s1628_s1 + $0x1a8] sm:$0xff]   ;;  %v1295_v2 = vld [vmem:[%s1628_s1 + $0x1f0] sm:$0xff]   ;;  %v1298_v5 = vld [vmem:[%s1628_s1 + $0x138] sm:$0xff]  }
  0x18   :  { %1095 = vmatprep.subr.bf16.mxu0 %v1249_v24  ;;  %v1296_v3 = vld [vmem:[%s1628_s1 + $0x1b0] sm:$0xff]   ;;  %v1299_v6 = vld [vmem:[%s1628_s1 + $0x1f8] sm:$0xff]   ;;  %v1304_v10 = vld [vmem:[%s1628_s1 + $0x200] sm:$0xff]  }
  0x19   :  { %1122 = vmatpush3.bf16.msra.mxu1 %v1248_v23  ;;  %v1300_v7 = vld [vmem:[%s1629_s0 + $0x10] ss:$36 sps:$4 sm:$0xff]   ;;  %v1303_v9 = vld [vmem:[%s1628_s1 + $0x1b8] sm:$0xff]   ;;  %v1308_v13 = vld [vmem:[%s1628_s1 + $0x208] sm:$0xff]  }
  0x1a   :  { %1123 = vmatprep.subr.bf16.mxu1 %v1251_v26  ;;  %v1302_v8 = vld [vmem:[%s1629_s0 + $0x14] ss:$36 sps:$4 sm:$0xff]   ;;  %v1307_v12 = vld [vmem:[%s1629_s0 + $0x1c] ss:$36 sps:$4 sm:$0xff]   ;;  %v1313_v17 = vld [vmem:[%s1629_s0 + $0x64] ss:$36 sps:$4 sm:$0xff]  }
  0x1b   :  { %1096 = vmatpush3.bf16.msra.mxu0 %v1250_v25  ;;  %v1305_v11 = vld [vmem:[%s1629_s0 + $0x18] ss:$36 sps:$4 sm:$0xff]   ;;  %v1312_v16 = vld [vmem:[%s1628_s1 + $0x210] sm:$0xff]   ;;  %v1315_v18 = vld [vmem:[%s1629_s0 + $0x60] ss:$36 sps:$4 sm:$0xff]  }
  0x1c   :  { %1097 = vmatprep.subr.bf16.mxu0 %v1253_v28  ;;  %v1309_v14 = vld [vmem:[%s1629_s0 + $0x5c] ss:$36 sps:$4 sm:$0xff]   ;;  %v1318_v22 = vld [vmem:[%s1628_s1 + $0x228] sm:$0xff]   ;;  %v1319_v23 = vld [vmem:[%s1628_s1 + $0x230] sm:$0xff]  }
  0x1d   :  { %1124 = vmatpush3.bf16.msra.mxu1 %v1252_v27  ;;  %v1311_v15 = vld [vmem:[%s1629_s0 + $0x58] ss:$36 sps:$4 sm:$0xff]   ;;  %v1317_v20 = vld [vmem:[%s1628_s1 + $0x220] sm:$0xff]   ;;  %v1322_v25 = vld [vmem:[%s1629_s0 + $0x68] ss:$36 sps:$4 sm:$0xff]  }
  0x1e   :  { %1125 = vmatprep.subr.bf16.mxu1 %v1255_v30  ;;  %v1316_v19 = vld [vmem:[%s1628_s1 + $0x218] sm:$0xff]   ;;  %v1321_v21 = vld [vmem:[%s1629_s0 + $0x20] ss:$36 sps:$4 sm:$0xff]  }
  0x1f   :  { %1098 = vmatpush3.bf16.msra.mxu0 %v1254_v29  ;;  %v1320_v24 = vld [vmem:[%s1628_s1 + $0x238] sm:$0xff]   ;;  %v984_v27 = vld [vmem:[%s1630_s2] ss:$0 sm:$0xff] }
  0x20   :  { %1139 = vmatprep.subr.bf16.mxu0 %v1260_v34 }
  0x21   :  { %1126 = vmatpush3.bf16.msra.mxu1 %v1259_v33 }
  0x22   :  { %743 = vmatmul.mubr.bf16.vlgmr.msra.gmra.mrb[0].mxu0 %v1256_v31  ;;  %1167 = vmatprep.subr.bf16.mxu1 %v1265_v38 }
  0x23   :  { %1140 = vmatpush3.bf16.msra.mxu0 %v1264_v37  ;;  %750 = vmatprep.mubr.bf16.mxu0 %v1284_v57 }
  0x24   :  { %792 = vmatmul.mubr.bf16.vlgmr.msra.gmra.mrb[0].mxu1 %v1261_v35  ;;  %1141 = vmatprep.subr.bf16.mxu0 %v1267_v40 }
  0x25   :  { %1168 = vmatpush3.bf16.msra.mxu1 %v1266_v39  ;;  %799 = vmatprep.mubr.bf16.mxu1 %v1289_v61 }
  0x26   :  { %1169 = vmatprep.subr.bf16.mxu1 %v1269_v42 }
  0x27   :  { %1142 = vmatpush3.bf16.msra.mxu0 %v1268_v41 }
  0x28   :  { %1143 = vmatprep.subr.bf16.mxu0 %v1271_v44 }
  0x29   :  { %1170 = vmatpush3.bf16.msra.mxu1 %v1270_v43 }
  0x2a   :  { %1171 = vmatprep.subr.bf16.mxu1 %v1273_v46  ;;  %751 = vmatmul.mubr.bf16.gmra.mrb[4].mxu0 %v1287_v59 }
  0x2b   :  { %1144 = vmatpush3.bf16.msra.mxu0 %v1272_v45  ;;  %840 = vmatprep.mubr.bf16.mxu0 %v1302_v8 }
  0x2c   :  { %1145 = vmatprep.subr.bf16.mxu0 %v1275_v48  ;;  %800 = vmatmul.mubr.bf16.gmra.mrb[4].mxu1 %v1292_v63 }
  0x2d   :  { %1172 = vmatpush3.bf16.msra.mxu1 %v1274_v47  ;;  %889 = vmatprep.mubr.bf16.mxu1 %v1307_v12 }
  0x2e   :  { %1173 = vmatprep.subr.bf16.mxu1 %v1277_v50 }
  0x2f   :  { %1146 = vmatpush3.bf16.msra.mxu0 %v1276_v49 }
  0x30   :  { %1147 = vmatprep.subr.bf16.mxu0 %v1279_v52 }
  0x31   :  { %1174 = vmatpush3.bf16.msra.mxu1 %v1278_v51 }
  0x32   :  { %1175 = vmatprep.subr.bf16.mxu1 %v1281_v54 }
  0x33   :  { %1148 = vmatpush3.bf16.msra.mxu0 %v1280_v53 }
  0x34   :  { %1149 = vmatprep.subr.bf16.mxu0 %v1283_v56 }
  0x35   :  { %1176 = vmatpush3.bf16.msra.mxu1 %v1282_v55 }
  0x36   :  { %1177 = vmatprep.subr.bf16.mxu1 %v1288_v60 }
  0x37   :  { %1150 = vmatpush3.bf16.msra.mxu0 %v1286_v58 }
  0x38   :  { %1151 = vmatprep.subr.bf16.mxu0 %v1293_v0 }
  0x39   :  { %1178 = vmatpush3.bf16.msra.mxu1 %v1291_v62 }
  0x3a   :  { %1179 = vmatprep.subr.bf16.mxu1 %v1295_v2 }
  0x3b   :  { %1152 = vmatpush3.bf16.msra.mxu0 %v1294_v1 }
  0x3c   :  { %1153 = vmatprep.subr.bf16.mxu0 %v1297_v4 }
  0x3d   :  { %1180 = vmatpush3.bf16.msra.mxu1 %v1296_v3 }
  0x3e   :  { %1181 = vmatprep.subr.bf16.mxu1 %v1299_v6 }
  0x3f   :  { %1154 = vmatpush3.bf16.msra.mxu0 %v1298_v5 }
  0x40   :  { %1205 = vmatprep.subr.bf16.mxu0 %v1304_v10 }
  0x41   :  { %1182 = vmatpush3.bf16.msra.mxu1 %v1303_v9 }
  0x42   :  { %841 = vmatmul.mubr.bf16.vlgmr.msra.gmra.mrb[8].mxu0 %v1300_v7 }
  0x43   :  { %1206 = vmatpush3.bf16.msra.mxu0 %v1304_v10  ;;  %848 = vmatprep.mubr.bf16.mxu0 %v1309_v14 }
  0x44   :  { %890 = vmatmul.mubr.bf16.vlgmr.msra.gmra.mrb[8].mxu1 %v1305_v11  ;;  %1207 = vmatprep.subr.bf16.mxu0 %v1308_v13 }
  0x45   :  { %897 = vmatprep.mubr.bf16.mxu1 %v1313_v17 }
  0x47   :  { %1208 = vmatpush3.bf16.msra.mxu0 %v1308_v13 }
  0x48   :  { %1209 = vmatprep.subr.bf16.mxu0 %v1312_v16 }
  0x4a   :  { %849 = vmatmul.mubr.bf16.gmra.mrb[12].mxu0 %v1311_v15 }
  0x4b   :  { %1210 = vmatpush3.bf16.msra.mxu0 %v1312_v16  ;;  %1221 = vmatprep.mubr.bf16.mxu0 %v1321_v21 }
  0x4c   :  { %898 = vmatmul.mubr.bf16.gmra.mrb[12].mxu1 %v1315_v18  ;;  %1211 = vmatprep.subr.bf16.mxu0 %v1316_v19 }
  0x4f   :  { %1212 = vmatpush3.bf16.msra.mxu0 %v1316_v19 }
  0x50   :  { %1213 = vmatprep.subr.bf16.mxu0 %v1317_v20 }
  0x53   :  { %1214 = vmatpush3.bf16.msra.mxu0 %v1317_v20 }
  0x54   :  { %1215 = vmatprep.subr.bf16.mxu0 %v1318_v22 }
  0x57   :  { %1216 = vmatpush3.bf16.msra.mxu0 %v1318_v22 }
  0x58   :  { %1217 = vmatprep.subr.bf16.mxu0 %v1319_v23 }
  0x5b   :  { %1218 = vmatpush3.bf16.msra.mxu0 %v1319_v23 }
  0x5c   :  { %1219 = vmatprep.subr.bf16.mxu0 %v1320_v24 }
  0x5f   :  { %1220 = vmatpush3.bf16.msra.mxu0 %v1320_v24 }
  0x62   :  { %1222 = vmatmul.mubr.bf16.vlgmr.msra.gmra.mrb[16].mxu0 %v1322_v25 }
  0xf5   :  { %v1099_v26 = vpop.f32.mrb[0].mxu0 }
  0xf6   :  { %v1100_v28 = vpop.f32.mrb[1].mxu0 }
  0xf7   :  { %v1101_v29 = vadd.f32 %v1100_v28, %v1099_v26  ;;  %v1102_v30 = vpop.f32.mrb[2].mxu0  ;;  %v1127_v31 = vpop.f32.mrb[0].mxu1 }
  0xf8   :  { %v1103_v32 = vpop.f32.mrb[3].mxu0  ;;  %v1128_v35 = vpop.f32.mrb[1].mxu1 }
  0xf9   :  { %v745_v33 = vadd.f32 %v1101_v29, %v984_v27  ;;  %v1104_v34 = vadd.f32 %v1103_v32, %v1102_v30  ;;  %v1129_v36 = vadd.f32 %v1128_v35, %v1127_v31  ;;  %v1130_v37 = vpop.f32.mrb[2].mxu1 }
  0xfa   :  { %v1131_v39 = vpop.f32.mrb[3].mxu1 }
  0xfb   :  { %v748_v38 = vadd.f32 %v1104_v34, %v984_v27  ;;  %v794_v40 = vadd.f32 %v1129_v36, %v745_v33  ;;  %v1132_v41 = vadd.f32 %v1131_v39, %v1130_v37 }
  0xfd   :  { %v797_v42 = vadd.f32 %v1132_v41, %v748_v38  ;;  %v1105_v43 = vpop.f32.mrb[4].mxu0 }
  0xfe   :  { %v1106_v44 = vpop.f32.mrb[5].mxu0 }
  0xff   :  { %v1107_v45 = vadd.f32 %v1106_v44, %v1105_v43  ;;  %v1108_v46 = vpop.f32.mrb[6].mxu0  ;;  %v1133_v47 = vpop.f32.mrb[4].mxu1 }
 0x100   :  { %v1109_v48 = vpop.f32.mrb[7].mxu0  ;;  %v1134_v51 = vpop.f32.mrb[5].mxu1 }
 0x101   :  { %v753_v49 = vadd.f32 %v1107_v45, %v984_v27  ;;  %v1110_v50 = vadd.f32 %v1109_v48, %v1108_v46  ;;  %v1135_v52 = vadd.f32 %v1134_v51, %v1133_v47  ;;  %v1136_v53 = vpop.f32.mrb[6].mxu1 }
 0x102   :  { %v1137_v55 = vpop.f32.mrb[7].mxu1 }
 0x103   :  { %v756_v54 = vadd.f32 %v1110_v50, %v984_v27  ;;  %v802_v56 = vadd.f32 %v1135_v52, %v753_v49  ;;  %v1138_v57 = vadd.f32 %v1137_v55, %v1136_v53 }
 0x105   :  { %v805_v58 = vadd.f32 %v1138_v57, %v756_v54 }
 0x115   :  { %v1155_v59 = vpop.f32.mrb[8].mxu0 }
 0x116   :  { %v1156_v60 = vpop.f32.mrb[9].mxu0 }
 0x117   :  { %v1157_v61 = vadd.f32 %v1156_v60, %v1155_v59  ;;  %v1158_v62 = vpop.f32.mrb[10].mxu0  ;;  %v1183_v63 = vpop.f32.mrb[8].mxu1 }
 0x118   :  { %v1159_v0 = vpop.f32.mrb[11].mxu0  ;;  %v1184_v3 = vpop.f32.mrb[9].mxu1 }
 0x119   :  { %v843_v1 = vadd.f32 %v1157_v61, %v794_v40  ;;  %v1160_v2 = vadd.f32 %v1159_v0, %v1158_v62  ;;  %v1185_v4 = vadd.f32 %v1184_v3, %v1183_v63  ;;  %v1186_v5 = vpop.f32.mrb[10].mxu1 }
 0x11a   :  { %v1187_v7 = vpop.f32.mrb[11].mxu1 }
 0x11b   :  { %v846_v6 = vadd.f32 %v1160_v2, %v797_v42  ;;  %v1188_v8 = vadd.f32 %v1187_v7, %v1186_v5  ;;  %v892_v9 = vadd.f32 %v1185_v4, %v843_v1 }
 0x11d   :  { %v1161_v10 = vpop.f32.mrb[12].mxu0  ;;  %v895_v12 = vadd.f32 %v1188_v8, %v846_v6 }
 0x11e   :  { %v1162_v11 = vpop.f32.mrb[13].mxu0 }
 0x11f   :  { %v1163_v13 = vadd.f32 %v1162_v11, %v1161_v10  ;;  %v1164_v14 = vpop.f32.mrb[14].mxu0  ;;  %v1189_v15 = vpop.f32.mrb[12].mxu1 }
 0x120   :  { %v1165_v16 = vpop.f32.mrb[15].mxu0  ;;  %v1190_v19 = vpop.f32.mrb[13].mxu1 }
 0x121   :  { %v851_v17 = vadd.f32 %v1163_v13, %v802_v56  ;;  %v1166_v18 = vadd.f32 %v1165_v16, %v1164_v14  ;;  %v1191_v20 = vadd.f32 %v1190_v19, %v1189_v15  ;;  %v1192_v21 = vpop.f32.mrb[14].mxu1 }
 0x122   :  { %v1193_v23 = vpop.f32.mrb[15].mxu1 }
 0x123   :  { %v854_v22 = vadd.f32 %v1166_v18, %v805_v58  ;;  %v1194_v24 = vadd.f32 %v1193_v23, %v1192_v21  ;;  %v900_v25 = vadd.f32 %v1191_v20, %v851_v17 }
 0x125   :  { %v903_v26 = vadd.f32 %v1194_v24, %v854_v22 }
 0x135   :  { %v1223_v27 = vpop.f32.mrb[16].mxu0 }
 0x136   :  { %v949_v28 = vadd.f32 %v1223_v27, %v900_v25  ;;  %v940_v29 = vpop.f32.mrb[17].mxu0 }
 0x137   :  { %v941_v30 = vadd.f32 %v940_v29, %v892_v9  ;;  %v1224_v31 = vpop.f32.mrb[18].mxu0 }
 0x138   :  { %v957_v32 = vmax.f32 %v949_v28, 0.0  ;;  %v952_v33 = vadd.f32 %v1224_v31, %v903_v26  ;;  %v943_v34 = vpop.f32.mrb[19].mxu0 }
 0x139   :  { %v955_v35 = vmax.f32 %v941_v30, 0.0  ;;  %v944_v36 = vadd.f32 %v943_v34, %v895_v12 }
 0x13a   :  { %v1081_v37 = vpack.c.bf16 %v957_v32, %v957_v32  ;;  %v958_v38 = vmax.f32 %v952_v33, 0.0 }
 0x13b   :  { %v1079_v39 = vpack.c.bf16 %v955_v35, %v955_v35  ;;  %v956_v40 = vmax.f32 %v944_v36, 0.0 }
 0x13c   :  { %978 = vst.msk [vmem:[%s1631_s3 + $0x8] sm:$0xf] %vm975_vm0, %v1081_v37  ;;  %v1082_v41 = vpack.c.bf16 %v958_v38, %v958_v38 }
 0x13d   :  { %976 = vst.msk [vmem:[%s1631_s3] sm:$0xf] %vm975_vm0, %v1079_v39  ;;  %v1080_v42 = vpack.c.bf16 %v956_v40, %v956_v40 }
 0x13e   :  { %979 = vst.msk [vmem:[%s1631_s3 + $0xc] sm:$0xf] %vm975_vm0, %v1082_v41 }
 0x13f   :  { %977 = vst.msk [vmem:[%s1631_s3 + $0x4] sm:$0xf] %vm975_vm0, %v1080_v42 }

// kernel: mglnet_forward.129
= control target key start
LH: loop header
LB: loop body
LE: loop exit
PB: predicated region body
PF: predicated region fallthrough
CT: control target
= control target key end

     0   :  { %vm59_vm0 = vcmask 261120   ;;  %vm143_vm1 = vcmask 257024   ;;  %s250_s1 = inlined_call_operand.vmem [shape: bf16[32,32], index: 1, kind: input, shape index: {}]   ;;  %s251_s0 = inlined_call_operand.vmem [shape: bf16[32,32], index: 0, kind: input, shape index: {}]   ;;  %s252_s2 = inlined_call_operand.vmem [shape: f32[1,32], index: 2, kind: input, shape index: {}]   ;;  %s253_s3 = inlined_call_operand.vmem [shape: bf16[32,32], index: 3, kind: input, shape index: {}]   ;;  %s254_s4 = inlined_call_operand.vmem [shape: bf16[32,32], index: 4, kind: output, shape index: {}]  }
   0x1   :  { %v188_v0 = vld [vmem:[%s250_s1] sm:$0xff]   ;;  %v189_v1 = vld [vmem:[%s250_s1 + $0x8] sm:$0xff]  }
   0x2   :  { %180 = vmatprep.subr.bf16.mxu0 %v188_v0  ;;  %v190_v2 = vld [vmem:[%s251_s0] sm:$0xff]   ;;  %v191_v3 = vld [vmem:[%s251_s0 + $0x8] sm:$0xff]  }
   0x3   :  { %181 = vmatpush3.bf16.msra.mxu0 %v188_v0  ;;  %184 = vmatprep.mubr.msk.bf16.mxu0 %vm59_vm0, %v190_v2  ;;  %v175_v4 = vld [vmem:[%s253_s3 + $0x8] sm:$0xff]   ;;  %v152_v5 = vld [vmem:[%s252_s2] ss:$0 sm:$0xff] }
   0x4   :  { %182 = vmatprep.subr.bf16.mxu0 %v189_v1  ;;  %v168_v6 = vld [vmem:[%s253_s3] sm:$0xff]   ;;  %v173_v8 = vunpack.c.l.bf16 %v175_v4  ;;  %v174_v15 = vunpack.c.h.bf16 %v175_v4 }
   0x5   :  { %v169_v11 = vunpack.c.l.bf16 %v168_v6  ;;  %v170_v19 = vunpack.c.h.bf16 %v168_v6 }
   0x7   :  { %183 = vmatpush3.bf16.msra.mxu0 %v189_v1 }
   0xa   :  { %185 = vmatmul.mubr.msk.bf16.vlgmr.msra.gmra.mrb[0].mxu0 %vm59_vm0, %v191_v3 }
  0xdd   :  { %v186_v7 = vpop.f32.mrb[0].mxu0 }
  0xde   :  { %v109_v9 = vadd.f32 %v186_v7, %v152_v5  ;;  %v100_v10 = vpop.f32.mrb[1].mxu0 }
  0xdf   :  { %v101_v12 = vadd.f32 %v152_v5, %v100_v10  ;;  %v187_v13 = vpop.f32.mrb[2].mxu0 }
  0xe0   :  { %v117_v14 = vmax.f32 %v109_v9, 0.0  ;;  %v112_v16 = vadd.f32 %v187_v13, %v152_v5  ;;  %v103_v17 = vpop.f32.mrb[3].mxu0 }
  0xe1   :  { %v115_v18 = vmax.f32 %v101_v12, 0.0  ;;  %v104_v20 = vadd.f32 %v152_v5, %v103_v17 }
  0xe2   :  { %v125_v21 = vadd.f32 %v173_v8, %v117_v14  ;;  %v118_v22 = vmax.f32 %v112_v16, 0.0 }
  0xe3   :  { %v123_v23 = vadd.f32 %v169_v11, %v115_v18  ;;  %v116_v24 = vmax.f32 %v104_v20, 0.0 }
  0xe4   :  { %v165_v25 = vpack.c.bf16 %v125_v21, %v125_v21  ;;  %v126_v26 = vadd.f32 %v174_v15, %v118_v22 }
  0xe5   :  { %v163_v27 = vpack.c.bf16 %v123_v23, %v123_v23  ;;  %v124_v28 = vadd.f32 %v170_v19, %v116_v24 }
  0xe6   :  { %146 = vst.msk [vmem:[%s254_s4 + $0x8] sm:$0xf] %vm143_vm1, %v165_v25  ;;  %v166_v29 = vpack.c.bf16 %v126_v26, %v126_v26 }
  0xe7   :  { %144 = vst.msk [vmem:[%s254_s4] sm:$0xf] %vm143_vm1, %v163_v27  ;;  %v164_v30 = vpack.c.bf16 %v124_v28, %v124_v28 }
  0xe8   :  { %147 = vst.msk [vmem:[%s254_s4 + $0xc] sm:$0xf] %vm143_vm1, %v166_v29 }
  0xe9   :  { %145 = vst.msk [vmem:[%s254_s4 + $0x4] sm:$0xf] %vm143_vm1, %v164_v30 }

// kernel: mglnet_forward.131
= control target key start
LH: loop header
LB: loop body
LE: loop exit
PB: predicated region body
PF: predicated region fallthrough
CT: control target
= control target key end

     0   :  { %vm54_vm0 = vcmask 261120   ;;  %vm110_vm1 = vcmask 7168   ;;  %s189_s1 = inlined_call_operand.vmem [shape: bf16[32,1], index: 1, kind: input, shape index: {}]   ;;  %s190_s0 = inlined_call_operand.vmem [shape: bf16[32,32], index: 0, kind: input, shape index: {}]   ;;  %s191_s2 = inlined_call_operand.<no memory space> [shape: f32[1,1], index: 2, kind: input, shape index: {}]   ;;  %s192_s3 = inlined_call_operand.vmem [shape: f32[32,1], index: 3, kind: output, shape index: {}]  }
   0x1   :  { %v138_v0 = vld [vmem:[%s189_s1] sm:$0xff]   ;;  %v8_v1 = vstv %s191_s2  ;;  %v139_v2 = vld [vmem:[%s189_s1 + $0x8] sm:$0xff]  }
   0x2   :  { %9 = vst [vmem:[#allocation2] sm:$0x1] %v8_v1  ;;  %130 = vmatprep.subr.bf16.mxu0 %v138_v0  ;;  %v140_v3 = vld [vmem:[%s190_s0] sm:$0xff]   ;;  %v141_v4 = vld [vmem:[%s190_s0 + $0x8] sm:$0xff]  }
   0x3   :  { %131 = vmatpush3.bf16.msra.mxu0 %v138_v0  ;;  %134 = vmatprep.mubr.msk.bf16.mxu0 %vm54_vm0, %v140_v3 }
   0x4   :  { %132 = vmatprep.subr.bf16.mxu0 %v139_v2 }
   0x7   :  { %133 = vmatpush3.bf16.msra.mxu0 %v139_v2 }
   0x9   :  { %v119_v5 = vld [vmem:[#allocation2] ss:$0 sm:$0xff] }
   0xa   :  { %135 = vmatmul.mubr.msk.bf16.vlgmr.msra.gmra.mrb[0].mxu0 %vm54_vm0, %v141_v4 }
  0xdd   :  { %v136_v6 = vpop.f32.mrb[0].mxu0 }
  0xde   :  { %v104_v7 = vadd.f32 %v136_v6, %v119_v5  ;;  %v95_v8 = vpop.f32.mrb[1].mxu0 }
  0xdf   :  { %v96_v9 = vadd.f32 %v119_v5, %v95_v8  ;;  %v137_v10 = vpop.f32.mrb[2].mxu0 }
  0xe0   :  { %113 = vst.msk [vmem:[%s192_s3 + $0x10] sm:$0xff] %vm110_vm1, %v104_v7  ;;  %v107_v11 = vadd.f32 %v137_v10, %v119_v5  ;;  %v98_v12 = vpop.f32.mrb[3].mxu0 }
  0xe1   :  { %111 = vst.msk [vmem:[%s192_s3] sm:$0xff] %vm110_vm1, %v96_v9  ;;  %v99_v13 = vadd.f32 %v119_v5, %v98_v12 }
  0xe2   :  { %114 = vst.msk [vmem:[%s192_s3 + $0x18] sm:$0xff] %vm110_vm1, %v107_v11 }
  0xe3   :  { %112 = vst.msk [vmem:[%s192_s3 + $0x8] sm:$0xff] %vm110_vm1, %v99_v13 }

// kernel: mglnet_forward.121
= control target key start
LH: loop header
LB: loop body
LE: loop exit
PB: predicated region body
PF: predicated region fallthrough
CT: control target
= control target key end

     0   :  { %vm975_vm0 = vcmask 257024   ;;  %s1628_s1 = inlined_call_operand.vmem [shape: bf16[1152,32], index: 1, kind: input, shape index: {}]   ;;  %s1629_s0 = inlined_call_operand.vmem [shape: bf16[32,1152], index: 0, kind: input, shape index: {}]   ;;  %s1630_s2 = inlined_call_operand.vmem [shape: f32[1,32], index: 2, kind: input, shape index: {}]   ;;  %s1631_s3 = inlined_call_operand.vmem [shape: bf16[32,32], index: 3, kind: output, shape index: {}]  }
   0x1   :  { %v1225_v0 = vld [vmem:[%s1628_s1 + $0x40] sm:$0xff]   ;;  %v1229_v4 = vld [vmem:[%s1628_s1 + $0x48] sm:$0xff]   ;;  %v1233_v8 = vld [vmem:[%s1628_s1 + $0x50] sm:$0xff]  }
   0x2   :  { %v1226_v1 = vld [vmem:[%s1628_s1] sm:$0xff]   ;;  %1083 = vmatprep.subr.bf16.mxu0 %v1225_v0  ;;  %v1230_v5 = vld [vmem:[%s1628_s1 + $0x8] sm:$0xff]   ;;  %v1234_v9 = vld [vmem:[%s1628_s1 + $0x10] sm:$0xff]  }
   0x3   :  { %v1227_v2 = vld [vmem:[%s1628_s1 + $0xc0] sm:$0xff]   ;;  %1084 = vmatpush3.bf16.msra.mxu0 %v1226_v1  ;;  %v1231_v6 = vld [vmem:[%s1628_s1 + $0xc8] sm:$0xff]   ;;  %v1235_v10 = vld [vmem:[%s1628_s1 + $0xd0] sm:$0xff]  }
   0x4   :  { %v1228_v3 = vld [vmem:[%s1628_s1 + $0x80] sm:$0xff]   ;;  %1111 = vmatprep.subr.bf16.mxu1 %v1227_v2  ;;  %1085 = vmatprep.subr.bf16.mxu0 %v1229_v4  ;;  %v1232_v7 = vld [vmem:[%s1628_s1 + $0x88] sm:$0xff]   ;;  %v1236_v11 = vld [vmem:[%s1628_s1 + $0x90] sm:$0xff]  }
   0x5   :  { %1112 = vmatpush3.bf16.msra.mxu1 %v1228_v3  ;;  %v1237_v12 = vld [vmem:[%s1628_s1 + $0x58] sm:$0xff]   ;;  %v1241_v16 = vld [vmem:[%s1628_s1 + $0x60] sm:$0xff]   ;;  %v1245_v20 = vld [vmem:[%s1628_s1 + $0x68] sm:$0xff]  }
   0x6   :  { %1113 = vmatprep.subr.bf16.mxu1 %v1231_v6  ;;  %v1238_v13 = vld [vmem:[%s1628_s1 + $0x18] sm:$0xff]   ;;  %v1242_v17 = vld [vmem:[%s1628_s1 + $0x20] sm:$0xff]   ;;  %v1246_v21 = vld [vmem:[%s1628_s1 + $0x28] sm:$0xff]  }
   0x7   :  { %1086 = vmatpush3.bf16.msra.mxu0 %v1230_v5  ;;  %v1239_v14 = vld [vmem:[%s1628_s1 + $0xd8] sm:$0xff]   ;;  %v1243_v18 = vld [vmem:[%s1628_s1 + $0xe0] sm:$0xff]   ;;  %v1247_v22 = vld [vmem:[%s1628_s1 + $0xe8] sm:$0xff]  }
   0x8   :  { %1087 = vmatprep.subr.bf16.mxu0 %v1233_v8  ;;  %v1240_v15 = vld [vmem:[%s1628_s1 + $0x98] sm:$0xff]   ;;  %v1244_v19 = vld [vmem:[%s1628_s1 + $0xa0] sm:$0xff]   ;;  %v1248_v23 = vld [vmem:[%s1628_s1 + $0xa8] sm:$0xff]  }
   0x9   :  { %1114 = vmatpush3.bf16.msra.mxu1 %v1232_v7  ;;  %v1249_v24 = vld [vmem:[%s1628_s1 + $0x70] sm:$0xff]   ;;  %v1253_v28 = vld [vmem:[%s1628_s1 + $0x78] sm:$0xff]   ;;  %v1256_v31 = vld [vmem:[%s1629_s0] ss:$36 sps:$4 sm:$0xff]  }
   0xa   :  { %1115 = vmatprep.subr.bf16.mxu1 %v1235_v10  ;;  %v1250_v25 = vld [vmem:[%s1628_s1 + $0x30] sm:$0xff]   ;;  %v1254_v29 = vld [vmem:[%s1628_s1 + $0x38] sm:$0xff]   ;;  %v1258_v32 = vld [vmem:[%s1629_s0 + $0x4] ss:$36 sps:$4 sm:$0xff]  }
   0xb   :  { %1088 = vmatpush3.bf16.msra.mxu0 %v1234_v9  ;;  %v1251_v26 = vld [vmem:[%s1628_s1 + $0xf0] sm:$0xff]   ;;  %v1255_v30 = vld [vmem:[%s1628_s1 + $0xf8] sm:$0xff]   ;;  %742 = vmatprep.mubr.bf16.mxu0 %v1258_v32  ;;  %v1260_v34 = vld [vmem:[%s1628_s1 + $0x140] sm:$0xff]  }
   0xc   :  { %1089 = vmatprep.subr.bf16.mxu0 %v1237_v12  ;;  %v1252_v27 = vld [vmem:[%s1628_s1 + $0xb0] sm:$0xff]   ;;  %v1259_v33 = vld [vmem:[%s1628_s1 + $0xb8] sm:$0xff]   ;;  %v1261_v35 = vld [vmem:[%s1629_s0 + $0x8] ss:$36 sps:$4 sm:$0xff]  }
   0xd   :  { %1116 = vmatpush3.bf16.msra.mxu1 %v1236_v11  ;;  %v1263_v36 = vld [vmem:[%s1629_s0 + $0xc] ss:$36 sps:$4 sm:$0xff]   ;;  %v1264_v37 = vld [vmem:[%s1628_s1 + $0x100] sm:$0xff]   ;;  %v1275_v48 = vld [vmem:[%s1628_s1 + $0x158] sm:$0xff]  }
   0xe   :  { %1117 = vmatprep.subr.bf16.mxu1 %v1239_v14  ;;  %791 = vmatprep.mubr.bf16.mxu1 %v1263_v36  ;;  %v1265_v38 = vld [vmem:[%s1628_s1 + $0x1c0] sm:$0xff]   ;;  %v1267_v40 = vld [vmem:[%s1628_s1 + $0x148] sm:$0xff]   ;;  %v1271_v44 = vld [vmem:[%s1628_s1 + $0x150] sm:$0xff]  }
   0xf   :  { %1090 = vmatpush3.bf16.msra.mxu0 %v1238_v13  ;;  %v1266_v39 = vld [vmem:[%s1628_s1 + $0x180] sm:$0xff]   ;;  %v1268_v41 = vld [vmem:[%s1628_s1 + $0x108] sm:$0xff]   ;;  %v1272_v45 = vld [vmem:[%s1628_s1 + $0x110] sm:$0xff]  }
  0x10   :  { %1091 = vmatprep.subr.bf16.mxu0 %v1241_v16  ;;  %v1269_v42 = vld [vmem:[%s1628_s1 + $0x1c8] sm:$0xff]   ;;  %v1273_v46 = vld [vmem:[%s1628_s1 + $0x1d0] sm:$0xff]   ;;  %v1276_v49 = vld [vmem:[%s1628_s1 + $0x118] sm:$0xff]  }
  0x11   :  { %1118 = vmatpush3.bf16.msra.mxu1 %v1240_v15  ;;  %v1270_v43 = vld [vmem:[%s1628_s1 + $0x188] sm:$0xff]   ;;  %v1274_v47 = vld [vmem:[%s1628_s1 + $0x190] sm:$0xff]   ;;  %v1277_v50 = vld [vmem:[%s1628_s1 + $0x1d8] sm:$0xff]  }
  0x12   :  { %1119 = vmatprep.subr.bf16.mxu1 %v1243_v18  ;;  %v1278_v51 = vld [vmem:[%s1628_s1 + $0x198] sm:$0xff]   ;;  %v1279_v52 = vld [vmem:[%s1628_s1 + $0x160] sm:$0xff]   ;;  %v1283_v56 = vld [vmem:[%s1628_s1 + $0x168] sm:$0xff]  }
  0x13   :  { %1092 = vmatpush3.bf16.msra.mxu0 %v1242_v17  ;;  %v1280_v53 = vld [vmem:[%s1628_s1 + $0x120] sm:$0xff]   ;;  %v1284_v57 = vld [vmem:[%s1629_s0 + $0x4c] ss:$36 sps:$4 sm:$0xff]   ;;  %v1289_v61 = vld [vmem:[%s1629_s0 + $0x54] ss:$36 sps:$4 sm:$0xff]  }
  0x14   :  { %1093 = vmatprep.subr.bf16.mxu0 %v1245_v20  ;;  %v1281_v54 = vld [vmem:[%s1628_s1 + $0x1e0] sm:$0xff]   ;;  %v1286_v58 = vld [vmem:[%s1628_s1 + $0x128] sm:$0xff]   ;;  %v1292_v63 = vld [vmem:[%s1629_s0 + $0x50] ss:$36 sps:$4 sm:$0xff]  }
  0x15   :  { %1120 = vmatpush3.bf16.msra.mxu1 %v1244_v19  ;;  %v1282_v55 = vld [vmem:[%s1628_s1 + $0x1a0] sm:$0xff]   ;;  %v1287_v59 = vld [vmem:[%s1629_s0 + $0x48] ss:$36 sps:$4 sm:$0xff]   ;;  %v1293_v0 = vld [vmem:[%s1628_s1 + $0x170] sm:$0xff]  }
  0x16   :  { %1121 = vmatprep.subr.bf16.mxu1 %v1247_v22  ;;  %v1288_v60 = vld [vmem:[%s1628_s1 + $0x1e8] sm:$0xff]   ;;  %v1294_v1 = vld [vmem:[%s1628_s1 + $0x130] sm:$0xff]   ;;  %v1297_v4 = vld [vmem:[%s1628_s1 + $0x178] sm:$0xff]  }
  0x17   :  { %1094 = vmatpush3.bf16.msra.mxu0 %v1246_v21  ;;  %v1291_v62 = vld [vmem:[%s1628_s1 + $0x1a8] sm:$0xff]   ;;  %v1295_v2 = vld [vmem:[%s1628_s1 + $0x1f0] sm:$0xff]   ;;  %v1298_v5 = vld [vmem:[%s1628_s1 + $0x138] sm:$0xff]  }
  0x18   :  { %1095 = vmatprep.subr.bf16.mxu0 %v1249_v24  ;;  %v1296_v3 = vld [vmem:[%s1628_s1 + $0x1b0] sm:$0xff]   ;;  %v1299_v6 = vld [vmem:[%s1628_s1 + $0x1f8] sm:$0xff]   ;;  %v1304_v10 = vld [vmem:[%s1628_s1 + $0x200] sm:$0xff]  }
  0x19   :  { %1122 = vmatpush3.bf16.msra.mxu1 %v1248_v23  ;;  %v1300_v7 = vld [vmem:[%s1629_s0 + $0x10] ss:$36 sps:$4 sm:$0xff]   ;;  %v1303_v9 = vld [vmem:[%s1628_s1 + $0x1b8] sm:$0xff]   ;;  %v1308_v13 = vld [vmem:[%s1628_s1 + $0x208] sm:$0xff]  }
  0x1a   :  { %1123 = vmatprep.subr.bf16.mxu1 %v1251_v26  ;;  %v1302_v8 = vld [vmem:[%s1629_s0 + $0x14] ss:$36 sps:$4 sm:$0xff]   ;;  %v1307_v12 = vld [vmem:[%s1629_s0 + $0x1c] ss:$36 sps:$4 sm:$0xff]   ;;  %v1313_v17 = vld [vmem:[%s1629_s0 + $0x64] ss:$36 sps:$4 sm:$0xff]  }
  0x1b   :  { %1096 = vmatpush3.bf16.msra.mxu0 %v1250_v25  ;;  %v1305_v11 = vld [vmem:[%s1629_s0 + $0x18] ss:$36 sps:$4 sm:$0xff]   ;;  %v1312_v16 = vld [vmem:[%s1628_s1 + $0x210] sm:$0xff]   ;;  %v1315_v18 = vld [vmem:[%s1629_s0 + $0x60] ss:$36 sps:$4 sm:$0xff]  }
  0x1c   :  { %1097 = vmatprep.subr.bf16.mxu0 %v1253_v28  ;;  %v1309_v14 = vld [vmem:[%s1629_s0 + $0x5c] ss:$36 sps:$4 sm:$0xff]   ;;  %v1318_v22 = vld [vmem:[%s1628_s1 + $0x228] sm:$0xff]   ;;  %v1319_v23 = vld [vmem:[%s1628_s1 + $0x230] sm:$0xff]  }
  0x1d   :  { %1124 = vmatpush3.bf16.msra.mxu1 %v1252_v27  ;;  %v1311_v15 = vld [vmem:[%s1629_s0 + $0x58] ss:$36 sps:$4 sm:$0xff]   ;;  %v1317_v20 = vld [vmem:[%s1628_s1 + $0x220] sm:$0xff]   ;;  %v1322_v25 = vld [vmem:[%s1629_s0 + $0x68] ss:$36 sps:$4 sm:$0xff]  }
  0x1e   :  { %1125 = vmatprep.subr.bf16.mxu1 %v1255_v30  ;;  %v1316_v19 = vld [vmem:[%s1628_s1 + $0x218] sm:$0xff]   ;;  %v1321_v21 = vld [vmem:[%s1629_s0 + $0x20] ss:$36 sps:$4 sm:$0xff]  }
  0x1f   :  { %1098 = vmatpush3.bf16.msra.mxu0 %v1254_v29  ;;  %v1320_v24 = vld [vmem:[%s1628_s1 + $0x238] sm:$0xff]   ;;  %v984_v27 = vld [vmem:[%s1630_s2] ss:$0 sm:$0xff] }
  0x20   :  { %1139 = vmatprep.subr.bf16.mxu0 %v1260_v34 }
  0x21   :  { %1126 = vmatpush3.bf16.msra.mxu1 %v1259_v33 }
  0x22   :  { %743 = vmatmul.mubr.bf16.vlgmr.msra.gmra.mrb[0].mxu0 %v1256_v31  ;;  %1167 = vmatprep.subr.bf16.mxu1 %v1265_v38 }
  0x23   :  { %1140 = vmatpush3.bf16.msra.mxu0 %v1264_v37  ;;  %750 = vmatprep.mubr.bf16.mxu0 %v1284_v57 }
  0x24   :  { %792 = vmatmul.mubr.bf16.vlgmr.msra.gmra.mrb[0].mxu1 %v1261_v35  ;;  %1141 = vmatprep.subr.bf16.mxu0 %v1267_v40 }
  0x25   :  { %1168 = vmatpush3.bf16.msra.mxu1 %v1266_v39  ;;  %799 = vmatprep.mubr.bf16.mxu1 %v1289_v61 }
  0x26   :  { %1169 = vmatprep.subr.bf16.mxu1 %v1269_v42 }
  0x27   :  { %1142 = vmatpush3.bf16.msra.mxu0 %v1268_v41 }
  0x28   :  { %1143 = vmatprep.subr.bf16.mxu0 %v1271_v44 }
  0x29   :  { %1170 = vmatpush3.bf16.msra.mxu1 %v1270_v43 }
  0x2a   :  { %1171 = vmatprep.subr.bf16.mxu1 %v1273_v46  ;;  %751 = vmatmul.mubr.bf16.gmra.mrb[4].mxu0 %v1287_v59 }
  0x2b   :  { %1144 = vmatpush3.bf16.msra.mxu0 %v1272_v45  ;;  %840 = vmatprep.mubr.bf16.mxu0 %v1302_v8 }
  0x2c   :  { %1145 = vmatprep.subr.bf16.mxu0 %v1275_v48  ;;  %800 = vmatmul.mubr.bf16.gmra.mrb[4].mxu1 %v1292_v63 }
  0x2d   :  { %1172 = vmatpush3.bf16.msra.mxu1 %v1274_v47  ;;  %889 = vmatprep.mubr.bf16.mxu1 %v1307_v12 }
  0x2e   :  { %1173 = vmatprep.subr.bf16.mxu1 %v1277_v50 }
  0x2f   :  { %1146 = vmatpush3.bf16.msra.mxu0 %v1276_v49 }
  0x30   :  { %1147 = vmatprep.subr.bf16.mxu0 %v1279_v52 }
  0x31   :  { %1174 = vmatpush3.bf16.msra.mxu1 %v1278_v51 }
  0x32   :  { %1175 = vmatprep.subr.bf16.mxu1 %v1281_v54 }
  0x33   :  { %1148 = vmatpush3.bf16.msra.mxu0 %v1280_v53 }
  0x34   :  { %1149 = vmatprep.subr.bf16.mxu0 %v1283_v56 }
  0x35   :  { %1176 = vmatpush3.bf16.msra.mxu1 %v1282_v55 }
  0x36   :  { %1177 = vmatprep.subr.bf16.mxu1 %v1288_v60 }
  0x37   :  { %1150 = vmatpush3.bf16.msra.mxu0 %v1286_v58 }
  0x38   :  { %1151 = vmatprep.subr.bf16.mxu0 %v1293_v0 }
  0x39   :  { %1178 = vmatpush3.bf16.msra.mxu1 %v1291_v62 }
  0x3a   :  { %1179 = vmatprep.subr.bf16.mxu1 %v1295_v2 }
  0x3b   :  { %1152 = vmatpush3.bf16.msra.mxu0 %v1294_v1 }
  0x3c   :  { %1153 = vmatprep.subr.bf16.mxu0 %v1297_v4 }
  0x3d   :  { %1180 = vmatpush3.bf16.msra.mxu1 %v1296_v3 }
  0x3e   :  { %1181 = vmatprep.subr.bf16.mxu1 %v1299_v6 }
  0x3f   :  { %1154 = vmatpush3.bf16.msra.mxu0 %v1298_v5 }
  0x40   :  { %1205 = vmatprep.subr.bf16.mxu0 %v1304_v10 }
  0x41   :  { %1182 = vmatpush3.bf16.msra.mxu1 %v1303_v9 }
  0x42   :  { %841 = vmatmul.mubr.bf16.vlgmr.msra.gmra.mrb[8].mxu0 %v1300_v7 }
  0x43   :  { %1206 = vmatpush3.bf16.msra.mxu0 %v1304_v10  ;;  %848 = vmatprep.mubr.bf16.mxu0 %v1309_v14 }
  0x44   :  { %890 = vmatmul.mubr.bf16.vlgmr.msra.gmra.mrb[8].mxu1 %v1305_v11  ;;  %1207 = vmatprep.subr.bf16.mxu0 %v1308_v13 }
  0x45   :  { %897 = vmatprep.mubr.bf16.mxu1 %v1313_v17 }
  0x47   :  { %1208 = vmatpush3.bf16.msra.mxu0 %v1308_v13 }
  0x48   :  { %1209 = vmatprep.subr.bf16.mxu0 %v1312_v16 }
  0x4a   :  { %849 = vmatmul.mubr.bf16.gmra.mrb[12].mxu0 %v1311_v15 }
  0x4b   :  { %1210 = vmatpush3.bf16.msra.mxu0 %v1312_v16  ;;  %1221 = vmatprep.mubr.bf16.mxu0 %v1321_v21 }
  0x4c   :  { %898 = vmatmul.mubr.bf16.gmra.mrb[12].mxu1 %v1315_v18  ;;  %1211 = vmatprep.subr.bf16.mxu0 %v1316_v19 }
  0x4f   :  { %1212 = vmatpush3.bf16.msra.mxu0 %v1316_v19 }
  0x50   :  { %1213 = vmatprep.subr.bf16.mxu0 %v1317_v20 }
  0x53   :  { %1214 = vmatpush3.bf16.msra.mxu0 %v1317_v20 }
  0x54   :  { %1215 = vmatprep.subr.bf16.mxu0 %v1318_v22 }
  0x57   :  { %1216 = vmatpush3.bf16.msra.mxu0 %v1318_v22 }
  0x58   :  { %1217 = vmatprep.subr.bf16.mxu0 %v1319_v23 }
  0x5b   :  { %1218 = vmatpush3.bf16.msra.mxu0 %v1319_v23 }
  0x5c   :  { %1219 = vmatprep.subr.bf16.mxu0 %v1320_v24 }
  0x5f   :  { %1220 = vmatpush3.bf16.msra.mxu0 %v1320_v24 }
  0x62   :  { %1222 = vmatmul.mubr.bf16.vlgmr.msra.gmra.mrb[16].mxu0 %v1322_v25 }
  0xf5   :  { %v1099_v26 = vpop.f32.mrb[0].mxu0 }
  0xf6   :  { %v1100_v28 = vpop.f32.mrb[1].mxu0 }
  0xf7   :  { %v1101_v29 = vadd.f32 %v1100_v28, %v1099_v26  ;;  %v1102_v30 = vpop.f32.mrb[2].mxu0  ;;  %v1127_v31 = vpop.f32.mrb[0].mxu1 }
  0xf8   :  { %v1103_v32 = vpop.f32.mrb[3].mxu0  ;;  %v1128_v35 = vpop.f32.mrb[1].mxu1 }
  0xf9   :  { %v745_v33 = vadd.f32 %v1101_v29, %v984_v27  ;;  %v1104_v34 = vadd.f32 %v1103_v32, %v1102_v30  ;;  %v1129_v36 = vadd.f32 %v1128_v35, %v1127_v31  ;;  %v1130_v37 = vpop.f32.mrb[2].mxu1 }
  0xfa   :  { %v1131_v39 = vpop.f32.mrb[3].mxu1 }
  0xfb   :  { %v748_v38 = vadd.f32 %v1104_v34, %v984_v27  ;;  %v794_v40 = vadd.f32 %v1129_v36, %v745_v33  ;;  %v1132_v41 = vadd.f32 %v1131_v39, %v1130_v37 }
  0xfd   :  { %v797_v42 = vadd.f32 %v1132_v41, %v748_v38  ;;  %v1105_v43 = vpop.f32.mrb[4].mxu0 }
  0xfe   :  { %v1106_v44 = vpop.f32.mrb[5].mxu0 }
  0xff   :  { %v1107_v45 = vadd.f32 %v1106_v44, %v1105_v43  ;;  %v1108_v46 = vpop.f32.mrb[6].mxu0  ;;  %v1133_v47 = vpop.f32.mrb[4].mxu1 }
 0x100   :  { %v1109_v48 = vpop.f32.mrb[7].mxu0  ;;  %v1134_v51 = vpop.f32.mrb[5].mxu1 }
 0x101   :  { %v753_v49 = vadd.f32 %v1107_v45, %v984_v27  ;;  %v1110_v50 = vadd.f32 %v1109_v48, %v1108_v46  ;;  %v1135_v52 = vadd.f32 %v1134_v51, %v1133_v47  ;;  %v1136_v53 = vpop.f32.mrb[6].mxu1 }
 0x102   :  { %v1137_v55 = vpop.f32.mrb[7].mxu1 }
 0x103   :  { %v756_v54 = vadd.f32 %v1110_v50, %v984_v27  ;;  %v802_v56 = vadd.f32 %v1135_v52, %v753_v49  ;;  %v1138_v57 = vadd.f32 %v1137_v55, %v1136_v53 }
 0x105   :  { %v805_v58 = vadd.f32 %v1138_v57, %v756_v54 }
 0x115   :  { %v1155_v59 = vpop.f32.mrb[8].mxu0 }
 0x116   :  { %v1156_v60 = vpop.f32.mrb[9].mxu0 }
 0x117   :  { %v1157_v61 = vadd.f32 %v1156_v60, %v1155_v59  ;;  %v1158_v62 = vpop.f32.mrb[10].mxu0  ;;  %v1183_v63 = vpop.f32.mrb[8].mxu1 }
 0x118   :  { %v1159_v0 = vpop.f32.mrb[11].mxu0  ;;  %v1184_v3 = vpop.f32.mrb[9].mxu1 }
 0x119   :  { %v843_v1 = vadd.f32 %v1157_v61, %v794_v40  ;;  %v1160_v2 = vadd.f32 %v1159_v0, %v1158_v62  ;;  %v1185_v4 = vadd.f32 %v1184_v3, %v1183_v63  ;;  %v1186_v5 = vpop.f32.mrb[10].mxu1 }
 0x11a   :  { %v1187_v7 = vpop.f32.mrb[11].mxu1 }
 0x11b   :  { %v846_v6 = vadd.f32 %v1160_v2, %v797_v42  ;;  %v1188_v8 = vadd.f32 %v1187_v7, %v1186_v5  ;;  %v892_v9 = vadd.f32 %v1185_v4, %v843_v1 }
 0x11d   :  { %v1161_v10 = vpop.f32.mrb[12].mxu0  ;;  %v895_v12 = vadd.f32 %v1188_v8, %v846_v6 }
 0x11e   :  { %v1162_v11 = vpop.f32.mrb[13].mxu0 }
 0x11f   :  { %v1163_v13 = vadd.f32 %v1162_v11, %v1161_v10  ;;  %v1164_v14 = vpop.f32.mrb[14].mxu0  ;;  %v1189_v15 = vpop.f32.mrb[12].mxu1 }
 0x120   :  { %v1165_v16 = vpop.f32.mrb[15].mxu0  ;;  %v1190_v19 = vpop.f32.mrb[13].mxu1 }
 0x121   :  { %v851_v17 = vadd.f32 %v1163_v13, %v802_v56  ;;  %v1166_v18 = vadd.f32 %v1165_v16, %v1164_v14  ;;  %v1191_v20 = vadd.f32 %v1190_v19, %v1189_v15  ;;  %v1192_v21 = vpop.f32.mrb[14].mxu1 }
 0x122   :  { %v1193_v23 = vpop.f32.mrb[15].mxu1 }
 0x123   :  { %v854_v22 = vadd.f32 %v1166_v18, %v805_v58  ;;  %v1194_v24 = vadd.f32 %v1193_v23, %v1192_v21  ;;  %v900_v25 = vadd.f32 %v1191_v20, %v851_v17 }
 0x125   :  { %v903_v26 = vadd.f32 %v1194_v24, %v854_v22 }
 0x135   :  { %v1223_v27 = vpop.f32.mrb[16].mxu0 }
 0x136   :  { %v949_v28 = vadd.f32 %v1223_v27, %v900_v25  ;;  %v940_v29 = vpop.f32.mrb[17].mxu0 }
 0x137   :  { %v941_v30 = vadd.f32 %v940_v29, %v892_v9  ;;  %v1224_v31 = vpop.f32.mrb[18].mxu0 }
 0x138   :  { %v957_v32 = vmax.f32 %v949_v28, 0.0  ;;  %v952_v33 = vadd.f32 %v1224_v31, %v903_v26  ;;  %v943_v34 = vpop.f32.mrb[19].mxu0 }
 0x139   :  { %v955_v35 = vmax.f32 %v941_v30, 0.0  ;;  %v944_v36 = vadd.f32 %v943_v34, %v895_v12 }
 0x13a   :  { %v1081_v37 = vpack.c.bf16 %v957_v32, %v957_v32  ;;  %v958_v38 = vmax.f32 %v952_v33, 0.0 }
 0x13b   :  { %v1079_v39 = vpack.c.bf16 %v955_v35, %v955_v35  ;;  %v956_v40 = vmax.f32 %v944_v36, 0.0 }
 0x13c   :  { %978 = vst.msk [vmem:[%s1631_s3 + $0x8] sm:$0xf] %vm975_vm0, %v1081_v37  ;;  %v1082_v41 = vpack.c.bf16 %v958_v38, %v958_v38 }
 0x13d   :  { %976 = vst.msk [vmem:[%s1631_s3] sm:$0xf] %vm975_vm0, %v1079_v39  ;;  %v1080_v42 = vpack.c.bf16 %v956_v40, %v956_v40 }
 0x13e   :  { %979 = vst.msk [vmem:[%s1631_s3 + $0xc] sm:$0xf] %vm975_vm0, %v1082_v41 }
 0x13f   :  { %977 = vst.msk [vmem:[%s1631_s3 + $0x4] sm:$0xf] %vm975_vm0, %v1080_v42 }

// kernel: mglnet_forward.127
= control target key start
LH: loop header
LB: loop body
LE: loop exit
PB: predicated region body
PF: predicated region fallthrough
CT: control target
= control target key end

     0   :  { %s2100_s17 = smov 0   ;;  %s2349_s0 = inlined_call_operand.vmem [shape: bf16[2,16,32], index: 0, kind: input, shape index: {}]   ;;  %s2350_s1 = inlined_call_operand.vmem [shape: bf16[2,16,32], index: 1, kind: input, shape index: {}]   ;;  %s2351_s2 = inlined_call_operand.vmem [shape: bf16[32,8], index: 2, kind: input, shape index: {}]   ;;  %s2352_s3 = inlined_call_operand.vmem [shape: f32[1,8], index: 3, kind: input, shape index: {}]   ;;  %s2353_s4 = inlined_call_operand.vmem [shape: bf16[32,8], index: 4, kind: input, shape index: {}]   ;;  %s2354_s5 = inlined_call_operand.vmem [shape: f32[1,8], index: 5, kind: input, shape index: {}]   ;;  %s2355_s6 = inlined_call_operand.vmem [shape: bf16[32,32], index: 6, kind: input, shape index: {}]   ;;  %s2356_s7 = inlined_call_operand.vmem [shape: bf16[32,32], index: 7, kind: input, shape index: {}]   ;;  %s2357_s8 = inlined_call_operand.vmem [shape: bf16[32,32], index: 8, kind: input, shape index: {}]   ;;  %s2358_s9 = inlined_call_operand.vmem [shape: bf16[32,32], index: 9, kind: input, shape index: {}]   ;;  %s2359_s10 = inlined_call_operand.vmem [shape: bf16[2,16,32], index: 10, kind: output, shape index: {0}]   ;;  %s2360_s11 = inlined_call_operand.vmem [shape: bf16[2,16,32], index: 11, kind: output, shape index: {1}]  }
   0x1 LB: > { %s1722_s18 = sadd.s32 4294967295, %s2036_s17   ;;  %p1726_p0 = scmp.ge.s32.totalorder %s2036_s17, 1  ;;  %s2036_s17 = sphi %s2100_s17, %s22_s17  }
   0x2   : > { %p350_p1 = scmp.lt.s32.totalorder %s2036_s17, 3 }
   0x4   : > { %p351_p2 = pnand %p1726_p0, %p350_p1 }
   0x5   : > { %v1980_v0 = vld [vmem:[%s2351_s2] sm:$0xff] (!%p351_p2)   ;;  %v2038_v1 = vmov (!%p351_p2), 0.0   ;;  %v1981_v2 = vld [vmem:[%s2351_s2 + $0x8] sm:$0xff] (!%p351_p2)   ;;  %vm2039_vm0 = vmmov (!%p351_p2), 0   ;;  %p400_p3 = scmp.lt.s32.totalorder (!%p351_p2), %s1722_s18, 1  ;;  %vm453_vm1 = vcmask (!%p351_p2), 261120  }
   0x6   : > { %354 = sbr.rel (%p351_p2) target bundleno = 4490 (0x118a), region = 60  ;;  %1833 = vmatprep.subr.bf16.mxu0 (!%p351_p2), %v2038_v1  ;;  %1841 = vmatprep.subr.bf16.mxu1 (!%p351_p2), %v2038_v1  ;;  %v1735_v4 = vld [vmem:[%s2352_s3] ss:$0 sm:$0xff] (!%p351_p2)  ;;  %vm498_vm2 = vcmask (!%p351_p2), 64512   ;;  %vm552_vm3 = vcmask (!%p351_p2), 130048   ;;  %v1984_v47 = vld [vmem:[%s2353_s4 + $0x8] sm:$0xff] (!%p351_p2)  }
   0x7   : > { %1834 = vmatpush3.bf16.msra.mxu0 (!%p351_p2), %v1980_v0  ;;  %1837 = vmatprep.mubr.msk.bf16.mxu0 (!%p351_p2), %vm2039_vm0, %v2038_v1  ;;  %v1983_v45 = vld [vmem:[%s2353_s4] sm:$0xff] (!%p351_p2)   ;;  %vm823_vm4 = vcmask (!%p351_p2), 1043456   ;;  %vm1560_vm5 = vcmask (!%p351_p2), 257024  }
   0x8   : > { %1835 = vmatprep.subr.bf16.mxu0 (!%p351_p2), %v2038_v1  ;;  %1843 = vmatprep.mubr.msk.bf16.mxu1 (!%p351_p2), %vm2039_vm0, %v2038_v1  ;;  %v1741_v54 = vld [vmem:[%s2354_s5] ss:$0 sm:$0xff] (!%p351_p2) }
   0xb   : > { %1836 = vmatpush3.bf16.msra.mxu0 (!%p351_p2), %v1981_v2 }
   0xc   : > { %1855 = vmatprep.subr.bf16.mxu0 (!%p351_p2), %v2038_v1 }
   0xd   : > { %s2362_s18 = smov (!%p400_p3, %s1722_s18), 1 }
   0xe   : > { %s2121_s23 = sshll.u32 %s2362_s18, 3 }
   0xf   : > { %s404_s26 = scalar_lea.vmem %s2349_s0, %s2121_s23  ;;  %s409_s12 = scalar_lea.vmem %s2350_s1, %s2121_s23 }
  0x10   : > { %v1982_v3 = vld [vmem:[%s404_s26] sm:$0xff]   ;;  %s414_s21 = scalar_lea.vmem %s2359_s10, %s2121_s23  ;;  %s419_s25 = scalar_lea.vmem %s2360_s11, %s2121_s23 }
  0x11   : > { %1838 = vmatmul.mubr.msk.bf16.vlgmr.msra.gmra.mrb[0].mxu0 %vm453_vm1, %v1982_v3  ;;  %1842 = vmatpush3.bf16.msra.mxu1 %v1982_v3  ;;  %v1985_v39 = vld [vmem:[%s409_s12] sm:$0xff]  }
  0x12   : > { %1847 = vmatprep.subr.bf16.mxu1 %v2038_v1  ;;  %1857 = vmatprep.mubr.msk.bf16.mxu0 %vm2039_vm0, %v2038_v1 }
  0x13   : > { %1856 = vmatpush3.bf16.msra.mxu0 %v1985_v39 }
  0x14   : > { %1867 = vmatprep.subr.bf16.mxu0 %v2038_v1 }
  0xe4   : > { %v491_v5 = vpop.f32.mrb[0].mxu0 }
  0xe5   : > { %v492_v6 = vadd.f32 %v1735_v4, %v491_v5  ;;  %v1839_v7 = vpop.f32.mrb[1].mxu0 }
  0xe6   : > { %v494_v8 = vpop.f32.mrb[2].mxu0 }
  0xe7   : > { %v495_v9 = vadd.f32 %v1735_v4, %v494_v8  ;;  %v1840_v10 = vpop.f32.mrb[3].mxu0  ;;  %v499_v11 = vsel %vm498_vm2, %v492_v6, -inf }
  0xe8   : > { %500 = vmax.xlane.f32.xlu0 %v499_v11 }
  0xe9   : > { %v502_v12 = vsel %vm498_vm2, %v495_v9, -inf }
  0xec   : > { %503 = vmax.xlane.f32.xlu0 %v502_v12 }
 0x175   : > { %v501_v13 = vpop.xlane.xlu0 %500 }
 0x176   : > { %v505_v14 = vsub.f32 %v492_v6, %v501_v13 }
 0x178   : > { %v507_v15 = vmul.f32 1.442695, %v505_v14 }
 0x179   : > { %v504_v16 = vpop.xlane.xlu0 %503 }
 0x17a   : > { %1994 = vpow2.f32 %v507_v15  ;;  %v506_v17 = vsub.f32 %v495_v9, %v504_v16 }
 0x17c   : > { %v509_v18 = vmul.f32 1.442695, %v506_v17 }
 0x17e   : > { %1996 = vpow2.f32 %v509_v18 }
 0x184   : > { %v1995_v19 = vpop.eup %1994 }
 0x185   : > { %v511_v20 = vsel %vm498_vm2, %v1995_v19, 0.0 }
 0x186   : > { %512 = vadd.xlane.f32.xlu1 %v511_v20 }
 0x188   : > { %v1997_v21 = vpop.eup %1996 }
 0x189   : > { %v514_v22 = vsel %vm498_vm2, %v1997_v21, 0.0 }
 0x18a   : > { %515 = vadd.xlane.f32.xlu1 %v514_v22 }
 0x213   : > { %v513_v23 = vpop.xlane.xlu1 %512 }
 0x214   : > { %1998 = vrcp.f32 %v513_v23 }
 0x217   : > { %v516_v24 = vpop.xlane.xlu1 %515 }
 0x218   : > { %2000 = vrcp.f32 %v516_v24 }
 0x21e   : > { %v1999_v25 = vpop.eup %1998 }
 0x21f   : > { %v2139_v26 = vmul.f32 %v1999_v25, %v1995_v19 }
 0x221   : > { %v521_v29 = vsel %vm498_vm2, %v2139_v26, 0.0 }
 0x222   : > { %v2001_v27 = vpop.eup %2000 }
 0x223   : > { %v2141_v28 = vmul.f32 %v2001_v27, %v1997_v21 }
 0x225   : > { %v522_v30 = vsel %vm498_vm2, %v2141_v28, 0.0  ;;  %v1503_v31 = vpack.c.bf16 %v2141_v28, %v2139_v26 }
 0x226   : > { %v523_v32 = vadd.f32 %v522_v30, %v521_v29 }
 0x228   : > { %v524_v33 = vrot.slane %v523_v32, 4 }
 0x22a   : > { %v525_v34 = vadd.f32 %v524_v33, %v523_v32 }
 0x22c   : > { %v526_v35 = vrot.slane %v525_v34, 2 }
 0x22e   : > { %v527_v36 = vadd.f32 %v526_v35, %v525_v34 }
 0x230   : > { %v528_v37 = vrot.slane %v527_v36, 1 }
 0x232   : > { %v529_v38 = vadd.f32 %v528_v37, %v527_v36 }
 0x234   : > { %v530_v40 = vadd.f32 1e-06, %v529_v38 }
 0x236   : > { %2002 = vrcp.f32 %v530_v40 }
 0x240   : > { %v2003_v41 = vpop.eup %2002 }
 0x241   : > { %v532_v42 = vmul.f32 %v2003_v41, %v2139_v26  ;;  %v533_v43 = vmul.f32 %v2003_v41, %v2141_v28 }
 0x243   : > { %v534_v44 = vpack.c.bf16 %v533_v43, %v532_v42 }
 0x245   : > { %535 = vxpose.xlu0.c.b16.start.end [1/1] (short) (narrow) %v534_v44, 16 }
 0x2ab   : > { %v543_v46 = vpop.trf.xlu0 }
 0x2ac   : > { %1844 = vmatmul.mubr.msk.bf16.vlgmr.msra.gmra.mrb[0].mxu1 %vm552_vm3, %v543_v46 }
 0x2ad   : > { %1848 = vmatpush3.bf16.msra.mxu1 %v1983_v45  ;;  %1851 = vmatprep.mubr.msk.bf16.mxu1 %vm2039_vm0, %v2038_v1 }
 0x2ae   : > { %1849 = vmatprep.subr.bf16.mxu1 %v2038_v1 }
 0x2b1   : > { %1850 = vmatpush3.bf16.msra.mxu1 %v1984_v47 }
 0x2b2   : > { %1861 = vmatprep.subr.bf16.mxu1 %v2038_v1 }
 0x2b4   : > { %1852 = vmatmul.mubr.msk.bf16.vlgmr.msra.gmra.mrb[4].mxu1 %vm453_vm1, %v1985_v39 }
 0x2b5   : > { %1863 = vmatprep.mubr.msk.bf16.mxu1 %vm2039_vm0, %v2038_v1 }
 0x37f   : > { %v2170_v48 = vpop.f32.mrb[0].mxu1 }
 0x380   : > { %v2174_v49 = vpack.c.bf16 %v2170_v48, %v2170_v48  ;;  %v1845_v50 = vpop.f32.mrb[1].mxu1 }
 0x381   : > { %v593_v51 = vpop.f32.mrb[2].mxu1 }
 0x382   : > { %v1846_v52 = vpop.f32.mrb[3].mxu1  ;;  %v766_v53 = vsel %vm453_vm1, %v2174_v49, 0  ;;  %v824_v45 = vsel %vm823_vm4, %v2174_v49, 0 }
 0x383   : > { %1862 = vmatpush3.bf16.xpose.msra.mxu1 %v766_v53  ;;  %v1987_v52 = vld [vmem:[%s2355_s6 + $0x8] sm:$0xff]  }
 0x384   : > { %1873 = vmatprep.subr.bf16.mxu1 %v2038_v1 }
 0x387   : > { %v661_v55 = vpop.f32.mrb[4].mxu1 }
 0x388   : > { %v662_v56 = vadd.f32 %v1741_v54, %v661_v55  ;;  %v1853_v57 = vpop.f32.mrb[5].mxu1 }
 0x389   : > { %v664_v58 = vpop.f32.mrb[6].mxu1 }
 0x38a   : > { %v665_v59 = vadd.f32 %v1741_v54, %v664_v58  ;;  %v1854_v60 = vpop.f32.mrb[7].mxu1  ;;  %1864 = vmatmul.mubr.msk.bf16.vlgmr.msra.gmra.mrb[8].mxu1 %vm453_vm1, %v2174_v49  ;;  %v668_v61 = vsel %vm498_vm2, %v662_v56, -inf  ;;  %v1986_v49 = vld [vmem:[%s2355_s6] sm:$0xff]  }
 0x38b   : > { %669 = vmax.xlane.f32.xlu1 %v668_v61  ;;  %1877 = vmatprep.mubr.msk.bf16.mxu1 %vm2039_vm0, %v2038_v1 }
 0x38c   : > { %v671_v62 = vsel %vm498_vm2, %v665_v59, -inf  ;;  %1874 = vmatpush3.bf16.msra.mxu1 %v1986_v49 }
 0x38d   : > { %1875 = vmatprep.subr.bf16.mxu1 %v2038_v1 }
 0x38f   : > { %672 = vmax.xlane.f32.xlu1 %v671_v62 }
 0x390   : > { %1876 = vmatpush3.bf16.msra.mxu1 %v1987_v52 }
 0x391   : > { %1887 = vmatprep.subr.bf16.mxu1 %v2038_v1 }
 0x418   : > { %v670_v63 = vpop.xlane.xlu1 %669 }
 0x419   : > { %v674_v0 = vsub.f32 %v662_v56, %v670_v63 }
 0x41b   : > { %v676_v2 = vmul.f32 1.442695, %v674_v0 }
 0x41c   : > { %v673_v3 = vpop.xlane.xlu1 %672 }
 0x41d   : > { %2004 = vpow2.f32 %v676_v2  ;;  %v675_v4 = vsub.f32 %v665_v59, %v673_v3 }
 0x41f   : > { %v678_v5 = vmul.f32 1.442695, %v675_v4 }
 0x421   : > { %2006 = vpow2.f32 %v678_v5 }
 0x427   : > { %v2005_v6 = vpop.eup %2004 }
 0x428   : > { %v680_v7 = vsel %vm498_vm2, %v2005_v6, 0.0 }
 0x429   : > { %681 = vadd.xlane.f32.xlu1 %v680_v7 }
 0x42b   : > { %v2007_v8 = vpop.eup %2006 }
 0x42c   : > { %v683_v9 = vsel %vm498_vm2, %v2007_v8, 0.0 }
 0x42d   : > { %684 = vadd.xlane.f32.xlu1 %v683_v9 }
 0x45d   : > { %v802_v10 = vpop.f32.mrb[8].mxu1 }
 0x45e   : > { %v1865_v11 = vpop.f32.mrb[9].mxu1  ;;  %v808_v12 = vsel %vm498_vm2, %v802_v10, -inf }
 0x45f   : > { %809 = vmax.xlane.f32.xlu0 %v808_v12  ;;  %v805_v13 = vpop.f32.mrb[10].mxu1 }
 0x460   : > { %v1866_v14 = vpop.f32.mrb[11].mxu1 }
 0x4b6   : > { %v682_v15 = vpop.xlane.xlu1 %681 }
 0x4b7   : > { %2008 = vrcp.f32 %v682_v15 }
 0x4ba   : > { %v685_v16 = vpop.xlane.xlu1 %684 }
 0x4bb   : > { %2010 = vrcp.f32 %v685_v16 }
 0x4c1   : > { %v2009_v17 = vpop.eup %2008 }
 0x4c2   : > { %v2191_v18 = vmul.f32 %v2009_v17, %v2005_v6  ;;  %v1990_v17 = vld [vmem:[%s2356_s7] sm:$0xff]  }
 0x4c4   : > { %v690_v21 = vsel %vm498_vm2, %v2191_v18, 0.0 }
 0x4c5   : > { %v2011_v19 = vpop.eup %2010 }
 0x4c6   : > { %v2193_v20 = vmul.f32 %v2011_v19, %v2007_v8 }
 0x4c8   : > { %v691_v22 = vsel %vm498_vm2, %v2193_v20, 0.0  ;;  %v1563_v23 = vpack.c.bf16 %v2193_v20, %v2191_v18 }
 0x4c9   : > { %v692_v24 = vadd.f32 %v691_v22, %v690_v21  ;;  %v1988_v22 = vld [vmem:[%s2357_s8] sm:$0xff]  }
 0x4cb   : > { %v693_v25 = vrot.slane %v692_v24, 4 }
 0x4cd   : > { %v694_v27 = vadd.f32 %v693_v25, %v692_v24  ;;  %v1989_v25 = vld [vmem:[%s2357_s8 + $0x8] sm:$0xff]  }
 0x4cf   : > { %v695_v29 = vrot.slane %v694_v27, 2 }
 0x4d1   : > { %v696_v30 = vadd.f32 %v695_v29, %v694_v27 }
 0x4d3   : > { %v697_v32 = vrot.slane %v696_v30, 1 }
 0x4d5   : > { %v698_v33 = vadd.f32 %v697_v32, %v696_v30  ;;  %v1991_v30 = vld [vmem:[%s2356_s7 + $0x8] sm:$0xff]  }
 0x4d7   : > { %v699_v34 = vadd.f32 1e-06, %v698_v33 }
 0x4d9   : > { %2012 = vrcp.f32 %v699_v34 }
 0x4e3   : > { %v2013_v35 = vpop.eup %2012 }
 0x4e4   : > { %v701_v36 = vmul.f32 %v2013_v35, %v2191_v18  ;;  %v702_v37 = vmul.f32 %v2013_v35, %v2193_v20 }
 0x4e6   : > { %v703_v38 = vpack.c.bf16 %v702_v37, %v701_v36 }
 0x4e8   : > { %704 = vxpose.xlu1.c.b16.start.end [1/1] (short) (narrow) %v703_v38, 16 }
 0x4ec   : > { %v810_v39 = vpop.xlane.xlu0 %809 }
 0x4ed   : > { %v811_v40 = vsub.f32 %v802_v10, %v810_v39 }
 0x4ef   : > { %v812_v41 = vmul.f32 1.442695, %v811_v40 }
 0x4f1   : > { %2014 = vpow2.f32 %v812_v41  ;;  %v1992_v41 = vld [vmem:[%s2358_s9] sm:$0xff]  }
 0x4fb   : > { %v2015_v42 = vpop.eup %2014 }
 0x4fc   : > { %v814_v43 = vsel %vm498_vm2, %v2015_v42, 0.0 }
 0x4fd   : > { %815 = vadd.xlane.f32.xlu0 %v814_v43 }
 0x54e   : > { %v712_v44 = vpop.trf.xlu1 }
 0x54f   : > { %1858 = vmatmul.mubr.msk.bf16.vlgmr.msra.gmra.mrb[4].mxu0 %vm552_vm3, %v712_v44 }
 0x550   : > { %1868 = vmatpush3.bf16.msra.mxu0 %v824_v45  ;;  %1869 = vmatprep.mubr.msk.bf16.mxu0 %vm2039_vm0, %v2038_v1 }
 0x551   : > { %1881 = vmatprep.subr.bf16.mxu0 %v2038_v1 }
 0x58a   : > { %v816_v46 = vpop.xlane.xlu0 %815 }
 0x58b   : > { %2016 = vrcp.f32 %v816_v46 }
 0x595   : > { %v2017_v47 = vpop.eup %2016 }
 0x596   : > { %v818_v50 = vmul.f32 %v2017_v47, %v2015_v42  ;;  %v1993_v42 = vld [vmem:[%s2358_s9 + $0x8] sm:$0xff]  }
 0x598   : > { %v819_v51 = vpack.c.bf16 %v818_v50, %v818_v50 }
 0x59a   : > { %1870 = vmatmul.mubr.msk.bf16.vlgmr.msra.gmra.mrb[8].mxu0 %vm498_vm2, %v819_v51 }
 0x59b   : > { %1883 = vmatprep.mubr.msk.bf16.mxu0 %vm2039_vm0, %v2038_v1 }
 0x622   : > { %v2221_v53 = vpop.f32.mrb[4].mxu0 }
 0x623   : > { %v927_v54 = vpack.c.bf16 %v2221_v53, %v2221_v53  ;;  %v1859_v55 = vpop.f32.mrb[5].mxu0 }
 0x624   : > { %v761_v56 = vpop.f32.mrb[6].mxu0 }
 0x625   : > { %v1860_v57 = vpop.f32.mrb[7].mxu0  ;;  %v929_v58 = vsel %vm453_vm1, %v927_v54, 0  ;;  %v986_v0 = vsel %vm823_vm4, %v927_v54, 0 }
 0x626   : > { %1882 = vmatpush3.bf16.xpose.msra.mxu0 %v929_v58 }
 0x627   : > { %1893 = vmatprep.subr.bf16.mxu0 %v2038_v1 }
 0x62d   : > { %1884 = vmatmul.mubr.msk.bf16.vlgmr.msra.gmra.mrb[12].mxu0 %vm453_vm1, %v927_v54 }
 0x62e   : > { %1897 = vmatprep.mubr.msk.bf16.mxu0 %vm2039_vm0, %v2038_v1  ;;  %1894 = vmatpush3.bf16.msra.mxu0 %v1990_v17 }
 0x62f   : > { %1895 = vmatprep.subr.bf16.mxu0 %v2038_v1 }
 0x632   : > { %1896 = vmatpush3.bf16.msra.mxu0 %v1991_v30 }
 0x633   : > { %1909 = vmatprep.subr.bf16.mxu0 %v2038_v1 }
 0x66d   : > { %v860_v59 = vpop.f32.mrb[8].mxu0 }
 0x66e   : > { %v866_v60 = vpack.c.bf16 %v860_v59, %v860_v59  ;;  %v1871_v61 = vpop.f32.mrb[9].mxu0 }
 0x66f   : > { %v863_v62 = vpop.f32.mrb[10].mxu0 }
 0x670   : > { %v1872_v63 = vpop.f32.mrb[11].mxu0  ;;  %1878 = vmatmul.mubr.msk.bf16.vlgmr.msra.gmra.mrb[12].mxu1 %vm453_vm1, %v866_v60 }
 0x671   : > { %1888 = vmatpush3.bf16.msra.mxu1 %v986_v0  ;;  %1889 = vmatprep.mubr.msk.bf16.mxu1 %vm2039_vm0, %v2038_v1 }
 0x672   : > { %1901 = vmatprep.subr.bf16.mxu1 %v2038_v1 }
 0x700   : > { %v965_v2 = vpop.f32.mrb[12].mxu0 }
 0x701   : > { %v1885_v3 = vpop.f32.mrb[13].mxu0  ;;  %v971_v4 = vsel %vm498_vm2, %v965_v2, -inf }
 0x702   : > { %972 = vmax.xlane.f32.xlu1 %v971_v4  ;;  %v968_v5 = vpop.f32.mrb[14].mxu0 }
 0x703   : > { %v1886_v6 = vpop.f32.mrb[15].mxu0 }
 0x743   : > { %v920_v7 = vpop.f32.mrb[12].mxu1 }
 0x744   : > { %v921_v8 = vadd.f32 %v920_v7, %v2170_v48  ;;  %v1879_v9 = vpop.f32.mrb[13].mxu1 }
 0x745   : > { %v923_v10 = vpop.f32.mrb[14].mxu1 }
 0x746   : > { %v1880_v11 = vpop.f32.mrb[15].mxu1  ;;  %v2251_v27 = vmax.f32 %v921_v8, 0.0 }
 0x748   : > { %v2256_v29 = vpack.c.bf16 %v2251_v27, %v2251_v27 }
 0x78f   : > { %v973_v12 = vpop.xlane.xlu1 %972 }
 0x790   : > { %v974_v13 = vsub.f32 %v965_v2, %v973_v12 }
 0x792   : > { %v975_v14 = vmul.f32 1.442695, %v974_v13 }
 0x794   : > { %2018 = vpow2.f32 %v975_v14 }
 0x79e   : > { %v2019_v15 = vpop.eup %2018 }
 0x79f   : > { %v977_v16 = vsel %vm498_vm2, %v2019_v15, 0.0 }
 0x7a0   : > { %978 = vadd.xlane.f32.xlu0 %v977_v16 }
 0x82d   : > { %v979_v19 = vpop.xlane.xlu0 %978 }
 0x82e   : > { %2020 = vrcp.f32 %v979_v19 }
 0x838   : > { %v2021_v48 = vpop.eup %2020 }
 0x839   : > { %v981_v21 = vmul.f32 %v2021_v48, %v2019_v15  ;;  %v1460_v15 = vsel %vm823_vm4, %v2256_v29, 0 }
 0x83b   : > { %v982_v24 = vpack.c.bf16 %v981_v21, %v981_v21 }
 0x83d   : > { %1890 = vmatmul.mubr.msk.bf16.vlgmr.msra.gmra.mrb[16].mxu1 %vm498_vm2, %v982_v24 }
 0x83e   : > { %1902 = vmatpush3.bf16.msra.mxu1 %v1988_v22  ;;  %1905 = vmatprep.mubr.msk.bf16.mxu1 %vm2039_vm0, %v2038_v1 }
 0x83f   : > { %1903 = vmatprep.subr.bf16.mxu1 %v2038_v1 }
 0x842   : > { %1904 = vmatpush3.bf16.msra.mxu1 %v1989_v25 }
 0x843   : > { %1917 = vmatprep.subr.bf16.mxu1 %v2038_v1 }
 0x845   : > { %1906 = vmatmul.mubr.msk.bf16.vlgmr.msra.gmra.mrb[20].mxu1 %vm453_vm1, %v2256_v29 }
 0x846   : > { %1919 = vmatprep.mubr.msk.bf16.mxu1 %vm2039_vm0, %v2038_v1 }
 0x910   : > { %v1022_v32 = vpop.f32.mrb[16].mxu1 }
 0x911   : > { %v1028_v33 = vpack.c.bf16 %v1022_v32, %v1022_v32  ;;  %v1891_v34 = vpop.f32.mrb[17].mxu1 }
 0x912   : > { %v1025_v35 = vpop.f32.mrb[18].mxu1 }
 0x913   : > { %v1892_v36 = vpop.f32.mrb[19].mxu1  ;;  %1898 = vmatmul.mubr.msk.bf16.vlgmr.msra.gmra.mrb[16].mxu0 %vm453_vm1, %v1028_v33 }
 0x914   : > { %1913 = vmatprep.mubr.msk.bf16.mxu0 %vm2039_vm0, %v2038_v1  ;;  %1910 = vmatpush3.bf16.msra.mxu0 %v1992_v41 }
 0x915   : > { %1911 = vmatprep.subr.bf16.mxu0 %v2038_v1 }
 0x918   : > { %v1144_v37 = vpop.f32.mrb[20].mxu1  ;;  %1912 = vmatpush3.bf16.msra.mxu0 %v1993_v42 }
 0x919   : > { %v1907_v38 = vpop.f32.mrb[21].mxu1  ;;  %1923 = vmatprep.subr.bf16.mxu0 %v2038_v1  ;;  %v1209_v58 = vpack.c.bf16 %v1144_v37, %v1144_v37 }
 0x91a   : > { %v1147_v39 = vpop.f32.mrb[22].mxu1 }
 0x91b   : > { %v1908_v40 = vpop.f32.mrb[23].mxu1 }
 0x9e6   : > { %v1082_v43 = vpop.f32.mrb[16].mxu0 }
 0x9e7   : > { %v1083_v44 = vadd.f32 %v1082_v43, %v2221_v53  ;;  %v1899_v45 = vpop.f32.mrb[17].mxu0 }
 0x9e8   : > { %v1085_v46 = vpop.f32.mrb[18].mxu0 }
 0x9e9   : > { %v2279_v47 = vmax.f32 %v1083_v44, 0.0  ;;  %v1900_v50 = vpop.f32.mrb[19].mxu0 }
 0x9eb   : > { %v1090_v51 = vpack.c.bf16 %v2279_v47, %v2279_v47 }
 0x9ed   : > { %1914 = vmatmul.mubr.msk.bf16.vlgmr.msra.gmra.mrb[20].mxu0 %vm453_vm1, %v1090_v51  ;;  %v1273_v49 = vsel %vm823_vm4, %v1090_v51, 0 }
 0x9ee   : > { %1924 = vmatpush3.bf16.msra.mxu0 %v1273_v49  ;;  %1925 = vmatprep.mubr.msk.bf16.mxu0 %vm2039_vm0, %v2038_v1 }
 0x9ef   : > { %1937 = vmatprep.subr.bf16.mxu0 %v2038_v1 }
 0xac0   : > { %v1203_v52 = vpop.f32.mrb[20].mxu0 }
 0xac1   : > { %v1210_v53 = vpack.c.bf16 %v1203_v52, %v1203_v52  ;;  %v1915_v54 = vpop.f32.mrb[21].mxu0 }
 0xac2   : > { %v1206_v55 = vpop.f32.mrb[22].mxu0 }
 0xac3   : > { %v1215_v56 = vsel %vm453_vm1, %v1210_v53, 0  ;;  %v1916_v57 = vpop.f32.mrb[23].mxu0 }
 0xac4   : > { %1918 = vmatpush3.bf16.xpose.msra.mxu1 %v1215_v56 }
 0xac5   : > { %1929 = vmatprep.subr.bf16.mxu1 %v2038_v1 }
 0xacb   : > { %1920 = vmatmul.mubr.msk.bf16.vlgmr.msra.gmra.mrb[24].mxu1 %vm453_vm1, %v1209_v58 }
 0xacc   : > { %1930 = vmatpush3.bf16.msra.mxu1 %v1988_v22  ;;  %1933 = vmatprep.mubr.msk.bf16.mxu1 %vm2039_vm0, %v2038_v1 }
 0xacd   : > { %1931 = vmatprep.subr.bf16.mxu1 %v2038_v1 }
 0xad0   : > { %1932 = vmatpush3.bf16.msra.mxu1 %v1989_v25 }
 0xad1   : > { %1945 = vmatprep.subr.bf16.mxu1 %v2038_v1 }
 0xad3   : > { %1934 = vmatmul.mubr.msk.bf16.vlgmr.msra.gmra.mrb[28].mxu1 %vm453_vm1, %v1090_v51 }
 0xad4   : > { %1947 = vmatprep.mubr.msk.bf16.mxu1 %vm2039_vm0, %v2038_v1 }
 0xb9e   : > { %v1251_v59 = vpop.f32.mrb[24].mxu1 }
 0xb9f   : > { %v1257_v60 = vmul.f32 0.17677669, %v1251_v59  ;;  %v1921_v61 = vpop.f32.mrb[25].mxu1 }
 0xba0   : > { %v1254_v62 = vpop.f32.mrb[26].mxu1 }
 0xba1   : > { %v1922_v63 = vpop.f32.mrb[27].mxu1  ;;  %v1258_v0 = vsel %vm498_vm2, %v1257_v60, -inf }
 0xba2   : > { %1259 = vmax.xlane.f32.xlu0 %v1258_v0 }
 0xba6   : > { %v1350_v2 = vpop.f32.mrb[28].mxu1 }
 0xba7   : > { %v1935_v3 = vpop.f32.mrb[29].mxu1  ;;  %v1396_v34 = vpack.c.bf16 %v1350_v2, %v1350_v2 }
 0xba8   : > { %v1353_v4 = vpop.f32.mrb[30].mxu1 }
 0xba9   : > { %v1936_v5 = vpop.f32.mrb[31].mxu1 }
 0xc2f   : > { %v1260_v6 = vpop.xlane.xlu0 %1259 }
 0xc30   : > { %v1261_v7 = vsub.f32 %v1257_v60, %v1260_v6 }
 0xc32   : > { %v1262_v8 = vmul.f32 1.442695, %v1261_v7 }
 0xc34   : > { %2022 = vpow2.f32 %v1262_v8 }
 0xc3e   : > { %v2023_v9 = vpop.eup %2022 }
 0xc3f   : > { %v1264_v10 = vsel %vm498_vm2, %v2023_v9, 0.0 }
 0xc40   : > { %1265 = vadd.xlane.f32.xlu0 %v1264_v10 }
 0xccd   : > { %v1266_v11 = vpop.xlane.xlu0 %1265 }
 0xcce   : > { %2024 = vrcp.f32 %v1266_v11 }
 0xcd8   : > { %v2025_v12 = vpop.eup %2024 }
 0xcd9   : > { %v1268_v13 = vmul.f32 %v2025_v12, %v2023_v9 }
 0xcdb   : > { %v1269_v14 = vpack.c.bf16 %v1268_v13, %v1268_v13 }
 0xcdd   : > { %1926 = vmatmul.mubr.msk.bf16.vlgmr.msra.gmra.mrb[24].mxu0 %vm498_vm2, %v1269_v14 }
 0xcde   : > { %1938 = vmatpush3.bf16.msra.mxu0 %v1992_v41  ;;  %1941 = vmatprep.mubr.msk.bf16.mxu0 %vm2039_vm0, %v2038_v1 }
 0xcdf   : > { %1939 = vmatprep.subr.bf16.mxu0 %v2038_v1 }
 0xce2   : > { %1940 = vmatpush3.bf16.msra.mxu0 %v1993_v42 }
 0xce3   : > { %1951 = vmatprep.subr.bf16.mxu0 %v2038_v1 }
 0xce5   : > { %1942 = vmatmul.mubr.msk.bf16.vlgmr.msra.gmra.mrb[28].mxu0 %vm453_vm1, %v2256_v29 }
 0xce6   : > { %1952 = vmatpush3.bf16.msra.mxu0 %v1460_v15  ;;  %1953 = vmatprep.mubr.msk.bf16.mxu0 %vm2039_vm0, %v2038_v1 }
 0xce7   : > { %1963 = vmatprep.subr.bf16.mxu0 %v2038_v1 }
 0xdb0   : > { %v1309_v16 = vpop.f32.mrb[24].mxu0 }
 0xdb1   : > { %v1927_v17 = vpop.f32.mrb[25].mxu0  ;;  %v1315_v30 = vadd.f32 %v1309_v16, %v2251_v27 }
 0xdb2   : > { %v1312_v19 = vpop.f32.mrb[26].mxu0 }
 0xdb3   : > { %v1928_v48 = vpop.f32.mrb[27].mxu0  ;;  %v1504_v29 = vpack.c.bf16 %v1315_v30, %v1315_v30 }
 0xdb5   : > { %v1509_v35 = vsel %vm823_vm4, %v1504_v29, 0 }
 0xdb8   : > { %v1390_v21 = vpop.f32.mrb[28].mxu0 }
 0xdb9   : > { %v1397_v22 = vpack.c.bf16 %v1390_v21, %v1390_v21  ;;  %v1943_v24 = vpop.f32.mrb[29].mxu0 }
 0xdba   : > { %v1393_v25 = vpop.f32.mrb[30].mxu0 }
 0xdbb   : > { %v1402_v32 = vsel %vm453_vm1, %v1397_v22, 0  ;;  %v1944_v33 = vpop.f32.mrb[31].mxu0 }
 0xdbc   : > { %1946 = vmatpush3.bf16.xpose.msra.mxu1 %v1402_v32 }
 0xdbd   : > { %1957 = vmatprep.subr.bf16.mxu1 %v2038_v1 }
 0xdc3   : > { %1948 = vmatmul.mubr.msk.bf16.vlgmr.msra.gmra.mrb[32].mxu1 %vm453_vm1, %v1396_v34 }
 0xdc4   : > { %1958 = vmatpush3.bf16.msra.mxu1 %v1509_v35  ;;  %1959 = vmatprep.mubr.msk.bf16.mxu1 %vm2039_vm0, %v2038_v1 }
 0xdcb   : > { %1960 = vmatmul.mubr.msk.bf16.vlgmr.msra.gmra.mrb[36].mxu1 %vm498_vm2, %v1503_v31 }
 0xe96   : > { %v1438_v27 = vpop.f32.mrb[32].mxu1 }
 0xe97   : > { %v1444_v36 = vmul.f32 0.17677669, %v1438_v27  ;;  %v1949_v37 = vpop.f32.mrb[33].mxu1 }
 0xe98   : > { %v1441_v38 = vpop.f32.mrb[34].mxu1 }
 0xe99   : > { %v1950_v39 = vpop.f32.mrb[35].mxu1  ;;  %v1445_v40 = vsel %vm498_vm2, %v1444_v36, -inf }
 0xe9a   : > { %1446 = vmax.xlane.f32.xlu0 %v1445_v40 }
 0xe9e   : > { %v1545_v41 = vpop.f32.mrb[36].mxu1 }
 0xe9f   : > { %v1781_v42 = vpack.c.bf16 %v1545_v41, %v1545_v41  ;;  %v1961_v43 = vpop.f32.mrb[37].mxu1 }
 0xea0   : > { %v1548_v44 = vpop.f32.mrb[38].mxu1 }
 0xea1   : > { %1561 = vst.msk [vmem:[%s414_s21] sm:$0xf] %vm1560_vm5, %v1781_v42  ;;  %v1782_v26 = vpack.c.bf16 %v1548_v44, %v1548_v44  ;;  %v1962_v28 = vpop.f32.mrb[39].mxu1 }
 0xea3   : > { %1562 = vst.msk [vmem:[%s414_s21 + $0x4] sm:$0xf] %vm1560_vm5, %v1782_v26 }
 0xf27   : > { %v1447_v31 = vpop.xlane.xlu0 %1446 }
 0xf28   : > { %v1448_v45 = vsub.f32 %v1444_v36, %v1447_v31 }
 0xf2a   : > { %v1449_v46 = vmul.f32 1.442695, %v1448_v45 }
 0xf2c   : > { %2026 = vpow2.f32 %v1449_v46 }
 0xf36   : > { %v2027_v50 = vpop.eup %2026 }
 0xf37   : > { %v1451_v51 = vsel %vm498_vm2, %v2027_v50, 0.0 }
 0xf38   : > { %1452 = vadd.xlane.f32.xlu1 %v1451_v51 }
 0xfc5   : > { %v1453_v49 = vpop.xlane.xlu1 %1452 }
 0xfc6   : > { %2028 = vrcp.f32 %v1453_v49 }
 0xfd0   : > { %v2029_v52 = vpop.eup %2028 }
 0xfd1   : > { %v1455_v53 = vmul.f32 %v2029_v52, %v2027_v50 }
 0xfd3   : > { %v1456_v54 = vpack.c.bf16 %v1455_v53, %v1455_v53 }
 0xfd5   : > { %1954 = vmatmul.mubr.msk.bf16.vlgmr.msra.gmra.mrb[32].mxu0 %vm498_vm2, %v1456_v54 }
 0xfd6   : > { %1965 = vmatprep.mubr.msk.bf16.mxu0 %vm2039_vm0, %v2038_v1 }
0x10a8   : > { %v1496_v55 = vpop.f32.mrb[32].mxu0 }
0x10a9   : > { %v1502_v56 = vadd.f32 %v1496_v55, %v2279_v47  ;;  %v1955_v57 = vpop.f32.mrb[33].mxu0 }
0x10aa   : > { %v1499_v58 = vpop.f32.mrb[34].mxu0 }
0x10ab   : > { %v1564_v59 = vpack.c.bf16 %v1502_v56, %v1502_v56  ;;  %v1956_v60 = vpop.f32.mrb[35].mxu0 }
0x10ad   : > { %v1569_v61 = vsel %vm823_vm4, %v1564_v59, 0 }
0x10ae   : > { %1964 = vmatpush3.bf16.msra.mxu0 %v1569_v61 }
0x10b1   : > { %1966 = vmatmul.mubr.msk.bf16.vlgmr.msra.gmra.mrb[36].mxu0 %vm498_vm2, %v1563_v23 }
0x1184   : > { %v1605_v1 = vpop.f32.mrb[36].mxu0 }
0x1185   : > { %v1783_v62 = vpack.c.bf16 %v1605_v1, %v1605_v1  ;;  %v1967_v63 = vpop.f32.mrb[37].mxu0 }
0x1186   : > { %v1608_v47 = vpop.f32.mrb[38].mxu0 }
0x1187   : > { %1620 = vst.msk [vmem:[%s419_s25] sm:$0xf] %vm1560_vm5, %v1783_v62  ;;  %v1784_v0 = vpack.c.bf16 %v1608_v47, %v1608_v47  ;;  %v1968_v2 = vpop.f32.mrb[39].mxu0 }
0x1189   : > { %1621 = vst.msk [vmem:[%s419_s25 + $0x4] sm:$0xf] %vm1560_vm5, %v1784_v0 }
0x118a PF: > { %s22_s17 = sadd.s32 1, %s2036_s17  }
0x118b   : > { %p19_p4 = scmp.ge.s32.totalorder %s22_s17, 4  }
0x118d   :  { %21 = sbr.rel (!%p19_p4) target bundleno = 1 (0x1), region = 105 }

</bundles_post_ra>
